<compile_context>
chip_gen: v7x
topology: tpu7x:2x2x1
jax: 0.10.0
libtpu: 0.0.40
codegen_flags: <defaults>
</compile_context>

<pallas_src>
import functools

import jax
import jax.numpy as jnp
import numpy as np
from jax import lax
from jax.experimental import pallas as pl
from jax.experimental.pallas import tpu as pltpu

NEG_SLOPE = 0.01   # F.leaky_relu_ default and GATConv negative_slope
LANE = 128         # TPU lane width: feature dims padded to this
SUB = 8            # f32 sublane width: small row dims padded to this


def _rup(v, m):
    return ((v + m - 1) // m) * m


# ---------------------------------------------------------------------------
# Fused Pallas kernel: the entire forward pass, everything VMEM-resident.
# ---------------------------------------------------------------------------

def _fused_kernel(eidx_ref,       # [2, EP]  int32  rows: (edge_src, edge_dst), sentinel-padded
                  esrc_col_ref,   # [EP, 1]  int32  edge_src as a column (for the edge gather)
                  batch_row_ref,  # [1, NP]  int32  node -> molecule, sentinel-padded
                  x_ref,          # [NP, INP] f32
                  eattr_ref,      # [EP, EDP] f32
                  desc_ref,       # [BP, DP]  f32
                  wsq_ref,        # [NW, 128, 128] bf16  all 128x128 weights
                  brow_ref,       # [NB, 1, 128]   f32   all bias / attention rows
                  attpair_ref,    # [max(L,1), 2, 128] f32  per-atom-layer (att_src, att_dst)
                  gwih_ref,       # [NG, 128, 384] bf16  GRU w_ih, gates at lanes 0/128/256
                  gwhh_ref,       # [NG, 128, 384] bf16  GRU w_hh
                  gb_ref,         # [NG, 2, 384]   f32   GRU biases (row0=b_ih, row1=b_hh)
                  out_ref,        # [BP, 128] f32   prediction in column 0
                  *, n_atom_layers, num_timesteps):
    f32 = jnp.float32
    NP = x_ref.shape[0]
    EP = eattr_ref.shape[0]
    BP = desc_ref.shape[0]
    HP = LANE
    L = n_atom_layers

    # static slab indices (must match pack_params order)
    IW_LIN1, IW_GWX, IW_GWE, IW_GW2, IW_ATOM0 = 0, 1, 2, 3, 4
    IW_MOL = 4 + L
    IW_META1, IW_M2A, IW_M2B, IW_M3A, IW_M3B = 5 + L, 6 + L, 7 + L, 8 + L, 9 + L
    IW_C1D, IW_C1H, IW_C2, IW_C3 = 10 + L, 11 + L, 12 + L, 13 + L
    IB_LIN1, IB_ATTL, IB_ATTR, IB_GBIAS, IB_ABIAS0 = 0, 1, 2, 3, 4
    IB_MATTS, IB_MWADST, IB_MBIAS = 4 + L, 5 + L, 6 + L
    IB_M1, IB_M2A, IB_M2B, IB_M3 = 7 + L, 8 + L, 9 + L, 10 + L
    IB_C1, IB_C2, IB_C3 = 11 + L, 12 + L, 13 + L

    def dot(a, b):
        return jnp.dot(a, b, preferred_element_type=f32)

    def W(k):                       # bf16 weight tile -> f32 (cast hides under MXU work)
        return wsq_ref[k].astype(f32)

    def B(k):                       # [1, 128] f32 bias / attention row
        return brow_ref[k]

    def leaky(v):
        return jnp.where(v > 0, v, NEG_SLOPE * v)

    def elu(v):
        return jnp.where(v > 0, v, jnp.exp(jnp.minimum(v, 0.0)) - 1.0)

    def relu(v):
        return jnp.maximum(v, 0.0)

    def scores(att_rows, feats):
        # [A, HP] x [R, HP]^T -> [A, R]  (fused attention-logit matvecs)
        return lax.dot_general(att_rows, feats, (((1,), (1,)), ((), ())),
                               preferred_element_type=f32)

    def seg_softmax_agg(mask, logits_row, messages, bias_row):
        # Per-segment (row of `mask`) softmax over columns + weighted sum + bias.
        lg = jnp.where(mask, logits_row, -1e30)
        mx = jnp.max(lg, axis=-1, keepdims=True)
        ex = jnp.where(mask, jnp.exp(lg - mx), 0.0)
        denom = jnp.sum(ex, axis=-1, keepdims=True) + 1e-16        # PyG softmax eps
        w = ex * pl.reciprocal(denom, approx=False)                # exact (review item)
        return dot(w, messages) + bias_row

    def gru_relu(h_in, h_prev, g):
        # PyTorch GRUCell (gates r,z,n at lane offsets 0/128/256): 2 MXU passes, not 6.
        gb = gb_ref[g]                                             # [2, 384]
        gi = dot(h_in, gwih_ref[g].astype(f32)) + gb[0:1, :]
        gh = dot(h_prev, gwhh_ref[g].astype(f32)) + gb[1:2, :]
        r = jax.nn.sigmoid(gi[:, 0:HP] + gh[:, 0:HP])
        z = jax.nn.sigmoid(gi[:, HP:2 * HP] + gh[:, HP:2 * HP])
        n = jnp.tanh(gi[:, 2 * HP:3 * HP] + r * gh[:, 2 * HP:3 * HP])
        return relu((1.0 - z) * n + z * h_prev)

    # ---- segment masks / gather matrices from int32 index vectors (hoisted) ------
    # TODO(synk): dense one-hot masks are O(N*E); switch to index-based gathers for
    # real batched graphs.
    eidx = eidx_ref[...]
    node_iota = lax.broadcasted_iota(jnp.int32, (NP, EP), 0)
    s_src_f = (node_iota == eidx[0:1, :]).astype(f32)                               # [NP, EP]
    s_dst = node_iota == eidx[1:2, :]                                               # [NP, EP]
    s_dst_f = s_dst.astype(f32)
    g_src_f = (lax.broadcasted_iota(jnp.int32, (EP, NP), 1)
               == esrc_col_ref[...]).astype(f32)                                    # [EP, NP]
    s_mol = lax.broadcasted_iota(jnp.int32, (BP, NP), 0) == batch_row_ref[...]      # [BP, NP]
    s_mol_f = s_mol.astype(f32)

    # ---- x = leaky_relu(lin1(x)) --------------------------------------------------
    x = leaky(dot(x_ref[...], W(IW_LIN1)) + B(IB_LIN1))                             # [NP, HP]

    # ---- GATEConv + GRU ------------------------------------------------------------
    x_src = dot(g_src_f, x)                                                         # x[edge_src]
    xj_p = leaky(dot(x_src, W(IW_GWX)) + dot(eattr_ref[...], W(IW_GWE)))
    alpha_j = scores(B(IB_ATTL), xj_p)                                              # [1, EP]
    alpha_i = dot(scores(B(IB_ATTR), x), s_dst_f)                                   # dst score -> edges
    logits = leaky(alpha_j + alpha_i)
    msg = dot(x_src, W(IW_GW2))                              # lin2(raw x_j), per the spec
    h = elu(seg_softmax_agg(s_dst, logits, msg, B(IB_GBIAS)))
    x = gru_relu(h, x, 0)

    # ---- atom-level GATConv + GRU layers -------------------------------------------
    for l in range(L):
        xp = dot(x, W(IW_ATOM0 + l))
        both = scores(attpair_ref[l], xp)                    # [2, NP]: src & dst scores, one pass
        a_se = dot(both[0:1, :], s_src_f)                    # [1, EP]
        a_de = dot(both[1:2, :], s_dst_f)
        logits = leaky(a_se + a_de)
        msg = dot(g_src_f, xp)                               # xp[edge_src]
        h = elu(seg_softmax_agg(s_dst, logits, msg, B(IB_ABIAS0 + l)))
        x = gru_relu(h, x, 1 + l)

    # ---- molecule readout: global_add_pool + GAT(atom->mol) + GRU timesteps --------
    out = relu(dot(s_mol_f, x))                                                     # [BP, HP]
    xp = dot(x, W(IW_MOL))                                   # x fixed in the loop: hoisted
    a_src = scores(B(IB_MATTS), xp)                                                 # [1, NP]
    for _ in range(num_timesteps):
        # att_dst . (out @ W) == out . (W @ att_dst);  W@att_dst precomputed at pack time
        a_dst = dot(scores(B(IB_MWADST), out), s_mol_f)                             # [1, NP]
        logits = leaky(a_src + a_dst)
        h = elu(seg_softmax_agg(s_mol, logits, xp, B(IB_MBIAS)))                    # [BP, HP]
        out = gru_relu(h, out, 1 + L)

    # ---- descriptor MLP (BN folded, eval) + combined head ---------------------------
    d = relu(dot(desc_ref[...], W(IW_META1)) + B(IB_M1))                            # [BP, 128]
    d2a = relu(dot(d, W(IW_M2A)) + B(IB_M2A))                # meta2 output cols   0..127
    d2b = relu(dot(d, W(IW_M2B)) + B(IB_M2B))                # meta2 output cols 128..255
    d3 = relu(dot(d2a, W(IW_M3A)) + dot(d2b, W(IW_M3B)) + B(IB_M3))                 # [BP, 128]
    # cat([d3, out]) @ comb1_w == d3 @ W_desc + out @ W_graph (split weights, no concat)
    y = relu(dot(d3, W(IW_C1D)) + dot(out, W(IW_C1H)) + B(IB_C1))
    y = relu(dot(y, W(IW_C2)) + B(IB_C2))
    out_ref[...] = dot(y, W(IW_C3)) + B(IB_C3)


# ---------------------------------------------------------------------------
# Parameters (deterministic synthetic init, PyTorch shapes transposed to [in, out]).
# ---------------------------------------------------------------------------

def init_params(key, in_ch, hid, desc_ch, edge_dim, num_layers):
    ks = iter(jax.random.split(key, 64))

    def nrm(shape, scale=0.1):
        return (scale * jax.random.normal(next(ks), shape)).astype(jnp.float32)

    def gru_p():
        return dict(w_ih=nrm((hid, 3 * hid)), w_hh=nrm((hid, 3 * hid)),
                    b_ih=nrm((3 * hid,)), b_hh=nrm((3 * hid,)))

    p = {}
    p["lin1_w"] = nrm((in_ch, hid))
    p["lin1_b"] = nrm((hid,))
    p["gate"] = dict(lin1_w=nrm((hid + edge_dim, hid)), lin2_w=nrm((hid, hid)),
                     att_l=nrm((hid,)), att_r=nrm((hid,)), bias=nrm((hid,)))
    p["gru"] = gru_p()
    p["atom_convs"], p["atom_grus"] = [], []
    for _ in range(num_layers - 1):
        p["atom_convs"].append(dict(lin_w=nrm((hid, hid)), att_src=nrm((hid,)),
                                    att_dst=nrm((hid,)), bias=nrm((hid,))))
        p["atom_grus"].append(gru_p())
    p["mol_conv"] = dict(lin_w=nrm((hid, hid)), att_src=nrm((hid,)),
                         att_dst=nrm((hid,)), bias=nrm((hid,)))
    p["mol_gru"] = gru_p()   # .fc = nn.Identity() in torch is an unused attribute

    def lin_bn(din, dout):   # Linear + BatchNorm1d (eval: mean=0, var=1) folded
        w, b = nrm((din, dout)), nrm((dout,))
        gamma = nrm((dout,)) + 1.0
        beta = nrm((dout,))
        s = gamma / jnp.sqrt(1.0 + 1e-5)
        return dict(w=w * s[None, :], b=b * s + beta)

    p["meta1"] = lin_bn(desc_ch, 2 * desc_ch)
    p["meta2"] = lin_bn(2 * desc_ch, 256)
    p["meta3"] = lin_bn(256, 128)
    p["comb1"] = dict(w=nrm((128 + hid, 128)), b=nrm((128,)))
    p["comb2"] = dict(w=nrm((128, 64)), b=nrm((64,)))
    p["comb3"] = dict(w=nrm((64, 1)), b=nrm((1,)))
    return p


# ---------------------------------------------------------------------------
# One-time packing: pad, gate-concat, slab-stack and bf16-cast all weights.
# ---------------------------------------------------------------------------

def pack_params(params):
    hid = params["lin1_w"].shape[1]
    in_ch = params["lin1_w"].shape[0]
    edge_dim = params["gate"]["lin1_w"].shape[0] - hid
    desc_ch = params["meta1"]["w"].shape[0]
    assert hid <= LANE and in_ch <= LANE and edge_dim <= LANE
    assert desc_ch <= LANE and 2 * desc_ch <= LANE

    def pw(w, rows=LANE, cols=LANE):
        w = jnp.asarray(w, jnp.float32)
        return jnp.pad(w, ((0, rows - w.shape[0]), (0, cols - w.shape[1])))

    def pb(v, cols=LANE):
        v = jnp.asarray(v, jnp.float32).reshape(1, -1)
        return jnp.pad(v, ((0, 0), (0, cols - v.shape[1])))

    gp, mp = params["gate"], params["mol_conv"]
    m2w = jnp.asarray(params["meta2"]["w"], jnp.float32)
    m3w = jnp.asarray(params["meta3"]["w"], jnp.float32)
    c1w = jnp.asarray(params["comb1"]["w"], jnp.float32)

    wsq = [pw(params["lin1_w"]),
           pw(gp["lin1_w"][:hid]), pw(gp["lin1_w"][hid:]), pw(gp["lin2_w"])]
    wsq += [pw(c["lin_w"]) for c in params["atom_convs"]]
    wsq += [pw(mp["lin_w"]),
            pw(params["meta1"]["w"]),
            pw(m2w[:, :LANE]), pw(m2w[:, LANE:]),
            pw(m3w[:LANE, :]), pw(m3w[LANE:, :]),
            pw(c1w[:LANE, :]), pw(c1w[LANE:, :]),
            pw(params["comb2"]["w"]), pw(params["comb3"]["w"])]

    m2b = jnp.asarray(params["meta2"]["b"], jnp.float32)
    wadst = jnp.asarray(mp["lin_w"], jnp.float32) @ jnp.asarray(mp["att_dst"], jnp.float32)
    brow = [pb(params["lin1_b"]), pb(gp["att_l"]), pb(gp["att_r"]), pb(gp["bias"])]
    brow += [pb(c["bias"]) for c in params["atom_convs"]]
    brow += [pb(mp["att_src"]), pb(wadst), pb(mp["bias"]),
             pb(params["meta1"]["b"]), pb(m2b[:LANE]), pb(m2b[LANE:]),
             pb(params["meta3"]["b"]),
             pb(params["comb1"]["b"]), pb(params["comb2"]["b"]), pb(params["comb3"]["b"])]

    if params["atom_convs"]:
        attpair = jnp.stack([jnp.concatenate([pb(c["att_src"]), pb(c["att_dst"])], axis=0)
                             for c in params["atom_convs"]])
    else:
        attpair = jnp.zeros((1, 2, LANE), jnp.float32)       # dummy (unused) when L == 0

    def gru_pack(g):      # gates (r, z, n) at lane offsets 0 / 128 / 256
        wih = jnp.concatenate([pw(jnp.asarray(g["w_ih"], jnp.float32)[:, k * hid:(k + 1) * hid])
                               for k in range(3)], axis=1)
        whh = jnp.concatenate([pw(jnp.asarray(g["w_hh"], jnp.float32)[:, k * hid:(k + 1) * hid])
                               for k in range(3)], axis=1)
        bih = jnp.concatenate([pb(jnp.asarray(g["b_ih"])[k * hid:(k + 1) * hid]) for k in range(3)],
                              axis=1)
        bhh = jnp.concatenate([pb(jnp.asarray(g["b_hh"])[k * hid:(k + 1) * hid]) for k in range(3)],
                              axis=1)
        return wih, whh, jnp.concatenate([bih, bhh], axis=0)

    grus = [params["gru"]] + list(params["atom_grus"]) + [params["mol_gru"]]
    gpk = [gru_pack(g) for g in grus]
    packed = dict(
        wsq=jnp.stack(wsq).astype(jnp.bfloat16),               # [NW, 128, 128]
        brow=jnp.stack(brow),                                  # [NB, 1, 128] f32
        attpair=attpair,                                       # [max(L,1), 2, 128] f32
        gwih=jnp.stack([a for a, _, _ in gpk]).astype(jnp.bfloat16),   # [NG, 128, 384]
        gwhh=jnp.stack([b for _, b, _ in gpk]).astype(jnp.bfloat16),
        gbias=jnp.stack([c for _, _, c in gpk]),               # [NG, 2, 384] f32
    )
    return jax.tree_util.tree_map(jax.device_put, packed)


# ---------------------------------------------------------------------------
# Jitted forward: pad per-call data, build sentinel index rows, one pallas_call.
# ---------------------------------------------------------------------------

@functools.partial(jax.jit, static_argnames=("num_molecules", "num_timesteps"))
def attentive_fp_forward(packed, x, edge_src, edge_dst, edge_attr, descriptors, batch,
                         *, num_molecules, num_timesteps):
    n_nodes, in_ch = x.shape
    n_edges, edge_dim = edge_attr.shape
    desc_ch = descriptors.shape[1]
    n_atom_layers = packed["gwih"].shape[0] - 2

    NP = _rup(n_nodes, LANE)          # NP / EP also appear as lane axes of masks & logits
    EP = _rup(n_edges, LANE)
    BP = _rup(num_molecules, SUB)
    INP, EDP, DP = _rup(in_ch, LANE), _rup(edge_dim, LANE), _rup(desc_ch, LANE)

    x_p = jnp.pad(x.astype(jnp.float32), ((0, NP - n_nodes), (0, INP - in_ch)))
    ea_p = jnp.pad(edge_attr.astype(jnp.float32), ((0, EP - n_edges), (0, EDP - edge_dim)))
    de_p = jnp.pad(descriptors.astype(jnp.float32),
                   ((0, BP - num_molecules), (0, DP - desc_ch)))

    # sentinel-padded index vectors: padded edges/nodes match nothing in the iota compares
    esrc = edge_src.astype(jnp.int32)
    edst = edge_dst.astype(jnp.int32)
    eidx = jnp.pad(jnp.stack([esrc, edst]), ((0, 0), (0, EP - n_edges)), constant_values=NP)
    esrc_col = jnp.pad(esrc[:, None], ((0, EP - n_edges), (0, 0)), constant_values=NP)
    batch_row = jnp.pad(batch.astype(jnp.int32)[None, :], ((0, 0), (0, NP - n_nodes)),
                        constant_values=BP)

    operands = (eidx, esrc_col, batch_row, x_p, ea_p, de_p,
                packed["wsq"], packed["brow"], packed["attpair"],
                packed["gwih"], packed["gwhh"], packed["gbias"])
    vmem = pl.BlockSpec(memory_space=pltpu.MemorySpace.VMEM)
    out_pad = pl.pallas_call(
        functools.partial(_fused_kernel, n_atom_layers=n_atom_layers,
                          num_timesteps=num_timesteps),
        out_shape=jax.ShapeDtypeStruct((BP, LANE), jnp.float32),
        in_specs=[vmem] * len(operands),
        out_specs=vmem,
        compiler_params=pltpu.CompilerParams(vmem_limit_bytes=32 * 1024 * 1024),
    )(*operands)
    return out_pad[:num_molecules, :1]


# ---------------------------------------------------------------------------
# Pure-JAX (XLA) reference of the same eval-mode forward, unpadded (for checking).
# ---------------------------------------------------------------------------

def reference_forward(p, x, edge_src, edge_dst, edge_attr, descriptors, batch,
                      num_molecules, num_timesteps):
    hid = p["lin1_w"].shape[1]

    def leaky(v):
        return jnp.where(v > 0, v, NEG_SLOPE * v)

    def elu(v):
        return jnp.where(v > 0, v, jnp.expm1(jnp.minimum(v, 0.0)))

    def seg_softmax_agg(seg, n_seg, logits, msgs, bias):
        mask = seg[None, :] == jnp.arange(n_seg)[:, None]
        lg = jnp.where(mask, logits[None, :], -1e30)
        ex = jnp.where(mask, jnp.exp(lg - jnp.max(lg, axis=-1, keepdims=True)), 0.0)
        w = ex / (jnp.sum(ex, axis=-1, keepdims=True) + 1e-16)
        return w @ msgs + bias[None, :]

    def gru(inp, h, g):
        gi = inp @ g["w_ih"] + g["b_ih"]
        gh = h @ g["w_hh"] + g["b_hh"]
        r = jax.nn.sigmoid(gi[:, :hid] + gh[:, :hid])
        z = jax.nn.sigmoid(gi[:, hid:2 * hid] + gh[:, hid:2 * hid])
        n = jnp.tanh(gi[:, 2 * hid:] + r * gh[:, 2 * hid:])
        return (1.0 - z) * n + z * h

    n_nodes = x.shape[0]
    x = leaky(x @ p["lin1_w"] + p["lin1_b"])
    gp = p["gate"]
    x_src = x[edge_src]
    xj_p = leaky(jnp.concatenate([x_src, edge_attr], axis=-1) @ gp["lin1_w"])
    logits = leaky(xj_p @ gp["att_l"] + (x @ gp["att_r"])[edge_dst])
    h = elu(seg_softmax_agg(edge_dst, n_nodes, logits, x_src @ gp["lin2_w"], gp["bias"]))
    x = jnp.maximum(gru(h, x, p["gru"]), 0.0)
    for cp, gr in zip(p["atom_convs"], p["atom_grus"]):
        xp = x @ cp["lin_w"]
        logits = leaky((xp @ cp["att_src"])[edge_src] + (xp @ cp["att_dst"])[edge_dst])
        h = elu(seg_softmax_agg(edge_dst, n_nodes, logits, xp[edge_src], cp["bias"]))
        x = jnp.maximum(gru(h, x, gr), 0.0)
    pool = (batch[None, :] == jnp.arange(num_molecules)[:, None]).astype(jnp.float32)
    out = jnp.maximum(pool @ x, 0.0)
    mp = p["mol_conv"]
    for _ in range(num_timesteps):
        xp = x @ mp["lin_w"]
        op = out @ mp["lin_w"]
        logits = leaky(xp @ mp["att_src"] + (op @ mp["att_dst"])[batch])
        h = elu(seg_softmax_agg(batch, num_molecules, logits, xp, mp["bias"]))
        out = jnp.maximum(gru(h, out, p["mol_gru"]), 0.0)
    d = jnp.maximum(descriptors @ p["meta1"]["w"] + p["meta1"]["b"], 0.0)
    d = jnp.maximum(d @ p["meta2"]["w"] + p["meta2"]["b"], 0.0)
    d = jnp.maximum(d @ p["meta3"]["w"] + p["meta3"]["b"], 0.0)
    comb = jnp.concatenate([d, out], axis=1)
    y = jnp.maximum(comb @ p["comb1"]["w"] + p["comb1"]["b"], 0.0)
    y = jnp.maximum(y @ p["comb2"]["w"] + p["comb2"]["b"], 0.0)
    return y @ p["comb3"]["w"] + p["comb3"]["b"]


if __name__ == "__main__":
    IN_CH, HID, DESC_CH, EDGE_DIM = 16, 32, 10, 8
    NUM_LAYERS, NUM_TIMESTEPS = 2, 2
    N_NODES, N_EDGES, N_MOLS = 12, 24, 2

    key = jax.random.PRNGKey(0)
    kp, kx, ke, kd, ks, kt = jax.random.split(key, 6)
    params = init_params(kp, IN_CH, HID, DESC_CH, EDGE_DIM, NUM_LAYERS)
    # Model weights live in bf16 (halves weight DMA).  Round once up-front so the f32
    # reference evaluates exactly the same values the kernel sees.
    params = jax.tree_util.tree_map(
        lambda a: a.astype(jnp.bfloat16).astype(jnp.float32), params)

    packed = pack_params(params)            # one-time, device-resident weight slabs

    x = jax.random.normal(kx, (N_NODES, IN_CH), dtype=jnp.float32)
    edge_attr = jax.random.normal(ke, (N_EDGES, EDGE_DIM), dtype=jnp.float32)
    descriptors = jax.random.normal(kd, (N_MOLS, DESC_CH), dtype=jnp.float32)
    edge_src = jax.random.randint(ks, (N_EDGES,), 0, N_NODES)
    edge_dst = jax.random.randint(kt, (N_EDGES,), 0, N_NODES)
    batch = jnp.array([0] * (N_NODES // 2) + [1] * (N_NODES - N_NODES // 2), dtype=jnp.int32)

    out = attentive_fp_forward(packed, x, edge_src, edge_dst, edge_attr,
                               descriptors, batch,
                               num_molecules=N_MOLS, num_timesteps=NUM_TIMESTEPS)
    jax.block_until_ready(out)
    assert out.shape == (N_MOLS, 1)

    with jax.default_matmul_precision("highest"):
        ref = reference_forward(params, x, edge_src, edge_dst, edge_attr,
                                descriptors, batch, N_MOLS, NUM_TIMESTEPS)
    np.testing.assert_allclose(np.asarray(out), np.asarray(ref), rtol=5e-2, atol=5e-2)
    print("KERNEL_OK")
</pallas_src>

<mosaic_0001>
module attributes {stable_mosaic.version = 11 : i64} {
  func.func @_fused_kernel(%arg0: memref<2x128xi32, #tpu.memory_space<vmem>>, %arg1: memref<128x1xi32, #tpu.memory_space<vmem>>, %arg2: memref<1x128xi32, #tpu.memory_space<vmem>>, %arg3: memref<128x128xf32, #tpu.memory_space<vmem>>, %arg4: memref<128x128xf32, #tpu.memory_space<vmem>>, %arg5: memref<8x128xf32, #tpu.memory_space<vmem>>, %arg6: memref<15x128x128xbf16, #tpu.memory_space<vmem>>, %arg7: memref<15x1x128xf32, #tpu.memory_space<vmem>>, %arg8: memref<1x2x128xf32, #tpu.memory_space<vmem>>, %arg9: memref<3x128x384xbf16, #tpu.memory_space<vmem>>, %arg10: memref<3x128x384xbf16, #tpu.memory_space<vmem>>, %arg11: memref<3x2x384xf32, #tpu.memory_space<vmem>>, %arg12: memref<8x128xf32, #tpu.memory_space<vmem>>) attributes {dimension_semantics = [], scalar_prefetch = 0 : i64, scratch_operands = 0 : i64, tpu.core_type = #tpu.core_type<tc>} {
    %c0 = arith.constant 0 : index
    %c0_0 = arith.constant 0 : index
    %0 = vector.load %arg0[%c0, %c0_0] : memref<2x128xi32, #tpu.memory_space<vmem>>, vector<2x128xi32>
    %1 = tpu.iota {dimensions = array<i32: 0>} : vector<128x128xi32>
    %2 = vector.extract_strided_slice %0 {offsets = [0, 0], sizes = [1, 128], strides = [1, 1]} : vector<2x128xi32> to vector<1x128xi32>
    %3 = vector.broadcast %2 : vector<1x128xi32> to vector<128x128xi32>
    %4 = arith.cmpi eq, %1, %3 : vector<128x128xi32>
    %5 = arith.extui %4 : vector<128x128xi1> to vector<128x128xi32>
    %6 = arith.sitofp %5 : vector<128x128xi32> to vector<128x128xf32>
    %7 = vector.extract_strided_slice %0 {offsets = [1, 0], sizes = [1, 128], strides = [1, 1]} : vector<2x128xi32> to vector<1x128xi32>
    %8 = vector.broadcast %7 : vector<1x128xi32> to vector<128x128xi32>
    %9 = arith.cmpi eq, %1, %8 : vector<128x128xi32>
    %10 = arith.extui %9 : vector<128x128xi1> to vector<128x128xi32>
    %11 = arith.sitofp %10 : vector<128x128xi32> to vector<128x128xf32>
    %12 = tpu.iota {dimensions = array<i32: 1>} : vector<128x128xi32>
    %c0_1 = arith.constant 0 : index
    %c0_2 = arith.constant 0 : index
    %13 = vector.load %arg1[%c0_1, %c0_2] : memref<128x1xi32, #tpu.memory_space<vmem>>, vector<128x1xi32>
    %14 = vector.broadcast %13 : vector<128x1xi32> to vector<128x128xi32>
    %15 = arith.cmpi eq, %12, %14 : vector<128x128xi32>
    %16 = arith.extui %15 : vector<128x128xi1> to vector<128x128xi32>
    %17 = arith.sitofp %16 : vector<128x128xi32> to vector<128x128xf32>
    %18 = tpu.iota {dimensions = array<i32: 0>} : vector<8x128xi32>
    %c0_3 = arith.constant 0 : index
    %c0_4 = arith.constant 0 : index
    %19 = vector.load %arg2[%c0_3, %c0_4] : memref<1x128xi32, #tpu.memory_space<vmem>>, vector<1x128xi32>
    %20 = vector.broadcast %19 : vector<1x128xi32> to vector<8x128xi32>
    %21 = arith.cmpi eq, %18, %20 : vector<8x128xi32>
    %22 = arith.extui %21 : vector<8x128xi1> to vector<8x128xi32>
    %23 = arith.sitofp %22 : vector<8x128xi32> to vector<8x128xf32>
    %c0_5 = arith.constant 0 : index
    %c0_6 = arith.constant 0 : index
    %24 = vector.load %arg3[%c0_5, %c0_6] : memref<128x128xf32, #tpu.memory_space<vmem>>, vector<128x128xf32>
    %c0_7 = arith.constant 0 : index
    %c0_8 = arith.constant 0 : index
    %c0_9 = arith.constant 0 : index
    %25 = vector.load %arg6[%c0_7, %c0_8, %c0_9] : memref<15x128x128xbf16, #tpu.memory_space<vmem>>, vector<1x128x128xbf16>
    %26 = vector.shape_cast %25 : vector<1x128x128xbf16> to vector<128x128xbf16>
    %27 = arith.extf %26 : vector<128x128xbf16> to vector<128x128xf32>
    %cst = arith.constant dense<0.000000e+00> : vector<128x128xf32>
    %28 = tpu.matmul %24, %27, %cst {dimension_numbers = #tpu.dot_dimension_numbers<[1], [0], [0], [1], [0, 0, 1, 1], [], []>} : vector<128x128xf32>, vector<128x128xf32>, vector<128x128xf32> -> vector<128x128xf32>
    %c0_10 = arith.constant 0 : index
    %c0_11 = arith.constant 0 : index
    %c0_12 = arith.constant 0 : index
    %29 = vector.load %arg7[%c0_10, %c0_11, %c0_12] : memref<15x1x128xf32, #tpu.memory_space<vmem>>, vector<1x1x128xf32>
    %30 = vector.shape_cast %29 : vector<1x1x128xf32> to vector<1x128xf32>
    %31 = vector.broadcast %30 : vector<1x128xf32> to vector<128x128xf32>
    %32 = arith.addf %28, %31 : vector<128x128xf32>
    %cst_13 = arith.constant 0.000000e+00 : f32
    %33 = vector.broadcast %cst_13 : f32 to vector<128x128xf32>
    %34 = arith.cmpf ogt, %32, %33 : vector<128x128xf32>
    %cst_14 = arith.constant 0.00999999977 : f32
    %35 = vector.broadcast %cst_14 : f32 to vector<128x128xf32>
    %36 = arith.mulf %35, %32 : vector<128x128xf32>
    %37 = arith.select %34, %32, %36 : vector<128x128xi1>, vector<128x128xf32>
    %cst_15 = arith.constant dense<0.000000e+00> : vector<128x128xf32>
    %38 = tpu.matmul %17, %37, %cst_15 {dimension_numbers = #tpu.dot_dimension_numbers<[1], [0], [0], [1], [0, 0, 1, 1], [], []>} : vector<128x128xf32>, vector<128x128xf32>, vector<128x128xf32> -> vector<128x128xf32>
    %c1 = arith.constant 1 : index
    %c0_16 = arith.constant 0 : index
    %c0_17 = arith.constant 0 : index
    %39 = vector.load %arg6[%c1, %c0_16, %c0_17] : memref<15x128x128xbf16, #tpu.memory_space<vmem>>, vector<1x128x128xbf16>
    %40 = vector.shape_cast %39 : vector<1x128x128xbf16> to vector<128x128xbf16>
    %41 = arith.extf %40 : vector<128x128xbf16> to vector<128x128xf32>
    %cst_18 = arith.constant dense<0.000000e+00> : vector<128x128xf32>
    %42 = tpu.matmul %38, %41, %cst_18 {dimension_numbers = #tpu.dot_dimension_numbers<[1], [0], [0], [1], [0, 0, 1, 1], [], []>} : vector<128x128xf32>, vector<128x128xf32>, vector<128x128xf32> -> vector<128x128xf32>
    %c0_19 = arith.constant 0 : index
    %c0_20 = arith.constant 0 : index
    %43 = vector.load %arg4[%c0_19, %c0_20] : memref<128x128xf32, #tpu.memory_space<vmem>>, vector<128x128xf32>
    %c2 = arith.constant 2 : index
    %c0_21 = arith.constant 0 : index
    %c0_22 = arith.constant 0 : index
    %44 = vector.load %arg6[%c2, %c0_21, %c0_22] : memref<15x128x128xbf16, #tpu.memory_space<vmem>>, vector<1x128x128xbf16>
    %45 = vector.shape_cast %44 : vector<1x128x128xbf16> to vector<128x128xbf16>
    %46 = arith.extf %45 : vector<128x128xbf16> to vector<128x128xf32>
    %cst_23 = arith.constant dense<0.000000e+00> : vector<128x128xf32>
    %47 = tpu.matmul %43, %46, %cst_23 {dimension_numbers = #tpu.dot_dimension_numbers<[1], [0], [0], [1], [0, 0, 1, 1], [], []>} : vector<128x128xf32>, vector<128x128xf32>, vector<128x128xf32> -> vector<128x128xf32>
    %48 = arith.addf %42, %47 : vector<128x128xf32>
    %cst_24 = arith.constant 0.000000e+00 : f32
    %49 = vector.broadcast %cst_24 : f32 to vector<128x128xf32>
    %50 = arith.cmpf ogt, %48, %49 : vector<128x128xf32>
    %cst_25 = arith.constant 0.00999999977 : f32
    %51 = vector.broadcast %cst_25 : f32 to vector<128x128xf32>
    %52 = arith.mulf %51, %48 : vector<128x128xf32>
    %53 = arith.select %50, %48, %52 : vector<128x128xi1>, vector<128x128xf32>
    %c1_26 = arith.constant 1 : index
    %c0_27 = arith.constant 0 : index
    %c0_28 = arith.constant 0 : index
    %54 = vector.load %arg7[%c1_26, %c0_27, %c0_28] : memref<15x1x128xf32, #tpu.memory_space<vmem>>, vector<1x1x128xf32>
    %55 = vector.shape_cast %54 : vector<1x1x128xf32> to vector<1x128xf32>
    %cst_29 = arith.constant dense<0.000000e+00> : vector<1x128xf32>
    %56 = tpu.matmul %55, %53, %cst_29 {dimension_numbers = #tpu.dot_dimension_numbers<[1], [1], [0], [0], [0, 0, 1, 0], [], []>} : vector<1x128xf32>, vector<128x128xf32>, vector<1x128xf32> -> vector<1x128xf32>
    %c2_30 = arith.constant 2 : index
    %c0_31 = arith.constant 0 : index
    %c0_32 = arith.constant 0 : index
    %57 = vector.load %arg7[%c2_30, %c0_31, %c0_32] : memref<15x1x128xf32, #tpu.memory_space<vmem>>, vector<1x1x128xf32>
    %58 = vector.shape_cast %57 : vector<1x1x128xf32> to vector<1x128xf32>
    %cst_33 = arith.constant dense<0.000000e+00> : vector<1x128xf32>
    %59 = tpu.matmul %58, %37, %cst_33 {dimension_numbers = #tpu.dot_dimension_numbers<[1], [1], [0], [0], [0, 0, 1, 0], [], []>} : vector<1x128xf32>, vector<128x128xf32>, vector<1x128xf32> -> vector<1x128xf32>
    %cst_34 = arith.constant dense<0.000000e+00> : vector<1x128xf32>
    %60 = tpu.matmul %59, %11, %cst_34 {dimension_numbers = #tpu.dot_dimension_numbers<[1], [0], [0], [1], [0, 0, 1, 1], [], []>} : vector<1x128xf32>, vector<128x128xf32>, vector<1x128xf32> -> vector<1x128xf32>
    %61 = arith.addf %56, %60 : vector<1x128xf32>
    %cst_35 = arith.constant 0.000000e+00 : f32
    %62 = vector.broadcast %cst_35 : f32 to vector<1x128xf32>
    %63 = arith.cmpf ogt, %61, %62 : vector<1x128xf32>
    %cst_36 = arith.constant 0.00999999977 : f32
    %64 = vector.broadcast %cst_36 : f32 to vector<1x128xf32>
    %65 = arith.mulf %64, %61 : vector<1x128xf32>
    %66 = arith.select %63, %61, %65 : vector<1x128xi1>, vector<1x128xf32>
    %c3 = arith.constant 3 : index
    %c0_37 = arith.constant 0 : index
    %c0_38 = arith.constant 0 : index
    %67 = vector.load %arg6[%c3, %c0_37, %c0_38] : memref<15x128x128xbf16, #tpu.memory_space<vmem>>, vector<1x128x128xbf16>
    %68 = vector.shape_cast %67 : vector<1x128x128xbf16> to vector<128x128xbf16>
    %69 = arith.extf %68 : vector<128x128xbf16> to vector<128x128xf32>
    %cst_39 = arith.constant dense<0.000000e+00> : vector<128x128xf32>
    %70 = tpu.matmul %38, %69, %cst_39 {dimension_numbers = #tpu.dot_dimension_numbers<[1], [0], [0], [1], [0, 0, 1, 1], [], []>} : vector<128x128xf32>, vector<128x128xf32>, vector<128x128xf32> -> vector<128x128xf32>
    %c3_40 = arith.constant 3 : index
    %c0_41 = arith.constant 0 : index
    %c0_42 = arith.constant 0 : index
    %71 = vector.load %arg7[%c3_40, %c0_41, %c0_42] : memref<15x1x128xf32, #tpu.memory_space<vmem>>, vector<1x1x128xf32>
    %72 = vector.shape_cast %71 : vector<1x1x128xf32> to vector<1x128xf32>
    %cst_43 = arith.constant -1.000000e+30 : f32
    %73 = vector.shape_cast %66 : vector<1x128xf32> to vector<1x128xf32>
    %74 = vector.broadcast %73 : vector<1x128xf32> to vector<128x128xf32>
    %75 = vector.broadcast %cst_43 : f32 to vector<128x128xf32>
    %76 = arith.select %9, %74, %75 : vector<128x128xi1>, vector<128x128xf32>
    %cst_44 = arith.constant dense<0xFF800000> : vector<128xf32>
    %77 = vector.multi_reduction <maximumf>, %76, %cst_44 [1] : vector<128x128xf32> to vector<128xf32>
    %78 = vector.shape_cast %77 : vector<128xf32> to vector<128x1xf32>
    %79 = vector.broadcast %78 : vector<128x1xf32> to vector<128x128xf32>
    %80 = arith.subf %76, %79 : vector<128x128xf32>
    %81 = math.exp %80 : vector<128x128xf32>
    %cst_45 = arith.constant 0.000000e+00 : f32
    %82 = vector.broadcast %cst_45 : f32 to vector<128x128xf32>
    %83 = arith.select %9, %81, %82 : vector<128x128xi1>, vector<128x128xf32>
    %cst_46 = arith.constant dense<0.000000e+00> : vector<128xf32>
    %84 = vector.multi_reduction <add>, %83, %cst_46 [1] : vector<128x128xf32> to vector<128xf32>
    %85 = vector.shape_cast %84 : vector<128xf32> to vector<128x1xf32>
    %cst_47 = arith.constant 1.000000e-16 : f32
    %86 = vector.broadcast %cst_47 : f32 to vector<128x1xf32>
    %87 = arith.addf %85, %86 : vector<128x1xf32>
    %88 = tpu.reciprocal %87 : vector<128x1xf32> -> vector<128x1xf32>
    %89 = vector.broadcast %88 : vector<128x1xf32> to vector<128x128xf32>
    %90 = arith.mulf %83, %89 : vector<128x128xf32>
    %cst_48 = arith.constant dense<0.000000e+00> : vector<128x128xf32>
    %91 = tpu.matmul %90, %70, %cst_48 {dimension_numbers = #tpu.dot_dimension_numbers<[1], [0], [0], [1], [0, 0, 1, 1], [], []>} : vector<128x128xf32>, vector<128x128xf32>, vector<128x128xf32> -> vector<128x128xf32>
    %92 = vector.broadcast %72 : vector<1x128xf32> to vector<128x128xf32>
    %93 = arith.addf %91, %92 : vector<128x128xf32>
    %cst_49 = arith.constant 0.000000e+00 : f32
    %94 = vector.broadcast %cst_49 : f32 to vector<128x128xf32>
    %95 = arith.cmpf ogt, %93, %94 : vector<128x128xf32>
    %cst_50 = arith.constant 0.000000e+00 : f32
    %96 = vector.broadcast %cst_50 : f32 to vector<128x128xf32>
    %97 = arith.minimumf %93, %96 : vector<128x128xf32>
    %98 = math.exp %97 : vector<128x128xf32>
    %cst_51 = arith.constant 1.000000e+00 : f32
    %99 = vector.broadcast %cst_51 : f32 to vector<128x128xf32>
    %100 = arith.subf %98, %99 : vector<128x128xf32>
    %101 = arith.select %95, %93, %100 : vector<128x128xi1>, vector<128x128xf32>
    %c0_52 = arith.constant 0 : index
    %c0_53 = arith.constant 0 : index
    %c0_54 = arith.constant 0 : index
    %102 = vector.load %arg11[%c0_52, %c0_53, %c0_54] : memref<3x2x384xf32, #tpu.memory_space<vmem>>, vector<1x2x384xf32>
    %103 = vector.shape_cast %102 : vector<1x2x384xf32> to vector<2x384xf32>
    %c0_55 = arith.constant 0 : index
    %c0_56 = arith.constant 0 : index
    %c0_57 = arith.constant 0 : index
    %104 = vector.load %arg9[%c0_55, %c0_56, %c0_57] : memref<3x128x384xbf16, #tpu.memory_space<vmem>>, vector<1x128x384xbf16>
    %105 = vector.shape_cast %104 : vector<1x128x384xbf16> to vector<128x384xbf16>
    %106 = arith.extf %105 : vector<128x384xbf16> to vector<128x384xf32>
    %cst_58 = arith.constant dense<0.000000e+00> : vector<128x384xf32>
    %107 = tpu.matmul %101, %106, %cst_58 {dimension_numbers = #tpu.dot_dimension_numbers<[1], [0], [0], [1], [0, 0, 1, 1], [], []>} : vector<128x128xf32>, vector<128x384xf32>, vector<128x384xf32> -> vector<128x384xf32>
    %108 = vector.extract_strided_slice %103 {offsets = [0, 0], sizes = [1, 384], strides = [1, 1]} : vector<2x384xf32> to vector<1x384xf32>
    %109 = vector.broadcast %108 : vector<1x384xf32> to vector<128x384xf32>
    %110 = arith.addf %107, %109 : vector<128x384xf32>
    %c0_59 = arith.constant 0 : index
    %c0_60 = arith.constant 0 : index
    %c0_61 = arith.constant 0 : index
    %111 = vector.load %arg10[%c0_59, %c0_60, %c0_61] : memref<3x128x384xbf16, #tpu.memory_space<vmem>>, vector<1x128x384xbf16>
    %112 = vector.shape_cast %111 : vector<1x128x384xbf16> to vector<128x384xbf16>
    %113 = arith.extf %112 : vector<128x384xbf16> to vector<128x384xf32>
    %cst_62 = arith.constant dense<0.000000e+00> : vector<128x384xf32>
    %114 = tpu.matmul %37, %113, %cst_62 {dimension_numbers = #tpu.dot_dimension_numbers<[1], [0], [0], [1], [0, 0, 1, 1], [], []>} : vector<128x128xf32>, vector<128x384xf32>, vector<128x384xf32> -> vector<128x384xf32>
    %115 = vector.extract_strided_slice %103 {offsets = [1, 0], sizes = [1, 384], strides = [1, 1]} : vector<2x384xf32> to vector<1x384xf32>
    %116 = vector.broadcast %115 : vector<1x384xf32> to vector<128x384xf32>
    %117 = arith.addf %114, %116 : vector<128x384xf32>
    %118 = vector.extract_strided_slice %110 {offsets = [0, 0], sizes = [128, 128], strides = [1, 1]} : vector<128x384xf32> to vector<128x128xf32>
    %119 = vector.extract_strided_slice %117 {offsets = [0, 0], sizes = [128, 128], strides = [1, 1]} : vector<128x384xf32> to vector<128x128xf32>
    %120 = arith.addf %118, %119 : vector<128x128xf32>
    %121 = arith.negf %120 : vector<128x128xf32>
    %122 = math.exp %121 : vector<128x128xf32>
    %cst_63 = arith.constant 1.000000e+00 : f32
    %123 = vector.broadcast %cst_63 : f32 to vector<128x128xf32>
    %124 = arith.addf %123, %122 : vector<128x128xf32>
    %125 = arith.divf %123, %124 : vector<128x128xf32>
    %126 = vector.extract_strided_slice %110 {offsets = [0, 128], sizes = [128, 128], strides = [1, 1]} : vector<128x384xf32> to vector<128x128xf32>
    %127 = vector.extract_strided_slice %117 {offsets = [0, 128], sizes = [128, 128], strides = [1, 1]} : vector<128x384xf32> to vector<128x128xf32>
    %128 = arith.addf %126, %127 : vector<128x128xf32>
    %129 = arith.negf %128 : vector<128x128xf32>
    %130 = math.exp %129 : vector<128x128xf32>
    %cst_64 = arith.constant 1.000000e+00 : f32
    %131 = vector.broadcast %cst_64 : f32 to vector<128x128xf32>
    %132 = arith.addf %131, %130 : vector<128x128xf32>
    %133 = arith.divf %131, %132 : vector<128x128xf32>
    %134 = vector.extract_strided_slice %110 {offsets = [0, 256], sizes = [128, 128], strides = [1, 1]} : vector<128x384xf32> to vector<128x128xf32>
    %135 = vector.extract_strided_slice %117 {offsets = [0, 256], sizes = [128, 128], strides = [1, 1]} : vector<128x384xf32> to vector<128x128xf32>
    %136 = arith.mulf %125, %135 : vector<128x128xf32>
    %137 = arith.addf %134, %136 : vector<128x128xf32>
    %138 = math.tanh %137 : vector<128x128xf32>
    %cst_65 = arith.constant 1.000000e+00 : f32
    %139 = vector.broadcast %cst_65 : f32 to vector<128x128xf32>
    %140 = arith.subf %139, %133 : vector<128x128xf32>
    %141 = arith.mulf %140, %138 : vector<128x128xf32>
    %142 = arith.mulf %133, %37 : vector<128x128xf32>
    %143 = arith.addf %141, %142 : vector<128x128xf32>
    %cst_66 = arith.constant 0.000000e+00 : f32
    %144 = vector.broadcast %cst_66 : f32 to vector<128x128xf32>
    %145 = arith.maximumf %143, %144 : vector<128x128xf32>
    %c4 = arith.constant 4 : index
    %c0_67 = arith.constant 0 : index
    %c0_68 = arith.constant 0 : index
    %146 = vector.load %arg6[%c4, %c0_67, %c0_68] : memref<15x128x128xbf16, #tpu.memory_space<vmem>>, vector<1x128x128xbf16>
    %147 = vector.shape_cast %146 : vector<1x128x128xbf16> to vector<128x128xbf16>
    %148 = arith.extf %147 : vector<128x128xbf16> to vector<128x128xf32>
    %cst_69 = arith.constant dense<0.000000e+00> : vector<128x128xf32>
    %149 = tpu.matmul %145, %148, %cst_69 {dimension_numbers = #tpu.dot_dimension_numbers<[1], [0], [0], [1], [0, 0, 1, 1], [], []>} : vector<128x128xf32>, vector<128x128xf32>, vector<128x128xf32> -> vector<128x128xf32>
    %c0_70 = arith.constant 0 : index
    %c0_71 = arith.constant 0 : index
    %c0_72 = arith.constant 0 : index
    %150 = vector.load %arg8[%c0_70, %c0_71, %c0_72] : memref<1x2x128xf32, #tpu.memory_space<vmem>>, vector<1x2x128xf32>
    %151 = vector.shape_cast %150 : vector<1x2x128xf32> to vector<2x128xf32>
    %cst_73 = arith.constant dense<0.000000e+00> : vector<2x128xf32>
    %152 = tpu.matmul %151, %149, %cst_73 {dimension_numbers = #tpu.dot_dimension_numbers<[1], [1], [0], [0], [0, 0, 1, 0], [], []>} : vector<2x128xf32>, vector<128x128xf32>, vector<2x128xf32> -> vector<2x128xf32>
    %153 = vector.extract_strided_slice %152 {offsets = [0, 0], sizes = [1, 128], strides = [1, 1]} : vector<2x128xf32> to vector<1x128xf32>
    %cst_74 = arith.constant dense<0.000000e+00> : vector<1x128xf32>
    %154 = tpu.matmul %153, %6, %cst_74 {dimension_numbers = #tpu.dot_dimension_numbers<[1], [0], [0], [1], [0, 0, 1, 1], [], []>} : vector<1x128xf32>, vector<128x128xf32>, vector<1x128xf32> -> vector<1x128xf32>
    %155 = vector.extract_strided_slice %152 {offsets = [1, 0], sizes = [1, 128], strides = [1, 1]} : vector<2x128xf32> to vector<1x128xf32>
    %cst_75 = arith.constant dense<0.000000e+00> : vector<1x128xf32>
    %156 = tpu.matmul %155, %11, %cst_75 {dimension_numbers = #tpu.dot_dimension_numbers<[1], [0], [0], [1], [0, 0, 1, 1], [], []>} : vector<1x128xf32>, vector<128x128xf32>, vector<1x128xf32> -> vector<1x128xf32>
    %157 = arith.addf %154, %156 : vector<1x128xf32>
    %cst_76 = arith.constant 0.000000e+00 : f32
    %158 = vector.broadcast %cst_76 : f32 to vector<1x128xf32>
    %159 = arith.cmpf ogt, %157, %158 : vector<1x128xf32>
    %cst_77 = arith.constant 0.00999999977 : f32
    %160 = vector.broadcast %cst_77 : f32 to vector<1x128xf32>
    %161 = arith.mulf %160, %157 : vector<1x128xf32>
    %162 = arith.select %159, %157, %161 : vector<1x128xi1>, vector<1x128xf32>
    %cst_78 = arith.constant dense<0.000000e+00> : vector<128x128xf32>
    %163 = tpu.matmul %17, %149, %cst_78 {dimension_numbers = #tpu.dot_dimension_numbers<[1], [0], [0], [1], [0, 0, 1, 1], [], []>} : vector<128x128xf32>, vector<128x128xf32>, vector<128x128xf32> -> vector<128x128xf32>
    %c4_79 = arith.constant 4 : index
    %c0_80 = arith.constant 0 : index
    %c0_81 = arith.constant 0 : index
    %164 = vector.load %arg7[%c4_79, %c0_80, %c0_81] : memref<15x1x128xf32, #tpu.memory_space<vmem>>, vector<1x1x128xf32>
    %165 = vector.shape_cast %164 : vector<1x1x128xf32> to vector<1x128xf32>
    %cst_82 = arith.constant -1.000000e+30 : f32
    %166 = vector.shape_cast %162 : vector<1x128xf32> to vector<1x128xf32>
    %167 = vector.broadcast %166 : vector<1x128xf32> to vector<128x128xf32>
    %168 = vector.broadcast %cst_82 : f32 to vector<128x128xf32>
    %169 = arith.select %9, %167, %168 : vector<128x128xi1>, vector<128x128xf32>
    %cst_83 = arith.constant dense<0xFF800000> : vector<128xf32>
    %170 = vector.multi_reduction <maximumf>, %169, %cst_83 [1] : vector<128x128xf32> to vector<128xf32>
    %171 = vector.shape_cast %170 : vector<128xf32> to vector<128x1xf32>
    %172 = vector.broadcast %171 : vector<128x1xf32> to vector<128x128xf32>
    %173 = arith.subf %169, %172 : vector<128x128xf32>
    %174 = math.exp %173 : vector<128x128xf32>
    %cst_84 = arith.constant 0.000000e+00 : f32
    %175 = vector.broadcast %cst_84 : f32 to vector<128x128xf32>
    %176 = arith.select %9, %174, %175 : vector<128x128xi1>, vector<128x128xf32>
    %cst_85 = arith.constant dense<0.000000e+00> : vector<128xf32>
    %177 = vector.multi_reduction <add>, %176, %cst_85 [1] : vector<128x128xf32> to vector<128xf32>
    %178 = vector.shape_cast %177 : vector<128xf32> to vector<128x1xf32>
    %cst_86 = arith.constant 1.000000e-16 : f32
    %179 = vector.broadcast %cst_86 : f32 to vector<128x1xf32>
    %180 = arith.addf %178, %179 : vector<128x1xf32>
    %181 = tpu.reciprocal %180 : vector<128x1xf32> -> vector<128x1xf32>
    %182 = vector.broadcast %181 : vector<128x1xf32> to vector<128x128xf32>
    %183 = arith.mulf %176, %182 : vector<128x128xf32>
    %cst_87 = arith.constant dense<0.000000e+00> : vector<128x128xf32>
    %184 = tpu.matmul %183, %163, %cst_87 {dimension_numbers = #tpu.dot_dimension_numbers<[1], [0], [0], [1], [0, 0, 1, 1], [], []>} : vector<128x128xf32>, vector<128x128xf32>, vector<128x128xf32> -> vector<128x128xf32>
    %185 = vector.broadcast %165 : vector<1x128xf32> to vector<128x128xf32>
    %186 = arith.addf %184, %185 : vector<128x128xf32>
    %cst_88 = arith.constant 0.000000e+00 : f32
    %187 = vector.broadcast %cst_88 : f32 to vector<128x128xf32>
    %188 = arith.cmpf ogt, %186, %187 : vector<128x128xf32>
    %cst_89 = arith.constant 0.000000e+00 : f32
    %189 = vector.broadcast %cst_89 : f32 to vector<128x128xf32>
    %190 = arith.minimumf %186, %189 : vector<128x128xf32>
    %191 = math.exp %190 : vector<128x128xf32>
    %cst_90 = arith.constant 1.000000e+00 : f32
    %192 = vector.broadcast %cst_90 : f32 to vector<128x128xf32>
    %193 = arith.subf %191, %192 : vector<128x128xf32>
    %194 = arith.select %188, %186, %193 : vector<128x128xi1>, vector<128x128xf32>
    %c1_91 = arith.constant 1 : index
    %c0_92 = arith.constant 0 : index
    %c0_93 = arith.constant 0 : index
    %195 = vector.load %arg11[%c1_91, %c0_92, %c0_93] : memref<3x2x384xf32, #tpu.memory_space<vmem>>, vector<1x2x384xf32>
    %196 = vector.shape_cast %195 : vector<1x2x384xf32> to vector<2x384xf32>
    %c1_94 = arith.constant 1 : index
    %c0_95 = arith.constant 0 : index
    %c0_96 = arith.constant 0 : index
    %197 = vector.load %arg9[%c1_94, %c0_95, %c0_96] : memref<3x128x384xbf16, #tpu.memory_space<vmem>>, vector<1x128x384xbf16>
    %198 = vector.shape_cast %197 : vector<1x128x384xbf16> to vector<128x384xbf16>
    %199 = arith.extf %198 : vector<128x384xbf16> to vector<128x384xf32>
    %cst_97 = arith.constant dense<0.000000e+00> : vector<128x384xf32>
    %200 = tpu.matmul %194, %199, %cst_97 {dimension_numbers = #tpu.dot_dimension_numbers<[1], [0], [0], [1], [0, 0, 1, 1], [], []>} : vector<128x128xf32>, vector<128x384xf32>, vector<128x384xf32> -> vector<128x384xf32>
    %201 = vector.extract_strided_slice %196 {offsets = [0, 0], sizes = [1, 384], strides = [1, 1]} : vector<2x384xf32> to vector<1x384xf32>
    %202 = vector.broadcast %201 : vector<1x384xf32> to vector<128x384xf32>
    %203 = arith.addf %200, %202 : vector<128x384xf32>
    %c1_98 = arith.constant 1 : index
    %c0_99 = arith.constant 0 : index
    %c0_100 = arith.constant 0 : index
    %204 = vector.load %arg10[%c1_98, %c0_99, %c0_100] : memref<3x128x384xbf16, #tpu.memory_space<vmem>>, vector<1x128x384xbf16>
    %205 = vector.shape_cast %204 : vector<1x128x384xbf16> to vector<128x384xbf16>
    %206 = arith.extf %205 : vector<128x384xbf16> to vector<128x384xf32>
    %cst_101 = arith.constant dense<0.000000e+00> : vector<128x384xf32>
    %207 = tpu.matmul %145, %206, %cst_101 {dimension_numbers = #tpu.dot_dimension_numbers<[1], [0], [0], [1], [0, 0, 1, 1], [], []>} : vector<128x128xf32>, vector<128x384xf32>, vector<128x384xf32> -> vector<128x384xf32>
    %208 = vector.extract_strided_slice %196 {offsets = [1, 0], sizes = [1, 384], strides = [1, 1]} : vector<2x384xf32> to vector<1x384xf32>
    %209 = vector.broadcast %208 : vector<1x384xf32> to vector<128x384xf32>
    %210 = arith.addf %207, %209 : vector<128x384xf32>
    %211 = vector.extract_strided_slice %203 {offsets = [0, 0], sizes = [128, 128], strides = [1, 1]} : vector<128x384xf32> to vector<128x128xf32>
    %212 = vector.extract_strided_slice %210 {offsets = [0, 0], sizes = [128, 128], strides = [1, 1]} : vector<128x384xf32> to vector<128x128xf32>
    %213 = arith.addf %211, %212 : vector<128x128xf32>
    %214 = arith.negf %213 : vector<128x128xf32>
    %215 = math.exp %214 : vector<128x128xf32>
    %cst_102 = arith.constant 1.000000e+00 : f32
    %216 = vector.broadcast %cst_102 : f32 to vector<128x128xf32>
    %217 = arith.addf %216, %215 : vector<128x128xf32>
    %218 = arith.divf %216, %217 : vector<128x128xf32>
    %219 = vector.extract_strided_slice %203 {offsets = [0, 128], sizes = [128, 128], strides = [1, 1]} : vector<128x384xf32> to vector<128x128xf32>
    %220 = vector.extract_strided_slice %210 {offsets = [0, 128], sizes = [128, 128], strides = [1, 1]} : vector<128x384xf32> to vector<128x128xf32>
    %221 = arith.addf %219, %220 : vector<128x128xf32>
    %222 = arith.negf %221 : vector<128x128xf32>
    %223 = math.exp %222 : vector<128x128xf32>
    %cst_103 = arith.constant 1.000000e+00 : f32
    %224 = vector.broadcast %cst_103 : f32 to vector<128x128xf32>
    %225 = arith.addf %224, %223 : vector<128x128xf32>
    %226 = arith.divf %224, %225 : vector<128x128xf32>
    %227 = vector.extract_strided_slice %203 {offsets = [0, 256], sizes = [128, 128], strides = [1, 1]} : vector<128x384xf32> to vector<128x128xf32>
    %228 = vector.extract_strided_slice %210 {offsets = [0, 256], sizes = [128, 128], strides = [1, 1]} : vector<128x384xf32> to vector<128x128xf32>
    %229 = arith.mulf %218, %228 : vector<128x128xf32>
    %230 = arith.addf %227, %229 : vector<128x128xf32>
    %231 = math.tanh %230 : vector<128x128xf32>
    %cst_104 = arith.constant 1.000000e+00 : f32
    %232 = vector.broadcast %cst_104 : f32 to vector<128x128xf32>
    %233 = arith.subf %232, %226 : vector<128x128xf32>
    %234 = arith.mulf %233, %231 : vector<128x128xf32>
    %235 = arith.mulf %226, %145 : vector<128x128xf32>
    %236 = arith.addf %234, %235 : vector<128x128xf32>
    %cst_105 = arith.constant 0.000000e+00 : f32
    %237 = vector.broadcast %cst_105 : f32 to vector<128x128xf32>
    %238 = arith.maximumf %236, %237 : vector<128x128xf32>
    %cst_106 = arith.constant dense<0.000000e+00> : vector<8x128xf32>
    %239 = tpu.matmul %23, %238, %cst_106 {dimension_numbers = #tpu.dot_dimension_numbers<[1], [0], [0], [1], [0, 0, 1, 1], [], []>} : vector<8x128xf32>, vector<128x128xf32>, vector<8x128xf32> -> vector<8x128xf32>
    %cst_107 = arith.constant 0.000000e+00 : f32
    %240 = vector.broadcast %cst_107 : f32 to vector<8x128xf32>
    %241 = arith.maximumf %239, %240 : vector<8x128xf32>
    %c5 = arith.constant 5 : index
    %c0_108 = arith.constant 0 : index
    %c0_109 = arith.constant 0 : index
    %242 = vector.load %arg6[%c5, %c0_108, %c0_109] : memref<15x128x128xbf16, #tpu.memory_space<vmem>>, vector<1x128x128xbf16>
    %243 = vector.shape_cast %242 : vector<1x128x128xbf16> to vector<128x128xbf16>
    %244 = arith.extf %243 : vector<128x128xbf16> to vector<128x128xf32>
    %cst_110 = arith.constant dense<0.000000e+00> : vector<128x128xf32>
    %245 = tpu.matmul %238, %244, %cst_110 {dimension_numbers = #tpu.dot_dimension_numbers<[1], [0], [0], [1], [0, 0, 1, 1], [], []>} : vector<128x128xf32>, vector<128x128xf32>, vector<128x128xf32> -> vector<128x128xf32>
    %c5_111 = arith.constant 5 : index
    %c0_112 = arith.constant 0 : index
    %c0_113 = arith.constant 0 : index
    %246 = vector.load %arg7[%c5_111, %c0_112, %c0_113] : memref<15x1x128xf32, #tpu.memory_space<vmem>>, vector<1x1x128xf32>
    %247 = vector.shape_cast %246 : vector<1x1x128xf32> to vector<1x128xf32>
    %cst_114 = arith.constant dense<0.000000e+00> : vector<1x128xf32>
    %248 = tpu.matmul %247, %245, %cst_114 {dimension_numbers = #tpu.dot_dimension_numbers<[1], [1], [0], [0], [0, 0, 1, 0], [], []>} : vector<1x128xf32>, vector<128x128xf32>, vector<1x128xf32> -> vector<1x128xf32>
    %c6 = arith.constant 6 : index
    %c0_115 = arith.constant 0 : index
    %c0_116 = arith.constant 0 : index
    %249 = vector.load %arg7[%c6, %c0_115, %c0_116] : memref<15x1x128xf32, #tpu.memory_space<vmem>>, vector<1x1x128xf32>
    %250 = vector.shape_cast %249 : vector<1x1x128xf32> to vector<1x128xf32>
    %cst_117 = arith.constant dense<0.000000e+00> : vector<1x8xf32>
    %251 = tpu.matmul %250, %241, %cst_117 {dimension_numbers = #tpu.dot_dimension_numbers<[1], [1], [0], [0], [0, 0, 1, 0], [], []>} : vector<1x128xf32>, vector<8x128xf32>, vector<1x8xf32> -> vector<1x8xf32>
    %cst_118 = arith.constant dense<0.000000e+00> : vector<1x128xf32>
    %252 = tpu.matmul %251, %23, %cst_118 {dimension_numbers = #tpu.dot_dimension_numbers<[1], [0], [0], [1], [0, 0, 1, 1], [], []>} : vector<1x8xf32>, vector<8x128xf32>, vector<1x128xf32> -> vector<1x128xf32>
    %253 = arith.addf %248, %252 : vector<1x128xf32>
    %cst_119 = arith.constant 0.000000e+00 : f32
    %254 = vector.broadcast %cst_119 : f32 to vector<1x128xf32>
    %255 = arith.cmpf ogt, %253, %254 : vector<1x128xf32>
    %cst_120 = arith.constant 0.00999999977 : f32
    %256 = vector.broadcast %cst_120 : f32 to vector<1x128xf32>
    %257 = arith.mulf %256, %253 : vector<1x128xf32>
    %258 = arith.select %255, %253, %257 : vector<1x128xi1>, vector<1x128xf32>
    %c7 = arith.constant 7 : index
    %c0_121 = arith.constant 0 : index
    %c0_122 = arith.constant 0 : index
    %259 = vector.load %arg7[%c7, %c0_121, %c0_122] : memref<15x1x128xf32, #tpu.memory_space<vmem>>, vector<1x1x128xf32>
    %260 = vector.shape_cast %259 : vector<1x1x128xf32> to vector<1x128xf32>
    %cst_123 = arith.constant -1.000000e+30 : f32
    %261 = vector.shape_cast %258 : vector<1x128xf32> to vector<1x128xf32>
    %262 = vector.broadcast %261 : vector<1x128xf32> to vector<8x128xf32>
    %263 = vector.broadcast %cst_123 : f32 to vector<8x128xf32>
    %264 = arith.select %21, %262, %263 : vector<8x128xi1>, vector<8x128xf32>
    %cst_124 = arith.constant dense<0xFF800000> : vector<8xf32>
    %265 = vector.multi_reduction <maximumf>, %264, %cst_124 [1] : vector<8x128xf32> to vector<8xf32>
    %266 = vector.shape_cast %265 : vector<8xf32> to vector<8x1xf32>
    %267 = vector.broadcast %266 : vector<8x1xf32> to vector<8x128xf32>
    %268 = arith.subf %264, %267 : vector<8x128xf32>
    %269 = math.exp %268 : vector<8x128xf32>
    %cst_125 = arith.constant 0.000000e+00 : f32
    %270 = vector.broadcast %cst_125 : f32 to vector<8x128xf32>
    %271 = arith.select %21, %269, %270 : vector<8x128xi1>, vector<8x128xf32>
    %cst_126 = arith.constant dense<0.000000e+00> : vector<8xf32>
    %272 = vector.multi_reduction <add>, %271, %cst_126 [1] : vector<8x128xf32> to vector<8xf32>
    %273 = vector.shape_cast %272 : vector<8xf32> to vector<8x1xf32>
    %cst_127 = arith.constant 1.000000e-16 : f32
    %274 = vector.broadcast %cst_127 : f32 to vector<8x1xf32>
    %275 = arith.addf %273, %274 : vector<8x1xf32>
    %276 = tpu.reciprocal %275 : vector<8x1xf32> -> vector<8x1xf32>
    %277 = vector.broadcast %276 : vector<8x1xf32> to vector<8x128xf32>
    %278 = arith.mulf %271, %277 : vector<8x128xf32>
    %cst_128 = arith.constant dense<0.000000e+00> : vector<8x128xf32>
    %279 = tpu.matmul %278, %245, %cst_128 {dimension_numbers = #tpu.dot_dimension_numbers<[1], [0], [0], [1], [0, 0, 1, 1], [], []>} : vector<8x128xf32>, vector<128x128xf32>, vector<8x128xf32> -> vector<8x128xf32>
    %280 = vector.broadcast %260 : vector<1x128xf32> to vector<8x128xf32>
    %281 = arith.addf %279, %280 : vector<8x128xf32>
    %cst_129 = arith.constant 0.000000e+00 : f32
    %282 = vector.broadcast %cst_129 : f32 to vector<8x128xf32>
    %283 = arith.cmpf ogt, %281, %282 : vector<8x128xf32>
    %cst_130 = arith.constant 0.000000e+00 : f32
    %284 = vector.broadcast %cst_130 : f32 to vector<8x128xf32>
    %285 = arith.minimumf %281, %284 : vector<8x128xf32>
    %286 = math.exp %285 : vector<8x128xf32>
    %cst_131 = arith.constant 1.000000e+00 : f32
    %287 = vector.broadcast %cst_131 : f32 to vector<8x128xf32>
    %288 = arith.subf %286, %287 : vector<8x128xf32>
    %289 = arith.select %283, %281, %288 : vector<8x128xi1>, vector<8x128xf32>
    %c2_132 = arith.constant 2 : index
    %c0_133 = arith.constant 0 : index
    %c0_134 = arith.constant 0 : index
    %290 = vector.load %arg11[%c2_132, %c0_133, %c0_134] : memref<3x2x384xf32, #tpu.memory_space<vmem>>, vector<1x2x384xf32>
    %291 = vector.shape_cast %290 : vector<1x2x384xf32> to vector<2x384xf32>
    %c2_135 = arith.constant 2 : index
    %c0_136 = arith.constant 0 : index
    %c0_137 = arith.constant 0 : index
    %292 = vector.load %arg9[%c2_135, %c0_136, %c0_137] : memref<3x128x384xbf16, #tpu.memory_space<vmem>>, vector<1x128x384xbf16>
    %293 = vector.shape_cast %292 : vector<1x128x384xbf16> to vector<128x384xbf16>
    %294 = arith.extf %293 : vector<128x384xbf16> to vector<128x384xf32>
    %cst_138 = arith.constant dense<0.000000e+00> : vector<8x384xf32>
    %295 = tpu.matmul %289, %294, %cst_138 {dimension_numbers = #tpu.dot_dimension_numbers<[1], [0], [0], [1], [0, 0, 1, 1], [], []>} : vector<8x128xf32>, vector<128x384xf32>, vector<8x384xf32> -> vector<8x384xf32>
    %296 = vector.extract_strided_slice %291 {offsets = [0, 0], sizes = [1, 384], strides = [1, 1]} : vector<2x384xf32> to vector<1x384xf32>
    %297 = vector.broadcast %296 : vector<1x384xf32> to vector<8x384xf32>
    %298 = arith.addf %295, %297 : vector<8x384xf32>
    %c2_139 = arith.constant 2 : index
    %c0_140 = arith.constant 0 : index
    %c0_141 = arith.constant 0 : index
    %299 = vector.load %arg10[%c2_139, %c0_140, %c0_141] : memref<3x128x384xbf16, #tpu.memory_space<vmem>>, vector<1x128x384xbf16>
    %300 = vector.shape_cast %299 : vector<1x128x384xbf16> to vector<128x384xbf16>
    %301 = arith.extf %300 : vector<128x384xbf16> to vector<128x384xf32>
    %cst_142 = arith.constant dense<0.000000e+00> : vector<8x384xf32>
    %302 = tpu.matmul %241, %301, %cst_142 {dimension_numbers = #tpu.dot_dimension_numbers<[1], [0], [0], [1], [0, 0, 1, 1], [], []>} : vector<8x128xf32>, vector<128x384xf32>, vector<8x384xf32> -> vector<8x384xf32>
    %303 = vector.extract_strided_slice %291 {offsets = [1, 0], sizes = [1, 384], strides = [1, 1]} : vector<2x384xf32> to vector<1x384xf32>
    %304 = vector.broadcast %303 : vector<1x384xf32> to vector<8x384xf32>
    %305 = arith.addf %302, %304 : vector<8x384xf32>
    %306 = vector.extract_strided_slice %298 {offsets = [0, 0], sizes = [8, 128], strides = [1, 1]} : vector<8x384xf32> to vector<8x128xf32>
    %307 = vector.extract_strided_slice %305 {offsets = [0, 0], sizes = [8, 128], strides = [1, 1]} : vector<8x384xf32> to vector<8x128xf32>
    %308 = arith.addf %306, %307 : vector<8x128xf32>
    %309 = arith.negf %308 : vector<8x128xf32>
    %310 = math.exp %309 : vector<8x128xf32>
    %cst_143 = arith.constant 1.000000e+00 : f32
    %311 = vector.broadcast %cst_143 : f32 to vector<8x128xf32>
    %312 = arith.addf %311, %310 : vector<8x128xf32>
    %313 = arith.divf %311, %312 : vector<8x128xf32>
    %314 = vector.extract_strided_slice %298 {offsets = [0, 128], sizes = [8, 128], strides = [1, 1]} : vector<8x384xf32> to vector<8x128xf32>
    %315 = vector.extract_strided_slice %305 {offsets = [0, 128], sizes = [8, 128], strides = [1, 1]} : vector<8x384xf32> to vector<8x128xf32>
    %316 = arith.addf %314, %315 : vector<8x128xf32>
    %317 = arith.negf %316 : vector<8x128xf32>
    %318 = math.exp %317 : vector<8x128xf32>
    %cst_144 = arith.constant 1.000000e+00 : f32
    %319 = vector.broadcast %cst_144 : f32 to vector<8x128xf32>
    %320 = arith.addf %319, %318 : vector<8x128xf32>
    %321 = arith.divf %319, %320 : vector<8x128xf32>
    %322 = vector.extract_strided_slice %298 {offsets = [0, 256], sizes = [8, 128], strides = [1, 1]} : vector<8x384xf32> to vector<8x128xf32>
    %323 = vector.extract_strided_slice %305 {offsets = [0, 256], sizes = [8, 128], strides = [1, 1]} : vector<8x384xf32> to vector<8x128xf32>
    %324 = arith.mulf %313, %323 : vector<8x128xf32>
    %325 = arith.addf %322, %324 : vector<8x128xf32>
    %326 = math.tanh %325 : vector<8x128xf32>
    %cst_145 = arith.constant 1.000000e+00 : f32
    %327 = vector.broadcast %cst_145 : f32 to vector<8x128xf32>
    %328 = arith.subf %327, %321 : vector<8x128xf32>
    %329 = arith.mulf %328, %326 : vector<8x128xf32>
    %330 = arith.mulf %321, %241 : vector<8x128xf32>
    %331 = arith.addf %329, %330 : vector<8x128xf32>
    %cst_146 = arith.constant 0.000000e+00 : f32
    %332 = vector.broadcast %cst_146 : f32 to vector<8x128xf32>
    %333 = arith.maximumf %331, %332 : vector<8x128xf32>
    %c6_147 = arith.constant 6 : index
    %c0_148 = arith.constant 0 : index
    %c0_149 = arith.constant 0 : index
    %334 = vector.load %arg7[%c6_147, %c0_148, %c0_149] : memref<15x1x128xf32, #tpu.memory_space<vmem>>, vector<1x1x128xf32>
    %335 = vector.shape_cast %334 : vector<1x1x128xf32> to vector<1x128xf32>
    %cst_150 = arith.constant dense<0.000000e+00> : vector<1x8xf32>
    %336 = tpu.matmul %335, %333, %cst_150 {dimension_numbers = #tpu.dot_dimension_numbers<[1], [1], [0], [0], [0, 0, 1, 0], [], []>} : vector<1x128xf32>, vector<8x128xf32>, vector<1x8xf32> -> vector<1x8xf32>
    %cst_151 = arith.constant dense<0.000000e+00> : vector<1x128xf32>
    %337 = tpu.matmul %336, %23, %cst_151 {dimension_numbers = #tpu.dot_dimension_numbers<[1], [0], [0], [1], [0, 0, 1, 1], [], []>} : vector<1x8xf32>, vector<8x128xf32>, vector<1x128xf32> -> vector<1x128xf32>
    %338 = arith.addf %248, %337 : vector<1x128xf32>
    %cst_152 = arith.constant 0.000000e+00 : f32
    %339 = vector.broadcast %cst_152 : f32 to vector<1x128xf32>
    %340 = arith.cmpf ogt, %338, %339 : vector<1x128xf32>
    %cst_153 = arith.constant 0.00999999977 : f32
    %341 = vector.broadcast %cst_153 : f32 to vector<1x128xf32>
    %342 = arith.mulf %341, %338 : vector<1x128xf32>
    %343 = arith.select %340, %338, %342 : vector<1x128xi1>, vector<1x128xf32>
    %c7_154 = arith.constant 7 : index
    %c0_155 = arith.constant 0 : index
    %c0_156 = arith.constant 0 : index
    %344 = vector.load %arg7[%c7_154, %c0_155, %c0_156] : memref<15x1x128xf32, #tpu.memory_space<vmem>>, vector<1x1x128xf32>
    %345 = vector.shape_cast %344 : vector<1x1x128xf32> to vector<1x128xf32>
    %cst_157 = arith.constant -1.000000e+30 : f32
    %346 = vector.shape_cast %343 : vector<1x128xf32> to vector<1x128xf32>
    %347 = vector.broadcast %346 : vector<1x128xf32> to vector<8x128xf32>
    %348 = vector.broadcast %cst_157 : f32 to vector<8x128xf32>
    %349 = arith.select %21, %347, %348 : vector<8x128xi1>, vector<8x128xf32>
    %cst_158 = arith.constant dense<0xFF800000> : vector<8xf32>
    %350 = vector.multi_reduction <maximumf>, %349, %cst_158 [1] : vector<8x128xf32> to vector<8xf32>
    %351 = vector.shape_cast %350 : vector<8xf32> to vector<8x1xf32>
    %352 = vector.broadcast %351 : vector<8x1xf32> to vector<8x128xf32>
    %353 = arith.subf %349, %352 : vector<8x128xf32>
    %354 = math.exp %353 : vector<8x128xf32>
    %cst_159 = arith.constant 0.000000e+00 : f32
    %355 = vector.broadcast %cst_159 : f32 to vector<8x128xf32>
    %356 = arith.select %21, %354, %355 : vector<8x128xi1>, vector<8x128xf32>
    %cst_160 = arith.constant dense<0.000000e+00> : vector<8xf32>
    %357 = vector.multi_reduction <add>, %356, %cst_160 [1] : vector<8x128xf32> to vector<8xf32>
    %358 = vector.shape_cast %357 : vector<8xf32> to vector<8x1xf32>
    %cst_161 = arith.constant 1.000000e-16 : f32
    %359 = vector.broadcast %cst_161 : f32 to vector<8x1xf32>
    %360 = arith.addf %358, %359 : vector<8x1xf32>
    %361 = tpu.reciprocal %360 : vector<8x1xf32> -> vector<8x1xf32>
    %362 = vector.broadcast %361 : vector<8x1xf32> to vector<8x128xf32>
    %363 = arith.mulf %356, %362 : vector<8x128xf32>
    %cst_162 = arith.constant dense<0.000000e+00> : vector<8x128xf32>
    %364 = tpu.matmul %363, %245, %cst_162 {dimension_numbers = #tpu.dot_dimension_numbers<[1], [0], [0], [1], [0, 0, 1, 1], [], []>} : vector<8x128xf32>, vector<128x128xf32>, vector<8x128xf32> -> vector<8x128xf32>
    %365 = vector.broadcast %345 : vector<1x128xf32> to vector<8x128xf32>
    %366 = arith.addf %364, %365 : vector<8x128xf32>
    %cst_163 = arith.constant 0.000000e+00 : f32
    %367 = vector.broadcast %cst_163 : f32 to vector<8x128xf32>
    %368 = arith.cmpf ogt, %366, %367 : vector<8x128xf32>
    %cst_164 = arith.constant 0.000000e+00 : f32
    %369 = vector.broadcast %cst_164 : f32 to vector<8x128xf32>
    %370 = arith.minimumf %366, %369 : vector<8x128xf32>
    %371 = math.exp %370 : vector<8x128xf32>
    %cst_165 = arith.constant 1.000000e+00 : f32
    %372 = vector.broadcast %cst_165 : f32 to vector<8x128xf32>
    %373 = arith.subf %371, %372 : vector<8x128xf32>
    %374 = arith.select %368, %366, %373 : vector<8x128xi1>, vector<8x128xf32>
    %c2_166 = arith.constant 2 : index
    %c0_167 = arith.constant 0 : index
    %c0_168 = arith.constant 0 : index
    %375 = vector.load %arg11[%c2_166, %c0_167, %c0_168] : memref<3x2x384xf32, #tpu.memory_space<vmem>>, vector<1x2x384xf32>
    %376 = vector.shape_cast %375 : vector<1x2x384xf32> to vector<2x384xf32>
    %c2_169 = arith.constant 2 : index
    %c0_170 = arith.constant 0 : index
    %c0_171 = arith.constant 0 : index
    %377 = vector.load %arg9[%c2_169, %c0_170, %c0_171] : memref<3x128x384xbf16, #tpu.memory_space<vmem>>, vector<1x128x384xbf16>
    %378 = vector.shape_cast %377 : vector<1x128x384xbf16> to vector<128x384xbf16>
    %379 = arith.extf %378 : vector<128x384xbf16> to vector<128x384xf32>
    %cst_172 = arith.constant dense<0.000000e+00> : vector<8x384xf32>
    %380 = tpu.matmul %374, %379, %cst_172 {dimension_numbers = #tpu.dot_dimension_numbers<[1], [0], [0], [1], [0, 0, 1, 1], [], []>} : vector<8x128xf32>, vector<128x384xf32>, vector<8x384xf32> -> vector<8x384xf32>
    %381 = vector.extract_strided_slice %376 {offsets = [0, 0], sizes = [1, 384], strides = [1, 1]} : vector<2x384xf32> to vector<1x384xf32>
    %382 = vector.broadcast %381 : vector<1x384xf32> to vector<8x384xf32>
    %383 = arith.addf %380, %382 : vector<8x384xf32>
    %c2_173 = arith.constant 2 : index
    %c0_174 = arith.constant 0 : index
    %c0_175 = arith.constant 0 : index
    %384 = vector.load %arg10[%c2_173, %c0_174, %c0_175] : memref<3x128x384xbf16, #tpu.memory_space<vmem>>, vector<1x128x384xbf16>
    %385 = vector.shape_cast %384 : vector<1x128x384xbf16> to vector<128x384xbf16>
    %386 = arith.extf %385 : vector<128x384xbf16> to vector<128x384xf32>
    %cst_176 = arith.constant dense<0.000000e+00> : vector<8x384xf32>
    %387 = tpu.matmul %333, %386, %cst_176 {dimension_numbers = #tpu.dot_dimension_numbers<[1], [0], [0], [1], [0, 0, 1, 1], [], []>} : vector<8x128xf32>, vector<128x384xf32>, vector<8x384xf32> -> vector<8x384xf32>
    %388 = vector.extract_strided_slice %376 {offsets = [1, 0], sizes = [1, 384], strides = [1, 1]} : vector<2x384xf32> to vector<1x384xf32>
    %389 = vector.broadcast %388 : vector<1x384xf32> to vector<8x384xf32>
    %390 = arith.addf %387, %389 : vector<8x384xf32>
    %391 = vector.extract_strided_slice %383 {offsets = [0, 0], sizes = [8, 128], strides = [1, 1]} : vector<8x384xf32> to vector<8x128xf32>
    %392 = vector.extract_strided_slice %390 {offsets = [0, 0], sizes = [8, 128], strides = [1, 1]} : vector<8x384xf32> to vector<8x128xf32>
    %393 = arith.addf %391, %392 : vector<8x128xf32>
    %394 = arith.negf %393 : vector<8x128xf32>
    %395 = math.exp %394 : vector<8x128xf32>
    %cst_177 = arith.constant 1.000000e+00 : f32
    %396 = vector.broadcast %cst_177 : f32 to vector<8x128xf32>
    %397 = arith.addf %396, %395 : vector<8x128xf32>
    %398 = arith.divf %396, %397 : vector<8x128xf32>
    %399 = vector.extract_strided_slice %383 {offsets = [0, 128], sizes = [8, 128], strides = [1, 1]} : vector<8x384xf32> to vector<8x128xf32>
    %400 = vector.extract_strided_slice %390 {offsets = [0, 128], sizes = [8, 128], strides = [1, 1]} : vector<8x384xf32> to vector<8x128xf32>
    %401 = arith.addf %399, %400 : vector<8x128xf32>
    %402 = arith.negf %401 : vector<8x128xf32>
    %403 = math.exp %402 : vector<8x128xf32>
    %cst_178 = arith.constant 1.000000e+00 : f32
    %404 = vector.broadcast %cst_178 : f32 to vector<8x128xf32>
    %405 = arith.addf %404, %403 : vector<8x128xf32>
    %406 = arith.divf %404, %405 : vector<8x128xf32>
    %407 = vector.extract_strided_slice %383 {offsets = [0, 256], sizes = [8, 128], strides = [1, 1]} : vector<8x384xf32> to vector<8x128xf32>
    %408 = vector.extract_strided_slice %390 {offsets = [0, 256], sizes = [8, 128], strides = [1, 1]} : vector<8x384xf32> to vector<8x128xf32>
    %409 = arith.mulf %398, %408 : vector<8x128xf32>
    %410 = arith.addf %407, %409 : vector<8x128xf32>
    %411 = math.tanh %410 : vector<8x128xf32>
    %cst_179 = arith.constant 1.000000e+00 : f32
    %412 = vector.broadcast %cst_179 : f32 to vector<8x128xf32>
    %413 = arith.subf %412, %406 : vector<8x128xf32>
    %414 = arith.mulf %413, %411 : vector<8x128xf32>
    %415 = arith.mulf %406, %333 : vector<8x128xf32>
    %416 = arith.addf %414, %415 : vector<8x128xf32>
    %cst_180 = arith.constant 0.000000e+00 : f32
    %417 = vector.broadcast %cst_180 : f32 to vector<8x128xf32>
    %418 = arith.maximumf %416, %417 : vector<8x128xf32>
    %c0_181 = arith.constant 0 : index
    %c0_182 = arith.constant 0 : index
    %419 = vector.load %arg5[%c0_181, %c0_182] : memref<8x128xf32, #tpu.memory_space<vmem>>, vector<8x128xf32>
    %c6_183 = arith.constant 6 : index
    %c0_184 = arith.constant 0 : index
    %c0_185 = arith.constant 0 : index
    %420 = vector.load %arg6[%c6_183, %c0_184, %c0_185] : memref<15x128x128xbf16, #tpu.memory_space<vmem>>, vector<1x128x128xbf16>
    %421 = vector.shape_cast %420 : vector<1x128x128xbf16> to vector<128x128xbf16>
    %422 = arith.extf %421 : vector<128x128xbf16> to vector<128x128xf32>
    %cst_186 = arith.constant dense<0.000000e+00> : vector<8x128xf32>
    %423 = tpu.matmul %419, %422, %cst_186 {dimension_numbers = #tpu.dot_dimension_numbers<[1], [0], [0], [1], [0, 0, 1, 1], [], []>} : vector<8x128xf32>, vector<128x128xf32>, vector<8x128xf32> -> vector<8x128xf32>
    %c8 = arith.constant 8 : index
    %c0_187 = arith.constant 0 : index
    %c0_188 = arith.constant 0 : index
    %424 = vector.load %arg7[%c8, %c0_187, %c0_188] : memref<15x1x128xf32, #tpu.memory_space<vmem>>, vector<1x1x128xf32>
    %425 = vector.shape_cast %424 : vector<1x1x128xf32> to vector<1x128xf32>
    %426 = vector.broadcast %425 : vector<1x128xf32> to vector<8x128xf32>
    %427 = arith.addf %423, %426 : vector<8x128xf32>
    %cst_189 = arith.constant 0.000000e+00 : f32
    %428 = vector.broadcast %cst_189 : f32 to vector<8x128xf32>
    %429 = arith.maximumf %427, %428 : vector<8x128xf32>
    %c7_190 = arith.constant 7 : index
    %c0_191 = arith.constant 0 : index
    %c0_192 = arith.constant 0 : index
    %430 = vector.load %arg6[%c7_190, %c0_191, %c0_192] : memref<15x128x128xbf16, #tpu.memory_space<vmem>>, vector<1x128x128xbf16>
    %431 = vector.shape_cast %430 : vector<1x128x128xbf16> to vector<128x128xbf16>
    %432 = arith.extf %431 : vector<128x128xbf16> to vector<128x128xf32>
    %cst_193 = arith.constant dense<0.000000e+00> : vector<8x128xf32>
    %433 = tpu.matmul %429, %432, %cst_193 {dimension_numbers = #tpu.dot_dimension_numbers<[1], [0], [0], [1], [0, 0, 1, 1], [], []>} : vector<8x128xf32>, vector<128x128xf32>, vector<8x128xf32> -> vector<8x128xf32>
    %c9 = arith.constant 9 : index
    %c0_194 = arith.constant 0 : index
    %c0_195 = arith.constant 0 : index
    %434 = vector.load %arg7[%c9, %c0_194, %c0_195] : memref<15x1x128xf32, #tpu.memory_space<vmem>>, vector<1x1x128xf32>
    %435 = vector.shape_cast %434 : vector<1x1x128xf32> to vector<1x128xf32>
    %436 = vector.broadcast %435 : vector<1x128xf32> to vector<8x128xf32>
    %437 = arith.addf %433, %436 : vector<8x128xf32>
    %cst_196 = arith.constant 0.000000e+00 : f32
    %438 = vector.broadcast %cst_196 : f32 to vector<8x128xf32>
    %439 = arith.maximumf %437, %438 : vector<8x128xf32>
    %c8_197 = arith.constant 8 : index
    %c0_198 = arith.constant 0 : index
    %c0_199 = arith.constant 0 : index
    %440 = vector.load %arg6[%c8_197, %c0_198, %c0_199] : memref<15x128x128xbf16, #tpu.memory_space<vmem>>, vector<1x128x128xbf16>
    %441 = vector.shape_cast %440 : vector<1x128x128xbf16> to vector<128x128xbf16>
    %442 = arith.extf %441 : vector<128x128xbf16> to vector<128x128xf32>
    %cst_200 = arith.constant dense<0.000000e+00> : vector<8x128xf32>
    %443 = tpu.matmul %429, %442, %cst_200 {dimension_numbers = #tpu.dot_dimension_numbers<[1], [0], [0], [1], [0, 0, 1, 1], [], []>} : vector<8x128xf32>, vector<128x128xf32>, vector<8x128xf32> -> vector<8x128xf32>
    %c10 = arith.constant 10 : index
    %c0_201 = arith.constant 0 : index
    %c0_202 = arith.constant 0 : index
    %444 = vector.load %arg7[%c10, %c0_201, %c0_202] : memref<15x1x128xf32, #tpu.memory_space<vmem>>, vector<1x1x128xf32>
    %445 = vector.shape_cast %444 : vector<1x1x128xf32> to vector<1x128xf32>
    %446 = vector.broadcast %445 : vector<1x128xf32> to vector<8x128xf32>
    %447 = arith.addf %443, %446 : vector<8x128xf32>
    %cst_203 = arith.constant 0.000000e+00 : f32
    %448 = vector.broadcast %cst_203 : f32 to vector<8x128xf32>
    %449 = arith.maximumf %447, %448 : vector<8x128xf32>
    %c9_204 = arith.constant 9 : index
    %c0_205 = arith.constant 0 : index
    %c0_206 = arith.constant 0 : index
    %450 = vector.load %arg6[%c9_204, %c0_205, %c0_206] : memref<15x128x128xbf16, #tpu.memory_space<vmem>>, vector<1x128x128xbf16>
    %451 = vector.shape_cast %450 : vector<1x128x128xbf16> to vector<128x128xbf16>
    %452 = arith.extf %451 : vector<128x128xbf16> to vector<128x128xf32>
    %cst_207 = arith.constant dense<0.000000e+00> : vector<8x128xf32>
    %453 = tpu.matmul %439, %452, %cst_207 {dimension_numbers = #tpu.dot_dimension_numbers<[1], [0], [0], [1], [0, 0, 1, 1], [], []>} : vector<8x128xf32>, vector<128x128xf32>, vector<8x128xf32> -> vector<8x128xf32>
    %c10_208 = arith.constant 10 : index
    %c0_209 = arith.constant 0 : index
    %c0_210 = arith.constant 0 : index
    %454 = vector.load %arg6[%c10_208, %c0_209, %c0_210] : memref<15x128x128xbf16, #tpu.memory_space<vmem>>, vector<1x128x128xbf16>
    %455 = vector.shape_cast %454 : vector<1x128x128xbf16> to vector<128x128xbf16>
    %456 = arith.extf %455 : vector<128x128xbf16> to vector<128x128xf32>
    %cst_211 = arith.constant dense<0.000000e+00> : vector<8x128xf32>
    %457 = tpu.matmul %449, %456, %cst_211 {dimension_numbers = #tpu.dot_dimension_numbers<[1], [0], [0], [1], [0, 0, 1, 1], [], []>} : vector<8x128xf32>, vector<128x128xf32>, vector<8x128xf32> -> vector<8x128xf32>
    %458 = arith.addf %453, %457 : vector<8x128xf32>
    %c11 = arith.constant 11 : index
    %c0_212 = arith.constant 0 : index
    %c0_213 = arith.constant 0 : index
    %459 = vector.load %arg7[%c11, %c0_212, %c0_213] : memref<15x1x128xf32, #tpu.memory_space<vmem>>, vector<1x1x128xf32>
    %460 = vector.shape_cast %459 : vector<1x1x128xf32> to vector<1x128xf32>
    %461 = vector.broadcast %460 : vector<1x128xf32> to vector<8x128xf32>
    %462 = arith.addf %458, %461 : vector<8x128xf32>
    %cst_214 = arith.constant 0.000000e+00 : f32
    %463 = vector.broadcast %cst_214 : f32 to vector<8x128xf32>
    %464 = arith.maximumf %462, %463 : vector<8x128xf32>
    %c11_215 = arith.constant 11 : index
    %c0_216 = arith.constant 0 : index
    %c0_217 = arith.constant 0 : index
    %465 = vector.load %arg6[%c11_215, %c0_216, %c0_217] : memref<15x128x128xbf16, #tpu.memory_space<vmem>>, vector<1x128x128xbf16>
    %466 = vector.shape_cast %465 : vector<1x128x128xbf16> to vector<128x128xbf16>
    %467 = arith.extf %466 : vector<128x128xbf16> to vector<128x128xf32>
    %cst_218 = arith.constant dense<0.000000e+00> : vector<8x128xf32>
    %468 = tpu.matmul %464, %467, %cst_218 {dimension_numbers = #tpu.dot_dimension_numbers<[1], [0], [0], [1], [0, 0, 1, 1], [], []>} : vector<8x128xf32>, vector<128x128xf32>, vector<8x128xf32> -> vector<8x128xf32>
    %c12 = arith.constant 12 : index
    %c0_219 = arith.constant 0 : index
    %c0_220 = arith.constant 0 : index
    %469 = vector.load %arg6[%c12, %c0_219, %c0_220] : memref<15x128x128xbf16, #tpu.memory_space<vmem>>, vector<1x128x128xbf16>
    %470 = vector.shape_cast %469 : vector<1x128x128xbf16> to vector<128x128xbf16>
    %471 = arith.extf %470 : vector<128x128xbf16> to vector<128x128xf32>
    %cst_221 = arith.constant dense<0.000000e+00> : vector<8x128xf32>
    %472 = tpu.matmul %418, %471, %cst_221 {dimension_numbers = #tpu.dot_dimension_numbers<[1], [0], [0], [1], [0, 0, 1, 1], [], []>} : vector<8x128xf32>, vector<128x128xf32>, vector<8x128xf32> -> vector<8x128xf32>
    %473 = arith.addf %468, %472 : vector<8x128xf32>
    %c12_222 = arith.constant 12 : index
    %c0_223 = arith.constant 0 : index
    %c0_224 = arith.constant 0 : index
    %474 = vector.load %arg7[%c12_222, %c0_223, %c0_224] : memref<15x1x128xf32, #tpu.memory_space<vmem>>, vector<1x1x128xf32>
    %475 = vector.shape_cast %474 : vector<1x1x128xf32> to vector<1x128xf32>
    %476 = vector.broadcast %475 : vector<1x128xf32> to vector<8x128xf32>
    %477 = arith.addf %473, %476 : vector<8x128xf32>
    %cst_225 = arith.constant 0.000000e+00 : f32
    %478 = vector.broadcast %cst_225 : f32 to vector<8x128xf32>
    %479 = arith.maximumf %477, %478 : vector<8x128xf32>
    %c13 = arith.constant 13 : index
    %c0_226 = arith.constant 0 : index
    %c0_227 = arith.constant 0 : index
    %480 = vector.load %arg6[%c13, %c0_226, %c0_227] : memref<15x128x128xbf16, #tpu.memory_space<vmem>>, vector<1x128x128xbf16>
    %481 = vector.shape_cast %480 : vector<1x128x128xbf16> to vector<128x128xbf16>
    %482 = arith.extf %481 : vector<128x128xbf16> to vector<128x128xf32>
    %cst_228 = arith.constant dense<0.000000e+00> : vector<8x128xf32>
    %483 = tpu.matmul %479, %482, %cst_228 {dimension_numbers = #tpu.dot_dimension_numbers<[1], [0], [0], [1], [0, 0, 1, 1], [], []>} : vector<8x128xf32>, vector<128x128xf32>, vector<8x128xf32> -> vector<8x128xf32>
    %c13_229 = arith.constant 13 : index
    %c0_230 = arith.constant 0 : index
    %c0_231 = arith.constant 0 : index
    %484 = vector.load %arg7[%c13_229, %c0_230, %c0_231] : memref<15x1x128xf32, #tpu.memory_space<vmem>>, vector<1x1x128xf32>
    %485 = vector.shape_cast %484 : vector<1x1x128xf32> to vector<1x128xf32>
    %486 = vector.broadcast %485 : vector<1x128xf32> to vector<8x128xf32>
    %487 = arith.addf %483, %486 : vector<8x128xf32>
    %cst_232 = arith.constant 0.000000e+00 : f32
    %488 = vector.broadcast %cst_232 : f32 to vector<8x128xf32>
    %489 = arith.maximumf %487, %488 : vector<8x128xf32>
    %c14 = arith.constant 14 : index
    %c0_233 = arith.constant 0 : index
    %c0_234 = arith.constant 0 : index
    %490 = vector.load %arg6[%c14, %c0_233, %c0_234] : memref<15x128x128xbf16, #tpu.memory_space<vmem>>, vector<1x128x128xbf16>
    %491 = vector.shape_cast %490 : vector<1x128x128xbf16> to vector<128x128xbf16>
    %492 = arith.extf %491 : vector<128x128xbf16> to vector<128x128xf32>
    %cst_235 = arith.constant dense<0.000000e+00> : vector<8x128xf32>
    %493 = tpu.matmul %489, %492, %cst_235 {dimension_numbers = #tpu.dot_dimension_numbers<[1], [0], [0], [1], [0, 0, 1, 1], [], []>} : vector<8x128xf32>, vector<128x128xf32>, vector<8x128xf32> -> vector<8x128xf32>
    %c14_236 = arith.constant 14 : index
    %c0_237 = arith.constant 0 : index
    %c0_238 = arith.constant 0 : index
    %494 = vector.load %arg7[%c14_236, %c0_237, %c0_238] : memref<15x1x128xf32, #tpu.memory_space<vmem>>, vector<1x1x128xf32>
    %495 = vector.shape_cast %494 : vector<1x1x128xf32> to vector<1x128xf32>
    %496 = vector.broadcast %495 : vector<1x128xf32> to vector<8x128xf32>
    %497 = arith.addf %493, %496 : vector<8x128xf32>
    %c0_239 = arith.constant 0 : index
    %c0_240 = arith.constant 0 : index
    %498 = vector.load %arg12[%c0_239, %c0_240] : memref<8x128xf32, #tpu.memory_space<vmem>>, vector<8x128xf32>
    tpu.vector_store %arg12[%c0_239, %c0_240], %497 {strides = array<i32>} : memref<8x128xf32, #tpu.memory_space<vmem>>, vector<8x128xf32>,
    return
  }
}

</mosaic_0001>

<bundles_post_ra>
// kernel: attentive_fp_forward.1
= control target key start
LH: loop header
LB: loop body
LE: loop exit
PB: predicated region body
PF: predicated region fallthrough
CT: control target
= control target key end

     0   :  { %17 = vsyncpa [#allocation3], 0  ;;  %s16544_s0 = inlined_call_operand.vmem [shape: s32[2,128], index: 0, kind: input, shape index: {}]   ;;  %s16545_s1 = inlined_call_operand.vmem [shape: s32[128,1], index: 1, kind: input, shape index: {}]   ;;  %s16546_s2 = inlined_call_operand.vmem [shape: s32[1,128], index: 2, kind: input, shape index: {}]   ;;  %s16547_s3 = inlined_call_operand.vmem [shape: f32[128,128], index: 3, kind: input, shape index: {}]   ;;  %s16548_s4 = inlined_call_operand.vmem [shape: f32[128,128], index: 4, kind: input, shape index: {}]   ;;  %s16549_s5 = inlined_call_operand.vmem [shape: f32[8,128], index: 5, kind: input, shape index: {}]   ;;  %s16550_s6 = inlined_call_operand.hbm [shape: bf16[15,128,128], index: 6, kind: input, shape index: {}]   ;;  %s16551_s7 = inlined_call_operand.vmem [shape: f32[15,1,128], index: 7, kind: input, shape index: {}]   ;;  %s16552_s8 = inlined_call_operand.vmem [shape: f32[1,2,128], index: 8, kind: input, shape index: {}]   ;;  %s16553_s9 = inlined_call_operand.hbm [shape: bf16[3,128,384], index: 9, kind: input, shape index: {}]   ;;  %s16554_s10 = inlined_call_operand.hbm [shape: bf16[3,128,384], index: 10, kind: input, shape index: {}]   ;;  %s16555_s11 = inlined_call_operand.vmem [shape: f32[3,2,384], index: 11, kind: input, shape index: {}]   ;;  %s16556_s12 = inlined_call_operand.vmem [shape: f32[8,128], index: 12, kind: output, shape index: {}]  }
   0x1   :  { %18 = vsyncpa [#allocation5], 0  ;;  %s13794_s21 = smov [#allocation4]   ;;  %s13724_s25 = scalar_lea.hbm %s16553_s9, 9216 }
   0x2   :  { %s52_s22 = sshll.u32 %s13794_s21, 4  ;;  %p13725_p0 = scmp.ne.s32.totalorder %s16553_s9, %s13724_s25  ;;  %s53_s22 = int_to_ptr.vmem [resolvable:$true] %s52_s22 }
   0x3   :  { %p13728_p1 = scmp.lt.u32.totalorder %s13724_s25, %s16553_s9 }
   0x5   :  { %p13730_p2 = pnand %p13728_p1, %p13725_p0 }
   0x7   :  { %13733 = shalt.err (!%p13730_p2)
}
   0x8   :  { %s13734_s30 = scalar_lea.vmem %s53_s22, 9216  ;;  %p13739_p4 = scmp.lt.s32.totalorder %s53_s22, %s53_s22 }
   0x9   :  { %p13735_p3 = scmp.ne.s32.totalorder %s53_s22, %s13734_s30  ;;  %p13740_p5 = scmp.lt.s32.totalorder %s13734_s30, %s13734_s30 }
   0xb   :  { %p13741_p6 = por %p13740_p5, %p13739_p4 }
   0xd   :  { %p13742_p7 = pnand %p13741_p6, %p13735_p3 }
   0xf   :  { %13745 = shalt.err (!%p13742_p7)
}
  0x10   :  { %s13795_s13 = smov 192   ;;  %s13796_s14 = smov 12  }
  0x11   :  { %58 = dma.hbm_to_vmem [thread:$0]  %s16553_s9, 9216, %s53_s22, [#allocation5], %s13795_s13, %s13795_s13, %s13796_s14  }
  0x12   :  { %s13797_s17 = smov [#allocation2]   ;;  %s13746_s21 = scalar_lea.hbm %s16550_s6, 15360 }
  0x13   :  { %s36_s18 = sshll.u32 %s13797_s17, 4  ;;  %p13747_p8 = scmp.ne.s32.totalorder %s16550_s6, %s13746_s21  ;;  %s37_s18 = int_to_ptr.vmem [resolvable:$true] %s36_s18 }
  0x14   :  { %p13750_p9 = scmp.lt.u32.totalorder %s13746_s21, %s16550_s6 }
  0x16   :  { %p13752_p10 = pnand %p13750_p9, %p13747_p8 }
  0x18   :  { %13755 = shalt.err (!%p13752_p10)
}
  0x19   :  { %s13756_s27 = scalar_lea.vmem %s37_s18, 15360  ;;  %p13761_p12 = scmp.lt.s32.totalorder %s37_s18, %s37_s18 }
  0x1a   :  { %p13757_p11 = scmp.ne.s32.totalorder %s37_s18, %s13756_s27  ;;  %p13762_p13 = scmp.lt.s32.totalorder %s13756_s27, %s13756_s27 }
  0x1c   :  { %p13763_p0 = por %p13762_p13, %p13761_p12 }
  0x1e   :  { %p13764_p1 = pnand %p13763_p0, %p13757_p11 }
  0x20   :  { %13767 = shalt.err (!%p13764_p1)
}
  0x21   :  { %s13798_s9 = smov 64   ;;  %s13799_s22 = smov 4  }
  0x22   :  { %42 = dma.hbm_to_vmem [thread:$0]  %s16550_s6, 15360, %s37_s18, [#allocation3], %s13798_s9, %s13798_s9, %s13799_s22  }
  0x23   :  { %s13800_s30 = smov [#allocation6]   ;;  %s13768_s19 = scalar_lea.hbm %s16554_s10, 9216 }
  0x24   :  { %s64_s15 = sshll.u32 %s13800_s30, 4  ;;  %p13769_p2 = scmp.ne.s32.totalorder %s16554_s10, %s13768_s19  ;;  %s65_s15 = int_to_ptr.vmem [resolvable:$true] %s64_s15 }
  0x25   :  { %p13772_p3 = scmp.lt.u32.totalorder %s13768_s19, %s16554_s10 }
  0x27   :  { %p13774_p4 = pnand %p13772_p3, %p13769_p2 }
  0x29   :  { %13777 = shalt.err (!%p13774_p4)
}
  0x2a   :  { %s13778_s25 = scalar_lea.vmem %s65_s15, 9216  ;;  %p13783_p6 = scmp.lt.s32.totalorder %s65_s15, %s65_s15 }
  0x2b   :  { %p13779_p5 = scmp.ne.s32.totalorder %s65_s15, %s13778_s25  ;;  %p13784_p7 = scmp.lt.s32.totalorder %s13778_s25, %s13778_s25 }
  0x2d   :  { %p13785_p8 = por %p13784_p7, %p13783_p6 }
  0x2f   :  { %p13786_p9 = pnand %p13785_p8, %p13779_p5 }
  0x31   :  { %13789 = shalt.err (!%p13786_p9)
}
  0x32   :  { %70 = dma.hbm_to_vmem [thread:$0]  %s16554_s10, 9216, %s65_s15, [#allocation5], %s13795_s13, %s13795_s13, %s13796_s14  }
  0x33   :  { %13790 = dma.done.wait [#allocation3], 15360  }
  0x34   :  { %13791 = vsyncadd [#allocation3], 4294951936 }
  0x35   :  { %13792 = dma.done.wait [#allocation5], 18432  }
  0x36   :  { %13793 = vsyncadd [#allocation5], 4294948864  ;;  %v13801_v0 = vmov 0   ;;  %v8228_v1 = vld [vmem:[#allocation2] sm:$0xff]   ;;  %v8707_v2 = vld [vmem:[#allocation2 + $0x8] sm:$0xff]   ;;  %v83_v41 = vlaneseq  ;;  %v16575_v44 = vmov 1.0  }
  0x37   :  { %12985 = vset.pattern.permute.xlu0 %v13801_v0  ;;  %12986 = vset.pattern.permute.xlu1 %v13801_v0  ;;  %v326_v3 = vld [vmem:[%s16547_s3] sm:$0xff]  ;;  %v8708_v4 = vld [vmem:[#allocation2 + $0x10] sm:$0xff]   ;;  %v8709_v5 = vld [vmem:[#allocation2 + $0x18] sm:$0xff]  }
  0x38   :  { %11269 = vmatprep.subr.bf16.mxu0 %v8228_v1  ;;  %9691 = vmatprep.mubr.f32.mxu0 %v326_v3  ;;  %v206_v6 = vld [vmem:[%s16545_s1] sm:$0xff]  ;;  %v208_v7 = vld [vmem:[%s16545_s1 + $0x10] sm:$0xff]  ;;  %v207_v8 = vld [vmem:[%s16545_s1 + $0x8] sm:$0xff]  ;;  %v14011_v42 = vand.u32 127, %v83_v41 }
  0x39   :  { %11271 = vmatpush3.bf16.msra.mxu0 %v8228_v1  ;;  %223 = vperm.xlu0 %12985, %v206_v6   ;;  %v209_v9 = vld [vmem:[%s16545_s1 + $0x18] sm:$0xff]  ;;  %v8710_v10 = vld [vmem:[#allocation2 + $0x20] sm:$0xff]   ;;  %v211_v12 = vld [vmem:[%s16545_s1 + $0x28] sm:$0xff] }
  0x3a   :  { %11273 = vmatprep.subr.bf16.mxu0 %v8707_v2  ;;  %229 = vperm.xlu1 %12986, %v208_v7   ;;  %v210_v11 = vld [vmem:[%s16545_s1 + $0x20] sm:$0xff]  ;;  %v8711_v13 = vld [vmem:[#allocation2 + $0x28] sm:$0xff]   ;;  %v212_v14 = vld [vmem:[%s16545_s1 + $0x30] sm:$0xff]  ;;  %16720 = vst [vmem:[#allocation9_spill] sm:$0xff] %v14011_v42 }
  0x3b   :  { %v213_v15 = vld [vmem:[%s16545_s1 + $0x38] sm:$0xff]  ;;  %v8712_v16 = vld [vmem:[#allocation2 + $0x30] sm:$0xff]   ;;  %v214_v17 = vld [vmem:[%s16545_s1 + $0x40] sm:$0xff] }
  0x3c   :  { %v215_v18 = vld [vmem:[%s16545_s1 + $0x48] sm:$0xff]  ;;  %v8713_v19 = vld [vmem:[#allocation2 + $0x38] sm:$0xff]   ;;  %v216_v20 = vld [vmem:[%s16545_s1 + $0x50] sm:$0xff] }
  0x3d   :  { %11275 = vmatpush3.bf16.msra.mxu0 %v8707_v2  ;;  %226 = vperm.xlu0 %12985, %v207_v8   ;;  %v217_v21 = vld [vmem:[%s16545_s1 + $0x58] sm:$0xff]  ;;  %v327_v22 = vld [vmem:[%s16547_s3 + $0x8] sm:$0xff]  ;;  %v218_v23 = vld [vmem:[%s16545_s1 + $0x60] sm:$0xff] }
  0x3e   :  { %11277 = vmatprep.subr.bf16.mxu0 %v8708_v4  ;;  %232 = vperm.xlu1 %12986, %v209_v9   ;;  %v328_v24 = vld [vmem:[%s16547_s3 + $0x10] sm:$0xff]  ;;  %v219_v25 = vld [vmem:[%s16545_s1 + $0x68] sm:$0xff]  ;;  %v329_v26 = vld [vmem:[%s16547_s3 + $0x18] sm:$0xff] }
  0x3f   :  { %v220_v27 = vld [vmem:[%s16545_s1 + $0x70] sm:$0xff]  ;;  %v330_v28 = vld [vmem:[%s16547_s3 + $0x20] sm:$0xff]  ;;  %v221_v29 = vld [vmem:[%s16545_s1 + $0x78] sm:$0xff] }
  0x40   :  { %v331_v30 = vld [vmem:[%s16547_s3 + $0x28] sm:$0xff]  ;;  %v332_v31 = vld [vmem:[%s16547_s3 + $0x30] sm:$0xff]  ;;  %v333_v32 = vld [vmem:[%s16547_s3 + $0x38] sm:$0xff] }
  0x41   :  { %11279 = vmatpush3.bf16.msra.mxu0 %v8708_v4  ;;  %235 = vperm.xlu0 %12985, %v210_v11   ;;  %v334_v33 = vld [vmem:[%s16547_s3 + $0x40] sm:$0xff]  ;;  %v335_v34 = vld [vmem:[%s16547_s3 + $0x48] sm:$0xff]  ;;  %v336_v35 = vld [vmem:[%s16547_s3 + $0x50] sm:$0xff] }
  0x42   :  { %11281 = vmatprep.subr.bf16.mxu0 %v8709_v5  ;;  %238 = vperm.xlu1 %12986, %v211_v12   ;;  %v337_v36 = vld [vmem:[%s16547_s3 + $0x58] sm:$0xff]  ;;  %v338_v37 = vld [vmem:[%s16547_s3 + $0x60] sm:$0xff]  ;;  %v339_v38 = vld [vmem:[%s16547_s3 + $0x68] sm:$0xff] }
  0x43   :  { %v340_v39 = vld [vmem:[%s16547_s3 + $0x70] sm:$0xff]  ;;  %v341_v40 = vld [vmem:[%s16547_s3 + $0x78] sm:$0xff]  ;;  %v8292_v45 = vld [vmem:[#allocation2 + $0x80] sm:$0xff]  }
  0x44   :  { %v8721_v46 = vld [vmem:[#allocation2 + $0x88] sm:$0xff]   ;;  %v752_v47 = vld [vmem:[%s16548_s4] sm:$0xff]  ;;  %v8722_v48 = vld [vmem:[#allocation2 + $0x90] sm:$0xff]  }
  0x45   :  { %11283 = vmatpush3.bf16.msra.mxu0 %v8709_v5  ;;  %241 = vperm.xlu0 %12985, %v212_v14   ;;  %v8723_v49 = vld [vmem:[#allocation2 + $0x98] sm:$0xff]   ;;  %v8724_v50 = vld [vmem:[#allocation2 + $0xa0] sm:$0xff]   ;;  %v8725_v51 = vld [vmem:[#allocation2 + $0xa8] sm:$0xff]  }
  0x46   :  { %11285 = vmatprep.subr.bf16.mxu0 %v8710_v10  ;;  %244 = vperm.xlu1 %12986, %v213_v15   ;;  %v8726_v52 = vld [vmem:[#allocation2 + $0xb0] sm:$0xff]   ;;  %v14027_v53 = vld [vmem:[%s16551_s7] ss:$0 sm:$0xff]  ;;  %v8727_v54 = vld [vmem:[#allocation2 + $0xb8] sm:$0xff]  }
  0x47   :  { %v8260_v60 = vld [vmem:[#allocation2 + $0x40] sm:$0xff]   ;;  %v753_v2 = vld [vmem:[%s16548_s4 + $0x8] sm:$0xff]  ;;  %v754_v7 = vld [vmem:[%s16548_s4 + $0x10] sm:$0xff] }
  0x48   :  { %v755_v14 = vld [vmem:[%s16548_s4 + $0x18] sm:$0xff] }
  0x49   :  { %11287 = vmatpush3.bf16.msra.mxu0 %v8710_v10  ;;  %247 = vperm.xlu0 %12985, %v214_v17   ;;  %v8714_v10 = vld [vmem:[#allocation2 + $0x48] sm:$0xff]  }
  0x4a   :  { %11289 = vmatprep.subr.bf16.mxu0 %v8711_v13  ;;  %250 = vperm.xlu1 %12986, %v215_v18  }
  0x4d   :  { %11291 = vmatpush3.bf16.msra.mxu0 %v8711_v13  ;;  %253 = vperm.xlu0 %12985, %v216_v20  }
  0x4e   :  { %11293 = vmatprep.subr.bf16.mxu0 %v8712_v16  ;;  %256 = vperm.xlu1 %12986, %v217_v21  }
  0x51   :  { %11295 = vmatpush3.bf16.msra.mxu0 %v8712_v16  ;;  %259 = vperm.xlu0 %12985, %v218_v23  }
  0x52   :  { %11297 = vmatprep.subr.bf16.mxu0 %v8713_v19  ;;  %262 = vperm.xlu1 %12986, %v219_v25  }
  0x55   :  { %11299 = vmatpush3.bf16.msra.mxu0 %v8713_v19  ;;  %265 = vperm.xlu0 %12985, %v220_v27   ;;  %v756_v19 = vld [vmem:[%s16548_s4 + $0x20] sm:$0xff] }
  0x56   :  { %268 = vperm.xlu1 %12986, %v221_v29   ;;  %11333 = vmatprep.subr.bf16.mxu0 %v8292_v45 }
  0x58   :  { %9692 = vmatmul.mubr.f32.vlgmr.msra.gmra.mrb[0].mxu0 %v327_v22  ;;  %v8715_v22 = vld [vmem:[#allocation2 + $0x50] sm:$0xff]  }
  0x59   :  { %9694 = vmatprep.mubr.f32.mxu0 %v328_v24  ;;  %11335 = vmatpush3.bf16.msra.mxu0 %v8292_v45 }
  0x5a   :  { %11337 = vmatprep.subr.bf16.mxu0 %v8721_v46 }
  0x5c   :  { %9695 = vmatmul.mubr.f32.gmra.mrb[2].mxu0 %v329_v26  ;;  %v757_v26 = vld [vmem:[%s16548_s4 + $0x28] sm:$0xff] }
  0x5d   :  { %9697 = vmatprep.mubr.f32.mxu0 %v330_v28  ;;  %11339 = vmatpush3.bf16.msra.mxu0 %v8721_v46 }
  0x5e   :  { %11341 = vmatprep.subr.bf16.mxu0 %v8722_v48 }
  0x60   :  { %9698 = vmatmul.mubr.f32.gmra.mrb[4].mxu0 %v331_v30 }
  0x61   :  { %9700 = vmatprep.mubr.f32.mxu0 %v332_v31  ;;  %11343 = vmatpush3.bf16.msra.mxu0 %v8722_v48  ;;  %v758_v31 = vld [vmem:[%s16548_s4 + $0x30] sm:$0xff] }
  0x62   :  { %11345 = vmatprep.subr.bf16.mxu0 %v8723_v49 }
  0x64   :  { %9701 = vmatmul.mubr.f32.gmra.mrb[6].mxu0 %v333_v32 }
  0x65   :  { %9703 = vmatprep.mubr.f32.mxu0 %v334_v33  ;;  %11347 = vmatpush3.bf16.msra.mxu0 %v8723_v49 }
  0x66   :  { %11349 = vmatprep.subr.bf16.mxu0 %v8724_v50 }
  0x68   :  { %9704 = vmatmul.mubr.f32.gmra.mrb[8].mxu0 %v335_v34  ;;  %v8716_v34 = vld [vmem:[#allocation2 + $0x58] sm:$0xff]  }
  0x69   :  { %9706 = vmatprep.mubr.f32.mxu0 %v336_v35  ;;  %11351 = vmatpush3.bf16.msra.mxu0 %v8724_v50  ;;  %v8717_v50 = vld [vmem:[#allocation2 + $0x60] sm:$0xff]  }
  0x6a   :  { %11353 = vmatprep.subr.bf16.mxu0 %v8725_v51 }
  0x6c   :  { %9707 = vmatmul.mubr.f32.gmra.mrb[10].mxu0 %v337_v36 }
  0x6d   :  { %9709 = vmatprep.mubr.f32.mxu0 %v338_v37  ;;  %11355 = vmatpush3.bf16.msra.mxu0 %v8725_v51 }
  0x6e   :  { %11357 = vmatprep.subr.bf16.mxu0 %v8726_v52 }
  0x70   :  { %9710 = vmatmul.mubr.f32.gmra.mrb[12].mxu0 %v339_v38  ;;  %v759_v38 = vld [vmem:[%s16548_s4 + $0x38] sm:$0xff] }
  0x71   :  { %9712 = vmatprep.mubr.f32.mxu0 %v340_v39  ;;  %11359 = vmatpush3.bf16.msra.mxu0 %v8726_v52 }
  0x72   :  { %11361 = vmatprep.subr.bf16.mxu0 %v8727_v54 }
  0x74   :  { %9713 = vmatmul.mubr.f32.gmra.mrb[14].mxu0 %v341_v40 }
  0x75   :  { %9803 = vmatprep.mubr.f32.mxu0 %v752_v47  ;;  %11363 = vmatpush3.bf16.msra.mxu0 %v8727_v54  ;;  %v760_v47 = vld [vmem:[%s16548_s4 + $0x40] sm:$0xff] }
  0x76   :  { %11365 = vmatprep.subr.bf16.mxu0 %v8260_v60 }
  0x78   :  { %9804 = vmatmul.mubr.f32.vlgmr.msra.gmra.mrb[16].mxu0 %v753_v2 }
  0x79   :  { %11367 = vmatpush3.bf16.msra.mxu0 %v8260_v60  ;;  %9806 = vmatprep.mubr.f32.mxu0 %v754_v7  ;;  %v763_v7 = vld [vmem:[%s16548_s4 + $0x58] sm:$0xff] }
  0x7a   :  { %11369 = vmatprep.subr.bf16.mxu0 %v8714_v10 }
  0x7c   :  { %9807 = vmatmul.mubr.f32.gmra.mrb[18].mxu0 %v755_v14  ;;  %v764_v14 = vld [vmem:[%s16548_s4 + $0x60] sm:$0xff] }
  0x7d   :  { %11371 = vmatpush3.bf16.msra.mxu0 %v8714_v10  ;;  %9809 = vmatprep.mubr.f32.mxu0 %v756_v19  ;;  %v8719_v19 = vld [vmem:[#allocation2 + $0x70] sm:$0xff]  }
  0x7e   :  { %11373 = vmatprep.subr.bf16.mxu0 %v8715_v22 }
  0x80   :  { %9810 = vmatmul.mubr.f32.gmra.mrb[20].mxu0 %v757_v26 }
  0x81   :  { %11375 = vmatpush3.bf16.msra.mxu0 %v8715_v22  ;;  %9812 = vmatprep.mubr.f32.mxu0 %v758_v31 }
  0x82   :  { %11377 = vmatprep.subr.bf16.mxu0 %v8716_v34 }
  0x84   :  { %9813 = vmatmul.mubr.f32.gmra.mrb[22].mxu0 %v759_v38 }
  0x85   :  { %11379 = vmatpush3.bf16.msra.mxu0 %v8716_v34  ;;  %9815 = vmatprep.mubr.f32.mxu0 %v760_v47 }
  0x86   :  { %11381 = vmatprep.subr.bf16.mxu0 %v8717_v50 }
  0x89   :  { %11383 = vmatpush3.bf16.msra.mxu0 %v8717_v50 }
  0xb8   :  { %v14013_v43 = vpop.permute.xlu0 %223 }
  0xb9   :  { %16721 = vst [vmem:[#allocation10_spill] sm:$0xff] %v14013_v43  ;;  %vm16572_vm0 = vcmp.eq.s32.totalorder %v14011_v42, %v14013_v43 }
  0xba   :  { %9747 = vmatprep.mubr.msk.f32.mxu1 %vm16572_vm0, %v16575_v44 }
 0x12b   :  { %v9693_v55 = vpop.f32.mrb[0].mxu0 }
 0x12c   :  { %v453_v56 = vadd.f32 %v9693_v55, %v14027_v53  ;;  %v447_v57 = vpop.f32.mrb[1].mxu0  ;;  %v761_v55 = vld [vmem:[%s16548_s4 + $0x48] sm:$0xff] }
 0x12d   :  { %v448_v58 = vadd.f32 %v14027_v53, %v447_v57  ;;  %9816 = vmatmul.mubr.f32.gmra.mrb[24].mxu0 %v761_v55 }
 0x12e   :  { %vm527_vm1 = vcmp.gt.f32.partialorder %v453_v56, 0.0  ;;  %v543_v59 = vmul.f32 0.01, %v453_v56 }
 0x12f   :  { %vm526_vm2 = vcmp.gt.f32.partialorder %v448_v58, 0.0  ;;  %v542_v61 = vmul.f32 0.01, %v448_v58  ;;  %v9696_v62 = vpop.f32.mrb[2].mxu0 }
 0x130   :  { %v14031_v63 = vsel %vm527_vm1, %v453_v56, %v543_v59  ;;  %v463_v0 = vadd.f32 %v9696_v62, %v14027_v53  ;;  %v457_v1 = vpop.f32.mrb[3].mxu0 }
 0x131   :  { %v14037_v3 = vsel %vm526_vm2, %v448_v58, %v542_v61  ;;  %v458_v4 = vadd.f32 %v14027_v53, %v457_v1  ;;  %v14112_v58 = vpop.permute.xlu1 %229  ;;  %v762_v61 = vld [vmem:[%s16548_s4 + $0x50] sm:$0xff]  ;;  %v8718_v1 = vld [vmem:[#allocation2 + $0x68] sm:$0xff]  }
 0x132   :  { %vm529_vm3 = vcmp.gt.f32.partialorder %v463_v0, 0.0  ;;  %v545_v5 = vmul.f32 0.01, %v463_v0  ;;  %v14042_v6 = vpack.c.bf16 %v14031_v63, %v14037_v3  ;;  %16724 = vst [vmem:[#allocation13_spill] sm:$0xff] %v14112_v58  ;;  %9818 = vmatprep.mubr.f32.mxu0 %v762_v61  ;;  %11385 = vmatprep.subr.bf16.mxu0 %v8718_v1  ;;  %vm16570_vm2 = vcmp.eq.s32.totalorder %v14011_v42, %v14112_v58  ;;  %v8324_v61 = vld [vmem:[#allocation2 + $0xc0] sm:$0xff]  }
 0x133   :  { %vm528_vm4 = vcmp.gt.f32.partialorder %v458_v4, 0.0  ;;  %v544_v8 = vmul.f32 0.01, %v458_v4  ;;  %v9699_v9 = vpop.f32.mrb[4].mxu0  ;;  %9819 = vmatmul.mubr.f32.gmra.mrb[26].mxu0 %v763_v7  ;;  %v8734_v7 = vld [vmem:[#allocation2 + $0xf8] sm:$0xff]  }
 0x134   :  { %v14047_v11 = vsel %vm529_vm3, %v463_v0, %v545_v5  ;;  %v473_v12 = vadd.f32 %v9699_v9, %v14027_v53  ;;  %v467_v13 = vpop.f32.mrb[5].mxu0  ;;  %11301 = vmatprep.subr.bf16.mxu1 %v14042_v6  ;;  %11387 = vmatpush3.bf16.msra.mxu0 %v8718_v1  ;;  %v8731_v1 = vld [vmem:[#allocation2 + $0xe0] sm:$0xff]  }
 0x135   :  { %v14054_v15 = vsel %vm528_vm4, %v458_v4, %v544_v8  ;;  %v468_v16 = vadd.f32 %v14027_v53, %v467_v13  ;;  %11303 = vmatpush3.bf16.msra.mxu1 %v14042_v6  ;;  %v14128_v8 = vpop.permute.xlu0 %226  ;;  %9821 = vmatprep.mubr.f32.mxu0 %v764_v14 }
 0x136   :  { %vm531_vm5 = vcmp.gt.f32.partialorder %v473_v12, 0.0  ;;  %v547_v17 = vmul.f32 0.01, %v473_v12  ;;  %v14060_v18 = vpack.c.bf16 %v14047_v11, %v14054_v15  ;;  %16726 = vst [vmem:[#allocation15_spill] sm:$0xff] %v14128_v8  ;;  %11389 = vmatprep.subr.bf16.mxu0 %v8719_v19  ;;  %vm16571_vm3 = vcmp.eq.s32.totalorder %v14011_v42, %v14128_v8 }
 0x137   :  { %vm530_vm6 = vcmp.gt.f32.partialorder %v468_v16, 0.0  ;;  %v546_v20 = vmul.f32 0.01, %v468_v16  ;;  %v9702_v21 = vpop.f32.mrb[6].mxu0 }
 0x138   :  { %v14065_v23 = vsel %vm531_vm5, %v473_v12, %v547_v17  ;;  %v483_v24 = vadd.f32 %v9702_v21, %v14027_v53  ;;  %v477_v25 = vpop.f32.mrb[7].mxu0  ;;  %11305 = vmatprep.subr.bf16.mxu1 %v14060_v18  ;;  %11391 = vmatpush3.bf16.msra.mxu0 %v8719_v19 }
 0x139   :  { %v14072_v27 = vsel %vm530_vm6, %v468_v16, %v546_v20  ;;  %v478_v28 = vadd.f32 %v14027_v53, %v477_v25  ;;  %11307 = vmatpush3.bf16.msra.mxu1 %v14060_v18  ;;  %v14141_v20 = vpop.permute.xlu1 %232  ;;  %v765_v25 = vld [vmem:[%s16548_s4 + $0x68] sm:$0xff] }
 0x13a   :  { %vm533_vm7 = vcmp.gt.f32.partialorder %v483_v24, 0.0  ;;  %v549_v29 = vmul.f32 0.01, %v483_v24  ;;  %v14078_v30 = vpack.c.bf16 %v14065_v23, %v14072_v27  ;;  %16728 = vst [vmem:[#allocation17_spill] sm:$0xff] %v14141_v20  ;;  %9822 = vmatmul.mubr.f32.gmra.mrb[28].mxu0 %v765_v25  ;;  %vm16569_vm4 = vcmp.eq.s32.totalorder %v14011_v42, %v14141_v20 }
 0x13b   :  { %vm532_vm8 = vcmp.gt.f32.partialorder %v478_v28, 0.0  ;;  %v548_v32 = vmul.f32 0.01, %v478_v28  ;;  %v9705_v33 = vpop.f32.mrb[8].mxu0 }
 0x13c   :  { %v14083_v35 = vsel %vm533_vm7, %v483_v24, %v549_v29  ;;  %v493_v36 = vadd.f32 %v9705_v33, %v14027_v53  ;;  %v487_v37 = vpop.f32.mrb[9].mxu0  ;;  %11309 = vmatprep.subr.bf16.mxu1 %v14078_v30  ;;  %v14161_v33 = vpop.permute.xlu0 %235 }
 0x13d   :  { %v14090_v39 = vsel %vm532_vm8, %v478_v28, %v548_v32  ;;  %v488_v40 = vadd.f32 %v14027_v53, %v487_v37  ;;  %11311 = vmatpush3.bf16.msra.mxu1 %v14078_v30  ;;  %v766_v32 = vld [vmem:[%s16548_s4 + $0x70] sm:$0xff]  ;;  %16731 = vst [vmem:[#allocation20_spill] sm:$0xff] %v14161_v33  ;;  %v767_v37 = vld [vmem:[%s16548_s4 + $0x78] sm:$0xff]  ;;  %vm16568_vm5 = vcmp.eq.s32.totalorder %v14011_v42, %v14161_v33 }
 0x13e   :  { %vm535_vm9 = vcmp.gt.f32.partialorder %v493_v36, 0.0  ;;  %v551_v45 = vmul.f32 0.01, %v493_v36  ;;  %v14096_v46 = vpack.c.bf16 %v14083_v35, %v14090_v39  ;;  %9824 = vmatprep.mubr.f32.mxu0 %v766_v32 }
 0x13f   :  { %vm534_vm10 = vcmp.gt.f32.partialorder %v488_v40, 0.0  ;;  %v550_v48 = vmul.f32 0.01, %v488_v40  ;;  %v9708_v49 = vpop.f32.mrb[10].mxu0  ;;  %9825 = vmatmul.mubr.f32.gmra.mrb[30].mxu0 %v767_v37 }
 0x140   :  { %v14101_v51 = vsel %vm535_vm9, %v493_v36, %v551_v45  ;;  %v503_v52 = vadd.f32 %v9708_v49, %v14027_v53  ;;  %v497_v54 = vpop.f32.mrb[11].mxu0  ;;  %11313 = vmatprep.subr.bf16.mxu1 %v14096_v46  ;;  %v14179_v47 = vpop.permute.xlu0 %241 }
 0x141   :  { %16722 = vst [vmem:[#allocation11_spill] sm:$0xff] %v14101_v51  ;;  %v14108_v56 = vsel %vm534_vm10, %v488_v40, %v550_v48  ;;  %v498_v57 = vadd.f32 %v14027_v53, %v497_v54  ;;  %11315 = vmatpush3.bf16.msra.mxu1 %v14096_v46  ;;  %v14172_v40 = vpop.permute.xlu1 %238  ;;  %16735 = vst [vmem:[#allocation24_spill] sm:$0xff] %v14179_v47  ;;  %v16579_v48 = vmov 0.0|0.0   ;;  %vm16566_vm7 = vcmp.eq.s32.totalorder %v14011_v42, %v14179_v47 }
 0x142   :  { %16723 = vst [vmem:[#allocation12_spill] sm:$0xff] %v14108_v56  ;;  %vm537_vm11 = vcmp.gt.f32.partialorder %v503_v52, 0.0  ;;  %v553_v59 = vmul.f32 0.01, %v503_v52  ;;  %v14116_v60 = vpack.c.bf16 %v14101_v51, %v14108_v56  ;;  %16734 = vst [vmem:[#allocation23_spill] sm:$0xff] %v14172_v40  ;;  %vm16567_vm6 = vcmp.eq.s32.totalorder %v14011_v42, %v14172_v40 }
 0x143   :  { %vm536_vm12 = vcmp.gt.f32.partialorder %v498_v57, 0.0  ;;  %v552_v62 = vmul.f32 0.01, %v498_v57  ;;  %v9711_v0 = vpop.f32.mrb[12].mxu0 }
 0x144   :  { %v14121_v2 = vsel %vm537_vm11, %v503_v52, %v553_v59  ;;  %v513_v4 = vadd.f32 %v9711_v0, %v14027_v53  ;;  %v507_v5 = vpop.f32.mrb[13].mxu0  ;;  %11317 = vmatprep.subr.bf16.mxu1 %v14116_v60  ;;  %v14200_v50 = vpop.permute.xlu0 %247  ;;  %v8730_v0 = vld [vmem:[#allocation2 + $0xd8] sm:$0xff]  }
 0x145   :  { %16725 = vst [vmem:[#allocation14_spill] sm:$0xff] %v14121_v2  ;;  %v14130_v9 = vsel %vm536_vm12, %v498_v57, %v552_v62  ;;  %v508_v10 = vadd.f32 %v14027_v53, %v507_v5  ;;  %11319 = vmatpush3.bf16.msra.mxu1 %v14116_v60  ;;  %v14188_v49 = vpop.permute.xlu1 %244  ;;  %16737 = vst [vmem:[#allocation26_spill] sm:$0xff] %v14200_v50  ;;  %vm16564_vm9 = vcmp.eq.s32.totalorder %v14011_v42, %v14200_v50  ;;  %v8728_v62 = vld [vmem:[#allocation2 + $0xc8] sm:$0xff]   ;;  %v8733_v5 = vld [vmem:[#allocation2 + $0xf0] sm:$0xff]  }
 0x146   :  { %16727 = vst [vmem:[#allocation16_spill] sm:$0xff] %v14130_v9  ;;  %vm539_vm13 = vcmp.gt.f32.partialorder %v513_v4, 0.0  ;;  %v555_v12 = vmul.f32 0.01, %v513_v4  ;;  %v14136_v13 = vpack.c.bf16 %v14121_v2, %v14130_v9  ;;  %16736 = vst [vmem:[#allocation25_spill] sm:$0xff] %v14188_v49  ;;  %vm16565_vm8 = vcmp.eq.s32.totalorder %v14011_v42, %v14188_v49 }
 0x147   :  { %vm538_vm14 = vcmp.gt.f32.partialorder %v508_v10, 0.0  ;;  %v554_v16 = vmul.f32 0.01, %v508_v10  ;;  %v9714_v17 = vpop.f32.mrb[14].mxu0 }
 0x148   :  { %v14143_v21 = vsel %vm539_vm13, %v513_v4, %v555_v12  ;;  %v523_v22 = vadd.f32 %v9714_v17, %v14027_v53  ;;  %v517_v24 = vpop.f32.mrb[15].mxu0  ;;  %11321 = vmatprep.subr.bf16.mxu1 %v14136_v13  ;;  %v14224_v54 = vpop.permute.xlu0 %253  ;;  %v8732_v4 = vld [vmem:[#allocation2 + $0xe8] sm:$0xff]  }
 0x149   :  { %16729 = vst [vmem:[#allocation18_spill] sm:$0xff] %v14143_v21  ;;  %v14150_v26 = vsel %vm538_vm14, %v508_v10, %v554_v16  ;;  %v518_v28 = vadd.f32 %v14027_v53, %v517_v24  ;;  %11323 = vmatpush3.bf16.msra.mxu1 %v14136_v13  ;;  %v8720_v53 = vld [vmem:[#allocation2 + $0x78] sm:$0xff]   ;;  %v14212_v52 = vpop.permute.xlu1 %250  ;;  %16739 = vst [vmem:[#allocation28_spill] sm:$0xff] %v14224_v54  ;;  %vm16562_vm11 = vcmp.eq.s32.totalorder %v14011_v42, %v14224_v54 }
 0x14a   :  { %16730 = vst [vmem:[#allocation19_spill] sm:$0xff] %v14150_v26  ;;  %vm541_vm15 = vcmp.gt.f32.partialorder %v523_v22, 0.0  ;;  %v557_v29 = vmul.f32 0.01, %v523_v22  ;;  %v14156_v31 = vpack.c.bf16 %v14143_v21, %v14150_v26  ;;  %11393 = vmatprep.subr.bf16.mxu0 %v8720_v53  ;;  %16738 = vst [vmem:[#allocation27_spill] sm:$0xff] %v14212_v52  ;;  %vm16563_vm10 = vcmp.eq.s32.totalorder %v14011_v42, %v14212_v52 }
 0x14b   :  { %vm540_vm1 = vcmp.gt.f32.partialorder %v518_v28, 0.0  ;;  %v556_v34 = vmul.f32 0.01, %v518_v28  ;;  %11395 = vmatpush3.bf16.msra.mxu0 %v8720_v53  ;;  %v14313_v10 = vshrl.u32 %v83_v41, 7  ;;  %v16587_v53 = vmov 1.0|1.0  }
 0x14c   :  { %v14163_v36 = vsel %vm541_vm15, %v523_v22, %v557_v29  ;;  %11325 = vmatprep.subr.bf16.mxu1 %v14156_v31  ;;  %11420 = vmatprep.subr.bf16.mxu0 %v16579_v48  ;;  %v14247_v55 = vpop.permute.xlu0 %259 }
 0x14d   :  { %16732 = vst [vmem:[#allocation21_spill] sm:$0xff] %v14163_v36  ;;  %v14169_v38 = vsel %vm540_vm1, %v518_v28, %v556_v34  ;;  %11327 = vmatpush3.bf16.msra.mxu1 %v14156_v31  ;;  %16741 = vst [vmem:[#allocation30_spill] sm:$0xff] %v14247_v55  ;;  %vm16557_vm13 = vcmp.eq.s32.totalorder %v14011_v42, %v14247_v55  ;;  %v14316_v12 = vsub.s32 1, %v14313_v10  ;;  %v14322_v14 = vadd.s32 8, %v14313_v10 }
 0x14e   :  { %16733 = vst [vmem:[#allocation22_spill] sm:$0xff] %v14169_v38  ;;  %v14176_v45 = vpack.c.bf16 %v14163_v36, %v14169_v38  ;;  %16745 = vst [vmem:[#allocation34_spill] sm:$0xff] %v14313_v10  ;;  %v14340_v19 = vadd.s32 16, %v14313_v10  ;;  %v14343_v22 = vadd.s32 24, %v14313_v10  ;;  %v14365_v32 = vadd.s32 40, %v14313_v10 }
 0x14f   :  { %16746 = vst [vmem:[#allocation35_spill] sm:$0xff] %v14316_v12  ;;  %16747 = vst [vmem:[#allocation36_spill] sm:$0xff] %v14322_v14 }
 0x150   :  { %11329 = vmatprep.subr.bf16.mxu1 %v14176_v45  ;;  %v14270_v57 = vpop.permute.xlu0 %265  ;;  %16752 = vst [vmem:[#allocation37_spill] sm:$0xff] %v14340_v19  ;;  %16753 = vst [vmem:[#allocation38_spill] sm:$0xff] %v14343_v22 }
 0x151   :  { %11331 = vmatpush3.bf16.msra.mxu1 %v14176_v45  ;;  %16743 = vst [vmem:[#allocation32_spill] sm:$0xff] %v14270_v57  ;;  %vm16559_vm15 = vcmp.eq.s32.totalorder %v14011_v42, %v14270_v57  ;;  %16759 = vst [vmem:[#allocation40_spill] sm:$0xff] %v14365_v32 }
 0x152   :  { %11396 = vmatprep.subr.bf16.mxu1 %v16579_v48 }
 0x154   :  { %9748 = vmatmul.mubr.msk.f32.vlgmr.msra.gmra.mrb[0].mxu1 %vm16571_vm3, %v16575_v44 }
 0x155   :  { %9750 = vmatprep.mubr.msk.f32.mxu1 %vm16570_vm2, %v16575_v44 }
 0x158   :  { %9751 = vmatmul.mubr.msk.f32.gmra.mrb[2].mxu1 %vm16569_vm4, %v16575_v44 }
 0x159   :  { %9753 = vmatprep.mubr.msk.f32.mxu1 %vm16568_vm5, %v16575_v44 }
 0x15a   :  { %11398 = vmatpush3.bf16.xpose.msra.mxu1 %v14042_v6  ;;  %v14234_v6 = vpop.permute.xlu1 %256 }
 0x15b   :  { %11399 = vmatprep.subr.bf16.mxu1 %v16579_v48  ;;  %16740 = vst [vmem:[#allocation29_spill] sm:$0xff] %v14234_v6  ;;  %vm16561_vm12 = vcmp.eq.s32.totalorder %v14011_v42, %v14234_v6 }
 0x15c   :  { %9754 = vmatmul.mubr.msk.f32.gmra.mrb[4].mxu1 %vm16567_vm6, %v16575_v44 }
 0x15d   :  { %9756 = vmatprep.mubr.msk.f32.mxu1 %vm16566_vm7, %v16575_v44 }
 0x160   :  { %9757 = vmatmul.mubr.msk.f32.gmra.mrb[6].mxu1 %vm16565_vm8, %v16575_v44 }
 0x161   :  { %9759 = vmatprep.mubr.msk.f32.mxu1 %vm16564_vm9, %v16575_v44 }
 0x162   :  { %11401 = vmatpush3.bf16.xpose.msra.mxu1 %v14060_v18  ;;  %v14260_v18 = vpop.permute.xlu1 %262 }
 0x163   :  { %11402 = vmatprep.subr.bf16.mxu1 %v16579_v48  ;;  %16742 = vst [vmem:[#allocation31_spill] sm:$0xff] %v14260_v18  ;;  %vm16560_vm14 = vcmp.eq.s32.totalorder %v14011_v42, %v14260_v18 }
 0x164   :  { %9760 = vmatmul.mubr.msk.f32.gmra.mrb[8].mxu1 %vm16563_vm10, %v16575_v44 }
 0x165   :  { %9762 = vmatprep.mubr.msk.f32.mxu1 %vm16562_vm11, %v16575_v44 }
 0x166   :  { %v14282_v59 = vpop.permute.xlu1 %268 }
 0x167   :  { %16744 = vst [vmem:[#allocation33_spill] sm:$0xff] %v14282_v59  ;;  %vm16558_vm1 = vcmp.eq.s32.totalorder %v14011_v42, %v14282_v59 }
 0x168   :  { %9763 = vmatmul.mubr.msk.f32.gmra.mrb[10].mxu1 %vm16561_vm12, %v16575_v44 }
 0x169   :  { %9765 = vmatprep.mubr.msk.f32.mxu1 %vm16557_vm13, %v16575_v44  ;;  %vm16585_vm13 = vmmov 0  }
 0x16a   :  { %11404 = vmatpush3.bf16.xpose.msra.mxu1 %v14078_v30  ;;  %v16577_v30 = vmov 0.0  }
 0x16b   :  { %11405 = vmatprep.subr.bf16.mxu1 %v16579_v48 }
 0x16c   :  { %9766 = vmatmul.mubr.msk.f32.gmra.mrb[12].mxu1 %vm16560_vm14, %v16575_v44 }
 0x16d   :  { %9768 = vmatprep.mubr.msk.f32.mxu1 %vm16559_vm15, %v16575_v44 }
 0x170   :  { %9769 = vmatmul.mubr.msk.f32.gmra.mrb[14].mxu1 %vm16558_vm1, %v16575_v44  ;;  %v16781_v44 = vmov 0 }
 0x171   :  { %9915 = vmatprep.mubr.msk.f32.mxu1 %vm16585_vm13, %v16577_v30  ;;  %v14478_v30 = vadd.s32 96, %v14313_v10 }
 0x172   :  { %11407 = vmatpush3.bf16.xpose.msra.mxu1 %v14096_v46  ;;  %v8031_v46 = vld [vmem:[%s16551_s7 + $0x2] sm:$0x1] }
 0x173   :  { %11408 = vmatprep.subr.bf16.mxu1 %v16579_v48  ;;  %16784 = vst [vmem:[#allocation49_spill] sm:$0xff] %v14478_v30 }
 0x17a   :  { %11410 = vmatpush3.bf16.xpose.msra.mxu1 %v14116_v60  ;;  %v8729_v60 = vld [vmem:[#allocation2 + $0xd0] sm:$0xff]  }
 0x17b   :  { %11411 = vmatprep.subr.bf16.mxu1 %v16579_v48 }
 0x182   :  { %11413 = vmatpush3.bf16.xpose.msra.mxu1 %v14136_v13  ;;  %v82_v13 = vld [vmem:[%s16544_s0] sm:$0x3] }
 0x183   :  { %11414 = vmatprep.subr.bf16.mxu1 %v16579_v48  ;;  %v14325_v16 = vrot.slane %v82_v13, %v14316_v12 }
 0x185   :  { %vm14329_vm1 = vcmp.eq.s32.totalorder %v14313_v10, %v14325_v16  ;;  %vm14335_vm15 = vcmp.eq.s32.totalorder %v14322_v14, %v14325_v16  ;;  %vm14351_vm12 = vcmp.eq.s32.totalorder %v14340_v19, %v14325_v16  ;;  %vm14357_vm11 = vcmp.eq.s32.totalorder %v14343_v22, %v14325_v16 }
 0x186   :  { %vm16584_vm14 = vmpackc.low %vm14335_vm15, %vm14329_vm1  ;;  %vm14386_vm8 = vcmp.eq.s32.totalorder %v14365_v32, %v14325_v16 }
 0x187   :  { %vm16574_vm10 = vmpackc.low %vm14357_vm11, %vm14351_vm12 }
 0x18a   :  { %11416 = vmatpush3.bf16.xpose.msra.mxu1 %v14156_v31  ;;  %v14362_v31 = vadd.s32 32, %v14313_v10 }
 0x18b   :  { %11417 = vmatprep.subr.bf16.mxu1 %v16579_v48 }
 0x18c   :  { %16758 = vst [vmem:[#allocation39_spill] sm:$0xff] %v14362_v31  ;;  %vm14380_vm9 = vcmp.eq.s32.totalorder %v14362_v31, %v14325_v16 }
 0x18d   :  { %vm16573_vm7 = vmpackc.low %vm14386_vm8, %vm14380_vm9 }
 0x192   :  { %11419 = vmatpush3.bf16.xpose.msra.mxu1 %v14176_v45 }
 0x193   :  { %11469 = vmatprep.subr.bf16.mxu1 %v8324_v61 }
 0x199   :  { %9916 = vmatmul.mubr.f32.vlgmr.msra.gmra.mrb[16].mxu1 %v8031_v46  ;;  %v14391_v46 = vadd.s32 48, %v14313_v10 }
 0x19a   :  { %11471 = vmatpush3.bf16.msra.mxu1 %v8324_v61 }
 0x19b   :  { %11473 = vmatprep.subr.bf16.mxu1 %v8728_v62  ;;  %16764 = vst [vmem:[#allocation41_spill] sm:$0xff] %v14391_v46  ;;  %vm14409_vm6 = vcmp.eq.s32.totalorder %v14391_v46, %v14325_v16 }
 0x19e   :  { %11475 = vmatpush3.bf16.msra.mxu1 %v8728_v62  ;;  %v14394_v62 = vadd.s32 56, %v14313_v10 }
 0x19f   :  { %11477 = vmatprep.subr.bf16.mxu1 %v8729_v60 }
 0x1a0   :  { %16765 = vst [vmem:[#allocation42_spill] sm:$0xff] %v14394_v62  ;;  %vm14415_vm5 = vcmp.eq.s32.totalorder %v14394_v62, %v14325_v16  ;;  %v16795_v62 = vmov 1.0|1.0  }
 0x1a1   :  { %vm16583_vm4 = vmpackc.low %vm14415_vm5, %vm14409_vm6 }
 0x1a2   :  { %11479 = vmatpush3.bf16.msra.mxu1 %v8729_v60 }
 0x1a3   :  { %11481 = vmatprep.subr.bf16.mxu1 %v8730_v0 }
 0x1a6   :  { %11483 = vmatpush3.bf16.msra.mxu1 %v8730_v0 }
 0x1a7   :  { %11485 = vmatprep.subr.bf16.mxu1 %v8731_v1 }
 0x1aa   :  { %11487 = vmatpush3.bf16.msra.mxu1 %v8731_v1  ;;  %v16766_v1 = vmov 0 }
 0x1ab   :  { %11489 = vmatprep.subr.bf16.mxu1 %v8732_v4  ;;  %v16767_v1 = vsel %vm14409_vm6, 4294967295, %v16766_v1 }
 0x1ae   :  { %11491 = vmatpush3.bf16.msra.mxu1 %v8732_v4  ;;  %v16768_v4 = vmov 0 }
 0x1af   :  { %11493 = vmatprep.subr.bf16.mxu1 %v8733_v5  ;;  %v16769_v4 = vsel %vm14415_vm5, 4294967295, %v16768_v4 }
 0x1b2   :  { %11495 = vmatpush3.bf16.msra.mxu1 %v8733_v5  ;;  %v14420_v5 = vadd.s32 64, %v14313_v10 }
 0x1b3   :  { %11497 = vmatprep.subr.bf16.mxu1 %v8734_v7 }
 0x1b4   :  { %16770 = vst [vmem:[#allocation43_spill] sm:$0xff] %v14420_v5  ;;  %vm14438_vm2 = vcmp.eq.s32.totalorder %v14420_v5, %v14325_v16  ;;  %v14510_v5 = vadd.s32 120, %v14313_v10 }
 0x1b6   :  { %11499 = vmatpush3.bf16.msra.mxu1 %v8734_v7  ;;  %v14423_v7 = vadd.s32 72, %v14313_v10  ;;  %16794 = vst [vmem:[#allocation54_spill] sm:$0xff] %v14510_v5 }
 0x1b8   :  { %16771 = vst [vmem:[#allocation44_spill] sm:$0xff] %v14423_v7  ;;  %vm14444_vm3 = vcmp.eq.s32.totalorder %v14423_v7, %v14325_v16  ;;  %v14507_v7 = vadd.s32 112, %v14313_v10 }
 0x1b9   :  { %vm16593_vm0 = vmpackc.low %vm14444_vm3, %vm14438_vm2 }
 0x1ba   :  { %16793 = vst [vmem:[#allocation53_spill] sm:$0xff] %v14507_v7 }
 0x227   :  { %v9749_v24 = vpop.f32.mrb[0].mxu1 }
 0x228   :  { %v640_v25 = vpop.f32.mrb[1].mxu1 }
 0x229   :  { %9859 = vmatprep.mubr.f32.mxu0 %v640_v25  ;;  %10020 = vmatprep.mubr.f32.mxu1 %v640_v25  ;;  %v16772_v25 = vmov 0 }
 0x22a   :  { %9860 = vmatmul.mubr.f32.vlgmr.msra.gmra.mrb[16].mxu0 %v9749_v24  ;;  %10021 = vmatmul.mubr.f32.vlgmr.msra.gmra.mrb[18].mxu1 %v9749_v24  ;;  %v16773_v25 = vsel %vm14438_vm2, 4294967295, %v16772_v25 }
 0x22b   :  { %v9752_v34 = vpop.f32.mrb[2].mxu1  ;;  %11422 = vmatpush3.bf16.msk.msra.mxu0 %vm16584_vm14, %v16587_v53  ;;  %vm14496_vm14 = vcmp.eq.s32.totalorder %v14478_v30, %v14325_v16  ;;  %v16799_v30 = vmov 0 }
 0x22c   :  { %v650_v37 = vpop.f32.mrb[3].mxu1  ;;  %11423 = vmatprep.subr.bf16.mxu0 %v16579_v48 }
 0x22d   :  { %9862 = vmatprep.mubr.f32.mxu0 %v650_v37  ;;  %10023 = vmatprep.mubr.f32.mxu1 %v650_v37  ;;  %v14449_v37 = vadd.s32 80, %v14313_v10 }
 0x22e   :  { %9863 = vmatmul.mubr.f32.gmra.mrb[18].mxu0 %v9752_v34  ;;  %10024 = vmatmul.mubr.f32.gmra.mrb[20].mxu1 %v9752_v34  ;;  %v16774_v34 = vmov 0 }
 0x22f   :  { %v9755_v60 = vpop.f32.mrb[4].mxu1  ;;  %11425 = vmatpush3.bf16.msk.msra.mxu0 %vm16574_vm10, %v16587_v53  ;;  %v16775_v34 = vsel %vm14444_vm3, 4294967295, %v16774_v34  ;;  %16776 = vst [vmem:[#allocation45_spill] sm:$0xff] %v14449_v37  ;;  %vm14525_vm3 = vcmp.eq.s32.totalorder %v14507_v7, %v14325_v16 }
 0x230   :  { %v660_v0 = vpop.f32.mrb[5].mxu1  ;;  %11426 = vmatprep.subr.bf16.mxu0 %v16579_v48 }
 0x231   :  { %9865 = vmatprep.mubr.f32.mxu0 %v660_v0  ;;  %10026 = vmatprep.mubr.f32.mxu1 %v660_v0 }
 0x232   :  { %9866 = vmatmul.mubr.f32.gmra.mrb[20].mxu0 %v9755_v60  ;;  %10027 = vmatmul.mubr.f32.gmra.mrb[22].mxu1 %v9755_v60  ;;  %v14452_v60 = vadd.s32 88, %v14313_v10 }
 0x233   :  { %v9758_v13 = vpop.f32.mrb[6].mxu1  ;;  %11428 = vmatpush3.bf16.msk.msra.mxu0 %vm16573_vm7, %v16587_v53  ;;  %vm14467_vm7 = vcmp.eq.s32.totalorder %v14449_v37, %v14325_v16  ;;  %v16786_v37 = vmov 0.0|0.0  }
 0x234   :  { %v670_v24 = vpop.f32.mrb[7].mxu1  ;;  %11429 = vmatprep.subr.bf16.mxu0 %v16579_v48  ;;  %16777 = vst [vmem:[#allocation46_spill] sm:$0xff] %v14452_v60  ;;  %vm14473_vm10 = vcmp.eq.s32.totalorder %v14452_v60, %v14325_v16 }
 0x235   :  { %9868 = vmatprep.mubr.f32.mxu0 %v670_v24  ;;  %10029 = vmatprep.mubr.f32.mxu1 %v670_v24  ;;  %v16782_v44 = vsel %vm14473_vm10, 4294967295, %v16781_v44 }
 0x236   :  { %9869 = vmatmul.mubr.f32.gmra.mrb[22].mxu0 %v9758_v13  ;;  %10030 = vmatmul.mubr.f32.gmra.mrb[24].mxu1 %v9758_v13  ;;  %v16778_v13 = vmov 0  ;;  %16783 = vst [vmem:[#allocation48_spill] sm:$0xff] %v16782_v44 }
 0x237   :  { %v9761_v0 = vpop.f32.mrb[8].mxu1  ;;  %11431 = vmatpush3.bf16.msk.msra.mxu0 %vm16583_vm4, %v16587_v53  ;;  %v16779_v13 = vsel %vm14467_vm7, 4294967295, %v16778_v13  ;;  %vm16600_vm4 = vmpackc.low %vm14473_vm10, %vm14467_vm7  ;;  %vm14531_vm10 = vcmp.eq.s32.totalorder %v14510_v5, %v14325_v16 }
 0x238   :  { %v680_v24 = vpop.f32.mrb[9].mxu1  ;;  %11432 = vmatprep.subr.bf16.mxu0 %v16579_v48  ;;  %16780 = vst [vmem:[#allocation47_spill] sm:$0xff] %v16779_v13  ;;  %v14481_v48 = vadd.s32 104, %v14313_v10  ;;  %v16800_v30 = vsel %vm14531_vm10, 4294967295, %v16799_v30 }
 0x239   :  { %9871 = vmatprep.mubr.f32.mxu0 %v680_v24  ;;  %10032 = vmatprep.mubr.f32.mxu1 %v680_v24  ;;  %16801 = vst [vmem:[#allocation56_spill] sm:$0xff] %v16800_v30 }
 0x23a   :  { %16785 = vst [vmem:[#allocation50_spill] sm:$0xff] %v14481_v48  ;;  %9872 = vmatmul.mubr.f32.gmra.mrb[24].mxu0 %v9761_v0  ;;  %10033 = vmatmul.mubr.f32.gmra.mrb[26].mxu1 %v9761_v0  ;;  %v16787_v0 = vmov 0  ;;  %vm14502_vm13 = vcmp.eq.s32.totalorder %v14481_v48, %v14325_v16  ;;  %v16802_v16 = vmov 0.0  }
 0x23b   :  { %v9764_v24 = vpop.f32.mrb[10].mxu1  ;;  %11434 = vmatpush3.bf16.msk.msra.mxu0 %vm16593_vm0, %v16587_v53  ;;  %v16788_v0 = vsel %vm14496_vm14, 4294967295, %v16787_v0  ;;  %v16790_v53 = vmov 0  ;;  %vm16601_vm0 = vmpackc.low %vm14502_vm13, %vm14496_vm14 }
 0x23c   :  { %v690_v60 = vpop.f32.mrb[11].mxu1  ;;  %11435 = vmatprep.subr.bf16.mxu0 %v16786_v37  ;;  %16789 = vst [vmem:[#allocation51_spill] sm:$0xff] %v16788_v0  ;;  %v16791_v53 = vsel %vm14502_vm13, 4294967295, %v16790_v53 }
 0x23d   :  { %9874 = vmatprep.mubr.f32.mxu0 %v690_v60  ;;  %10035 = vmatprep.mubr.f32.mxu1 %v690_v60  ;;  %16792 = vst [vmem:[#allocation52_spill] sm:$0xff] %v16791_v53 }
 0x23e   :  { %9875 = vmatmul.mubr.f32.gmra.mrb[26].mxu0 %v9764_v24  ;;  %10036 = vmatmul.mubr.f32.gmra.mrb[28].mxu1 %v9764_v24  ;;  %v16796_v24 = vmov 0 }
 0x23f   :  { %v9767_v60 = vpop.f32.mrb[12].mxu1  ;;  %11437 = vmatpush3.bf16.msk.msra.mxu0 %vm16600_vm4, %v16795_v62  ;;  %v16797_v24 = vsel %vm14525_vm3, 4294967295, %v16796_v24  ;;  %vm16617_vm4 = vmpackc.low %vm14531_vm10, %vm14525_vm3 }
 0x240   :  { %v700_v48 = vpop.f32.mrb[13].mxu1  ;;  %11438 = vmatprep.subr.bf16.mxu0 %v16786_v37  ;;  %16798 = vst [vmem:[#allocation55_spill] sm:$0xff] %v16797_v24 }
 0x241   :  { %9877 = vmatprep.mubr.f32.mxu0 %v700_v48  ;;  %10038 = vmatprep.mubr.f32.mxu1 %v700_v48 }
 0x242   :  { %9878 = vmatmul.mubr.f32.gmra.mrb[28].mxu0 %v9767_v60  ;;  %10039 = vmatmul.mubr.f32.gmra.mrb[30].mxu1 %v9767_v60 }
 0x243   :  { %v9770_v46 = vpop.f32.mrb[14].mxu1  ;;  %11440 = vmatpush3.bf16.msk.msra.mxu0 %vm16601_vm0, %v16795_v62  ;;  %vm16803_vm0 = vmmov 0  }
 0x244   :  { %v710_v48 = vpop.f32.mrb[15].mxu1  ;;  %11441 = vmatprep.subr.bf16.mxu0 %v16786_v37 }
 0x245   :  { %9880 = vmatprep.mubr.f32.mxu0 %v710_v48  ;;  %10041 = vmatprep.mubr.f32.mxu1 %v710_v48 }
 0x246   :  { %9881 = vmatmul.mubr.f32.gmra.mrb[30].mxu0 %v9770_v46  ;;  %10042 = vmatmul.mubr.f32.gmra.mrb[32].mxu1 %v9770_v46 }
 0x247   :  { %11443 = vmatpush3.bf16.msk.msra.mxu0 %vm16617_vm4, %v16795_v62  ;;  %9950 = vmatprep.mubr.msk.f32.mxu0 %vm16803_vm0, %v16802_v16 }
 0x248   :  { %11444 = vmatprep.subr.bf16.mxu0 %v16786_v37 }
 0x26c   :  { %v1209_v60 = vpop.f32.mrb[16].mxu1 }
 0x26d   :  { %v9917_v5 = vpop.f32.mrb[17].mxu1  ;;  %9951 = vmatmul.mubr.f32.vlgmr.msra.gmra.mrb[32].mxu0 %v1209_v60 }
 0x26e   :  { %9985 = vmatprep.mubr.msk.f32.mxu0 %vm16803_vm0, %v16802_v16 }
 0x2fd   :  { %v9861_v48 = vpop.f32.mrb[16].mxu0  ;;  %v10022_v46 = vpop.f32.mrb[18].mxu1 }
 0x2fe   :  { %vm1092_vm13 = vcmp.gt.f32.partialorder %v9861_v48, 0.0  ;;  %v1108_v7 = vmul.f32 0.01, %v9861_v48  ;;  %v1012_v32 = vpop.f32.mrb[17].mxu0  ;;  %v1455_v31 = vpop.f32.mrb[19].mxu1 }
 0x2ff   :  { %vm1091_vm14 = vcmp.gt.f32.partialorder %v1012_v32, 0.0  ;;  %v1107_v22 = vmul.f32 0.01, %v1012_v32  ;;  %v11500_v19 = vpack.c.bf16 %v10022_v46, %v1455_v31 }
 0x300   :  { %v1124_v14 = vsel %vm1092_vm13, %v9861_v48, %v1108_v7 }
 0x301   :  { %v1123_v59 = vsel %vm1091_vm14, %v1012_v32, %v1107_v22  ;;  %v9864_v57 = vpop.f32.mrb[18].mxu0  ;;  %v10025_v18 = vpop.f32.mrb[20].mxu1  ;;  %11501 = vmatprep.subr.bf16.mxu1 %v11500_v19 }
 0x302   :  { %v11445_v55 = vpack.c.bf16 %v1124_v14, %v1123_v59  ;;  %vm1094_vm4 = vcmp.gt.f32.partialorder %v9864_v57, 0.0  ;;  %v1110_v5 = vmul.f32 0.01, %v9864_v57  ;;  %v1022_v60 = vpop.f32.mrb[19].mxu0  ;;  %v1465_v6 = vpop.f32.mrb[21].mxu1  ;;  %11503 = vmatpush3.bf16.msra.mxu1 %v11500_v19 }
 0x303   :  { %vm1093_vm0 = vcmp.gt.f32.partialorder %v1022_v60, 0.0  ;;  %v1109_v54 = vmul.f32 0.01, %v1022_v60  ;;  %v11504_v52 = vpack.c.bf16 %v10025_v18, %v1465_v6 }
 0x304   :  { %v1126_v50 = vsel %vm1094_vm4, %v9864_v57, %v1110_v5  ;;  %11446 = vmatpush3.bf16.xpose.msra.mxu0 %v11445_v55 }
 0x305   :  { %v1125_v49 = vsel %vm1093_vm0, %v1022_v60, %v1109_v54  ;;  %v9867_v47 = vpop.f32.mrb[20].mxu0  ;;  %v10028_v40 = vpop.f32.mrb[22].mxu1  ;;  %11505 = vmatprep.subr.bf16.mxu1 %v11504_v52  ;;  %11447 = vmatprep.subr.bf16.mxu0 %v16786_v37 }
 0x306   :  { %v11448_v22 = vpack.c.bf16 %v1126_v50, %v1125_v49  ;;  %vm1096_vm13 = vcmp.gt.f32.partialorder %v9867_v47, 0.0  ;;  %v1112_v31 = vmul.f32 0.01, %v9867_v47  ;;  %v1032_v59 = vpop.f32.mrb[21].mxu0  ;;  %v1475_v14 = vpop.f32.mrb[23].mxu1  ;;  %11507 = vmatpush3.bf16.msra.mxu1 %v11504_v52 }
 0x307   :  { %vm1095_vm14 = vcmp.gt.f32.partialorder %v1032_v59, 0.0  ;;  %v1111_v32 = vmul.f32 0.01, %v1032_v59  ;;  %v11508_v19 = vpack.c.bf16 %v10028_v40, %v1475_v14 }
 0x308   :  { %v1128_v7 = vsel %vm1096_vm13, %v9867_v47, %v1112_v31 }
 0x309   :  { %v1127_v48 = vsel %vm1095_vm14, %v1032_v59, %v1111_v32  ;;  %v9870_v6 = vpop.f32.mrb[22].mxu0  ;;  %v10031_v18 = vpop.f32.mrb[24].mxu1  ;;  %11509 = vmatprep.subr.bf16.mxu1 %v11508_v19 }
 0x30a   :  { %v11451_v54 = vpack.c.bf16 %v1128_v7, %v1127_v48  ;;  %vm1098_vm0 = vcmp.gt.f32.partialorder %v9870_v6, 0.0  ;;  %v1114_v55 = vmul.f32 0.01, %v9870_v6  ;;  %v1042_v57 = vpop.f32.mrb[23].mxu0  ;;  %v1485_v46 = vpop.f32.mrb[25].mxu1  ;;  %11511 = vmatpush3.bf16.msra.mxu1 %v11508_v19 }
 0x30b   :  { %vm1097_vm4 = vcmp.gt.f32.partialorder %v1042_v57, 0.0  ;;  %v1113_v49 = vmul.f32 0.01, %v1042_v57  ;;  %v11512_v50 = vpack.c.bf16 %v10031_v18, %v1485_v46 }
 0x30c   :  { %v1130_v5 = vsel %vm1098_vm0, %v9870_v6, %v1114_v55  ;;  %11449 = vmatpush3.bf16.xpose.msra.mxu0 %v11448_v22 }
 0x30d   :  { %v1129_v52 = vsel %vm1097_vm4, %v1042_v57, %v1113_v49  ;;  %v9873_v60 = vpop.f32.mrb[24].mxu0  ;;  %v10034_v33 = vpop.f32.mrb[26].mxu1  ;;  %11513 = vmatprep.subr.bf16.mxu1 %v11512_v50  ;;  %11450 = vmatprep.subr.bf16.mxu0 %v16786_v37 }
 0x30e   :  { %v11454_v40 = vpack.c.bf16 %v1130_v5, %v1129_v52  ;;  %vm1100_vm13 = vcmp.gt.f32.partialorder %v9873_v60, 0.0  ;;  %v1116_v47 = vmul.f32 0.01, %v9873_v60  ;;  %v1052_v31 = vpop.f32.mrb[25].mxu0  ;;  %v1495_v59 = vpop.f32.mrb[27].mxu1  ;;  %11515 = vmatpush3.bf16.msra.mxu1 %v11512_v50 }
 0x30f   :  { %vm1099_vm14 = vcmp.gt.f32.partialorder %v1052_v31, 0.0  ;;  %v1115_v14 = vmul.f32 0.01, %v1052_v31  ;;  %v11516_v32 = vpack.c.bf16 %v10034_v33, %v1495_v59 }
 0x310   :  { %v1132_v19 = vsel %vm1100_vm13, %v9873_v60, %v1116_v47 }
 0x311   :  { %v1131_v7 = vsel %vm1099_vm14, %v1052_v31, %v1115_v14  ;;  %v9876_v48 = vpop.f32.mrb[26].mxu0  ;;  %v10037_v6 = vpop.f32.mrb[28].mxu1  ;;  %11517 = vmatprep.subr.bf16.mxu1 %v11516_v32 }
 0x312   :  { %v11457_v22 = vpack.c.bf16 %v1132_v19, %v1131_v7  ;;  %vm1102_vm0 = vcmp.gt.f32.partialorder %v9876_v48, 0.0  ;;  %v1118_v18 = vmul.f32 0.01, %v9876_v48  ;;  %v1062_v55 = vpop.f32.mrb[27].mxu0  ;;  %v1505_v57 = vpop.f32.mrb[29].mxu1  ;;  %11519 = vmatpush3.bf16.msra.mxu1 %v11516_v32 }
 0x313   :  { %vm1101_vm4 = vcmp.gt.f32.partialorder %v1062_v55, 0.0  ;;  %v1117_v46 = vmul.f32 0.01, %v1062_v55  ;;  %v11520_v49 = vpack.c.bf16 %v10037_v6, %v1505_v57 }
 0x314   :  { %v1134_v5 = vsel %vm1102_vm0, %v9876_v48, %v1118_v18  ;;  %11452 = vmatpush3.bf16.xpose.msra.mxu0 %v11451_v54 }
 0x315   :  { %v1133_v50 = vsel %vm1101_vm4, %v1062_v55, %v1117_v46  ;;  %v9879_v52 = vpop.f32.mrb[28].mxu0  ;;  %v10040_v20 = vpop.f32.mrb[30].mxu1  ;;  %11521 = vmatprep.subr.bf16.mxu1 %v11520_v49  ;;  %11453 = vmatprep.subr.bf16.mxu0 %v16786_v37 }
 0x316   :  { %v11460_v33 = vpack.c.bf16 %v1134_v5, %v1133_v50  ;;  %vm1104_vm13 = vcmp.gt.f32.partialorder %v9879_v52, 0.0  ;;  %v1120_v60 = vmul.f32 0.01, %v9879_v52  ;;  %v1072_v47 = vpop.f32.mrb[29].mxu0  ;;  %v1515_v31 = vpop.f32.mrb[31].mxu1  ;;  %11523 = vmatpush3.bf16.msra.mxu1 %v11520_v49  ;;  %v14568_v50 = vsub.s32 0, %v14313_v10 }
 0x317   :  { %vm1103_vm14 = vcmp.gt.f32.partialorder %v1072_v47, 0.0  ;;  %v1119_v59 = vmul.f32 0.01, %v1072_v47  ;;  %v11524_v14 = vpack.c.bf16 %v10040_v20, %v1515_v31 }
 0x318   :  { %v1136_v32 = vsel %vm1104_vm13, %v9879_v52, %v1120_v60  ;;  %16804 = vst [vmem:[#allocation57_spill] sm:$0xff] %v14568_v50 }
 0x319   :  { %v1135_v19 = vsel %vm1103_vm14, %v1072_v47, %v1119_v59  ;;  %v9882_v7 = vpop.f32.mrb[30].mxu0  ;;  %v10043_v48 = vpop.f32.mrb[32].mxu1  ;;  %11525 = vmatprep.subr.bf16.mxu1 %v11524_v14  ;;  %vm16805_vm14 = vnez %v16788_v0 }
 0x31a   :  { %v11463_v54 = vpack.c.bf16 %v1136_v32, %v1135_v19  ;;  %vm1106_vm0 = vcmp.gt.f32.partialorder %v9882_v7, 0.0  ;;  %v1122_v6 = vmul.f32 0.01, %v9882_v7  ;;  %v1082_v18 = vpop.f32.mrb[31].mxu0  ;;  %v1525_v55 = vpop.f32.mrb[33].mxu1  ;;  %11527 = vmatpush3.bf16.msra.mxu1 %v11524_v14 }
 0x31b   :  { %vm1105_vm4 = vcmp.gt.f32.partialorder %v1082_v18, 0.0  ;;  %v1121_v57 = vmul.f32 0.01, %v1082_v18  ;;  %v11528_v46 = vpack.c.bf16 %v10043_v48, %v1525_v55 }
 0x31c   :  { %v1138_v5 = vsel %vm1106_vm0, %v9882_v7, %v1122_v6  ;;  %11455 = vmatpush3.bf16.xpose.msra.mxu0 %v11454_v40  ;;  %v8030_v40 = vld [vmem:[%s16551_s7 + $0x1] sm:$0x1]  ;;  %vm16806_vm0 = vnez %v16775_v34 }
 0x31d   :  { %v1137_v49 = vsel %vm1105_vm4, %v1082_v18, %v1121_v57  ;;  %11529 = vmatprep.subr.bf16.mxu1 %v11528_v46  ;;  %11456 = vmatprep.subr.bf16.mxu0 %v16786_v37  ;;  %vm16807_vm4 = vnez %v16782_v44 }
 0x31e   :  { %v11466_v20 = vpack.c.bf16 %v1138_v5, %v1137_v49  ;;  %11531 = vmatpush3.bf16.msra.mxu1 %v11528_v46 }
 0x324   :  { %11458 = vmatpush3.bf16.xpose.msra.mxu0 %v11457_v22 }
 0x325   :  { %11459 = vmatprep.subr.bf16.mxu0 %v16786_v37 }
 0x32c   :  { %11461 = vmatpush3.bf16.xpose.msra.mxu0 %v11460_v33 }
 0x32d   :  { %11462 = vmatprep.subr.bf16.mxu0 %v16786_v37 }
 0x334   :  { %11464 = vmatpush3.bf16.xpose.msra.mxu0 %v11463_v54 }
 0x335   :  { %11465 = vmatprep.subr.bf16.mxu0 %v16786_v37 }
 0x33c   :  { %11467 = vmatpush3.bf16.xpose.msra.mxu0 %v11466_v20 }
 0x343   :  { %9986 = vmatmul.mubr.f32.vlgmr.msra.gmra.mrb[32].mxu0 %v8030_v40 }
 0x416   :  { %v1349_v52 = vpop.f32.mrb[32].mxu0 }
 0x417   :  { %vm1353_vm13 = vcmp.gt.f32.partialorder %v1349_v52, 0.0  ;;  %v1354_v22 = vmul.f32 0.01, %v1349_v52  ;;  %v9987_v60 = vpop.f32.mrb[33].mxu0 }
 0x419   :  { %v1355_v47 = vsel %vm1353_vm13, %v1349_v52, %v1354_v22  ;;  %vm16808_vm13 = vnez %v16791_v53 }
 0x41a   :  { %v1539_v33 = vrot.slane %v1355_v47, %v14568_v50 }
 0x41c   :  { %v1541_v31 = vsel %vm14335_vm15, %v1539_v33, -1e+30  ;;  %v1540_v59 = vsel %vm14329_vm1, %v1539_v33, -1e+30  ;;  %v1544_v14 = vsel %vm14380_vm9, %v1539_v33, -1e+30 }
 0x41d   :  { %1558 = vmax.xlane.f32.xlu1 %v1541_v31  ;;  %1556 = vmax.xlane.f32.xlu0 %v1540_v59  ;;  %v1542_v32 = vsel %vm14351_vm12, %v1539_v33, -1e+30  ;;  %v1546_v19 = vsel %vm14409_vm6, %v1539_v33, -1e+30  ;;  %v1543_v7 = vsel %vm14357_vm11, %v1539_v33, -1e+30 }
 0x41e   :  { %v1548_v48 = vsel %vm14438_vm2, %v1539_v33, -1e+30  ;;  %v1545_v54 = vsel %vm14386_vm8, %v1539_v33, -1e+30  ;;  %v1550_v6 = vsel %vm14467_vm7, %v1539_v33, -1e+30 }
 0x41f   :  { %v1547_v18 = vsel %vm14415_vm5, %v1539_v33, -1e+30  ;;  %v14593_v55 = vsel %vm16805_vm14, %v1539_v33, -1e+30  ;;  %v14597_v57 = vsel %vm16806_vm0, %v1539_v33, -1e+30 }
 0x420   :  { %v14603_v46 = vsel %vm14525_vm3, %v1539_v33, -1e+30  ;;  %v14607_v5 = vsel %vm16807_vm4, %v1539_v33, -1e+30  ;;  %v14613_v49 = vsel %vm16808_vm13, %v1539_v33, -1e+30 }
 0x421   :  { %1564 = vmax.xlane.f32.xlu1 %v1544_v14  ;;  %1560 = vmax.xlane.f32.xlu0 %v1542_v32  ;;  %v14618_v20 = vsel %vm14531_vm10, %v1539_v33, -1e+30 }
 0x425   :  { %1568 = vmax.xlane.f32.xlu1 %v1546_v19  ;;  %1562 = vmax.xlane.f32.xlu0 %v1543_v7 }
 0x429   :  { %1572 = vmax.xlane.f32.xlu1 %v1548_v48  ;;  %1566 = vmax.xlane.f32.xlu0 %v1545_v54 }
 0x42d   :  { %1576 = vmax.xlane.f32.xlu1 %v1550_v6  ;;  %1570 = vmax.xlane.f32.xlu0 %v1547_v18 }
 0x431   :  { %1580 = vmax.xlane.f32.xlu1 %v14593_v55  ;;  %1574 = vmax.xlane.f32.xlu0 %v14597_v57 }
 0x435   :  { %1584 = vmax.xlane.f32.xlu1 %v14603_v46  ;;  %1578 = vmax.xlane.f32.xlu0 %v14607_v5 }
 0x439   :  { %1582 = vmax.xlane.f32.xlu0 %v14613_v49 }
 0x43d   :  { %1586 = vmax.xlane.f32.xlu0 %v14618_v20 }
 0x4aa   :  { %v1559_v40 = vpop.xlane.xlu1 %1558  ;;  %v1557_v52 = vpop.xlane.xlu0 %1556 }
 0x4ab   :  { %v1589_v22 = vsub.f32 %v1541_v31, %v1559_v40  ;;  %v1588_v60 = vsub.f32 %v1540_v59, %v1557_v52 }
 0x4ad   :  { %v1606_v47 = vmul.f32 1.442695, %v1589_v22  ;;  %v1604_v58 = vmul.f32 1.442695, %v1588_v60 }
 0x4ae   :  { %v1565_v8 = vpop.xlane.xlu1 %1564  ;;  %v1561_v43 = vpop.xlane.xlu0 %1560 }
 0x4af   :  { %13179 = vpow2.f32 %v1606_v47  ;;  %v1592_v42 = vsub.f32 %v1544_v14, %v1565_v8  ;;  %v1590_v62 = vsub.f32 %v1542_v32, %v1561_v43 }
 0x4b0   :  { %13181 = vpow2.f32 %v1604_v58 }
 0x4b1   :  { %v1608_v12 = vmul.f32 1.442695, %v1590_v62  ;;  %v1612_v50 = vmul.f32 1.442695, %v1592_v42 }
 0x4b2   :  { %v1569_v10 = vpop.xlane.xlu1 %1568  ;;  %v1563_v36 = vpop.xlane.xlu0 %1562 }
 0x4b3   :  { %v1594_v33 = vsub.f32 %v1546_v19, %v1569_v10  ;;  %v1591_v38 = vsub.f32 %v1543_v7, %v1563_v36  ;;  %13183 = vpow2.f32 %v1608_v12 }
 0x4b4   :  { %13185 = vpow2.f32 %v1612_v50 }
 0x4b5   :  { %v1610_v21 = vmul.f32 1.442695, %v1591_v38  ;;  %v1616_v26 = vmul.f32 1.442695, %v1594_v33 }
 0x4b6   :  { %v1573_v31 = vpop.xlane.xlu1 %1572  ;;  %v1567_v59 = vpop.xlane.xlu0 %1566 }
 0x4b7   :  { %v1596_v40 = vsub.f32 %v1548_v48, %v1573_v31  ;;  %v1593_v52 = vsub.f32 %v1545_v54, %v1567_v59  ;;  %13187 = vpow2.f32 %v1610_v21 }
 0x4b8   :  { %13189 = vpow2.f32 %v1616_v26 }
 0x4b9   :  { %v13180_v22 = vpop.eup %13179  ;;  %v1614_v60 = vmul.f32 1.442695, %v1593_v52  ;;  %v1620_v43 = vmul.f32 1.442695, %v1596_v40 }
 0x4ba   :  { %v13182_v8 = vpop.eup %13181  ;;  %v1577_v58 = vpop.xlane.xlu1 %1576  ;;  %v14623_v10 = vsel %vm14335_vm15, %v13180_v22, 0.0 }
 0x4bb   :  { %v1571_v42 = vpop.xlane.xlu0 %1570  ;;  %v1598_v36 = vsub.f32 %v1550_v6, %v1577_v58  ;;  %1654 = vadd.xlane.f32.xlu0 %v14623_v10  ;;  %v14628_v12 = vsel %vm14329_vm1, %v13182_v8, 0.0  ;;  %13191 = vpow2.f32 %v1614_v60 }
 0x4bc   :  { %v1595_v38 = vsub.f32 %v1547_v18, %v1571_v42  ;;  %1652 = vadd.xlane.f32.xlu1 %v14628_v12  ;;  %13193 = vpow2.f32 %v1620_v43 }
 0x4bd   :  { %v13184_v26 = vpop.eup %13183  ;;  %v1624_v62 = vmul.f32 1.442695, %v1598_v36 }
 0x4be   :  { %v1618_v21 = vmul.f32 1.442695, %v1595_v38  ;;  %v1581_v50 = vpop.xlane.xlu1 %1580  ;;  %v14635_v7 = vsel %vm14351_vm12, %v13184_v26, 0.0  ;;  %v13186_v48 = vpop.eup %13185 }
 0x4bf   :  { %v1575_v14 = vpop.xlane.xlu0 %1574  ;;  %v1600_v32 = vsub.f32 %v14593_v55, %v1581_v50 }
 0x4c0   :  { %v1597_v19 = vsub.f32 %v14597_v57, %v1575_v14  ;;  %13195 = vpow2.f32 %v1618_v21  ;;  %1656 = vadd.xlane.f32.xlu1 %v14635_v7  ;;  %v14642_v57 = vsel %vm14380_vm9, %v13186_v48, 0.0 }
 0x4c1   :  { %v13188_v6 = vpop.eup %13187  ;;  %13197 = vpow2.f32 %v1624_v62  ;;  %v1628_v18 = vmul.f32 1.442695, %v1600_v32 }
 0x4c2   :  { %v1622_v54 = vmul.f32 1.442695, %v1597_v19  ;;  %v1585_v47 = vpop.xlane.xlu1 %1584  ;;  %v14646_v59 = vsel %vm14357_vm11, %v13188_v6, 0.0  ;;  %v13190_v40 = vpop.eup %13189 }
 0x4c3   :  { %v1579_v33 = vpop.xlane.xlu0 %1578  ;;  %v1602_v31 = vsub.f32 %v14603_v46, %v1585_v47  ;;  %1658 = vadd.xlane.f32.xlu0 %v14646_v59  ;;  %v14653_v8 = vsel %vm14409_vm6, %v13190_v40, 0.0 }
 0x4c4   :  { %v1599_v55 = vsub.f32 %v14607_v5, %v1579_v33  ;;  %13199 = vpow2.f32 %v1622_v54  ;;  %1660 = vadd.xlane.f32.xlu1 %v14642_v57 }
 0x4c5   :  { %v13192_v22 = vpop.eup %13191  ;;  %13201 = vpow2.f32 %v1628_v18  ;;  %v1632_v46 = vmul.f32 1.442695, %v1602_v31 }
 0x4c6   :  { %v1626_v52 = vmul.f32 1.442695, %v1599_v55  ;;  %v14657_v43 = vsel %vm14386_vm8, %v13192_v22, 0.0  ;;  %v13194_v58 = vpop.eup %13193  ;;  %v12990_v22 = vld [vmem:[#allocation4 + $0x8] ss:$12 sps:$4 sm:$0xff]  }
 0x4c7   :  { %v1583_v60 = vpop.xlane.xlu0 %1582  ;;  %1662 = vadd.xlane.f32.xlu0 %v14657_v43  ;;  %v14664_v21 = vsel %vm14438_vm2, %v13194_v58, 0.0  ;;  %11565 = vmatprep.subr.bf16.mxu0 %v12990_v22 }
 0x4c8   :  { %v1601_v5 = vsub.f32 %v14613_v49, %v1583_v60  ;;  %13203 = vpow2.f32 %v1626_v52  ;;  %1664 = vadd.xlane.f32.xlu1 %v14653_v8  ;;  %v12987_v52 = vld [vmem:[#allocation4 + $0x4] ss:$12 sps:$4 sm:$0xff]   ;;  %11567 = vmatpush3.bf16.msra.mxu0 %v12990_v22 }
 0x4c9   :  { %13205 = vpow2.f32 %v1632_v46  ;;  %v12994_v46 = vld [vmem:[#allocation4 + $0x20] ss:$12 sps:$4 sm:$0xff]   ;;  %11533 = vmatprep.subr.bf16.mxu1 %v12987_v52  ;;  %v12998_v60 = vld [vmem:[#allocation4 + $0x38] ss:$12 sps:$4 sm:$0xff]  }
 0x4ca   :  { %v1630_v42 = vmul.f32 1.442695, %v1601_v5  ;;  %v13196_v36 = vpop.eup %13195  ;;  %11569 = vmatprep.subr.bf16.mxu0 %v12994_v46 }
 0x4cb   :  { %v1587_v38 = vpop.xlane.xlu0 %1586  ;;  %v14668_v26 = vsel %vm14415_vm5, %v13196_v36, 0.0  ;;  %v13198_v62 = vpop.eup %13197 }
 0x4cc   :  { %13207 = vpow2.f32 %v1630_v42  ;;  %v1603_v49 = vsub.f32 %v14618_v20, %v1587_v38  ;;  %1668 = vadd.xlane.f32.xlu1 %v14664_v21  ;;  %1666 = vadd.xlane.f32.xlu0 %v14668_v26  ;;  %v14674_v32 = vsel %vm14467_vm7, %v13198_v62, 0.0 }
 0x4cd   :  { %11571 = vmatpush3.bf16.msra.mxu0 %v12994_v46 }
 0x4ce   :  { %v1634_v50 = vmul.f32 1.442695, %v1603_v49  ;;  %v13200_v14 = vpop.eup %13199  ;;  %11573 = vmatprep.subr.bf16.mxu0 %v12998_v60 }
 0x4cf   :  { %v14678_v20 = vsel %vm16806_vm0, %v13200_v14, 0.0  ;;  %v13202_v19 = vpop.eup %13201 }
 0x4d0   :  { %13209 = vpow2.f32 %v1634_v50  ;;  %1672 = vadd.xlane.f32.xlu1 %v14674_v32  ;;  %1670 = vadd.xlane.f32.xlu0 %v14678_v20  ;;  %v14684_v54 = vsel %vm16805_vm14, %v13202_v19, 0.0 }
 0x4d1   :  { %11575 = vmatpush3.bf16.msra.mxu0 %v12998_v60 }
 0x4d2   :  { %v13204_v48 = vpop.eup %13203 }
 0x4d3   :  { %v14688_v6 = vsel %vm16807_vm4, %v13204_v48, 0.0  ;;  %v13206_v18 = vpop.eup %13205 }
 0x4d4   :  { %1676 = vadd.xlane.f32.xlu1 %v14684_v54  ;;  %1674 = vadd.xlane.f32.xlu0 %v14688_v6  ;;  %v14698_v31 = vsel %vm14525_vm3, %v13206_v18, 0.0 }
 0x4d6   :  { %v13208_v47 = vpop.eup %13207 }
 0x4d7   :  { %v14694_v33 = vsel %vm16808_vm13, %v13208_v47, 0.0 }
 0x4d8   :  { %1680 = vadd.xlane.f32.xlu1 %v14698_v31  ;;  %1678 = vadd.xlane.f32.xlu0 %v14694_v33 }
 0x4da   :  { %v13210_v55 = vpop.eup %13209 }
 0x4db   :  { %v14704_v40 = vsel %vm14531_vm10, %v13210_v55, 0.0 }
 0x4dc   :  { %1682 = vadd.xlane.f32.xlu0 %v14704_v40 }
 0x548   :  { %v1655_v5 = vpop.xlane.xlu0 %1654 }
 0x549   :  { %v1653_v58 = vpop.xlane.xlu1 %1652  ;;  %v1685_v42 = vadd.f32 1e-16, %v1655_v5  ;;  %v12989_v5 = vld [vmem:[#allocation4] ss:$12 sps:$4 sm:$0xff]  }
 0x54a   :  { %v1684_v36 = vadd.f32 1e-16, %v1653_v58  ;;  %v12991_v58 = vld [vmem:[#allocation4 + $0x1c] ss:$12 sps:$4 sm:$0xff]  }
 0x54b   :  { %13211 = vrcp.f32 %v1685_v42 }
 0x54c   :  { %13213 = vrcp.f32 %v1684_v36 }
 0x54d   :  { %v1657_v38 = vpop.xlane.xlu1 %1656 }
 0x54e   :  { %v1686_v49 = vadd.f32 1e-16, %v1657_v38 }
 0x550   :  { %13215 = vrcp.f32 %v1686_v49  ;;  %v1659_v50 = vpop.xlane.xlu0 %1658 }
 0x551   :  { %v1661_v62 = vpop.xlane.xlu1 %1660  ;;  %v1687_v19 = vadd.f32 1e-16, %v1659_v50 }
 0x552   :  { %v1688_v14 = vadd.f32 1e-16, %v1661_v62 }
 0x554   :  { %13217 = vrcp.f32 %v1688_v14  ;;  %v1663_v47 = vpop.xlane.xlu0 %1662  ;;  %v12993_v14 = vld [vmem:[#allocation4 + $0x18] ss:$12 sps:$4 sm:$0xff]  }
 0x555   :  { %v13212_v48 = vpop.eup %13211  ;;  %13219 = vrcp.f32 %v1687_v19  ;;  %v1665_v18 = vpop.xlane.xlu1 %1664  ;;  %v1689_v22 = vadd.f32 1e-16, %v1663_v47 }
 0x556   :  { %v13214_v55 = vpop.eup %13213  ;;  %v1690_v52 = vadd.f32 1e-16, %v1665_v18  ;;  %v1717_v46 = vmul.f32 %v13212_v48, %v14623_v10  ;;  %v12995_v10 = vld [vmem:[#allocation4 + $0x34] ss:$12 sps:$4 sm:$0xff]  }
 0x557   :  { %v1716_v60 = vmul.f32 %v13214_v55, %v14628_v12 }
 0x558   :  { %13221 = vrcp.f32 %v1690_v52 }
 0x559   :  { %13223 = vrcp.f32 %v1689_v22  ;;  %10076 = vmatprep.mubr.f32.mxu1 %v1716_v60  ;;  %v1669_v42 = vpop.xlane.xlu1 %1668  ;;  %v1667_v36 = vpop.xlane.xlu0 %1666  ;;  %v12997_v22 = vld [vmem:[#allocation4 + $0x30] ss:$12 sps:$4 sm:$0xff]  }
 0x55a   :  { %v13216_v38 = vpop.eup %13215  ;;  %v1692_v49 = vadd.f32 1e-16, %v1669_v42  ;;  %v1691_v62 = vadd.f32 1e-16, %v1667_v36  ;;  %10077 = vmatmul.mubr.f32.vlgmr.msra.gmra.mrb[34].mxu1 %v1717_v46 }
 0x55b   :  { %v1718_v50 = vmul.f32 %v13216_v38, %v14635_v7  ;;  %11535 = vmatpush1.bf16.msra.mxu1 %v12989_v5 }
 0x55c   :  { %13225 = vrcp.f32 %v1692_v49  ;;  %11537 = vmatprep.subr.bf16.mxu1 %v12991_v58 }
 0x55d   :  { %13227 = vrcp.f32 %v1691_v62  ;;  %v1673_v12 = vpop.xlane.xlu1 %1672  ;;  %10079 = vmatprep.mubr.f32.mxu1 %v1718_v50  ;;  %v1671_v19 = vpop.xlane.xlu0 %1670 }
 0x55e   :  { %v13218_v48 = vpop.eup %13217  ;;  %v1694_v18 = vadd.f32 1e-16, %v1673_v12  ;;  %v1693_v47 = vadd.f32 1e-16, %v1671_v19 }
 0x55f   :  { %v13220_v55 = vpop.eup %13219  ;;  %v1720_v52 = vmul.f32 %v13218_v48, %v14642_v57  ;;  %11539 = vmatpush1.bf16.msra.mxu1 %v12993_v14 }
 0x560   :  { %13229 = vrcp.f32 %v1694_v18  ;;  %v1719_v7 = vmul.f32 %v13220_v55, %v14646_v59  ;;  %11541 = vmatprep.subr.bf16.mxu1 %v12995_v10 }
 0x561   :  { %13231 = vrcp.f32 %v1693_v47  ;;  %v1677_v46 = vpop.xlane.xlu1 %1676  ;;  %v1675_v60 = vpop.xlane.xlu0 %1674 }
 0x562   :  { %v13222_v5 = vpop.eup %13221  ;;  %v1696_v58 = vadd.f32 1e-16, %v1677_v46  ;;  %10080 = vmatmul.mubr.f32.gmra.mrb[36].mxu1 %v1719_v7  ;;  %v1695_v42 = vadd.f32 1e-16, %v1675_v60 }
 0x563   :  { %v13224_v36 = vpop.eup %13223  ;;  %10082 = vmatprep.mubr.f32.mxu1 %v1720_v52  ;;  %v1722_v38 = vmul.f32 %v13222_v5, %v14653_v8  ;;  %11543 = vmatpush1.bf16.msra.mxu1 %v12997_v22 }
 0x564   :  { %13233 = vrcp.f32 %v1696_v58  ;;  %v1721_v57 = vmul.f32 %v13224_v36, %v14657_v43  ;;  %v12999_v58 = vld [vmem:[#allocation4 + $0x4c] ss:$12 sps:$4 sm:$0xff]  }
 0x565   :  { %13235 = vrcp.f32 %v1695_v42  ;;  %v1681_v49 = vpop.xlane.xlu1 %1680  ;;  %v1679_v62 = vpop.xlane.xlu0 %1678  ;;  %v13002_v42 = vld [vmem:[#allocation4 + $0x50] ss:$12 sps:$4 sm:$0xff]   ;;  %11545 = vmatprep.subr.bf16.mxu1 %v12999_v58  ;;  %v13005_v36 = vld [vmem:[#allocation4 + $0x60] ss:$12 sps:$4 sm:$0xff]  }
 0x566   :  { %v13226_v59 = vpop.eup %13225  ;;  %v1698_v50 = vadd.f32 1e-16, %v1681_v49  ;;  %10083 = vmatmul.mubr.f32.gmra.mrb[38].mxu1 %v1721_v57  ;;  %v1697_v14 = vadd.f32 1e-16, %v1679_v62  ;;  %11577 = vmatprep.subr.bf16.mxu0 %v13002_v42  ;;  %v13011_v57 = vld [vmem:[#allocation4 + $0x94] ss:$12 sps:$4 sm:$0xff]  }
 0x567   :  { %v13228_v10 = vpop.eup %13227  ;;  %10085 = vmatprep.mubr.f32.mxu1 %v1722_v38  ;;  %v1724_v12 = vmul.f32 %v13226_v59, %v14664_v21  ;;  %11579 = vmatpush3.bf16.msra.mxu0 %v13002_v42  ;;  %v13009_v38 = vld [vmem:[#allocation4 + $0x78] ss:$12 sps:$4 sm:$0xff]   ;;  %v13013_v49 = vld [vmem:[#allocation4 + $0x90] ss:$12 sps:$4 sm:$0xff]  }
 0x568   :  { %13237 = vrcp.f32 %v1698_v50  ;;  %v1723_v19 = vmul.f32 %v13228_v10, %v14668_v26  ;;  %v13014_v62 = vld [vmem:[#allocation4 + $0x98] ss:$12 sps:$4 sm:$0xff]   ;;  %v13017_v50 = vld [vmem:[#allocation4 + $0xa8] ss:$12 sps:$4 sm:$0xff]  }
 0x569   :  { %13239 = vrcp.f32 %v1697_v14  ;;  %v1683_v8 = vpop.xlane.xlu0 %1682  ;;  %v13015_v59 = vld [vmem:[#allocation4 + $0xac] ss:$12 sps:$4 sm:$0xff]   ;;  %v13018_v14 = vld [vmem:[#allocation4 + $0xb0] ss:$12 sps:$4 sm:$0xff]  }
 0x56a   :  { %v13230_v48 = vpop.eup %13229  ;;  %10086 = vmatmul.mubr.f32.gmra.mrb[40].mxu1 %v1723_v19  ;;  %v1699_v18 = vadd.f32 1e-16, %v1683_v8  ;;  %v13019_v10 = vld [vmem:[#allocation6 + $0x4] ss:$12 sps:$4 sm:$0xff]   ;;  %v14730_v19 = vld [vmem:[%s16551_s7 + $0x3] ss:$0 sm:$0xff] }
 0x56b   :  { %v13232_v43 = vpop.eup %13231  ;;  %10088 = vmatprep.mubr.f32.mxu1 %v1724_v12  ;;  %v1726_v47 = vmul.f32 %v13230_v48, %v14674_v32  ;;  %v14724_v12 = vld [vmem:[#allocation6 + $0x8] ss:$12 sps:$4 sm:$0xff]  }
 0x56c   :  { %13241 = vrcp.f32 %v1699_v18  ;;  %v1725_v55 = vmul.f32 %v13232_v43, %v14678_v20 }
 0x56e   :  { %v13234_v52 = vpop.eup %13233  ;;  %10089 = vmatmul.mubr.f32.gmra.mrb[42].mxu1 %v1725_v55 }
 0x56f   :  { %v13236_v22 = vpop.eup %13235  ;;  %10091 = vmatprep.mubr.f32.mxu1 %v1726_v47  ;;  %v1728_v21 = vmul.f32 %v13234_v52, %v14684_v54  ;;  %v13001_v54 = vld [vmem:[#allocation4 + $0x48] ss:$12 sps:$4 sm:$0xff]  }
 0x570   :  { %v1727_v26 = vmul.f32 %v13236_v22, %v14688_v6  ;;  %11547 = vmatpush1.bf16.msra.mxu1 %v13001_v54  ;;  %v13003_v6 = vld [vmem:[#allocation4 + $0x64] ss:$12 sps:$4 sm:$0xff]  }
 0x571   :  { %11549 = vmatprep.subr.bf16.mxu1 %v13003_v6 }
 0x572   :  { %v13238_v7 = vpop.eup %13237  ;;  %10092 = vmatmul.mubr.f32.gmra.mrb[44].mxu1 %v1727_v26 }
 0x573   :  { %v13240_v46 = vpop.eup %13239  ;;  %10094 = vmatprep.mubr.f32.mxu1 %v1728_v21  ;;  %v1730_v60 = vmul.f32 %v13238_v7, %v14698_v31  ;;  %v13006_v31 = vld [vmem:[#allocation4 + $0x68] ss:$12 sps:$4 sm:$0xff]  }
 0x574   :  { %v1729_v5 = vmul.f32 %v13240_v46, %v14694_v33  ;;  %11551 = vmatpush1.bf16.msra.mxu1 %v13005_v36  ;;  %11581 = vmatprep.subr.bf16.mxu0 %v13006_v31  ;;  %v13007_v33 = vld [vmem:[#allocation4 + $0x7c] ss:$12 sps:$4 sm:$0xff]  }
 0x575   :  { %11583 = vmatpush3.bf16.msra.mxu0 %v13006_v31  ;;  %11553 = vmatprep.subr.bf16.mxu1 %v13007_v33 }
 0x576   :  { %v13242_v32 = vpop.eup %13241  ;;  %10095 = vmatmul.mubr.f32.gmra.mrb[46].mxu1 %v1729_v5 }
 0x577   :  { %10097 = vmatprep.mubr.f32.mxu1 %v1730_v60  ;;  %v1731_v20 = vmul.f32 %v13242_v32, %v14704_v40  ;;  %v13010_v40 = vld [vmem:[#allocation4 + $0x80] ss:$12 sps:$4 sm:$0xff]  }
 0x578   :  { %11555 = vmatpush1.bf16.msra.mxu1 %v13009_v38  ;;  %11585 = vmatprep.subr.bf16.mxu0 %v13010_v40 }
 0x579   :  { %11587 = vmatpush3.bf16.msra.mxu0 %v13010_v40  ;;  %11557 = vmatprep.subr.bf16.mxu1 %v13011_v57 }
 0x57a   :  { %10098 = vmatmul.mubr.f32.gmra.mrb[48].mxu1 %v1731_v20  ;;  %11589 = vmatprep.subr.bf16.mxu0 %v13014_v62 }
 0x57b   :  { %2152 = vmatprep.mubr.f32.mxu1 %v16802_v16 }
 0x57c   :  { %11559 = vmatpush1.bf16.msra.mxu1 %v13013_v49 }
 0x57d   :  { %11591 = vmatpush3.bf16.msra.mxu0 %v13014_v62  ;;  %11561 = vmatprep.subr.bf16.mxu1 %v13015_v59 }
 0x57e   :  { %11593 = vmatprep.subr.bf16.mxu0 %v13018_v14 }
 0x580   :  { %11563 = vmatpush1.bf16.msra.mxu1 %v13017_v50 }
 0x581   :  { %11595 = vmatpush3.bf16.msra.mxu0 %v13018_v14  ;;  %11597 = vmatprep.subr.bf16.mxu1 %v13019_v10 }
 0x582   :  { %11629 = vmatprep.subr.bf16.mxu0 %v14724_v12 }
 0x62d   :  { %v10078_v8 = vpop.f32.mrb[34].mxu1 }
 0x62e   :  { %v1810_v48 = vadd.f32 %v10078_v8, %v14730_v19  ;;  %v1804_v18 = vpop.f32.mrb[35].mxu1 }
 0x62f   :  { %v1805_v43 = vadd.f32 %v14730_v19, %v1804_v18  ;;  %v13021_v18 = vld [vmem:[#allocation6] ss:$12 sps:$4 sm:$0xff]  }
 0x630   :  { %v1900_v47 = vmin.f32 %v1810_v48, 0.0  ;;  %vm1884_vm10 = vcmp.gt.f32.partialorder %v1810_v48, 0.0 }
 0x631   :  { %v1899_v55 = vmin.f32 %v1805_v43, 0.0  ;;  %vm1883_vm3 = vcmp.gt.f32.partialorder %v1805_v43, 0.0 }
 0x632   :  { %v1917_v52 = vmul.f32 1.442695, %v1900_v47 }
 0x633   :  { %v1915_v22 = vmul.f32 1.442695, %v1899_v55 }
 0x634   :  { %13243 = vpow2.f32 %v1917_v52  ;;  %v13026_v52 = vld [vmem:[#allocation6 + $0x20] ss:$12 sps:$4 sm:$0xff]  }
 0x635   :  { %13245 = vpow2.f32 %v1915_v22  ;;  %v10081_v21 = vpop.f32.mrb[36].mxu1 }
 0x636   :  { %v14735_v26 = vadd.f32 %v10081_v21, %v14730_v19  ;;  %v1814_v7 = vpop.f32.mrb[37].mxu1 }
 0x637   :  { %v14738_v46 = vadd.f32 %v14730_v19, %v1814_v7 }
 0x638   :  { %v1902_v60 = vmin.f32 %v14735_v26, 0.0 }
 0x639   :  { %v1901_v5 = vmin.f32 %v14738_v46, 0.0  ;;  %v10084_v32 = vpop.f32.mrb[38].mxu1 }
 0x63a   :  { %v1921_v20 = vmul.f32 1.442695, %v1902_v60  ;;  %v14743_v58 = vadd.f32 %v10084_v32, %v14730_v19  ;;  %v1824_v54 = vpop.f32.mrb[39].mxu1 }
 0x63b   :  { %v1919_v42 = vmul.f32 1.442695, %v1901_v5  ;;  %v14746_v6 = vadd.f32 %v14730_v19, %v1824_v54  ;;  %v13023_v5 = vld [vmem:[#allocation6 + $0x1c] ss:$12 sps:$4 sm:$0xff]  }
 0x63c   :  { %13247 = vpow2.f32 %v1921_v20  ;;  %v1904_v36 = vmin.f32 %v14743_v58, 0.0 }
 0x63d   :  { %13249 = vpow2.f32 %v1919_v42  ;;  %v1903_v31 = vmin.f32 %v14746_v6, 0.0  ;;  %v10087_v33 = vpop.f32.mrb[40].mxu1 }
 0x63e   :  { %v13244_v38 = vpop.eup %13243  ;;  %v1925_v40 = vmul.f32 1.442695, %v1904_v36  ;;  %v14751_v57 = vadd.f32 %v10087_v33, %v14730_v19  ;;  %v1834_v49 = vpop.f32.mrb[41].mxu1  ;;  %v13025_v36 = vld [vmem:[#allocation6 + $0x18] ss:$12 sps:$4 sm:$0xff]  }
 0x63f   :  { %v13246_v62 = vpop.eup %13245  ;;  %v1923_v59 = vmul.f32 1.442695, %v1903_v31  ;;  %v14754_v50 = vadd.f32 %v14730_v19, %v1834_v49  ;;  %v8051_v14 = vadd.f32 -1.0, %v13244_v38  ;;  %v13028_v33 = vld [vmem:[#allocation6 + $0x34] ss:$12 sps:$4 sm:$0xff]  }
 0x640   :  { %v8050_v10 = vadd.f32 -1.0, %v13246_v62  ;;  %13251 = vpow2.f32 %v1925_v40  ;;  %v1906_v8 = vmin.f32 %v14751_v57, 0.0  ;;  %v13027_v62 = vld [vmem:[#allocation6 + $0x38] ss:$12 sps:$4 sm:$0xff]  }
 0x641   :  { %13253 = vpow2.f32 %v1923_v59  ;;  %v1905_v47 = vmin.f32 %v14754_v50, 0.0  ;;  %v10090_v55 = vpop.f32.mrb[42].mxu1  ;;  %v1964_v54 = vsel %vm1884_vm10, %v1810_v48, %v8051_v14  ;;  %vm1886_vm10 = vcmp.gt.f32.partialorder %v14735_v26, 0.0 }
 0x642   :  { %v1963_v22 = vsel %vm1883_vm3, %v1805_v43, %v8050_v10  ;;  %v1929_v21 = vmul.f32 1.442695, %v1906_v8  ;;  %v14759_v7 = vadd.f32 %v10090_v55, %v14730_v19  ;;  %v1844_v60 = vpop.f32.mrb[43].mxu1  ;;  %vm1885_vm3 = vcmp.gt.f32.partialorder %v14738_v46, 0.0 }
 0x643   :  { %v1927_v32 = vmul.f32 1.442695, %v1905_v47  ;;  %v14762_v20 = vadd.f32 %v14730_v19, %v1844_v60  ;;  %2153 = vmatmul.mubr.f32.vlgmr.msra.gmra.mrb[50].mxu1 %v1963_v22  ;;  %10132 = vmatprep.mubr.f32.mxu0 %v1963_v22  ;;  %v13030_v47 = vld [vmem:[#allocation6 + $0x30] ss:$12 sps:$4 sm:$0xff]  }
 0x644   :  { %13255 = vpow2.f32 %v1929_v21  ;;  %v1908_v42 = vmin.f32 %v14759_v7, 0.0  ;;  %10133 = vmatmul.mubr.f32.vlgmr.msra.gmra.mrb[34].mxu0 %v1964_v54  ;;  %11599 = vmatpush1.bf16.msra.mxu1 %v13021_v18  ;;  %v13031_v21 = vld [vmem:[#allocation6 + $0x50] ss:$12 sps:$4 sm:$0xff]   ;;  %vm1892_vm14 = vcmp.gt.f32.partialorder %v14759_v7, 0.0 }
 0x645   :  { %13257 = vpow2.f32 %v1927_v32  ;;  %v1907_v43 = vmin.f32 %v14762_v20, 0.0  ;;  %v10093_v31 = vpop.f32.mrb[44].mxu1  ;;  %2158 = vmatprep.mubr.f32.mxu1 %v16802_v16  ;;  %11631 = vmatpush3.bf16.msra.mxu0 %v14724_v12 }
 0x646   :  { %v13248_v38 = vpop.eup %13247  ;;  %v1933_v40 = vmul.f32 1.442695, %v1908_v42  ;;  %v14769_v49 = vadd.f32 %v10093_v31, %v14730_v19  ;;  %v1854_v48 = vpop.f32.mrb[45].mxu1  ;;  %11601 = vmatprep.subr.bf16.mxu1 %v13023_v5  ;;  %11633 = vmatprep.subr.bf16.mxu0 %v13026_v52 }
 0x647   :  { %v13250_v59 = vpop.eup %13249  ;;  %v1931_v14 = vmul.f32 1.442695, %v1907_v43  ;;  %v14772_v10 = vadd.f32 %v14730_v19, %v1854_v48  ;;  %2159 = vmatmul.mubr.f32.gmra.mrb[52].mxu1 %v1964_v54  ;;  %v8053_v8 = vadd.f32 -1.0, %v13248_v38  ;;  %v13032_v48 = vld [vmem:[#allocation6 + $0x68] ss:$12 sps:$4 sm:$0xff]  }
 0x648   :  { %13259 = vpow2.f32 %v1933_v40  ;;  %v1910_v12 = vmin.f32 %v14769_v49, 0.0  ;;  %2164 = vmatprep.mubr.f32.mxu1 %v16802_v16  ;;  %v8052_v18 = vadd.f32 -1.0, %v13250_v59  ;;  %11603 = vmatpush1.bf16.msra.mxu1 %v13025_v36  ;;  %v13033_v36 = vld [vmem:[#allocation6 + $0x4c] ss:$12 sps:$4 sm:$0xff]  }
 0x649   :  { %13261 = vpow2.f32 %v1931_v14  ;;  %v1909_v55 = vmin.f32 %v14772_v10, 0.0  ;;  %v10096_v22 = vpop.f32.mrb[46].mxu1  ;;  %11635 = vmatpush3.bf16.msra.mxu0 %v13026_v52  ;;  %11605 = vmatprep.subr.bf16.mxu1 %v13028_v33  ;;  %v1966_v52 = vsel %vm1886_vm10, %v14735_v26, %v8053_v8  ;;  %vm1888_vm10 = vcmp.gt.f32.partialorder %v14743_v58, 0.0 }
 0x64a   :  { %v13252_v60 = vpop.eup %13251  ;;  %v1937_v5 = vmul.f32 1.442695, %v1910_v12  ;;  %v14779_v32 = vadd.f32 %v10096_v22, %v14730_v19  ;;  %v1864_v54 = vpop.f32.mrb[47].mxu1  ;;  %v1965_v42 = vsel %vm1885_vm3, %v14738_v46, %v8052_v18  ;;  %11637 = vmatprep.subr.bf16.mxu0 %v13027_v62  ;;  %vm1887_vm3 = vcmp.gt.f32.partialorder %v14746_v6, 0.0  ;;  %v13035_v12 = vld [vmem:[#allocation6 + $0x48] ss:$12 sps:$4 sm:$0xff]  }
 0x64b   :  { %v13254_v43 = vpop.eup %13253  ;;  %v1935_v31 = vmul.f32 1.442695, %v1909_v55  ;;  %v14784_v38 = vadd.f32 %v14730_v19, %v1864_v54  ;;  %10135 = vmatprep.mubr.f32.mxu0 %v1965_v42  ;;  %2165 = vmatmul.mubr.f32.gmra.mrb[54].mxu1 %v1965_v42  ;;  %v8055_v33 = vadd.f32 -1.0, %v13252_v60  ;;  %v13038_v60 = vld [vmem:[#allocation6 + $0x64] ss:$12 sps:$4 sm:$0xff]  }
 0x64c   :  { %13263 = vpow2.f32 %v1937_v5  ;;  %v1912_v40 = vmin.f32 %v14779_v32, 0.0  ;;  %10136 = vmatmul.mubr.f32.gmra.mrb[36].mxu0 %v1966_v52  ;;  %2170 = vmatprep.mubr.f32.mxu1 %v16802_v16  ;;  %v8054_v46 = vadd.f32 -1.0, %v13254_v43 }
 0x64d   :  { %13265 = vpow2.f32 %v1935_v31  ;;  %v1911_v59 = vmin.f32 %v14784_v38, 0.0  ;;  %v10099_v14 = vpop.f32.mrb[48].mxu1  ;;  %11639 = vmatpush3.bf16.msra.mxu0 %v13027_v62  ;;  %11607 = vmatpush1.bf16.msra.mxu1 %v13030_v47  ;;  %v1968_v62 = vsel %vm1888_vm10, %v14743_v58, %v8055_v33  ;;  %v13040_v31 = vld [vmem:[#allocation6 + $0x60] ss:$12 sps:$4 sm:$0xff]   ;;  %vm1890_vm10 = vcmp.gt.f32.partialorder %v14751_v57, 0.0 }
 0x64e   :  { %v13256_v18 = vpop.eup %13255  ;;  %v1941_v26 = vmul.f32 1.442695, %v1912_v40  ;;  %v14792_v8 = vadd.f32 %v10099_v14, %v14730_v19  ;;  %v1874_v55 = vpop.f32.mrb[49].mxu1  ;;  %v1967_v22 = vsel %vm1887_vm3, %v14746_v6, %v8054_v46  ;;  %11641 = vmatprep.subr.bf16.mxu0 %v13031_v21  ;;  %11609 = vmatprep.subr.bf16.mxu1 %v13033_v36  ;;  %vm1889_vm3 = vcmp.gt.f32.partialorder %v14754_v50, 0.0  ;;  %v13042_v33 = vld [vmem:[#allocation6 + $0x7c] ss:$12 sps:$4 sm:$0xff]  }
 0x64f   :  { %v13258_v5 = vpop.eup %13257  ;;  %v1939_v54 = vmul.f32 1.442695, %v1911_v59  ;;  %v14797_v42 = vadd.f32 %v14730_v19, %v1874_v55  ;;  %10138 = vmatprep.mubr.f32.mxu0 %v1967_v22  ;;  %2171 = vmatmul.mubr.f32.gmra.mrb[56].mxu1 %v1966_v52  ;;  %v8057_v47 = vadd.f32 -1.0, %v13256_v18  ;;  %v13036_v19 = vld [vmem:[#allocation6 + $0x80] ss:$12 sps:$4 sm:$0xff]  }
 0x650   :  { %13267 = vpow2.f32 %v1941_v26  ;;  %v1914_v43 = vmin.f32 %v14792_v8, 0.0  ;;  %10139 = vmatmul.mubr.f32.gmra.mrb[38].mxu0 %v1968_v62  ;;  %2176 = vmatprep.mubr.f32.mxu1 %v16802_v16  ;;  %v8056_v6 = vadd.f32 -1.0, %v13258_v5  ;;  %v13037_v55 = vld [vmem:[#allocation6 + $0x98] ss:$12 sps:$4 sm:$0xff]  }
 0x651   :  { %13269 = vpow2.f32 %v1939_v54  ;;  %v1913_v36 = vmin.f32 %v14797_v42, 0.0  ;;  %11643 = vmatpush3.bf16.msra.mxu0 %v13031_v21  ;;  %11611 = vmatpush1.bf16.msra.mxu1 %v13035_v12  ;;  %v1970_v14 = vsel %vm1890_vm10, %v14751_v57, %v8057_v47  ;;  %v13045_v57 = vld [vmem:[#allocation6 + $0x94] ss:$12 sps:$4 sm:$0xff]   ;;  %vm1893_vm10 = vcmp.gt.f32.partialorder %v14772_v10, 0.0 }
 0x652   :  { %v13260_v52 = vpop.eup %13259  ;;  %v1945_v40 = vmul.f32 1.442695, %v1914_v43  ;;  %v1969_v58 = vsel %vm1889_vm3, %v14754_v50, %v8056_v6  ;;  %11645 = vmatprep.subr.bf16.mxu0 %v13032_v48  ;;  %11613 = vmatprep.subr.bf16.mxu1 %v13038_v60  ;;  %vm1891_vm3 = vcmp.gt.f32.partialorder %v14762_v20, 0.0  ;;  %v13044_v50 = vld [vmem:[#allocation6 + $0x78] ss:$12 sps:$4 sm:$0xff]  }
 0x653   :  { %v13262_v46 = vpop.eup %13261  ;;  %v1943_v59 = vmul.f32 1.442695, %v1913_v36  ;;  %10141 = vmatprep.mubr.f32.mxu0 %v1969_v58  ;;  %2177 = vmatmul.mubr.f32.gmra.mrb[58].mxu1 %v1967_v22  ;;  %v8059_v18 = vadd.f32 -1.0, %v13260_v52  ;;  %v13041_v43 = vld [vmem:[#allocation6 + $0xb0] ss:$12 sps:$4 sm:$0xff]  }
 0x654   :  { %13271 = vpow2.f32 %v1945_v40  ;;  %10142 = vmatmul.mubr.f32.gmra.mrb[40].mxu0 %v1970_v14  ;;  %2182 = vmatprep.mubr.f32.mxu1 %v16802_v16  ;;  %v8058_v21 = vadd.f32 -1.0, %v13262_v46 }
 0x655   :  { %13273 = vpow2.f32 %v1943_v59  ;;  %11647 = vmatpush3.bf16.msra.mxu0 %v13032_v48  ;;  %11615 = vmatpush1.bf16.msra.mxu1 %v13040_v31  ;;  %v1972_v60 = vsel %vm1892_vm14, %v14759_v7, %v8059_v18  ;;  %vm1895_vm14 = vcmp.gt.f32.partialorder %v14784_v38, 0.0  ;;  %v16812_v59 = vld [vmem:[#allocation21_spill] sm:$0xff]  ;;  %v8735_v18 = vld [vmem:[#allocation2 + $0x108] sm:$0xff]  }
 0x656   :  { %v13264_v12 = vpop.eup %13263  ;;  %v1971_v26 = vsel %vm1891_vm3, %v14762_v20, %v8058_v21  ;;  %11649 = vmatprep.subr.bf16.mxu0 %v13036_v19  ;;  %11617 = vmatprep.subr.bf16.mxu1 %v13042_v33  ;;  %v13047_v20 = vld [vmem:[#allocation6 + $0x90] ss:$12 sps:$4 sm:$0xff]   ;;  %vm1894_vm3 = vcmp.gt.f32.partialorder %v14769_v49, 0.0 }
 0x657   :  { %v13266_v22 = vpop.eup %13265  ;;  %10144 = vmatprep.mubr.f32.mxu0 %v1971_v26  ;;  %2183 = vmatmul.mubr.f32.gmra.mrb[60].mxu1 %v1968_v62  ;;  %v8061_v5 = vadd.f32 -1.0, %v13264_v12  ;;  %v13048_v62 = vld [vmem:[#allocation6 + $0xac] ss:$12 sps:$4 sm:$0xff]   ;;  %v8736_v21 = vld [vmem:[#allocation2 + $0x110] sm:$0xff]   ;;  %v8738_v12 = vld [vmem:[#allocation2 + $0x120] sm:$0xff]  }
 0x658   :  { %10145 = vmatmul.mubr.f32.gmra.mrb[42].mxu0 %v1972_v60  ;;  %2188 = vmatprep.mubr.f32.mxu1 %v16802_v16  ;;  %v8060_v48 = vadd.f32 -1.0, %v13266_v22 }
 0x659   :  { %11651 = vmatpush3.bf16.msra.mxu0 %v13036_v19  ;;  %11619 = vmatpush1.bf16.msra.mxu1 %v13044_v50  ;;  %v1974_v6 = vsel %vm1894_vm3, %v14769_v49, %v8061_v5  ;;  %vm1897_vm3 = vcmp.gt.f32.partialorder %v14797_v42, 0.0  ;;  %v8737_v50 = vld [vmem:[#allocation2 + $0x118] sm:$0xff]  }
 0x65a   :  { %v13268_v54 = vpop.eup %13267  ;;  %v1973_v47 = vsel %vm1893_vm10, %v14772_v10, %v8060_v48  ;;  %11653 = vmatprep.subr.bf16.mxu0 %v13037_v55  ;;  %11621 = vmatprep.subr.bf16.mxu1 %v13045_v57  ;;  %v13050_v10 = vld [vmem:[#allocation6 + $0xa8] ss:$12 sps:$4 sm:$0xff]   ;;  %vm1896_vm10 = vcmp.gt.f32.partialorder %v14779_v32, 0.0  ;;  %v8741_v57 = vld [vmem:[#allocation2 + $0x138] sm:$0xff]  }
 0x65b   :  { %v13270_v7 = vpop.eup %13269  ;;  %10147 = vmatprep.mubr.f32.mxu0 %v1973_v47  ;;  %2189 = vmatmul.mubr.f32.gmra.mrb[62].mxu1 %v1969_v58  ;;  %v8063_v36 = vadd.f32 -1.0, %v13268_v54 }
 0x65c   :  { %10148 = vmatmul.mubr.f32.gmra.mrb[44].mxu0 %v1974_v6  ;;  %2194 = vmatprep.mubr.f32.mxu1 %v16802_v16  ;;  %v8062_v19 = vadd.f32 -1.0, %v13270_v7 }
 0x65d   :  { %11655 = vmatpush3.bf16.msra.mxu0 %v13037_v55  ;;  %11623 = vmatpush1.bf16.msra.mxu1 %v13047_v20  ;;  %v1976_v49 = vsel %vm1896_vm10, %v14779_v32, %v8063_v36  ;;  %v16809_v32 = vld [vmem:[#allocation19_spill] sm:$0xff]  ;;  %vm16813_vm10 = vmmov 0  }
 0x65e   :  { %v13272_v31 = vpop.eup %13271  ;;  %v1975_v52 = vsel %vm1895_vm14, %v14784_v38, %v8062_v19  ;;  %11657 = vmatprep.subr.bf16.mxu0 %v13041_v43  ;;  %11625 = vmatprep.subr.bf16.mxu1 %v13048_v62  ;;  %vm1898_vm14 = vcmp.gt.f32.partialorder %v14792_v8, 0.0  ;;  %v8740_v55 = vld [vmem:[#allocation2 + $0x130] sm:$0xff]   ;;  %v1979_v19 = vld [vmem:[%s16555_s11] sm:$0x3f] }
 0x65f   :  { %v13274_v40 = vpop.eup %13273  ;;  %10150 = vmatprep.mubr.f32.mxu0 %v1975_v52  ;;  %2195 = vmatmul.mubr.f32.gmra.mrb[64].mxu1 %v1970_v14  ;;  %v8065_v58 = vadd.f32 -1.0, %v13272_v31  ;;  %v8356_v14 = vld [vmem:[#allocation2 + $0x100] sm:$0xff]  }
 0x660   :  { %10151 = vmatmul.mubr.f32.gmra.mrb[46].mxu0 %v1976_v49  ;;  %2200 = vmatprep.mubr.f32.mxu1 %v16802_v16  ;;  %v8064_v33 = vadd.f32 -1.0, %v13274_v40 }
 0x661   :  { %11659 = vmatpush3.bf16.msra.mxu0 %v13041_v43  ;;  %11627 = vmatpush1.bf16.msra.mxu1 %v13050_v10  ;;  %v1978_v46 = vsel %vm1898_vm14, %v14792_v8, %v8065_v58  ;;  %v16810_v8 = vld [vmem:[#allocation18_spill] sm:$0xff]  ;;  %v16820_v58 = vld [vmem:[#allocation57_spill] sm:$0xff]  ;;  %vm16834_vm14 = vmpackc.low %vm14357_vm11, %vm14351_vm12 }
 0x662   :  { %v1977_v38 = vsel %vm1897_vm3, %v14797_v42, %v8064_v33  ;;  %11692 = vmatprep.subr.bf16.mxu1 %v16786_v37  ;;  %v16811_v42 = vld [vmem:[#allocation22_spill] sm:$0xff]  ;;  %11661 = vmatprep.subr.bf16.mxu0 %v8356_v14  ;;  %vm16833_vm3 = vmpackc.low %vm14335_vm15, %vm14329_vm1 }
 0x663   :  { %10153 = vmatprep.mubr.f32.mxu0 %v1977_v38  ;;  %2201 = vmatmul.mubr.f32.gmra.mrb[66].mxu1 %v1971_v26  ;;  %v8739_v26 = vld [vmem:[#allocation2 + $0x128] sm:$0xff]  }
 0x664   :  { %10154 = vmatmul.mubr.f32.gmra.mrb[48].mxu0 %v1978_v46  ;;  %2206 = vmatprep.mubr.f32.mxu1 %v16802_v16 }
 0x665   :  { %10188 = vmatprep.mubr.f32.mxu0 %v14037_v3 }
 0x667   :  { %2207 = vmatmul.mubr.f32.gmra.mrb[68].mxu1 %v1972_v60 }
 0x668   :  { %10189 = vmatmul.mubr.f32.vlgmr.msra.gmra.mrb[50].mxu0 %v14031_v63  ;;  %2212 = vmatprep.mubr.f32.mxu1 %v16802_v16 }
 0x669   :  { %10191 = vmatprep.mubr.f32.mxu0 %v14054_v15  ;;  %11663 = vmatpush3.bf16.msra.mxu0 %v8356_v14 }
 0x66a   :  { %11665 = vmatprep.subr.bf16.mxu0 %v8735_v18 }
 0x66b   :  { %2213 = vmatmul.mubr.f32.gmra.mrb[70].mxu1 %v1973_v47 }
 0x66c   :  { %10192 = vmatmul.mubr.f32.gmra.mrb[52].mxu0 %v14047_v11  ;;  %2218 = vmatprep.mubr.f32.mxu1 %v16802_v16 }
 0x66d   :  { %10194 = vmatprep.mubr.f32.mxu0 %v14072_v27  ;;  %11667 = vmatpush3.bf16.msra.mxu0 %v8735_v18 }
 0x66e   :  { %11669 = vmatprep.subr.bf16.mxu0 %v8736_v21 }
 0x66f   :  { %2219 = vmatmul.mubr.f32.gmra.mrb[72].mxu1 %v1974_v6  ;;  %v16814_v6 = vld [vmem:[#allocation34_spill] sm:$0xff] }
 0x670   :  { %10195 = vmatmul.mubr.f32.gmra.mrb[54].mxu0 %v14065_v23  ;;  %2224 = vmatprep.mubr.f32.mxu1 %v16802_v16  ;;  %v14907_v36 = vsub.s32 4, %v16814_v6 }
 0x671   :  { %10197 = vmatprep.mubr.f32.mxu0 %v14090_v39  ;;  %11671 = vmatpush3.bf16.msra.mxu0 %v8736_v21 }
 0x672   :  { %11673 = vmatprep.subr.bf16.mxu0 %v8737_v50  ;;  %16815 = vst [vmem:[#allocation58_spill] sm:$0xff] %v14907_v36 }
 0x673   :  { %2225 = vmatmul.mubr.f32.gmra.mrb[74].mxu1 %v1975_v52  ;;  %v2072_v52 = vrot.slane %v1979_v19, %v14907_v36  ;;  %v14947_v36 = vsub.s32 2, %v16814_v6 }
 0x674   :  { %10198 = vmatmul.mubr.f32.gmra.mrb[56].mxu0 %v14083_v35  ;;  %2230 = vmatprep.mubr.f32.mxu1 %v16802_v16 }
 0x675   :  { %10200 = vmatprep.mubr.f32.mxu0 %v14108_v56  ;;  %11675 = vmatpush3.bf16.msra.mxu0 %v8737_v50  ;;  %v14922_v33 = vrot.slane %v2072_v52, %v16820_v58  ;;  %16823 = vst [vmem:[#allocation65_spill] sm:$0xff] %v14947_v36 }
 0x676   :  { %11677 = vmatprep.subr.bf16.mxu0 %v8738_v12 }
 0x677   :  { %2231 = vmatmul.mubr.f32.gmra.mrb[76].mxu1 %v1976_v49 }
 0x678   :  { %10201 = vmatmul.mubr.f32.gmra.mrb[58].mxu0 %v14101_v51  ;;  %2236 = vmatprep.mubr.f32.mxu1 %v16802_v16 }
 0x679   :  { %10203 = vmatprep.mubr.f32.mxu0 %v14130_v9  ;;  %11679 = vmatpush3.bf16.msra.mxu0 %v8738_v12 }
 0x67a   :  { %11681 = vmatprep.subr.bf16.mxu0 %v8739_v26 }
 0x67b   :  { %2237 = vmatmul.mubr.f32.gmra.mrb[78].mxu1 %v1977_v38 }
 0x67c   :  { %10204 = vmatmul.mubr.f32.gmra.mrb[60].mxu0 %v14121_v2  ;;  %2242 = vmatprep.mubr.f32.mxu1 %v16802_v16 }
 0x67d   :  { %10206 = vmatprep.mubr.f32.mxu0 %v16809_v32  ;;  %11683 = vmatpush3.bf16.msra.mxu0 %v8739_v26 }
 0x67e   :  { %11685 = vmatprep.subr.bf16.mxu0 %v8740_v55 }
 0x67f   :  { %2243 = vmatmul.mubr.f32.gmra.mrb[80].mxu1 %v1978_v46 }
 0x680   :  { %10207 = vmatmul.mubr.f32.gmra.mrb[62].mxu0 %v16810_v8  ;;  %2565 = vmatprep.mubr.f32.mxu1 %v16802_v16 }
 0x681   :  { %10209 = vmatprep.mubr.f32.mxu0 %v16811_v42  ;;  %11687 = vmatpush3.bf16.msra.mxu0 %v8740_v55 }
 0x682   :  { %11689 = vmatprep.subr.bf16.mxu0 %v8741_v57 }
 0x683   :  { %2566 = vmatmul.mubr.f32.vlgmr.msra.gmra.mrb[50].mxu1 %v14037_v3 }
 0x684   :  { %10210 = vmatmul.mubr.f32.gmra.mrb[64].mxu0 %v16812_v59  ;;  %2571 = vmatprep.mubr.f32.mxu1 %v16802_v16 }
 0x685   :  { %11691 = vmatpush3.bf16.msra.mxu0 %v8741_v57 }
 0x686   :  { %11716 = vmatprep.subr.bf16.mxu0 %v16786_v37 }
 0x687   :  { %2572 = vmatmul.mubr.f32.gmra.mrb[52].mxu1 %v14031_v63 }
 0x688   :  { %2577 = vmatprep.mubr.f32.mxu1 %v16802_v16 }
 0x68b   :  { %2578 = vmatmul.mubr.f32.gmra.mrb[54].mxu1 %v14054_v15 }
 0x68c   :  { %2583 = vmatprep.mubr.f32.mxu1 %v16802_v16 }
 0x68f   :  { %2584 = vmatmul.mubr.f32.gmra.mrb[56].mxu1 %v14047_v11 }
 0x690   :  { %2589 = vmatprep.mubr.f32.mxu1 %v16802_v16 }
 0x693   :  { %2590 = vmatmul.mubr.f32.gmra.mrb[58].mxu1 %v14072_v27 }
 0x694   :  { %2595 = vmatprep.mubr.f32.mxu1 %v16802_v16 }
 0x697   :  { %2596 = vmatmul.mubr.f32.gmra.mrb[60].mxu1 %v14065_v23 }
 0x698   :  { %2601 = vmatprep.mubr.f32.mxu1 %v16802_v16 }
 0x69b   :  { %2602 = vmatmul.mubr.f32.gmra.mrb[62].mxu1 %v14090_v39 }
 0x69c   :  { %2607 = vmatprep.mubr.f32.mxu1 %v16802_v16 }
 0x69f   :  { %2608 = vmatmul.mubr.f32.gmra.mrb[64].mxu1 %v14083_v35 }
 0x6a0   :  { %2613 = vmatprep.mubr.f32.mxu1 %v16802_v16 }
 0x6a3   :  { %2614 = vmatmul.mubr.f32.gmra.mrb[66].mxu1 %v14108_v56 }
 0x6a4   :  { %2619 = vmatprep.mubr.f32.mxu1 %v16802_v16 }
 0x6a7   :  { %2620 = vmatmul.mubr.f32.gmra.mrb[68].mxu1 %v14101_v51 }
 0x6a8   :  { %2625 = vmatprep.mubr.f32.mxu1 %v16802_v16 }
 0x6ab   :  { %2626 = vmatmul.mubr.f32.gmra.mrb[70].mxu1 %v14130_v9 }
 0x6ac   :  { %2631 = vmatprep.mubr.f32.mxu1 %v16802_v16 }
 0x6af   :  { %2632 = vmatmul.mubr.f32.gmra.mrb[72].mxu1 %v14121_v2  ;;  %v14961_v2 = vsub.s32 5, %v16814_v6 }
 0x6b0   :  { %2637 = vmatprep.mubr.f32.mxu1 %v16802_v16 }
 0x6b1   :  { %16826 = vst [vmem:[#allocation67_spill] sm:$0xff] %v14961_v2  ;;  %v2485_v56 = vrot.slane %v1979_v19, %v14961_v2 }
 0x6b3   :  { %2638 = vmatmul.mubr.f32.gmra.mrb[74].mxu1 %v16809_v32  ;;  %v2068_v32 = vrot.slane %v1979_v19, %v14947_v36 }
 0x6b4   :  { %2643 = vmatprep.mubr.f32.mxu1 %v16802_v16 }
 0x6b5   :  { %v2083_v24 = vrot.slane %v2068_v32, %v16820_v58 }
 0x6b7   :  { %2644 = vmatmul.mubr.f32.gmra.mrb[76].mxu1 %v16810_v8 }
 0x6b8   :  { %2649 = vmatprep.mubr.f32.mxu1 %v16802_v16 }
 0x6bb   :  { %2650 = vmatmul.mubr.f32.gmra.mrb[78].mxu1 %v16811_v42  ;;  %v16825_v42 = vld [vmem:[#allocation35_spill] sm:$0xff] }
 0x6bc   :  { %2655 = vmatprep.mubr.f32.mxu1 %v16802_v16  ;;  %v2477_v8 = vrot.slane %v1979_v19, %v16825_v42 }
 0x6be   :  { %v2492_v51 = vrot.slane %v2477_v8, %v16825_v42 }
 0x6bf   :  { %2656 = vmatmul.mubr.f32.gmra.mrb[80].mxu1 %v16812_v59  ;;  %v2064_v59 = vrot.slane %v1979_v19, %v16820_v58 }
 0x6c0   :  { %10300 = vmatprep.mubr.msk.f32.mxu1 %vm16813_vm10, %v16802_v16 }
 0x717   :  { %v14886_v22 = vpop.f32.mrb[34].mxu0 }
 0x718   :  { %v14888_v60 = vpop.f32.mrb[35].mxu0 }
 0x71f   :  { %v14890_v5 = vpop.f32.mrb[36].mxu0 }
 0x720   :  { %v14892_v48 = vpop.f32.mrb[37].mxu0 }
 0x723   :  { %v14894_v20 = vpop.f32.mrb[38].mxu0 }
 0x724   :  { %v14896_v54 = vpop.f32.mrb[39].mxu0 }
 0x727   :  { %v14898_v47 = vpop.f32.mrb[40].mxu0 }
 0x728   :  { %v14900_v43 = vpop.f32.mrb[41].mxu0 }
 0x72b   :  { %v14902_v62 = vpop.f32.mrb[42].mxu0 }
 0x72c   :  { %v14904_v7 = vpop.f32.mrb[43].mxu0 }
 0x72f   :  { %v14912_v10 = vpop.f32.mrb[44].mxu0 }
 0x730   :  { %16816 = vst [vmem:[#allocation59_spill] sm:$0xff] %v14912_v10  ;;  %v14914_v31 = vpop.f32.mrb[45].mxu0 }
 0x731   :  { %16817 = vst [vmem:[#allocation60_spill] sm:$0xff] %v14914_v31 }
 0x733   :  { %v14917_v40 = vpop.f32.mrb[46].mxu0 }
 0x734   :  { %16818 = vst [vmem:[#allocation61_spill] sm:$0xff] %v14917_v40  ;;  %v14919_v49 = vpop.f32.mrb[47].mxu0  ;;  %v2079_v40 = vrot.slane %v2064_v59, %v16820_v58  ;;  %v14981_v59 = vrot.slane %v2485_v56, %v16825_v42 }
 0x735   :  { %16819 = vst [vmem:[#allocation62_spill] sm:$0xff] %v14919_v49 }
 0x737   :  { %v10155_v38 = vpop.f32.mrb[48].mxu0 }
 0x738   :  { %v14925_v46 = vadd.f32 %v10155_v38, %v14922_v33  ;;  %v2385_v14 = vpop.f32.mrb[49].mxu0 }
 0x739   :  { %v14928_v18 = vadd.f32 %v2385_v14, %v14922_v33  ;;  %v14950_v14 = vsub.s32 3, %v16814_v6 }
 0x73a   :  { %16821 = vst [vmem:[#allocation63_spill] sm:$0xff] %v14925_v46 }
 0x73b   :  { %16822 = vst [vmem:[#allocation64_spill] sm:$0xff] %v14928_v18  ;;  %v14930_v21 = vpop.f32.mrb[50].mxu0  ;;  %16824 = vst [vmem:[#allocation66_spill] sm:$0xff] %v14950_v14  ;;  %v2481_v18 = vrot.slane %v1979_v19, %v14950_v14  ;;  %v14974_v14 = vadd.f32 %v2492_v51, %v2079_v40 }
 0x73c   :  { %v14932_v50 = vpop.f32.mrb[51].mxu0 }
 0x73d   :  { %v2496_v30 = vrot.slane %v2481_v18, %v16825_v42 }
 0x73f   :  { %v14934_v12 = vpop.f32.mrb[52].mxu0  ;;  %v14978_v0 = vadd.f32 %v2496_v30, %v2083_v24 }
 0x740   :  { %v14936_v26 = vpop.f32.mrb[53].mxu0 }
 0x743   :  { %v14938_v55 = vpop.f32.mrb[54].mxu0 }
 0x744   :  { %v14940_v57 = vpop.f32.mrb[55].mxu0 }
 0x747   :  { %v14942_v52 = vpop.f32.mrb[56].mxu0 }
 0x748   :  { %v14944_v38 = vpop.f32.mrb[57].mxu0 }
 0x74b   :  { %v14952_v16 = vpop.f32.mrb[58].mxu0 }
 0x74c   :  { %v14956_v46 = vpop.f32.mrb[59].mxu0 }
 0x74f   :  { %v14963_v9 = vpop.f32.mrb[60].mxu0 }
 0x750   :  { %16827 = vst [vmem:[#allocation68_spill] sm:$0xff] %v14963_v9  ;;  %v14967_v49 = vpop.f32.mrb[61].mxu0 }
 0x753   :  { %v14972_v36 = vpop.f32.mrb[62].mxu0 }
 0x754   :  { %16828 = vst [vmem:[#allocation69_spill] sm:$0xff] %v14972_v36  ;;  %v14976_v6 = vpop.f32.mrb[63].mxu0 }
 0x755   :  { %16829 = vst [vmem:[#allocation70_spill] sm:$0xff] %v14976_v6 }
 0x756   :  { %v2567_v8 = vpop.f32.mrb[50].mxu1 }
 0x757   :  { %v12525_v53 = vadd.f32 %v14974_v14, %v2567_v8  ;;  %v10211_v10 = vpop.f32.mrb[64].mxu0  ;;  %v2569_v32 = vpop.f32.mrb[51].mxu1 }
 0x758   :  { %v14985_v18 = vadd.f32 %v10211_v10, %v14981_v59  ;;  %v12527_v19 = vadd.f32 %v14978_v0, %v2569_v32  ;;  %v2798_v2 = vpop.f32.mrb[65].mxu0 }
 0x759   :  { %v8066_v51 = vmul.f32 -1.442695, %v12525_v53  ;;  %v14989_v40 = vadd.f32 %v2798_v2, %v14981_v59 }
 0x75a   :  { %16830 = vst [vmem:[#allocation71_spill] sm:$0xff] %v14985_v18  ;;  %v2573_v30 = vpop.f32.mrb[52].mxu1  ;;  %v8082_v42 = vmul.f32 -1.442695, %v12527_v19 }
 0x75b   :  { %16831 = vst [vmem:[#allocation72_spill] sm:$0xff] %v14989_v40  ;;  %13275 = vpow2.f32 %v8066_v51  ;;  %v12529_v56 = vadd.f32 %v14974_v14, %v2573_v30  ;;  %v2575_v24 = vpop.f32.mrb[53].mxu1 }
 0x75c   :  { %v12531_v8 = vadd.f32 %v14978_v0, %v2575_v24 }
 0x75d   :  { %v8067_v58 = vmul.f32 -1.442695, %v12529_v56 }
 0x75e   :  { %v2579_v36 = vpop.f32.mrb[54].mxu1  ;;  %v8083_v32 = vmul.f32 -1.442695, %v12531_v8 }
 0x75f   :  { %13277 = vpow2.f32 %v8067_v58  ;;  %v12533_v10 = vadd.f32 %v14974_v14, %v2579_v36  ;;  %v2581_v18 = vpop.f32.mrb[55].mxu1 }
 0x760   :  { %13279 = vpow2.f32 %v8082_v42  ;;  %v12535_v53 = vadd.f32 %v14978_v0, %v2581_v18 }
 0x761   :  { %v8068_v2 = vmul.f32 -1.442695, %v12533_v10 }
 0x762   :  { %v8084_v40 = vmul.f32 -1.442695, %v12535_v53  ;;  %v2585_v6 = vpop.f32.mrb[56].mxu1 }
 0x763   :  { %13281 = vpow2.f32 %v8068_v2  ;;  %v12537_v51 = vadd.f32 %v14974_v14, %v2585_v6  ;;  %v2587_v30 = vpop.f32.mrb[57].mxu1 }
 0x764   :  { %v12539_v19 = vadd.f32 %v14978_v0, %v2587_v30  ;;  %13283 = vpow2.f32 %v8083_v32 }
 0x765   :  { %v13276_v56 = vpop.eup %13275  ;;  %v8069_v24 = vmul.f32 -1.442695, %v12537_v51  ;;  %13285 = vpow2.f32 %v8084_v40 }
 0x766   :  { %v2871_v58 = vadd.f32 1.0, %v13276_v56  ;;  %v8085_v36 = vmul.f32 -1.442695, %v12539_v19  ;;  %v2591_v9 = vpop.f32.mrb[58].mxu1 }
 0x767   :  { %13287 = vpow2.f32 %v8069_v24  ;;  %v12541_v42 = vadd.f32 %v14974_v14, %v2591_v9  ;;  %v2593_v18 = vpop.f32.mrb[59].mxu1 }
 0x768   :  { %13289 = vrcp.f32 %v2871_v58  ;;  %v12543_v8 = vadd.f32 %v14978_v0, %v2593_v18 }
 0x769   :  { %v13278_v10 = vpop.eup %13277  ;;  %v8070_v53 = vmul.f32 -1.442695, %v12541_v42  ;;  %13291 = vpow2.f32 %v8085_v36 }
 0x76a   :  { %v13280_v6 = vpop.eup %13279  ;;  %v2872_v2 = vadd.f32 1.0, %v13278_v10  ;;  %v8086_v30 = vmul.f32 -1.442695, %v12543_v8  ;;  %v2597_v31 = vpop.f32.mrb[60].mxu1 }
 0x76b   :  { %13293 = vpow2.f32 %v8070_v53  ;;  %v12545_v32 = vadd.f32 %v14974_v14, %v2597_v31  ;;  %v2599_v40 = vpop.f32.mrb[61].mxu1  ;;  %v2983_v9 = vadd.f32 1.0, %v13280_v6 }
 0x76c   :  { %13295 = vrcp.f32 %v2872_v2  ;;  %v12547_v51 = vadd.f32 %v14978_v0, %v2599_v40  ;;  %v2729_v2 = vadd.f32 %v14932_v50, %v14981_v59 }
 0x76d   :  { %v13282_v19 = vpop.eup %13281  ;;  %v8071_v56 = vmul.f32 -1.442695, %v12545_v32  ;;  %13297 = vpow2.f32 %v8086_v30 }
 0x76e   :  { %v2873_v24 = vadd.f32 1.0, %v13282_v19  ;;  %v8087_v58 = vmul.f32 -1.442695, %v12547_v51  ;;  %v2603_v18 = vpop.f32.mrb[62].mxu1  ;;  %v13284_v42 = vpop.eup %13283 }
 0x76f   :  { %13299 = vpow2.f32 %v8071_v56  ;;  %v12549_v36 = vadd.f32 %v14974_v14, %v2603_v18  ;;  %v2605_v8 = vpop.f32.mrb[63].mxu1  ;;  %v13286_v10 = vpop.eup %13285  ;;  %v2984_v40 = vadd.f32 1.0, %v13284_v42  ;;  %v2316_v56 = vadd.f32 %v14888_v60, %v14922_v33 }
 0x770   :  { %13301 = vrcp.f32 %v2873_v24  ;;  %v12551_v31 = vadd.f32 %v14978_v0, %v2605_v8  ;;  %v2985_v44 = vadd.f32 1.0, %v13286_v10 }
 0x771   :  { %v13288_v53 = vpop.eup %13287  ;;  %13303 = vrcp.f32 %v2983_v9  ;;  %v8072_v6 = vmul.f32 -1.442695, %v12549_v36  ;;  %v2734_v9 = vadd.f32 %v14930_v21, %v14981_v59  ;;  %v2331_v21 = vadd.f32 %v14890_v5, %v14922_v33 }
 0x772   :  { %v13290_v32 = vpop.eup %13289  ;;  %v2874_v30 = vadd.f32 1.0, %v13288_v53  ;;  %13305 = vpow2.f32 %v8087_v58  ;;  %v8088_v51 = vmul.f32 -1.442695, %v12551_v31  ;;  %v2609_v19 = vpop.f32.mrb[64].mxu1 }
 0x773   :  { %v3031_v18 = vmul.f32 %v13290_v32, %v2729_v2  ;;  %13307 = vpow2.f32 %v8072_v6  ;;  %v12553_v24 = vadd.f32 %v14974_v14, %v2609_v19  ;;  %v2611_v8 = vpop.f32.mrb[65].mxu1  ;;  %v13292_v13 = vpop.eup %13291  ;;  %v2321_v2 = vadd.f32 %v14886_v22, %v14922_v33 }
 0x774   :  { %13309 = vrcp.f32 %v2874_v30  ;;  %v12555_v60 = vadd.f32 %v14978_v0, %v2611_v8  ;;  %v2986_v30 = vadd.f32 1.0, %v13292_v13  ;;  %v2336_v13 = vadd.f32 %v14896_v54, %v14922_v33 }
 0x775   :  { %v13294_v50 = vpop.eup %13293  ;;  %v3047_v42 = vadd.f32 %v3031_v18, %v2316_v56  ;;  %13311 = vpow2.f32 %v8088_v51  ;;  %v8073_v31 = vmul.f32 -1.442695, %v12553_v24  ;;  %v2326_v18 = vadd.f32 %v14892_v48, %v14922_v33 }
 0x776   :  { %v13296_v58 = vpop.eup %13295  ;;  %13313 = vrcp.f32 %v2984_v40  ;;  %v2875_v36 = vadd.f32 1.0, %v13294_v50  ;;  %v2615_v53 = vpop.f32.mrb[66].mxu1  ;;  %v2739_v40 = vadd.f32 %v14936_v26, %v14981_v59  ;;  %v8089_v24 = vmul.f32 -1.442695, %v12555_v60 }
 0x777   :  { %13315 = vtanh.f32 %v3047_v42  ;;  %v3032_v6 = vmul.f32 %v13296_v58, %v2734_v9  ;;  %v2617_v10 = vpop.f32.mrb[67].mxu1  ;;  %v13298_v32 = vpop.eup %13297  ;;  %v15027_v42 = vadd.f32 %v14898_v47, %v14922_v33  ;;  %v12557_v58 = vadd.f32 %v14974_v14, %v2615_v53 }
 0x778   :  { %13317 = vrcp.f32 %v2985_v44  ;;  %v15021_v44 = vadd.f32 %v14894_v20, %v14922_v33  ;;  %v2987_v48 = vadd.f32 1.0, %v13298_v32  ;;  %v15032_v20 = vadd.f32 %v14900_v43, %v14922_v33 }
 0x779   :  { %v13300_v19 = vpop.eup %13299  ;;  %v3048_v51 = vadd.f32 %v3032_v6, %v2321_v2  ;;  %13319 = vrcp.f32 %v2875_v36  ;;  %v2744_v54 = vadd.f32 %v14934_v12, %v14981_v59  ;;  %v2754_v53 = vadd.f32 %v14938_v55, %v14981_v59 }
 0x77a   :  { %v13302_v56 = vpop.eup %13301  ;;  %v2876_v22 = vadd.f32 1.0, %v13300_v19  ;;  %13321 = vpow2.f32 %v8073_v31  ;;  %v2621_v8 = vpop.f32.mrb[68].mxu1  ;;  %v2749_v43 = vadd.f32 %v14940_v57, %v14981_v59 }
 0x77b   :  { %v13304_v50 = vpop.eup %13303  ;;  %13323 = vtanh.f32 %v3048_v51  ;;  %v3033_v5 = vmul.f32 %v13302_v56, %v2739_v40  ;;  %v2623_v26 = vpop.f32.mrb[69].mxu1  ;;  %v12561_v47 = vadd.f32 %v14974_v14, %v2621_v8  ;;  %v8074_v51 = vmul.f32 -1.442695, %v12557_v58 }
 0x77c   :  { %v13306_v9 = vpop.eup %13305  ;;  %13325 = vrcp.f32 %v2986_v30  ;;  %v12559_v56 = vadd.f32 %v14978_v0, %v2617_v10  ;;  %v12563_v10 = vadd.f32 %v14978_v0, %v2623_v26 }
 0x77d   :  { %v13308_v36 = vpop.eup %13307  ;;  %v3049_v31 = vadd.f32 %v3033_v5, %v2326_v18  ;;  %13327 = vrcp.f32 %v2876_v22  ;;  %v2988_v2 = vadd.f32 1.0, %v13306_v9  ;;  %v3079_v18 = vsub.f32 1.0, %v13304_v50 }
 0x77e   :  { %v13310_v60 = vpop.eup %13309  ;;  %v2877_v6 = vadd.f32 1.0, %v13308_v36  ;;  %13329 = vpow2.f32 %v8089_v24  ;;  %v2627_v30 = vpop.f32.mrb[70].mxu1  ;;  %v8075_v55 = vmul.f32 -1.442695, %v12561_v47 }
 0x77f   :  { %v13312_v32 = vpop.eup %13311  ;;  %13331 = vtanh.f32 %v3049_v31  ;;  %v3034_v19 = vmul.f32 %v13310_v60, %v2744_v54  ;;  %v2629_v40 = vpop.f32.mrb[71].mxu1  ;;  %v12565_v5 = vadd.f32 %v14974_v14, %v2627_v30  ;;  %v3111_v54 = vmul.f32 %v13304_v50, %v14037_v3 }
 0x780   :  { %v13314_v12 = vpop.eup %13313  ;;  %13333 = vrcp.f32 %v2987_v48  ;;  %v2989_v8 = vadd.f32 1.0, %v13312_v32  ;;  %v2759_v48 = vadd.f32 %v14944_v38, %v14981_v59  ;;  %v8090_v30 = vmul.f32 -1.442695, %v12559_v56 }
 0x781   :  { %v13316_v22 = vpop.eup %13315  ;;  %v3050_v24 = vadd.f32 %v3034_v19, %v2331_v21  ;;  %13335 = vrcp.f32 %v2877_v6  ;;  %v3080_v58 = vsub.f32 1.0, %v13314_v12  ;;  %v8076_v19 = vmul.f32 -1.442695, %v12565_v5 }
 0x782   :  { %v13318_v9 = vpop.eup %13317  ;;  %13337 = vrcp.f32 %v2988_v2  ;;  %v2633_v36 = vpop.f32.mrb[72].mxu1  ;;  %v3095_v57 = vmul.f32 %v13316_v22, %v3079_v18  ;;  %v12567_v3 = vadd.f32 %v14978_v0, %v2629_v40 }
 0x783   :  { %v13320_v31 = vpop.eup %13319  ;;  %13339 = vtanh.f32 %v3050_v24  ;;  %v2635_v21 = vpop.f32.mrb[73].mxu1  ;;  %v12569_v38 = vadd.f32 %v14974_v14, %v2633_v36  ;;  %v3081_v40 = vsub.f32 1.0, %v13318_v9 }
 0x784   :  { %v13322_v60 = vpop.eup %13321  ;;  %v3035_v6 = vmul.f32 %v13320_v31, %v2749_v43  ;;  %13341 = vpow2.f32 %v8074_v51  ;;  %v3127_v32 = vadd.f32 %v3111_v54, %v3095_v57  ;;  %v8091_v43 = vmul.f32 -1.442695, %v12563_v10 }
 0x785   :  { %v13324_v2 = vpop.eup %13323  ;;  %13343 = vrcp.f32 %v2989_v8  ;;  %v2878_v47 = vadd.f32 1.0, %v13322_v60  ;;  %v3112_v57 = vmul.f32 %v13314_v12, %v14031_v63  ;;  %v8092_v36 = vmul.f32 -1.442695, %v12567_v3 }
 0x786   :  { %v13326_v50 = vpop.eup %13325  ;;  %v3051_v18 = vadd.f32 %v3035_v6, %v2336_v13  ;;  %13345 = vpow2.f32 %v8075_v55  ;;  %v2639_v22 = vpop.f32.mrb[74].mxu1  ;;  %v15049_v24 = vmax.f32 %v3127_v32, 0.0  ;;  %v3096_v56 = vmul.f32 %v13324_v2, %v3080_v58 }
 0x787   :  { %v13328_v26 = vpop.eup %13327  ;;  %13347 = vrcp.f32 %v2878_v47  ;;  %v2641_v51 = vpop.f32.mrb[75].mxu1  ;;  %v3113_v13 = vmul.f32 %v13318_v9, %v14054_v15  ;;  %v12571_v54 = vadd.f32 %v14978_v0, %v2635_v21  ;;  %v8077_v58 = vmul.f32 -1.442695, %v12569_v38 }
 0x788   :  { %v13330_v8 = vpop.eup %13329  ;;  %13349 = vtanh.f32 %v3051_v18  ;;  %v3036_v5 = vmul.f32 %v13328_v26, %v2754_v53  ;;  %10244 = vmatprep.mubr.f32.mxu0 %v15049_v24  ;;  %v3128_v31 = vadd.f32 %v3112_v57, %v3096_v56  ;;  %v2764_v53 = vadd.f32 %v14942_v52, %v14981_v59 }
 0x789   :  { %v13332_v55 = vpop.eup %13331  ;;  %13351 = vpow2.f32 %v8090_v30  ;;  %v2990_v32 = vadd.f32 1.0, %v13330_v8  ;;  %v12573_v2 = vadd.f32 %v14974_v14, %v2639_v22  ;;  %v3082_v3 = vsub.f32 1.0, %v13326_v50 }
 0x78a   :  { %v13334_v60 = vpop.eup %13333  ;;  %v3052_v10 = vadd.f32 %v3036_v5, %v15021_v44  ;;  %13353 = vpow2.f32 %v8076_v19  ;;  %v2645_v63 = vpop.f32.mrb[76].mxu1  ;;  %v3097_v12 = vmul.f32 %v13332_v55, %v3081_v40  ;;  %v15058_v9 = vmax.f32 %v3128_v31, 0.0 }
 0x78b   :  { %v13336_v6 = vpop.eup %13335  ;;  %13355 = vpow2.f32 %v8091_v43  ;;  %v2647_v15 = vpop.f32.mrb[77].mxu1  ;;  %v8093_v19 = vmul.f32 -1.442695, %v12571_v54  ;;  %v3114_v52 = vmul.f32 %v13326_v50, %v14047_v11  ;;  %v12575_v26 = vadd.f32 %v14978_v0, %v2641_v51 }
 0x78c   :  { %v15060_v30 = vpop.eup %13337  ;;  %13357 = vtanh.f32 %v3052_v10  ;;  %v3037_v21 = vmul.f32 %v13336_v6, %v2759_v48  ;;  %v3129_v44 = vadd.f32 %v3113_v13, %v3097_v12  ;;  %10245 = vmatmul.mubr.f32.vlgmr.msra.gmra.mrb[66].mxu0 %v15058_v9  ;;  %v16832_v48 = vmov 1.0|1.0  }
 0x78d   :  { %v13340_v47 = vpop.eup %13339  ;;  %13359 = vpow2.f32 %v8092_v36  ;;  %11718 = vmatpush3.bf16.msk.msra.mxu0 %vm16833_vm3, %v16832_v48  ;;  %v8078_v8 = vmul.f32 -1.442695, %v12573_v2  ;;  %v3083_v40 = vsub.f32 1.0, %v13334_v60  ;;  %v12577_v36 = vadd.f32 %v14974_v14, %v2645_v63  ;;  %vm16835_vm3 = vmpackc.low %vm14386_vm8, %vm14380_vm9 }
 0x78e   :  { %v13342_v18 = vpop.eup %13341  ;;  %v3053_v38 = vadd.f32 %v3037_v21, %v15032_v20  ;;  %13361 = vpow2.f32 %v8077_v58  ;;  %v2651_v43 = vpop.f32.mrb[78].mxu1  ;;  %v15067_v56 = vmax.f32 %v3129_v44, 0.0  ;;  %v3098_v57 = vmul.f32 %v13340_v47, %v3082_v3  ;;  %11719 = vmatprep.subr.bf16.mxu0 %v16786_v37 }
 0x78f   :  { %v15075_v22 = vpop.eup %13343  ;;  %13363 = vrcp.f32 %v2990_v32  ;;  %v2879_v11 = vadd.f32 1.0, %v13342_v18  ;;  %v12581_v50 = vadd.f32 %v14974_v14, %v2651_v43  ;;  %v2653_v20 = vpop.f32.mrb[79].mxu1  ;;  %v8094_v58 = vmul.f32 -1.442695, %v12575_v26 }
 0x790   :  { %v13346_v51 = vpop.eup %13345  ;;  %13365 = vtanh.f32 %v3053_v38  ;;  %v15080_v5 = vadd.f32 %v14978_v0, %v2653_v20  ;;  %10247 = vmatprep.mubr.f32.mxu0 %v15067_v56  ;;  %v3130_v54 = vadd.f32 %v3114_v52, %v3098_v57  ;;  %v3115_v6 = vmul.f32 %v13334_v60, %v14072_v27 }
 0x791   :  { %v13348_v13 = vpop.eup %13347  ;;  %13367 = vrcp.f32 %v2879_v11  ;;  %v2880_v55 = vadd.f32 1.0, %v13346_v51  ;;  %11721 = vmatpush3.bf16.msk.msra.mxu0 %vm16834_vm14, %v16832_v48  ;;  %v3084_v47 = vsub.f32 1.0, %v15060_v30  ;;  %v8079_v52 = vmul.f32 -1.442695, %v12577_v36  ;;  %vm16836_vm14 = vmpackc.low %vm14415_vm5, %vm14409_vm6 }
 0x792   :  { %v13350_v31 = vpop.eup %13349  ;;  %v3038_v10 = vmul.f32 %v13348_v13, %v2764_v53  ;;  %13369 = vpow2.f32 %v8093_v19  ;;  %v2657_v12 = vpop.f32.mrb[80].mxu1  ;;  %v15094_v2 = vmax.f32 %v3130_v54, 0.0  ;;  %11722 = vmatprep.subr.bf16.mxu0 %v16786_v37  ;;  %v3085_v57 = vsub.f32 1.0, %v15075_v22 }
 0x793   :  { %v13352_v32 = vpop.eup %13351  ;;  %13371 = vrcp.f32 %v2880_v55  ;;  %v15092_v21 = vadd.f32 %v14974_v14, %v2657_v12  ;;  %v2659_v63 = vpop.f32.mrb[81].mxu1  ;;  %v3099_v53 = vmul.f32 %v13350_v31, %v3083_v40  ;;  %v12579_v14 = vadd.f32 %v14978_v0, %v2647_v15 }
 0x794   :  { %v13354_v44 = vpop.eup %13353  ;;  %v3054_v27 = vadd.f32 %v3038_v10, %v15027_v42  ;;  %13373 = vpow2.f32 %v8078_v8  ;;  %v15099_v60 = vadd.f32 %v14978_v0, %v2659_v63  ;;  %10248 = vmatmul.mubr.f32.gmra.mrb[68].mxu0 %v15094_v2  ;;  %v2991_v26 = vadd.f32 1.0, %v13352_v32 }
 0x795   :  { %v13356_v19 = vpop.eup %13355  ;;  %v2881_v3 = vadd.f32 1.0, %v13354_v44  ;;  %v3131_v18 = vadd.f32 %v3115_v6, %v3099_v53  ;;  %11724 = vmatpush3.bf16.msk.msra.mxu0 %vm16835_vm3, %v16832_v48  ;;  %v3116_v0 = vmul.f32 %v15060_v30, %v14065_v23  ;;  %v8095_v40 = vmul.f32 -1.442695, %v12579_v14  ;;  %vm16837_vm3 = vmpackc.low %vm16806_vm0, %vm14438_vm2 }
 0x796   :  { %v13358_v38 = vpop.eup %13357  ;;  %13375 = vtanh.f32 %v3054_v27  ;;  %11725 = vmatprep.subr.bf16.mxu0 %v16786_v37  ;;  %v2992_v20 = vadd.f32 1.0, %v13356_v19  ;;  %v2769_v36 = vadd.f32 %v14956_v46, %v14981_v59  ;;  %v8080_v23 = vmul.f32 -1.442695, %v12581_v50 }
 0x797   :  { %v13360_v42 = vpop.eup %13359  ;;  %13377 = vpow2.f32 %v8094_v58  ;;  %v15110_v43 = vmax.f32 %v3131_v18, 0.0  ;;  %v3100_v11 = vmul.f32 %v13358_v38, %v3084_v47  ;;  %v3117_v30 = vmul.f32 %v15075_v22, %v14090_v39 }
 0x798   :  { %v13362_v15 = vpop.eup %13361  ;;  %13379 = vrcp.f32 %v2881_v3  ;;  %v2993_v31 = vadd.f32 1.0, %v13360_v42  ;;  %v2356_v50 = vadd.f32 %v14904_v7, %v14922_v33  ;;  %v2774_v39 = vadd.f32 %v14952_v16, %v14981_v59 }
 0x799   :  { %v13364_v51 = vpop.eup %13363  ;;  %v2882_v8 = vadd.f32 1.0, %v13362_v15  ;;  %13381 = vpow2.f32 %v8079_v52  ;;  %10250 = vmatprep.mubr.f32.mxu0 %v15110_v43  ;;  %v3132_v13 = vadd.f32 %v3116_v0, %v3100_v11  ;;  %11727 = vmatpush3.bf16.msk.msra.mxu0 %vm16836_vm14, %v16832_v48  ;;  %v2361_v6 = vadd.f32 %v14902_v62, %v14922_v33  ;;  %v16838_v11 = vld [vmem:[#allocation48_spill] sm:$0xff]  ;;  %v16839_v0 = vld [vmem:[#allocation47_spill] sm:$0xff]  ;;  %vm16840_vm14 = vmpackc.low %vm16807_vm4, %vm14467_vm7 }
 0x79a   :  { %v13366_v55 = vpop.eup %13365  ;;  %13383 = vrcp.f32 %v2991_v26  ;;  %11728 = vmatprep.subr.bf16.mxu0 %v16786_v37  ;;  %v3086_v27 = vsub.f32 1.0, %v13364_v51  ;;  %v2779_v19 = vadd.f32 %v14967_v49, %v14981_v59  ;;  %v8081_v52 = vmul.f32 -1.442695, %v15092_v21  ;;  %v16841_v21 = vld [vmem:[#allocation60_spill] sm:$0xff] }
 0x79b   :  { %v13368_v54 = vpop.eup %13367  ;;  %13385 = vrcp.f32 %v2882_v8  ;;  %v15127_v10 = vmax.f32 %v3132_v13, 0.0  ;;  %v3101_v58 = vmul.f32 %v13366_v55, %v3085_v57  ;;  %v8096_v18 = vmul.f32 -1.442695, %v15080_v5 }
 0x79c   :  { %v13370_v46 = vpop.eup %13369  ;;  %v3039_v22 = vmul.f32 %v13368_v54, %v2769_v36  ;;  %13387 = vrcp.f32 %v2992_v20  ;;  %v3118_v26 = vmul.f32 %v13364_v51, %v14083_v35  ;;  %v2366_v15 = vadd.f32 %v16841_v21, %v14922_v33  ;;  %v16842_v35 = vld [vmem:[#allocation68_spill] sm:$0xff] }
 0x79d   :  { %v13372_v12 = vpop.eup %13371  ;;  %13389 = vpow2.f32 %v8095_v40  ;;  %10251 = vmatmul.mubr.f32.gmra.mrb[70].mxu0 %v15127_v10  ;;  %v3133_v32 = vadd.f32 %v3117_v30, %v3101_v58  ;;  %v2994_v16 = vadd.f32 1.0, %v13370_v46  ;;  %v2784_v51 = vadd.f32 %v16842_v35, %v14981_v59  ;;  %v16843_v30 = vld [vmem:[#allocation59_spill] sm:$0xff]  ;;  %v16844_v58 = vld [vmem:[#allocation52_spill] sm:$0xff]  ;;  %v16857_v35 = vld [vmem:[#allocation69_spill] sm:$0xff] }
 0x79e   :  { %v13374_v63 = vpop.eup %13373  ;;  %v3055_v53 = vadd.f32 %v3039_v22, %v2356_v50  ;;  %v3040_v44 = vmul.f32 %v13372_v12, %v2774_v39  ;;  %13391 = vpow2.f32 %v8080_v23  ;;  %11730 = vmatpush3.bf16.msk.msra.mxu0 %vm16837_vm3, %v16832_v48  ;;  %v2371_v54 = vadd.f32 %v16843_v30, %v14922_v33  ;;  %v16845_v46 = vld [vmem:[#allocation51_spill] sm:$0xff] }
 0x79f   :  { %13393 = vrcp.f32 %v2993_v31  ;;  %v2883_v7 = vadd.f32 1.0, %v13374_v63  ;;  %v15143_v62 = vmax.f32 %v3133_v32, 0.0  ;;  %11731 = vmatprep.subr.bf16.mxu0 %v16786_v37  ;;  %vm16846_vm3 = vnez %v16845_v46 }
 0x7a0   :  { %v13376_v47 = vpop.eup %13375  ;;  %13395 = vtanh.f32 %v3055_v53  ;;  %v3056_v3 = vadd.f32 %v3040_v44, %v2361_v6  ;;  %v8097_v39 = vmul.f32 -1.442695, %v15099_v60  ;;  %v16848_v44 = vld [vmem:[#allocation70_spill] sm:$0xff]  ;;  %v16852_v60 = vld [vmem:[#allocation55_spill] sm:$0xff] }
 0x7a1   :  { %v13378_v14 = vpop.eup %13377  ;;  %13397 = vrcp.f32 %v2883_v7  ;;  %10253 = vmatprep.mubr.f32.mxu0 %v15143_v62  ;;  %v3102_v38 = vmul.f32 %v13376_v47, %v3086_v27  ;;  %v2789_v27 = vadd.f32 %v16848_v44, %v14981_v59  ;;  %v16850_v47 = vld [vmem:[#allocation56_spill] sm:$0xff] }
 0x7a2   :  { %v13380_v42 = vpop.eup %13379  ;;  %13399 = vtanh.f32 %v3056_v3  ;;  %11733 = vmatpush3.bf16.msk.msra.mxu0 %vm16840_vm14, %v16832_v48  ;;  %v2995_v55 = vadd.f32 1.0, %v13378_v14  ;;  %vm16847_vm14 = vmpackc.low %vm16808_vm13, %vm16846_vm3  ;;  %vm16853_vm3 = vnez %v16852_v60 }
 0x7a3   :  { %v13382_v49 = vpop.eup %13381  ;;  %v3041_v20 = vmul.f32 %v13380_v42, %v2779_v19  ;;  %13401 = vrcp.f32 %v2994_v16  ;;  %v3134_v5 = vadd.f32 %v3118_v26, %v3102_v38  ;;  %11734 = vmatprep.subr.bf16.mxu0 %v16786_v37  ;;  %v16849_v16 = vld [vmem:[#allocation12_spill] sm:$0xff]  ;;  %v16855_v38 = vld [vmem:[#allocation62_spill] sm:$0xff] }
 0x7a4   :  { %v13384_v57 = vpop.eup %13383  ;;  %v2884_v8 = vadd.f32 1.0, %v13382_v49  ;;  %13403 = vpow2.f32 %v8081_v52  ;;  %v2376_v26 = vadd.f32 %v16855_v38, %v14922_v33 }
 0x7a5   :  { %v13386_v40 = vpop.eup %13385  ;;  %v3057_v13 = vadd.f32 %v3041_v20, %v2366_v15  ;;  %13405 = vpow2.f32 %v8096_v18  ;;  %v15163_v36 = vmax.f32 %v3134_v5, 0.0  ;;  %v3087_v63 = vsub.f32 1.0, %v13384_v57  ;;  %v16856_v20 = vld [vmem:[#allocation11_spill] sm:$0xff] }
 0x7a6   :  { %v13388_v23 = vpop.eup %13387  ;;  %v3042_v31 = vmul.f32 %v13386_v40, %v2784_v51  ;;  %13407 = vrcp.f32 %v2884_v8  ;;  %11736 = vmatpush3.bf16.msk.msra.mxu0 %vm16847_vm14, %v16832_v48  ;;  %v3119_v7 = vmul.f32 %v13384_v57, %v16849_v16  ;;  %vm16851_vm14 = vnez %v16850_v47 }
 0x7a7   :  { %v13390_v50 = vpop.eup %13389  ;;  %13409 = vtanh.f32 %v3057_v13  ;;  %10254 = vmatmul.mubr.f32.gmra.mrb[72].mxu0 %v15163_v36  ;;  %11737 = vmatprep.subr.bf16.mxu0 %v16786_v37  ;;  %vm16854_vm13 = vmpackc.low %vm16851_vm14, %vm16853_vm3  ;;  %v3088_v14 = vsub.f32 1.0, %v13388_v23  ;;  %v3120_v5 = vmul.f32 %v13388_v23, %v16856_v20  ;;  %v2794_v51 = vadd.f32 %v16857_v35, %v14981_v59  ;;  %v16862_v20 = vld [vmem:[#allocation64_spill] sm:$0xff] }
 0x7a8   :  { %v13392_v22 = vpop.eup %13391  ;;  %v3058_v12 = vadd.f32 %v3042_v31, %v2371_v54  ;;  %13411 = vrcp.f32 %v2995_v55  ;;  %v2996_v3 = vadd.f32 1.0, %v13390_v50 }
 0x7a9   :  { %v13394_v6 = vpop.eup %13393  ;;  %v2885_v32 = vadd.f32 1.0, %v13392_v22 }
 0x7aa   :  { %v13396_v53 = vpop.eup %13395  ;;  %13413 = vtanh.f32 %v3058_v12  ;;  %11739 = vmatpush3.bf16.msk.msra.mxu0 %vm16854_vm13, %v16832_v48  ;;  %v3089_v31 = vsub.f32 1.0, %v13394_v6 }
 0x7ab   :  { %v13398_v19 = vpop.eup %13397  ;;  %13415 = vpow2.f32 %v8097_v39  ;;  %v3103_v52 = vmul.f32 %v13396_v53, %v3087_v63  ;;  %11740 = vmatprep.subr.bf16.mxu0 %v16786_v37  ;;  %v16858_v39 = vld [vmem:[#allocation61_spill] sm:$0xff] }
 0x7ac   :  { %v13400_v18 = vpop.eup %13399  ;;  %v3043_v42 = vmul.f32 %v13398_v19, %v2789_v27  ;;  %13417 = vrcp.f32 %v2885_v32  ;;  %v2381_v22 = vadd.f32 %v16858_v39, %v14922_v33  ;;  %v16859_v32 = vld [vmem:[#allocation16_spill] sm:$0xff] }
 0x7ad   :  { %v13402_v49 = vpop.eup %13401  ;;  %v3135_v21 = vadd.f32 %v3119_v7, %v3103_v52  ;;  %v3104_v15 = vmul.f32 %v13400_v18, %v3088_v14  ;;  %13419 = vrcp.f32 %v2996_v3  ;;  %v3121_v63 = vmul.f32 %v13394_v6, %v16859_v32  ;;  %v16860_v52 = vld [vmem:[#allocation14_spill] sm:$0xff] }
 0x7ae   :  { %v13404_v57 = vpop.eup %13403  ;;  %v3059_v8 = vadd.f32 %v3043_v42, %v2376_v26  ;;  %v3090_v16 = vsub.f32 1.0, %v13402_v49  ;;  %v3122_v14 = vmul.f32 %v13402_v49, %v16860_v52  ;;  %v16861_v26 = vld [vmem:[#allocation72_spill] sm:$0xff]  ;;  %v16869_v52 = vld [vmem:[#allocation22_spill] sm:$0xff] }
 0x7af   :  { %v13406_v40 = vpop.eup %13405  ;;  %v2886_v13 = vadd.f32 1.0, %v13404_v57  ;;  %v15191_v55 = vmax.f32 %v3135_v21, 0.0  ;;  %v3136_v30 = vadd.f32 %v3120_v5, %v3104_v15 }
 0x7b0   :  { %v13408_v54 = vpop.eup %13407  ;;  %13421 = vtanh.f32 %v3059_v8  ;;  %v2997_v27 = vadd.f32 1.0, %v13406_v40  ;;  %v16863_v40 = vld [vmem:[#allocation19_spill] sm:$0xff] }
 0x7b1   :  { %v13410_v50 = vpop.eup %13409  ;;  %v3044_v12 = vmul.f32 %v13408_v54, %v2794_v51  ;;  %13423 = vrcp.f32 %v2886_v13  ;;  %10256 = vmatprep.mubr.f32.mxu0 %v15191_v55  ;;  %v15196_v23 = vmax.f32 %v3136_v30, 0.0  ;;  %v16864_v30 = vld [vmem:[#allocation71_spill] sm:$0xff] }
 0x7b2   :  { %v3105_v59 = vmul.f32 %v13410_v50, %v3089_v31  ;;  %v13412_v53 = vpop.eup %13411  ;;  %v16865_v50 = vld [vmem:[#allocation63_spill] sm:$0xff] }
 0x7b3   :  { %v3060_v44 = vadd.f32 %v3044_v12, %v2381_v22  ;;  %10257 = vmatmul.mubr.f32.gmra.mrb[74].mxu0 %v15196_v23  ;;  %v3091_v35 = vsub.f32 1.0, %v13412_v53  ;;  %v3123_v13 = vmul.f32 %v13412_v53, %v16863_v40 }
 0x7b4   :  { %v13414_v7 = vpop.eup %13413  ;;  %v3137_v19 = vadd.f32 %v3121_v63, %v3105_v59  ;;  %v16867_v63 = vld [vmem:[#allocation18_spill] sm:$0xff] }
 0x7b5   :  { %v13416_v3 = vpop.eup %13415  ;;  %13425 = vtanh.f32 %v3060_v44  ;;  %v3106_v33 = vmul.f32 %v13414_v7, %v3090_v16 }
 0x7b6   :  { %v13418_v18 = vpop.eup %13417  ;;  %v15201_v38 = vmax.f32 %v3137_v19, 0.0  ;;  %13427 = vrcp.f32 %v2997_v27  ;;  %v2998_v21 = vadd.f32 1.0, %v13416_v3 }
 0x7b7   :  { %v3045_v42 = vmul.f32 %v13418_v18, %v16861_v26  ;;  %v3138_v6 = vadd.f32 %v3122_v14, %v3106_v33  ;;  %v13420_v15 = vpop.eup %13419 }
 0x7b8   :  { %10259 = vmatprep.mubr.f32.mxu0 %v15201_v38  ;;  %v3092_v22 = vsub.f32 1.0, %v13420_v15  ;;  %v3124_v44 = vmul.f32 %v13420_v15, %v16867_v63  ;;  %v16871_v15 = vld [vmem:[#allocation21_spill] sm:$0xff] }
 0x7b9   :  { %v3061_v5 = vadd.f32 %v3045_v42, %v16862_v20  ;;  %v15206_v57 = vmax.f32 %v3138_v6, 0.0 }
 0x7ba   :  { %v13422_v51 = vpop.eup %13421 }
 0x7bb   :  { %v13424_v8 = vpop.eup %13423  ;;  %13429 = vtanh.f32 %v3061_v5  ;;  %10260 = vmatmul.mubr.f32.gmra.mrb[76].mxu0 %v15206_v57  ;;  %v3107_v49 = vmul.f32 %v13422_v51, %v3091_v35  ;;  %v16873_v51 = vmov 0.0  }
 0x7bc   :  { %v3046_v54 = vmul.f32 %v13424_v8, %v16864_v30  ;;  %13431 = vrcp.f32 %v2998_v21 }
 0x7bd   :  { %v3139_v31 = vadd.f32 %v3123_v13, %v3107_v49 }
 0x7be   :  { %v3062_v39 = vadd.f32 %v3046_v54, %v16865_v50 }
 0x7bf   :  { %v13426_v12 = vpop.eup %13425  ;;  %v15212_v59 = vmax.f32 %v3139_v31, 0.0 }
 0x7c0   :  { %13433 = vtanh.f32 %v3062_v39  ;;  %v3108_v32 = vmul.f32 %v13426_v12, %v3092_v22  ;;  %v13428_v27 = vpop.eup %13427 }
 0x7c1   :  { %16866 = vst [vmem:[#allocation48_spill] sm:$0xff] %v15212_v59  ;;  %10262 = vmatprep.mubr.f32.mxu0 %v15212_v59  ;;  %v3093_v53 = vsub.f32 1.0, %v13428_v27  ;;  %v3125_v14 = vmul.f32 %v13428_v27, %v16869_v52 }
 0x7c2   :  { %v3140_v16 = vadd.f32 %v3124_v44, %v3108_v32 }
 0x7c4   :  { %v15216_v7 = vmax.f32 %v3140_v16, 0.0 }
 0x7c5   :  { %v13430_v19 = vpop.eup %13429 }
 0x7c6   :  { %16868 = vst [vmem:[#allocation47_spill] sm:$0xff] %v15216_v7  ;;  %v13432_v3 = vpop.eup %13431  ;;  %10263 = vmatmul.mubr.f32.gmra.mrb[78].mxu0 %v15216_v7  ;;  %v3109_v33 = vmul.f32 %v13430_v19, %v3093_v53 }
 0x7c7   :  { %v3094_v26 = vsub.f32 1.0, %v13432_v3  ;;  %v3126_v20 = vmul.f32 %v13432_v3, %v16871_v15  ;;  %v16875_v15 = vld [vmem:[#allocation9_spill] sm:$0xff] }
 0x7c8   :  { %v3141_v18 = vadd.f32 %v3125_v14, %v3109_v33 }
 0x7ca   :  { %v13434_v42 = vpop.eup %13433  ;;  %v15220_v6 = vmax.f32 %v3141_v18, 0.0 }
 0x7cb   :  { %v3110_v21 = vmul.f32 %v13434_v42, %v3094_v26  ;;  %v3337_v42 = vld [vmem:[%s16552_s8] sm:$0x3] }
 0x7cc   :  { %16870 = vst [vmem:[#allocation60_spill] sm:$0xff] %v15220_v6  ;;  %10265 = vmatprep.mubr.f32.mxu0 %v15220_v6 }
 0x7cd   :  { %v3142_v5 = vadd.f32 %v3126_v20, %v3110_v21  ;;  %v16874_v21 = vmov 1.0   ;;  %v16876_v20 = vld [vmem:[#allocation10_spill] sm:$0xff] }
 0x7ce   :  { %vm16877_vm13 = vcmp.eq.s32.totalorder %v16875_v15, %v16876_v20  ;;  %v16915_v20 = vld [vmem:[#allocation41_spill] sm:$0xff] }
 0x7cf   :  { %v15224_v35 = vmax.f32 %v3142_v5, 0.0  ;;  %v16878_v5 = vld [vmem:[#allocation15_spill] sm:$0xff] }
 0x7d0   :  { %vm16879_vm3 = vcmp.eq.s32.totalorder %v16875_v15, %v16878_v5  ;;  %v16916_v5 = vld [vmem:[#allocation42_spill] sm:$0xff] }
 0x7d1   :  { %16872 = vst [vmem:[#allocation68_spill] sm:$0xff] %v15224_v35  ;;  %10266 = vmatmul.mubr.f32.gmra.mrb[80].mxu0 %v15224_v35 }
 0x7d2   :  { %10335 = vmatprep.mubr.msk.f32.mxu0 %vm16813_vm10, %v16873_v51 }
 0x85f   :  { %v10246_v8 = vpop.f32.mrb[66].mxu0 }
 0x860   :  { %v3258_v49 = vpop.f32.mrb[67].mxu0 }
 0x861   :  { %v11693_v40 = vpack.c.bf16 %v10246_v8, %v3258_v49  ;;  %v16880_v8 = vld [vmem:[#allocation13_spill] sm:$0xff] }
 0x862   :  { %v16882_v49 = vld [vmem:[#allocation17_spill] sm:$0xff] }
 0x863   :  { %11694 = vmatpush3.bf16.xpose.msra.mxu1 %v11693_v40  ;;  %vm16883_vm14 = vcmp.eq.s32.totalorder %v16875_v15, %v16882_v49  ;;  %v16918_v49 = vld [vmem:[#allocation44_spill] sm:$0xff] }
 0x864   :  { %11695 = vmatprep.subr.bf16.mxu1 %v16786_v37 }
 0x867   :  { %v10249_v13 = vpop.f32.mrb[68].mxu0 }
 0x868   :  { %v3268_v30 = vpop.f32.mrb[69].mxu0 }
 0x869   :  { %v11696_v54 = vpack.c.bf16 %v10249_v13, %v3268_v30  ;;  %v16886_v13 = vld [vmem:[#allocation23_spill] sm:$0xff]  ;;  %v16888_v30 = vld [vmem:[#allocation24_spill] sm:$0xff] }
 0x86a   :  { %vm16887_vm4 = vcmp.eq.s32.totalorder %v16875_v15, %v16886_v13  ;;  %v16920_v13 = vld [vmem:[#allocation46_spill] sm:$0xff] }
 0x86b   :  { %11697 = vmatpush3.bf16.xpose.msra.mxu1 %v11696_v54 }
 0x86c   :  { %11698 = vmatprep.subr.bf16.mxu1 %v16786_v37 }
 0x870   :  { %v10252_v31 = vpop.f32.mrb[70].mxu0 }
 0x871   :  { %v3278_v50 = vpop.f32.mrb[71].mxu0 }
 0x872   :  { %v11699_v39 = vpack.c.bf16 %v10252_v31, %v3278_v50  ;;  %v16892_v31 = vld [vmem:[#allocation26_spill] sm:$0xff]  ;;  %v16894_v50 = vld [vmem:[#allocation27_spill] sm:$0xff] }
 0x874   :  { %11700 = vmatpush3.bf16.xpose.msra.mxu1 %v11699_v39 }
 0x875   :  { %11701 = vmatprep.subr.bf16.mxu1 %v16786_v37 }
 0x87a   :  { %v10255_v22 = vpop.f32.mrb[72].mxu0 }
 0x87b   :  { %v3288_v12 = vpop.f32.mrb[73].mxu0 }
 0x87c   :  { %v11702_v32 = vpack.c.bf16 %v10255_v22, %v3288_v12  ;;  %v16898_v22 = vld [vmem:[#allocation29_spill] sm:$0xff]  ;;  %v16900_v12 = vld [vmem:[#allocation30_spill] sm:$0xff] }
 0x87e   :  { %11703 = vmatpush3.bf16.xpose.msra.mxu1 %v11702_v32 }
 0x87f   :  { %11704 = vmatprep.subr.bf16.mxu1 %v16786_v37 }
 0x886   :  { %v10258_v63 = vpop.f32.mrb[74].mxu0 }
 0x887   :  { %v3298_v44 = vpop.f32.mrb[75].mxu0 }
 0x888   :  { %v11705_v27 = vpack.c.bf16 %v10258_v63, %v3298_v44  ;;  %v16904_v63 = vld [vmem:[#allocation32_spill] sm:$0xff]  ;;  %v16906_v44 = vld [vmem:[#allocation33_spill] sm:$0xff] }
 0x88a   :  { %11706 = vmatpush3.bf16.xpose.msra.mxu1 %v11705_v27 }
 0x88b   :  { %11707 = vmatprep.subr.bf16.mxu1 %v16786_v37 }
 0x88e   :  { %v10261_v16 = vpop.f32.mrb[76].mxu0 }
 0x88f   :  { %v3308_v53 = vpop.f32.mrb[77].mxu0 }
 0x890   :  { %v11708_v19 = vpack.c.bf16 %v10261_v16, %v3308_v53  ;;  %v16908_v16 = vld [vmem:[#allocation57_spill] sm:$0xff] }
 0x892   :  { %11709 = vmatpush3.bf16.xpose.msra.mxu1 %v11708_v19 }
 0x893   :  { %11710 = vmatprep.subr.bf16.mxu1 %v16786_v37 }
 0x899   :  { %v10264_v3 = vpop.f32.mrb[78].mxu0 }
 0x89a   :  { %v3318_v33 = vpop.f32.mrb[79].mxu0 }
 0x89b   :  { %v11711_v52 = vpack.c.bf16 %v10264_v3, %v3318_v33  ;;  %v16910_v3 = vld [vmem:[#allocation36_spill] sm:$0xff] }
 0x89d   :  { %11712 = vmatpush3.bf16.xpose.msra.mxu1 %v11711_v52 }
 0x89e   :  { %11713 = vmatprep.subr.bf16.mxu1 %v16786_v37 }
 0x8a4   :  { %v10267_v14 = vpop.f32.mrb[80].mxu0 }
 0x8a5   :  { %v3328_v18 = vpop.f32.mrb[81].mxu0 }
 0x8a6   :  { %v11714_v26 = vpack.c.bf16 %v10267_v14, %v3328_v18  ;;  %v16911_v18 = vld [vmem:[#allocation37_spill] sm:$0xff] }
 0x8a8   :  { %11715 = vmatpush3.bf16.xpose.msra.mxu1 %v11714_v26 }
 0x8a9   :  { %11765 = vmatprep.subr.bf16.mxu1 %v11693_v40 }
 0x8af   :  { %10301 = vmatmul.mubr.f32.vlgmr.msra.gmra.mrb[82].mxu1 %v3337_v42  ;;  %v16913_v42 = vld [vmem:[#allocation39_spill] sm:$0xff] }
 0x8b0   :  { %11767 = vmatpush3.bf16.msra.mxu1 %v11693_v40  ;;  %10405 = vmatprep.mubr.msk.f32.mxu1 %vm16877_vm13, %v16874_v21  ;;  %vm16881_vm13 = vcmp.eq.s32.totalorder %v16875_v15, %v16880_v8  ;;  %v16884_v40 = vld [vmem:[#allocation20_spill] sm:$0xff]  ;;  %v16917_v8 = vld [vmem:[#allocation43_spill] sm:$0xff] }
 0x8b1   :  { %11769 = vmatprep.subr.bf16.mxu1 %v11696_v54  ;;  %vm16885_vm7 = vcmp.eq.s32.totalorder %v16875_v15, %v16884_v40  ;;  %v16919_v40 = vld [vmem:[#allocation45_spill] sm:$0xff] }
 0x8b4   :  { %11771 = vmatpush3.bf16.msra.mxu1 %v11696_v54  ;;  %v16890_v54 = vld [vmem:[#allocation25_spill] sm:$0xff] }
 0x8b5   :  { %11773 = vmatprep.subr.bf16.mxu1 %v11699_v39 }
 0x8b8   :  { %11775 = vmatpush3.bf16.msra.mxu1 %v11699_v39  ;;  %v16896_v39 = vld [vmem:[#allocation28_spill] sm:$0xff] }
 0x8b9   :  { %11777 = vmatprep.subr.bf16.mxu1 %v11702_v32 }
 0x8bc   :  { %11779 = vmatpush3.bf16.msra.mxu1 %v11702_v32  ;;  %v16902_v32 = vld [vmem:[#allocation31_spill] sm:$0xff] }
 0x8bd   :  { %11781 = vmatprep.subr.bf16.mxu1 %v11705_v27 }
 0x8c0   :  { %11783 = vmatpush3.bf16.msra.mxu1 %v11705_v27  ;;  %v13723_v27 = vld [vmem:[%s16544_s0] sm:$0x3] }
 0x8c1   :  { %11785 = vmatprep.subr.bf16.mxu1 %v11708_v19  ;;  %v103_v53 = vrot.slane %v13723_v27, %v16908_v16 }
 0x8c3   :  { %vm108_vm0 = vcmp.eq.s32.totalorder %v16913_v42, %v103_v53  ;;  %vm111_vm5 = vcmp.eq.s32.totalorder %v16916_v5, %v103_v53 }
 0x8c4   :  { %11787 = vmatpush3.bf16.msra.mxu1 %v11708_v19  ;;  %v16909_v19 = vld [vmem:[#allocation34_spill] sm:$0xff] }
 0x8c5   :  { %11789 = vmatprep.subr.bf16.mxu1 %v11711_v52 }
 0x8c8   :  { %11791 = vmatpush3.bf16.msra.mxu1 %v11711_v52 }
 0x8c9   :  { %11793 = vmatprep.subr.bf16.mxu1 %v11714_v26 }
 0x8cc   :  { %11795 = vmatpush3.bf16.msra.mxu1 %v11714_v26  ;;  %v16912_v26 = vld [vmem:[#allocation38_spill] sm:$0xff] }
 0x8cf   :  { %10406 = vmatmul.mubr.msk.f32.vlgmr.msra.gmra.mrb[84].mxu1 %vm16879_vm3, %v16874_v21  ;;  %vm16889_vm3 = vcmp.eq.s32.totalorder %v16875_v15, %v16888_v30  ;;  %v16921_v30 = vld [vmem:[#allocation49_spill] sm:$0xff] }
 0x8d0   :  { %10408 = vmatprep.mubr.msk.f32.mxu1 %vm16881_vm13, %v16874_v21  ;;  %vm16891_vm13 = vcmp.eq.s32.totalorder %v16875_v15, %v16890_v54  ;;  %v16922_v54 = vld [vmem:[#allocation50_spill] sm:$0xff] }
 0x8d3   :  { %10409 = vmatmul.mubr.msk.f32.gmra.mrb[86].mxu1 %vm16883_vm14, %v16874_v21  ;;  %vm16893_vm14 = vcmp.eq.s32.totalorder %v16875_v15, %v16892_v31  ;;  %v16923_v31 = vld [vmem:[#allocation53_spill] sm:$0xff] }
 0x8d4   :  { %10411 = vmatprep.mubr.msk.f32.mxu1 %vm16885_vm7, %v16874_v21  ;;  %vm16895_vm7 = vcmp.eq.s32.totalorder %v16875_v15, %v16894_v50  ;;  %v16924_v50 = vld [vmem:[#allocation54_spill] sm:$0xff] }
 0x8d7   :  { %10412 = vmatmul.mubr.msk.f32.gmra.mrb[88].mxu1 %vm16887_vm4, %v16874_v21  ;;  %vm16897_vm4 = vcmp.eq.s32.totalorder %v16875_v15, %v16896_v39 }
 0x8d8   :  { %10414 = vmatprep.mubr.msk.f32.mxu1 %vm16889_vm3, %v16874_v21  ;;  %vm16899_vm3 = vcmp.eq.s32.totalorder %v16875_v15, %v16898_v22 }
 0x8db   :  { %10415 = vmatmul.mubr.msk.f32.gmra.mrb[90].mxu1 %vm16891_vm13, %v16874_v21  ;;  %vm16901_vm13 = vcmp.eq.s32.totalorder %v16875_v15, %v16900_v12 }
 0x8dc   :  { %10417 = vmatprep.mubr.msk.f32.mxu1 %vm16893_vm14, %v16874_v21  ;;  %vm16903_vm14 = vcmp.eq.s32.totalorder %v16875_v15, %v16902_v32 }
 0x8df   :  { %10418 = vmatmul.mubr.msk.f32.gmra.mrb[92].mxu1 %vm16895_vm7, %v16874_v21  ;;  %vm16905_vm7 = vcmp.eq.s32.totalorder %v16875_v15, %v16904_v63 }
 0x8e0   :  { %10420 = vmatprep.mubr.msk.f32.mxu1 %vm16897_vm4, %v16874_v21  ;;  %vm16907_vm4 = vcmp.eq.s32.totalorder %v16875_v15, %v16906_v44  ;;  %v16914_v15 = vld [vmem:[#allocation40_spill] sm:$0xff] }
 0x8e1   :  { %vm109_vm6 = vcmp.eq.s32.totalorder %v16914_v15, %v103_v53 }
 0x8e3   :  { %10421 = vmatmul.mubr.msk.f32.gmra.mrb[94].mxu1 %vm16899_vm3, %v16874_v21  ;;  %vm104_vm3 = vcmp.eq.s32.totalorder %v16909_v19, %v103_v53 }
 0x8e4   :  { %10423 = vmatprep.mubr.msk.f32.mxu1 %vm16901_vm13, %v16874_v21  ;;  %vm105_vm13 = vcmp.eq.s32.totalorder %v16910_v3, %v103_v53 }
 0x8e7   :  { %10424 = vmatmul.mubr.msk.f32.gmra.mrb[96].mxu1 %vm16903_vm14, %v16874_v21  ;;  %vm11741_vm14 = vmpackc.low %vm105_vm13, %vm104_vm3  ;;  %vm110_vm13 = vcmp.eq.s32.totalorder %v16915_v20, %v103_v53 }
 0x8e8   :  { %10426 = vmatprep.mubr.msk.f32.mxu1 %vm16905_vm7, %v16874_v21  ;;  %vm106_vm7 = vcmp.eq.s32.totalorder %v16911_v18, %v103_v53  ;;  %vm11747_vm3 = vmpackc.low %vm109_vm6, %vm108_vm0  ;;  %vm114_vm6 = vcmp.eq.s32.totalorder %v16919_v40, %v103_v53  ;;  %vm115_vm0 = vcmp.eq.s32.totalorder %v16920_v13, %v103_v53 }
 0x8eb   :  { %10427 = vmatmul.mubr.msk.f32.gmra.mrb[98].mxu1 %vm16907_vm4, %v16874_v21  ;;  %vm107_vm4 = vcmp.eq.s32.totalorder %v16912_v26, %v103_v53 }
 0x8ec   :  { %4319 = vmatprep.mubr.f32.mxu1 %v16873_v51  ;;  %vm11744_vm2 = vmpackc.low %vm107_vm4, %vm106_vm7  ;;  %vm112_vm7 = vcmp.eq.s32.totalorder %v16917_v8, %v103_v53  ;;  %vm113_vm4 = vcmp.eq.s32.totalorder %v16918_v49, %v103_v53 }
 0x982   :  { %v3404_v33 = vpop.f32.mrb[82].mxu1 }
 0x983   :  { %v3409_v52 = vrot.slane %v3404_v33, 1  ;;  %v10302_v14 = vpop.f32.mrb[83].mxu1 }
 0x985   :  { %10336 = vmatmul.mubr.f32.vlgmr.msra.gmra.mrb[82].mxu0 %v3409_v52 }
 0x986   :  { %11742 = vmatpush3.bf16.msk.msra.mxu0 %vm11741_vm14, %v16832_v48  ;;  %10370 = vmatprep.mubr.msk.f32.mxu0 %vm16813_vm10, %v16873_v51  ;;  %vm11750_vm14 = vmpackc.low %vm111_vm5, %vm110_vm13  ;;  %vm116_vm5 = vcmp.eq.s32.totalorder %v16921_v30, %v103_v53  ;;  %vm117_vm13 = vcmp.eq.s32.totalorder %v16922_v54, %v103_v53  ;;  %vm16934_vm10 = vnez %v16852_v60 }
 0x987   :  { %11743 = vmatprep.subr.bf16.mxu0 %v16786_v37 }
 0x98a   :  { %11745 = vmatpush3.bf16.msk.msra.mxu0 %vm11744_vm2, %v16832_v48  ;;  %vm11753_vm2 = vmpackc.low %vm113_vm4, %vm112_vm7  ;;  %vm118_vm7 = vcmp.eq.s32.totalorder %v16923_v31, %v103_v53  ;;  %vm119_vm4 = vcmp.eq.s32.totalorder %v16924_v50, %v103_v53 }
 0x98b   :  { %11746 = vmatprep.subr.bf16.mxu0 %v16786_v37 }
 0x98e   :  { %11748 = vmatpush3.bf16.msk.msra.mxu0 %vm11747_vm3, %v16832_v48  ;;  %vm11756_vm3 = vmpackc.low %vm115_vm0, %vm114_vm6  ;;  %vm16925_vm0 = vnez %v16769_v4 }
 0x98f   :  { %11749 = vmatprep.subr.bf16.mxu0 %v16786_v37 }
 0x992   :  { %11751 = vmatpush3.bf16.msk.msra.mxu0 %vm11750_vm14, %v16832_v48  ;;  %vm11759_vm14 = vmpackc.low %vm117_vm13, %vm116_vm5  ;;  %vm16927_vm5 = vnez %v16775_v34  ;;  %vm16928_vm13 = vnez %v16773_v25 }
 0x993   :  { %11752 = vmatprep.subr.bf16.mxu0 %v16786_v37 }
 0x996   :  { %11754 = vmatpush3.bf16.msk.msra.mxu0 %vm11753_vm2, %v16832_v48  ;;  %vm11762_vm2 = vmpackc.low %vm119_vm4, %vm118_vm7  ;;  %vm16930_vm7 = vnez %v16839_v0  ;;  %vm16931_vm4 = vnez %v16844_v58 }
 0x997   :  { %11755 = vmatprep.subr.bf16.mxu0 %v16786_v37 }
 0x99a   :  { %11757 = vmatpush3.bf16.msk.msra.mxu0 %vm11756_vm3, %v16832_v48  ;;  %vm16926_vm3 = vnez %v16767_v1 }
 0x99b   :  { %11758 = vmatprep.subr.bf16.mxu0 %v16786_v37 }
 0x99e   :  { %11760 = vmatpush3.bf16.msk.msra.mxu0 %vm11759_vm14, %v16832_v48  ;;  %vm16929_vm14 = vnez %v16838_v11 }
 0x99f   :  { %11761 = vmatprep.subr.bf16.mxu0 %v16786_v37 }
 0x9a2   :  { %11763 = vmatpush3.bf16.msk.msra.mxu0 %vm11762_vm2, %v16832_v48  ;;  %v10407_v39 = vpop.f32.mrb[84].mxu1  ;;  %vm16932_vm2 = vnez %v16845_v46  ;;  %v13053_v46 = vld [vmem:[#allocation4 + $0xc0] ss:$12 sps:$4 sm:$0xff]  }
 0x9a3   :  { %v3620_v22 = vpop.f32.mrb[85].mxu1 }
 0x9a4   :  { %v11796_v12 = vpack.c.bf16 %v10407_v39, %v3620_v22 }
 0x9a5   :  { %10371 = vmatmul.mubr.f32.vlgmr.msra.gmra.mrb[82].mxu0 %v3404_v33 }
 0x9a6   :  { %v10410_v32 = vpop.f32.mrb[86].mxu1  ;;  %11797 = vmatprep.subr.bf16.mxu0 %v11796_v12 }
 0x9a7   :  { %v3630_v63 = vpop.f32.mrb[87].mxu1  ;;  %11799 = vmatpush3.bf16.msra.mxu0 %v11796_v12 }
 0x9a8   :  { %v11800_v44 = vpack.c.bf16 %v10410_v32, %v3630_v63 }
 0x9aa   :  { %v10413_v27 = vpop.f32.mrb[88].mxu1  ;;  %11801 = vmatprep.subr.bf16.mxu0 %v11800_v44 }
 0x9ab   :  { %v3640_v3 = vpop.f32.mrb[89].mxu1  ;;  %11803 = vmatpush3.bf16.msra.mxu0 %v11800_v44 }
 0x9ac   :  { %v11804_v53 = vpack.c.bf16 %v10413_v27, %v3640_v3 }
 0x9ae   :  { %v10416_v52 = vpop.f32.mrb[90].mxu1  ;;  %11805 = vmatprep.subr.bf16.mxu0 %v11804_v53 }
 0x9af   :  { %v3650_v14 = vpop.f32.mrb[91].mxu1  ;;  %11807 = vmatpush3.bf16.msra.mxu0 %v11804_v53 }
 0x9b0   :  { %v11808_v18 = vpack.c.bf16 %v10416_v52, %v3650_v14 }
 0x9b2   :  { %v10419_v48 = vpop.f32.mrb[92].mxu1  ;;  %11809 = vmatprep.subr.bf16.mxu0 %v11808_v18 }
 0x9b3   :  { %v3660_v26 = vpop.f32.mrb[93].mxu1  ;;  %11811 = vmatpush3.bf16.msra.mxu0 %v11808_v18 }
 0x9b4   :  { %v11812_v33 = vpack.c.bf16 %v10419_v48, %v3660_v26 }
 0x9b6   :  { %v10422_v42 = vpop.f32.mrb[94].mxu1  ;;  %11813 = vmatprep.subr.bf16.mxu0 %v11812_v33 }
 0x9b7   :  { %v3670_v15 = vpop.f32.mrb[95].mxu1  ;;  %11815 = vmatpush3.bf16.msra.mxu0 %v11812_v33 }
 0x9b8   :  { %v11816_v20 = vpack.c.bf16 %v10422_v42, %v3670_v15 }
 0x9ba   :  { %v10425_v5 = vpop.f32.mrb[96].mxu1  ;;  %11817 = vmatprep.subr.bf16.mxu0 %v11816_v20 }
 0x9bb   :  { %v3680_v8 = vpop.f32.mrb[97].mxu1  ;;  %11819 = vmatpush3.bf16.msra.mxu0 %v11816_v20 }
 0x9bc   :  { %v11820_v49 = vpack.c.bf16 %v10425_v5, %v3680_v8 }
 0x9be   :  { %v10428_v40 = vpop.f32.mrb[98].mxu1  ;;  %11821 = vmatprep.subr.bf16.mxu0 %v11820_v49 }
 0x9bf   :  { %v3690_v13 = vpop.f32.mrb[99].mxu1  ;;  %11823 = vmatpush3.bf16.msra.mxu0 %v11820_v49 }
 0x9c0   :  { %v11824_v30 = vpack.c.bf16 %v10428_v40, %v3690_v13 }
 0x9c2   :  { %11825 = vmatprep.subr.bf16.mxu0 %v11824_v30 }
 0x9c3   :  { %11827 = vmatpush3.bf16.msra.mxu0 %v11824_v30 }
 0xa78   :  { %v3547_v54 = vpop.f32.mrb[82].mxu0 }
 0xa79   :  { %vm3551_vm6 = vcmp.gt.f32.partialorder %v3547_v54, 0.0  ;;  %v3552_v31 = vmul.f32 0.01, %v3547_v54  ;;  %v10372_v50 = vpop.f32.mrb[83].mxu0 }
 0xa7b   :  { %v3553_v39 = vsel %vm3551_vm6, %v3547_v54, %v3552_v31  ;;  %vm16933_vm6 = vnez %v16850_v47  ;;  %v13059_v47 = vld [vmem:[#allocation4 + $0xf4] ss:$12 sps:$4 sm:$0xff]  }
 0xa7c   :  { %v3704_v22 = vrot.slane %v3553_v39, %v16908_v16 }
 0xa7e   :  { %v3706_v12 = vsel %vm14335_vm15, %v3704_v22, -1e+30  ;;  %v3705_v32 = vsel %vm14329_vm1, %v3704_v22, -1e+30  ;;  %v3708_v63 = vsel %vm14357_vm11, %v3704_v22, -1e+30 }
 0xa7f   :  { %3723 = vmax.xlane.f32.xlu0 %v3706_v12  ;;  %3721 = vmax.xlane.f32.xlu1 %v3705_v32  ;;  %v3707_v44 = vsel %vm14351_vm12, %v3704_v22, -1e+30  ;;  %v3710_v27 = vsel %vm14386_vm8, %v3704_v22, -1e+30  ;;  %v3709_v3 = vsel %vm14380_vm9, %v3704_v22, -1e+30 }
 0xa80   :  { %v3712_v53 = vsel %vm16925_vm0, %v3704_v22, -1e+30  ;;  %v3711_v52 = vsel %vm16926_vm3, %v3704_v22, -1e+30  ;;  %v3714_v14 = vsel %vm16927_vm5, %v3704_v22, -1e+30 }
 0xa81   :  { %v3713_v18 = vsel %vm16928_vm13, %v3704_v22, -1e+30  ;;  %v15364_v48 = vsel %vm16929_vm14, %v3704_v22, -1e+30  ;;  %v15368_v26 = vsel %vm16930_vm7, %v3704_v22, -1e+30 }
 0xa82   :  { %v15374_v33 = vsel %vm16931_vm4, %v3704_v22, -1e+30  ;;  %v15378_v42 = vsel %vm16932_vm2, %v3704_v22, -1e+30  ;;  %v15384_v15 = vsel %vm16933_vm6, %v3704_v22, -1e+30 }
 0xa83   :  { %3727 = vmax.xlane.f32.xlu0 %v3708_v63  ;;  %3725 = vmax.xlane.f32.xlu1 %v3707_v44  ;;  %v15388_v20 = vsel %vm16934_vm10, %v3704_v22, -1e+30 }
 0xa87   :  { %3731 = vmax.xlane.f32.xlu0 %v3710_v27  ;;  %3729 = vmax.xlane.f32.xlu1 %v3709_v3 }
 0xa8b   :  { %3735 = vmax.xlane.f32.xlu0 %v3712_v53  ;;  %3733 = vmax.xlane.f32.xlu1 %v3711_v52 }
 0xa8f   :  { %3739 = vmax.xlane.f32.xlu0 %v3714_v14  ;;  %3737 = vmax.xlane.f32.xlu1 %v3713_v18 }
 0xa93   :  { %3743 = vmax.xlane.f32.xlu0 %v15364_v48  ;;  %3741 = vmax.xlane.f32.xlu1 %v15368_v26 }
 0xa97   :  { %3747 = vmax.xlane.f32.xlu0 %v15374_v33  ;;  %3745 = vmax.xlane.f32.xlu1 %v15378_v42 }
 0xa9b   :  { %3751 = vmax.xlane.f32.xlu0 %v15384_v15  ;;  %3749 = vmax.xlane.f32.xlu1 %v15388_v20 }
 0xb0c   :  { %v3724_v5 = vpop.xlane.xlu0 %3723  ;;  %v3722_v8 = vpop.xlane.xlu1 %3721 }
 0xb0d   :  { %v3754_v49 = vsub.f32 %v3706_v12, %v3724_v5  ;;  %v3753_v40 = vsub.f32 %v3705_v32, %v3722_v8 }
 0xb0f   :  { %v3771_v13 = vmul.f32 1.442695, %v3754_v49  ;;  %v3769_v30 = vmul.f32 1.442695, %v3753_v40 }
 0xb10   :  { %v3728_v54 = vpop.xlane.xlu0 %3727  ;;  %v3726_v31 = vpop.xlane.xlu1 %3725 }
 0xb11   :  { %13435 = vpow2.f32 %v3771_v13  ;;  %v3756_v50 = vsub.f32 %v3708_v63, %v3728_v54  ;;  %v3755_v39 = vsub.f32 %v3707_v44, %v3726_v31 }
 0xb12   :  { %13437 = vpow2.f32 %v3769_v30 }
 0xb13   :  { %v3775_v21 = vmul.f32 1.442695, %v3756_v50  ;;  %v3773_v19 = vmul.f32 1.442695, %v3755_v39 }
 0xb14   :  { %v3732_v22 = vpop.xlane.xlu0 %3731  ;;  %v3730_v16 = vpop.xlane.xlu1 %3729 }
 0xb15   :  { %13439 = vpow2.f32 %v3775_v21  ;;  %v3758_v35 = vsub.f32 %v3710_v27, %v3732_v22  ;;  %v3757_v6 = vsub.f32 %v3709_v3, %v3730_v16 }
 0xb16   :  { %13441 = vpow2.f32 %v3773_v19 }
 0xb17   :  { %v3779_v7 = vmul.f32 1.442695, %v3758_v35  ;;  %v3777_v59 = vmul.f32 1.442695, %v3757_v6 }
 0xb18   :  { %v3736_v12 = vpop.xlane.xlu0 %3735  ;;  %v3734_v32 = vpop.xlane.xlu1 %3733 }
 0xb19   :  { %13443 = vpow2.f32 %v3779_v7  ;;  %v3760_v5 = vsub.f32 %v3712_v53, %v3736_v12  ;;  %v3759_v8 = vsub.f32 %v3711_v52, %v3734_v32 }
 0xb1a   :  { %13445 = vpow2.f32 %v3777_v59 }
 0xb1b   :  { %v13436_v49 = vpop.eup %13435  ;;  %v3783_v63 = vmul.f32 1.442695, %v3760_v5  ;;  %v3781_v44 = vmul.f32 1.442695, %v3759_v8 }
 0xb1c   :  { %v13438_v40 = vpop.eup %13437  ;;  %v3740_v13 = vpop.xlane.xlu0 %3739  ;;  %v15394_v21 = vsel %vm14335_vm15, %v13436_v49, 0.0 }
 0xb1d   :  { %v3738_v30 = vpop.xlane.xlu1 %3737  ;;  %13447 = vpow2.f32 %v3783_v63  ;;  %v3762_v16 = vsub.f32 %v3714_v14, %v3740_v13  ;;  %3819 = vadd.xlane.f32.xlu0 %v15394_v21  ;;  %v15399_v7 = vsel %vm14329_vm1, %v13438_v40, 0.0 }
 0xb1e   :  { %v3761_v35 = vsub.f32 %v3713_v18, %v3738_v30  ;;  %13449 = vpow2.f32 %v3781_v44  ;;  %3817 = vadd.xlane.f32.xlu1 %v15399_v7 }
 0xb1f   :  { %v13440_v59 = vpop.eup %13439  ;;  %v3787_v6 = vmul.f32 1.442695, %v3762_v16 }
 0xb20   :  { %v3785_v19 = vmul.f32 1.442695, %v3761_v35  ;;  %v13442_v27 = vpop.eup %13441  ;;  %v3744_v3 = vpop.xlane.xlu0 %3743  ;;  %v15404_v53 = vsel %vm14357_vm11, %v13440_v59, 0.0 }
 0xb21   :  { %v3742_v41 = vpop.xlane.xlu1 %3741  ;;  %13451 = vpow2.f32 %v3787_v6  ;;  %v3764_v52 = vsub.f32 %v15364_v48, %v3744_v3  ;;  %3823 = vadd.xlane.f32.xlu0 %v15404_v53  ;;  %v15411_v14 = vsel %vm14351_vm12, %v13442_v27, 0.0  ;;  %v13051_v27 = vld [vmem:[#allocation4 + $0xc4] ss:$12 sps:$4 sm:$0xff]   ;;  %v13054_v3 = vld [vmem:[#allocation4 + $0xc8] ss:$12 sps:$4 sm:$0xff]  }
 0xb22   :  { %v3763_v17 = vsub.f32 %v15368_v26, %v3742_v41  ;;  %13453 = vpow2.f32 %v3785_v19  ;;  %3821 = vadd.xlane.f32.xlu1 %v15411_v14  ;;  %v13055_v41 = vld [vmem:[#allocation4 + $0xdc] ss:$12 sps:$4 sm:$0xff]   ;;  %11829 = vmatprep.subr.bf16.mxu1 %v13051_v27 }
 0xb23   :  { %v13444_v18 = vpop.eup %13443  ;;  %v3791_v54 = vmul.f32 1.442695, %v3764_v52  ;;  %11861 = vmatprep.subr.bf16.mxu0 %v13054_v3  ;;  %11831 = vmatpush1.bf16.msra.mxu1 %v13053_v46  ;;  %v13057_v52 = vld [vmem:[#allocation4 + $0xd8] ss:$12 sps:$4 sm:$0xff]  }
 0xb24   :  { %v3789_v31 = vmul.f32 1.442695, %v3763_v17  ;;  %v13446_v29 = vpop.eup %13445  ;;  %v3748_v50 = vpop.xlane.xlu0 %3747  ;;  %v15416_v48 = vsel %vm14386_vm8, %v13444_v18, 0.0  ;;  %11833 = vmatprep.subr.bf16.mxu1 %v13055_v41  ;;  %v13061_v17 = vld [vmem:[#allocation4 + $0xf0] ss:$12 sps:$4 sm:$0xff]  }
 0xb25   :  { %v3746_v39 = vpop.xlane.xlu1 %3745  ;;  %13455 = vpow2.f32 %v3791_v54  ;;  %v3766_v26 = vsub.f32 %v15374_v33, %v3748_v50  ;;  %3827 = vadd.xlane.f32.xlu0 %v15416_v48  ;;  %v15423_v22 = vsel %vm14380_vm9, %v13446_v29, 0.0 }
 0xb26   :  { %v3765_v28 = vsub.f32 %v15378_v42, %v3746_v39  ;;  %13457 = vpow2.f32 %v3789_v31  ;;  %3825 = vadd.xlane.f32.xlu1 %v15423_v22 }
 0xb27   :  { %v13448_v12 = vpop.eup %13447  ;;  %v3795_v32 = vmul.f32 1.442695, %v3766_v26  ;;  %11835 = vmatpush1.bf16.msra.mxu1 %v13057_v52 }
 0xb28   :  { %v3793_v5 = vmul.f32 1.442695, %v3765_v28  ;;  %v13450_v61 = vpop.eup %13449  ;;  %v3752_v8 = vpop.xlane.xlu0 %3751  ;;  %v15428_v33 = vsel %vm16925_vm0, %v13448_v12, 0.0  ;;  %11837 = vmatprep.subr.bf16.mxu1 %v13059_v47 }
 0xb29   :  { %v3750_v49 = vpop.xlane.xlu1 %3749  ;;  %13459 = vpow2.f32 %v3795_v32  ;;  %v3768_v42 = vsub.f32 %v15384_v15, %v3752_v8  ;;  %3831 = vadd.xlane.f32.xlu0 %v15428_v33  ;;  %v15435_v63 = vsel %vm16926_vm3, %v13450_v61, 0.0 }
 0xb2a   :  { %v3767_v45 = vsub.f32 %v15388_v20, %v3750_v49  ;;  %13461 = vpow2.f32 %v3793_v5  ;;  %3829 = vadd.xlane.f32.xlu1 %v15435_v63 }
 0xb2b   :  { %v13452_v44 = vpop.eup %13451  ;;  %v3799_v40 = vmul.f32 1.442695, %v3768_v42  ;;  %11839 = vmatpush1.bf16.msra.mxu1 %v13061_v17 }
 0xb2c   :  { %v3797_v13 = vmul.f32 1.442695, %v3767_v45  ;;  %v13454_v4 = vpop.eup %13453  ;;  %v15440_v30 = vsel %vm16927_vm5, %v13452_v44, 0.0 }
 0xb2d   :  { %13463 = vpow2.f32 %v3799_v40  ;;  %3835 = vadd.xlane.f32.xlu0 %v15440_v30  ;;  %v15445_v15 = vsel %vm16928_vm13, %v13454_v4, 0.0 }
 0xb2e   :  { %13465 = vpow2.f32 %v3797_v13  ;;  %3833 = vadd.xlane.f32.xlu1 %v15445_v15 }
 0xb2f   :  { %v13456_v1 = vpop.eup %13455 }
 0xb30   :  { %v13458_v20 = vpop.eup %13457  ;;  %v15450_v16 = vsel %vm16929_vm14, %v13456_v1, 0.0  ;;  %v13058_v1 = vld [vmem:[#allocation4 + $0xe0] ss:$12 sps:$4 sm:$0xff]  }
 0xb31   :  { %3839 = vadd.xlane.f32.xlu0 %v15450_v16  ;;  %v15455_v34 = vsel %vm16930_vm7, %v13458_v20, 0.0 }
 0xb32   :  { %3837 = vadd.xlane.f32.xlu1 %v15455_v34 }
 0xb33   :  { %v13460_v25 = vpop.eup %13459 }
 0xb34   :  { %v13462_v35 = vpop.eup %13461  ;;  %v15460_v59 = vsel %vm16931_vm4, %v13460_v25, 0.0 }
 0xb35   :  { %3843 = vadd.xlane.f32.xlu0 %v15460_v59  ;;  %v15465_v11 = vsel %vm16932_vm2, %v13462_v35, 0.0 }
 0xb36   :  { %3841 = vadd.xlane.f32.xlu1 %v15465_v11 }
 0xb37   :  { %v13464_v6 = vpop.eup %13463 }
 0xb38   :  { %v13466_v0 = vpop.eup %13465  ;;  %v15470_v19 = vsel %vm16933_vm6, %v13464_v6, 0.0 }
 0xb39   :  { %3847 = vadd.xlane.f32.xlu0 %v15470_v19  ;;  %v15475_v58 = vsel %vm16934_vm10, %v13466_v0, 0.0 }
 0xb3a   :  { %3845 = vadd.xlane.f32.xlu1 %v15475_v58 }
 0xbaa   :  { %v3820_v18 = vpop.xlane.xlu0 %3819 }
 0xbab   :  { %v3850_v60 = vadd.f32 1e-16, %v3820_v18  ;;  %v3818_v54 = vpop.xlane.xlu1 %3817 }
 0xbac   :  { %v3849_v31 = vadd.f32 1e-16, %v3818_v54 }
 0xbad   :  { %13467 = vrcp.f32 %v3850_v60 }
 0xbae   :  { %13469 = vrcp.f32 %v3849_v31  ;;  %v3824_v29 = vpop.xlane.xlu0 %3823 }
 0xbaf   :  { %v3852_v50 = vadd.f32 1e-16, %v3824_v29  ;;  %v3822_v39 = vpop.xlane.xlu1 %3821 }
 0xbb0   :  { %v3851_v26 = vadd.f32 1e-16, %v3822_v39 }
 0xbb1   :  { %13471 = vrcp.f32 %v3852_v50 }
 0xbb2   :  { %13473 = vrcp.f32 %v3851_v26  ;;  %v3828_v28 = vpop.xlane.xlu0 %3827 }
 0xbb3   :  { %v3854_v12 = vadd.f32 1e-16, %v3828_v28  ;;  %v3826_v32 = vpop.xlane.xlu1 %3825 }
 0xbb4   :  { %v3853_v5 = vadd.f32 1e-16, %v3826_v32 }
 0xbb5   :  { %13475 = vrcp.f32 %v3854_v12 }
 0xbb6   :  { %13477 = vrcp.f32 %v3853_v5  ;;  %v3832_v61 = vpop.xlane.xlu0 %3831 }
 0xbb7   :  { %v13468_v8 = vpop.eup %13467  ;;  %v3856_v49 = vadd.f32 1e-16, %v3832_v61  ;;  %v3830_v42 = vpop.xlane.xlu1 %3829 }
 0xbb8   :  { %v13470_v45 = vpop.eup %13469  ;;  %v3855_v44 = vadd.f32 1e-16, %v3830_v42  ;;  %v3882_v40 = vmul.f32 %v13468_v8, %v15394_v21 }
 0xbb9   :  { %13479 = vrcp.f32 %v3856_v49  ;;  %v3881_v13 = vmul.f32 %v13470_v45, %v15399_v7  ;;  %v13062_v7 = vld [vmem:[#allocation4 + $0xf8] ss:$12 sps:$4 sm:$0xff]  }
 0xbba   :  { %13481 = vrcp.f32 %v3855_v44  ;;  %v3836_v4 = vpop.xlane.xlu0 %3835 }
 0xbbb   :  { %v13472_v20 = vpop.eup %13471  ;;  %v3858_v25 = vadd.f32 1e-16, %v3836_v4  ;;  %10461 = vmatprep.mubr.f32.mxu0 %v3881_v13  ;;  %v3834_v35 = vpop.xlane.xlu1 %3833 }
 0xbbc   :  { %v13474_v6 = vpop.eup %13473  ;;  %v3857_v0 = vadd.f32 1e-16, %v3834_v35  ;;  %10462 = vmatmul.mubr.f32.vlgmr.msra.gmra.mrb[84].mxu0 %v3882_v40  ;;  %v3884_v27 = vmul.f32 %v13472_v20, %v15404_v53  ;;  %v13066_v20 = vld [vmem:[#allocation4 + $0x110] ss:$12 sps:$4 sm:$0xff]  }
 0xbbd   :  { %13483 = vrcp.f32 %v3858_v25  ;;  %v3883_v46 = vmul.f32 %v13474_v6, %v15411_v14  ;;  %11863 = vmatpush3.bf16.msra.mxu0 %v13054_v3  ;;  %v13069_v25 = vld [vmem:[#allocation4 + $0x120] ss:$12 sps:$4 sm:$0xff]   ;;  %v13071_v35 = vld [vmem:[#allocation4 + $0x13c] ss:$12 sps:$4 sm:$0xff]  }
 0xbbe   :  { %13485 = vrcp.f32 %v3857_v0  ;;  %v3840_v21 = vpop.xlane.xlu0 %3839  ;;  %11865 = vmatprep.subr.bf16.mxu0 %v13058_v1  ;;  %v13074_v6 = vld [vmem:[#allocation4 + $0x140] ss:$12 sps:$4 sm:$0xff]   ;;  %v13077_v0 = vld [vmem:[#allocation4 + $0x150] ss:$12 sps:$4 sm:$0xff]  }
 0xbbf   :  { %v13476_v41 = vpop.eup %13475  ;;  %v3860_v52 = vadd.f32 1e-16, %v3840_v21  ;;  %10464 = vmatprep.mubr.f32.mxu0 %v3883_v46  ;;  %v3838_v47 = vpop.xlane.xlu1 %3837  ;;  %v13079_v46 = vld [vmem:[#allocation4 + $0x16c] ss:$12 sps:$4 sm:$0xff]   ;;  %v13081_v21 = vld [vmem:[#allocation4 + $0x168] ss:$12 sps:$4 sm:$0xff]  }
 0xbc0   :  { %v13478_v17 = vpop.eup %13477  ;;  %v3859_v18 = vadd.f32 1e-16, %v3838_v47  ;;  %10465 = vmatmul.mubr.f32.gmra.mrb[86].mxu0 %v3884_v27  ;;  %v3886_v60 = vmul.f32 %v13476_v41, %v15416_v48  ;;  %v13078_v27 = vld [vmem:[#allocation4 + $0x158] ss:$12 sps:$4 sm:$0xff]   ;;  %v15494_v41 = vld [vmem:[#allocation6 + $0xc8] ss:$12 sps:$4 sm:$0xff]  }
 0xbc1   :  { %13487 = vrcp.f32 %v3860_v52  ;;  %v3885_v53 = vmul.f32 %v13478_v17, %v15423_v22  ;;  %11867 = vmatpush3.bf16.msra.mxu0 %v13058_v1  ;;  %v13083_v52 = vld [vmem:[#allocation6 + $0xc4] ss:$12 sps:$4 sm:$0xff]  }
 0xbc2   :  { %13489 = vrcp.f32 %v3859_v18  ;;  %v3844_v14 = vpop.xlane.xlu0 %3843  ;;  %11869 = vmatprep.subr.bf16.mxu0 %v13062_v7  ;;  %v15500_v47 = vld [vmem:[%s16551_s7 + $0x4] ss:$0 sm:$0xff] }
 0xbc3   :  { %v13480_v3 = vpop.eup %13479  ;;  %v3862_v54 = vadd.f32 1e-16, %v3844_v14  ;;  %10467 = vmatprep.mubr.f32.mxu0 %v3885_v53  ;;  %v3842_v31 = vpop.xlane.xlu1 %3841 }
 0xbc4   :  { %v13482_v29 = vpop.eup %13481  ;;  %v3861_v50 = vadd.f32 1e-16, %v3842_v31  ;;  %10468 = vmatmul.mubr.f32.gmra.mrb[88].mxu0 %v3886_v60  ;;  %v3888_v39 = vmul.f32 %v13480_v3, %v15428_v33 }
 0xbc5   :  { %13491 = vrcp.f32 %v3862_v54  ;;  %v3887_v26 = vmul.f32 %v13482_v29, %v15435_v63  ;;  %11871 = vmatpush3.bf16.msra.mxu0 %v13062_v7  ;;  %v13082_v7 = vld [vmem:[#allocation4 + $0x170] ss:$12 sps:$4 sm:$0xff]  }
 0xbc6   :  { %13493 = vrcp.f32 %v3861_v50  ;;  %v3848_v48 = vpop.xlane.xlu0 %3847  ;;  %11873 = vmatprep.subr.bf16.mxu0 %v13066_v20 }
 0xbc7   :  { %v13484_v22 = vpop.eup %13483  ;;  %v3864_v28 = vadd.f32 1e-16, %v3848_v48  ;;  %10470 = vmatprep.mubr.f32.mxu0 %v3887_v26  ;;  %v3846_v12 = vpop.xlane.xlu1 %3845 }
 0xbc8   :  { %v13486_v32 = vpop.eup %13485  ;;  %v3863_v5 = vadd.f32 1e-16, %v3846_v12  ;;  %10471 = vmatmul.mubr.f32.gmra.mrb[90].mxu0 %v3888_v39  ;;  %v3890_v61 = vmul.f32 %v13484_v22, %v15440_v30 }
 0xbc9   :  { %13495 = vrcp.f32 %v3864_v28  ;;  %v3889_v8 = vmul.f32 %v13486_v32, %v15445_v15  ;;  %11875 = vmatpush3.bf16.msra.mxu0 %v13066_v20 }
 0xbca   :  { %13497 = vrcp.f32 %v3863_v5 }
 0xbcb   :  { %v13488_v33 = vpop.eup %13487  ;;  %10473 = vmatprep.mubr.f32.mxu0 %v3889_v8 }
 0xbcc   :  { %v13490_v49 = vpop.eup %13489  ;;  %10474 = vmatmul.mubr.f32.gmra.mrb[92].mxu0 %v3890_v61  ;;  %v3892_v63 = vmul.f32 %v13488_v33, %v15450_v16  ;;  %v13063_v16 = vld [vmem:[#allocation4 + $0x10c] ss:$12 sps:$4 sm:$0xff]  }
 0xbcd   :  { %v3891_v42 = vmul.f32 %v13490_v49, %v15455_v34  ;;  %v13065_v34 = vld [vmem:[#allocation4 + $0x108] ss:$12 sps:$4 sm:$0xff]   ;;  %11841 = vmatprep.subr.bf16.mxu1 %v13063_v16 }
 0xbce   :  { %11843 = vmatpush1.bf16.msra.mxu1 %v13065_v34 }
 0xbcf   :  { %v13492_v45 = vpop.eup %13491  ;;  %10476 = vmatprep.mubr.f32.mxu0 %v3891_v42 }
 0xbd0   :  { %v13494_v44 = vpop.eup %13493  ;;  %10477 = vmatmul.mubr.f32.gmra.mrb[94].mxu0 %v3892_v63  ;;  %v3894_v40 = vmul.f32 %v13492_v45, %v15460_v59  ;;  %v13067_v59 = vld [vmem:[#allocation4 + $0x124] ss:$12 sps:$4 sm:$0xff]  }
 0xbd1   :  { %v3893_v30 = vmul.f32 %v13494_v44, %v15465_v11  ;;  %v13070_v11 = vld [vmem:[#allocation4 + $0x128] ss:$12 sps:$4 sm:$0xff]   ;;  %11845 = vmatprep.subr.bf16.mxu1 %v13067_v59 }
 0xbd2   :  { %11847 = vmatpush1.bf16.msra.mxu1 %v13069_v25  ;;  %11877 = vmatprep.subr.bf16.mxu0 %v13070_v11 }
 0xbd3   :  { %v13496_v13 = vpop.eup %13495  ;;  %10479 = vmatprep.mubr.f32.mxu0 %v3893_v30  ;;  %11879 = vmatpush3.bf16.msra.mxu0 %v13070_v11 }
 0xbd4   :  { %v13498_v15 = vpop.eup %13497  ;;  %10480 = vmatmul.mubr.f32.gmra.mrb[96].mxu0 %v3894_v40  ;;  %v3896_v4 = vmul.f32 %v13496_v13, %v15470_v19  ;;  %v13073_v19 = vld [vmem:[#allocation4 + $0x138] ss:$12 sps:$4 sm:$0xff]   ;;  %11849 = vmatprep.subr.bf16.mxu1 %v13071_v35 }
 0xbd5   :  { %v3895_v1 = vmul.f32 %v13498_v15, %v15475_v58  ;;  %11881 = vmatprep.subr.bf16.mxu0 %v13074_v6  ;;  %v13075_v58 = vld [vmem:[#allocation4 + $0x154] ss:$12 sps:$4 sm:$0xff]  }
 0xbd6   :  { %11851 = vmatpush1.bf16.msra.mxu1 %v13073_v19 }
 0xbd7   :  { %10482 = vmatprep.mubr.f32.mxu0 %v3895_v1  ;;  %11883 = vmatpush3.bf16.msra.mxu0 %v13074_v6 }
 0xbd8   :  { %10483 = vmatmul.mubr.f32.gmra.mrb[98].mxu0 %v3896_v4  ;;  %11853 = vmatprep.subr.bf16.mxu1 %v13075_v58  ;;  %v13085_v58 = vld [vmem:[#allocation6 + $0xc0] ss:$12 sps:$4 sm:$0xff]  }
 0xbd9   :  { %11885 = vmatprep.subr.bf16.mxu0 %v13078_v27 }
 0xbda   :  { %11855 = vmatpush1.bf16.msra.mxu1 %v13077_v0 }
 0xbdb   :  { %11887 = vmatpush3.bf16.msra.mxu0 %v13078_v27  ;;  %11857 = vmatprep.subr.bf16.mxu1 %v13079_v46  ;;  %v13087_v46 = vld [vmem:[#allocation6 + $0xe0] ss:$12 sps:$4 sm:$0xff]  }
 0xbdc   :  { %11889 = vmatprep.subr.bf16.mxu0 %v13082_v7 }
 0xbde   :  { %11859 = vmatpush1.bf16.msra.mxu1 %v13081_v21 }
 0xbdf   :  { %11891 = vmatpush3.bf16.msra.mxu0 %v13082_v7  ;;  %11893 = vmatprep.subr.bf16.mxu1 %v13083_v52 }
 0xbe0   :  { %11925 = vmatprep.subr.bf16.mxu0 %v15494_v41 }
 0xc8f   :  { %v10463_v17 = vpop.f32.mrb[84].mxu0 }
 0xc90   :  { %v3975_v18 = vadd.f32 %v10463_v17, %v15500_v47  ;;  %v3969_v60 = vpop.f32.mrb[85].mxu0 }
 0xc91   :  { %v3970_v53 = vadd.f32 %v15500_v47, %v3969_v60 }
 0xc92   :  { %v4065_v14 = vmin.f32 %v3975_v18, 0.0  ;;  %vm4049_vm9 = vcmp.gt.f32.partialorder %v3975_v18, 0.0 }
 0xc93   :  { %v4064_v3 = vmin.f32 %v3970_v53, 0.0  ;;  %v10466_v54 = vpop.f32.mrb[86].mxu0  ;;  %vm4048_vm8 = vcmp.gt.f32.partialorder %v3970_v53, 0.0 }
 0xc94   :  { %v4082_v31 = vmul.f32 1.442695, %v4065_v14  ;;  %v15505_v29 = vadd.f32 %v10466_v54, %v15500_v47  ;;  %v3979_v50 = vpop.f32.mrb[87].mxu0  ;;  %v13088_v14 = vld [vmem:[#allocation6 + $0xdc] ss:$12 sps:$4 sm:$0xff]  }
 0xc95   :  { %v4080_v39 = vmul.f32 1.442695, %v4064_v3  ;;  %v15508_v26 = vadd.f32 %v15500_v47, %v3979_v50 }
 0xc96   :  { %13499 = vpow2.f32 %v4082_v31  ;;  %v4067_v48 = vmin.f32 %v15505_v29, 0.0  ;;  %vm4051_vm12 = vcmp.gt.f32.partialorder %v15505_v29, 0.0 }
 0xc97   :  { %13501 = vpow2.f32 %v4080_v39  ;;  %v4066_v22 = vmin.f32 %v15508_v26, 0.0  ;;  %v10469_v28 = vpop.f32.mrb[88].mxu0  ;;  %vm4050_vm11 = vcmp.gt.f32.partialorder %v15508_v26, 0.0 }
 0xc98   :  { %v4086_v12 = vmul.f32 1.442695, %v4067_v48  ;;  %v15513_v32 = vadd.f32 %v10469_v28, %v15500_v47  ;;  %v3989_v5 = vpop.f32.mrb[89].mxu0 }
 0xc99   :  { %v4084_v61 = vmul.f32 1.442695, %v4066_v22  ;;  %v15516_v8 = vadd.f32 %v15500_v47, %v3989_v5  ;;  %v13091_v22 = vld [vmem:[#allocation6 + $0xf8] ss:$12 sps:$4 sm:$0xff]  }
 0xc9a   :  { %13503 = vpow2.f32 %v4086_v12  ;;  %v4069_v33 = vmin.f32 %v15513_v32, 0.0  ;;  %vm4053_vm1 = vcmp.gt.f32.partialorder %v15513_v32, 0.0 }
 0xc9b   :  { %13505 = vpow2.f32 %v4084_v61  ;;  %v4068_v49 = vmin.f32 %v15516_v8, 0.0  ;;  %v10472_v63 = vpop.f32.mrb[90].mxu0  ;;  %vm4052_vm15 = vcmp.gt.f32.partialorder %v15516_v8, 0.0 }
 0xc9c   :  { %v4090_v42 = vmul.f32 1.442695, %v4069_v33  ;;  %v15521_v45 = vadd.f32 %v10472_v63, %v15500_v47  ;;  %v3999_v44 = vpop.f32.mrb[91].mxu0 }
 0xc9d   :  { %v4088_v40 = vmul.f32 1.442695, %v4068_v49  ;;  %v15524_v30 = vadd.f32 %v15500_v47, %v3999_v44 }
 0xc9e   :  { %13507 = vpow2.f32 %v4090_v42  ;;  %v4071_v13 = vmin.f32 %v15521_v45, 0.0  ;;  %v13093_v42 = vld [vmem:[#allocation6 + $0xf4] ss:$12 sps:$4 sm:$0xff]   ;;  %vm4055_vm0 = vcmp.gt.f32.partialorder %v15521_v45, 0.0 }
 0xc9f   :  { %13509 = vpow2.f32 %v4088_v40  ;;  %v4070_v15 = vmin.f32 %v15524_v30, 0.0  ;;  %v10475_v4 = vpop.f32.mrb[92].mxu0  ;;  %vm4054_vm10 = vcmp.gt.f32.partialorder %v15524_v30, 0.0 }
 0xca0   :  { %v13500_v1 = vpop.eup %13499  ;;  %v4094_v16 = vmul.f32 1.442695, %v4071_v13  ;;  %v15529_v34 = vadd.f32 %v10475_v4, %v15500_v47  ;;  %v4009_v20 = vpop.f32.mrb[93].mxu0 }
 0xca1   :  { %v13502_v59 = vpop.eup %13501  ;;  %v8149_v25 = vadd.f32 -1.0, %v13500_v1  ;;  %v4092_v11 = vmul.f32 1.442695, %v4070_v15  ;;  %v15532_v35 = vadd.f32 %v15500_v47, %v4009_v20  ;;  %v13092_v1 = vld [vmem:[#allocation6 + $0x110] ss:$12 sps:$4 sm:$0xff]  }
 0xca2   :  { %v8148_v19 = vadd.f32 -1.0, %v13502_v59  ;;  %13511 = vpow2.f32 %v4094_v16  ;;  %v4073_v6 = vmin.f32 %v15529_v34, 0.0  ;;  %v13095_v59 = vld [vmem:[#allocation6 + $0xf0] ss:$12 sps:$4 sm:$0xff]   ;;  %vm4057_vm5 = vcmp.gt.f32.partialorder %v15529_v34, 0.0 }
 0xca3   :  { %13513 = vpow2.f32 %v4092_v11  ;;  %v4072_v0 = vmin.f32 %v15532_v35, 0.0  ;;  %v10478_v27 = vpop.f32.mrb[94].mxu0  ;;  %v4129_v54 = vsel %vm4049_vm9, %v3975_v18, %v8149_v25  ;;  %v13090_v18 = vld [vmem:[#allocation6 + $0xd8] ss:$12 sps:$4 sm:$0xff]   ;;  %vm4056_vm3 = vcmp.gt.f32.partialorder %v15532_v35, 0.0 }
 0xca4   :  { %v13504_v21 = vpop.eup %13503  ;;  %v4128_v7 = vsel %vm4048_vm8, %v3970_v53, %v8148_v19  ;;  %v4098_v52 = vmul.f32 1.442695, %v4073_v6  ;;  %v15537_v17 = vadd.f32 %v10478_v27, %v15500_v47  ;;  %v4019_v60 = vpop.f32.mrb[95].mxu0  ;;  %vm16939_vm8 = vmmov 0  }
 0xca5   :  { %v13506_v3 = vpop.eup %13505  ;;  %v4096_v31 = vmul.f32 1.442695, %v4072_v0  ;;  %v15540_v50 = vadd.f32 %v15500_v47, %v4019_v60  ;;  %4320 = vmatmul.mubr.f32.vlgmr.msra.gmra.mrb[100].mxu1 %v4128_v7  ;;  %10517 = vmatprep.mubr.f32.mxu0 %v4128_v7  ;;  %v8151_v39 = vadd.f32 -1.0, %v13504_v21 }
 0xca6   :  { %13515 = vpow2.f32 %v4098_v52  ;;  %v4075_v48 = vmin.f32 %v15537_v17, 0.0  ;;  %10518 = vmatmul.mubr.f32.vlgmr.msra.gmra.mrb[100].mxu0 %v4129_v54  ;;  %11895 = vmatpush1.bf16.msra.mxu1 %v13085_v58  ;;  %v8150_v53 = vadd.f32 -1.0, %v13506_v3  ;;  %v13098_v58 = vld [vmem:[#allocation6 + $0x10c] ss:$12 sps:$4 sm:$0xff]   ;;  %vm4059_vm14 = vcmp.gt.f32.partialorder %v15537_v17, 0.0 }
 0xca7   :  { %13517 = vpow2.f32 %v4096_v31  ;;  %v4074_v28 = vmin.f32 %v15540_v50, 0.0  ;;  %v10481_v12 = vpop.f32.mrb[96].mxu0  ;;  %11927 = vmatpush3.bf16.msra.mxu0 %v15494_v41  ;;  %4325 = vmatprep.mubr.f32.mxu1 %v16873_v51  ;;  %v4131_v13 = vsel %vm4051_vm12, %v15505_v29, %v8151_v39  ;;  %v13103_v31 = vld [vmem:[#allocation6 + $0x124] ss:$12 sps:$4 sm:$0xff]   ;;  %vm4058_vm13 = vcmp.gt.f32.partialorder %v15540_v50, 0.0 }
 0xca8   :  { %v13508_v5 = vpop.eup %13507  ;;  %v4102_v61 = vmul.f32 1.442695, %v4075_v48  ;;  %v15548_v33 = vadd.f32 %v10481_v12, %v15500_v47  ;;  %v4029_v49 = vpop.f32.mrb[97].mxu0  ;;  %v4130_v63 = vsel %vm4050_vm11, %v15508_v26, %v8150_v53  ;;  %11929 = vmatprep.subr.bf16.mxu0 %v13087_v46  ;;  %11897 = vmatprep.subr.bf16.mxu1 %v13088_v14  ;;  %v13100_v14 = vld [vmem:[#allocation6 + $0x108] ss:$12 sps:$4 sm:$0xff]   ;;  %vm5720_vm11 = vcmask 64512  }
 0xca9   :  { %v13510_v44 = vpop.eup %13509  ;;  %v4100_v41 = vmul.f32 1.442695, %v4074_v28  ;;  %v15553_v40 = vadd.f32 %v15500_v47, %v4029_v49  ;;  %4326 = vmatmul.mubr.f32.gmra.mrb[102].mxu1 %v4129_v54  ;;  %10520 = vmatprep.mubr.f32.mxu0 %v4130_v63  ;;  %v8153_v15 = vadd.f32 -1.0, %v13508_v5  ;;  %v13105_v28 = vld [vmem:[#allocation6 + $0x120] ss:$12 sps:$4 sm:$0xff]  }
 0xcaa   :  { %13519 = vpow2.f32 %v4102_v61  ;;  %v4077_v4 = vmin.f32 %v15548_v33, 0.0  ;;  %10521 = vmatmul.mubr.f32.gmra.mrb[102].mxu0 %v4131_v13  ;;  %4331 = vmatprep.mubr.f32.mxu1 %v16873_v51  ;;  %v8152_v26 = vadd.f32 -1.0, %v13510_v44  ;;  %v13106_v5 = vld [vmem:[#allocation6 + $0x13c] ss:$12 sps:$4 sm:$0xff]   ;;  %vm4061_vm4 = vcmp.gt.f32.partialorder %v15548_v33, 0.0 }
 0xcab   :  { %13521 = vpow2.f32 %v4100_v41  ;;  %v4076_v16 = vmin.f32 %v15553_v40, 0.0  ;;  %v10484_v20 = vpop.f32.mrb[98].mxu0  ;;  %11931 = vmatpush3.bf16.msra.mxu0 %v13087_v46  ;;  %11899 = vmatpush1.bf16.msra.mxu1 %v13090_v18  ;;  %v4133_v21 = vsel %vm4053_vm1, %v15513_v32, %v8153_v15  ;;  %vm4060_vm7 = vcmp.gt.f32.partialorder %v15553_v40, 0.0 }
 0xcac   :  { %v13512_v25 = vpop.eup %13511  ;;  %v4106_v29 = vmul.f32 1.442695, %v4077_v4  ;;  %v15561_v11 = vadd.f32 %v10484_v20, %v15500_v47  ;;  %v4039_v19 = vpop.f32.mrb[99].mxu0  ;;  %v4132_v6 = vsel %vm4052_vm15, %v15516_v8, %v8152_v26  ;;  %11933 = vmatprep.subr.bf16.mxu0 %v13091_v22  ;;  %11901 = vmatprep.subr.bf16.mxu1 %v13093_v42  ;;  %v13108_v42 = vld [vmem:[#allocation6 + $0x138] ss:$12 sps:$4 sm:$0xff]  }
 0xcad   :  { %v13514_v0 = vpop.eup %13513  ;;  %v4104_v27 = vmul.f32 1.442695, %v4076_v16  ;;  %v15566_v46 = vadd.f32 %v15500_v47, %v4039_v19  ;;  %4332 = vmatmul.mubr.f32.gmra.mrb[104].mxu1 %v4130_v63  ;;  %10523 = vmatprep.mubr.f32.mxu0 %v4132_v6  ;;  %v8155_v7 = vadd.f32 -1.0, %v13512_v25  ;;  %v13096_v47 = vld [vmem:[#allocation6 + $0x128] ss:$12 sps:$4 sm:$0xff]  }
 0xcae   :  { %13523 = vpow2.f32 %v4106_v29  ;;  %v4079_v52 = vmin.f32 %v15561_v11, 0.0  ;;  %10524 = vmatmul.mubr.f32.gmra.mrb[104].mxu0 %v4133_v21  ;;  %4337 = vmatprep.mubr.f32.mxu1 %v16873_v51  ;;  %v8154_v8 = vadd.f32 -1.0, %v13514_v0  ;;  %v13112_v25 = vld [vmem:[#allocation6 + $0x16c] ss:$12 sps:$4 sm:$0xff]   ;;  %vm4063_vm6 = vcmp.gt.f32.partialorder %v15561_v11, 0.0  ;;  %v16936_v0 = vld [vmem:[#allocation47_spill] sm:$0xff] }
 0xcaf   :  { %13525 = vpow2.f32 %v4104_v27  ;;  %v4078_v60 = vmin.f32 %v15566_v46, 0.0  ;;  %11935 = vmatpush3.bf16.msra.mxu0 %v13091_v22  ;;  %11903 = vmatpush1.bf16.msra.mxu1 %v13095_v59  ;;  %v15579_v53 = vsel %vm4055_vm0, %v15521_v45, %v8155_v7  ;;  %v13097_v45 = vld [vmem:[#allocation6 + $0x140] ss:$12 sps:$4 sm:$0xff]   ;;  %v13102_v59 = vld [vmem:[#allocation6 + $0x170] ss:$12 sps:$4 sm:$0xff]   ;;  %vm4062_vm2 = vcmp.gt.f32.partialorder %v15566_v46, 0.0 }
 0xcb0   :  { %v13516_v3 = vpop.eup %13515  ;;  %v4110_v54 = vmul.f32 1.442695, %v4079_v52  ;;  %v15574_v32 = vsel %vm4054_vm10, %v15524_v30, %v8154_v8  ;;  %11937 = vmatprep.subr.bf16.mxu0 %v13092_v1  ;;  %11905 = vmatprep.subr.bf16.mxu1 %v13098_v58  ;;  %v13114_v58 = vld [vmem:[#allocation6 + $0x168] ss:$12 sps:$4 sm:$0xff]   ;;  %v16937_v27 = vld [vmem:[#allocation60_spill] sm:$0xff] }
 0xcb1   :  { %v13518_v39 = vpop.eup %13517  ;;  %v4108_v48 = vmul.f32 1.442695, %v4078_v60  ;;  %4338 = vmatmul.mubr.f32.gmra.mrb[106].mxu1 %v4131_v13  ;;  %10526 = vmatprep.mubr.f32.mxu0 %v15574_v32  ;;  %v8157_v22 = vadd.f32 -1.0, %v13516_v3  ;;  %v13101_v13 = vld [vmem:[#allocation6 + $0x158] ss:$12 sps:$4 sm:$0xff]  }
 0xcb2   :  { %13527 = vpow2.f32 %v4110_v54  ;;  %10527 = vmatmul.mubr.f32.gmra.mrb[106].mxu0 %v15579_v53  ;;  %4343 = vmatprep.mubr.f32.mxu1 %v16873_v51  ;;  %v8156_v30 = vadd.f32 -1.0, %v13518_v39 }
 0xcb3   :  { %13529 = vpow2.f32 %v4108_v48  ;;  %11939 = vmatpush3.bf16.msra.mxu0 %v13092_v1  ;;  %11907 = vmatpush1.bf16.msra.mxu1 %v13100_v14  ;;  %v15590_v49 = vsel %vm4057_vm5, %v15529_v34, %v8157_v22  ;;  %v13109_v34 = vld [vmem:[#allocation6 + $0x154] ss:$12 sps:$4 sm:$0xff]  }
 0xcb4   :  { %v13520_v12 = vpop.eup %13519  ;;  %v15585_v18 = vsel %vm4056_vm3, %v15532_v35, %v8156_v30  ;;  %11941 = vmatprep.subr.bf16.mxu0 %v13096_v47  ;;  %11909 = vmatprep.subr.bf16.mxu1 %v13103_v31  ;;  %v8164_v31 = vld [vmem:[%s16555_s11 + $0x6] sm:$0x3f] }
 0xcb5   :  { %v13522_v61 = vpop.eup %13521  ;;  %4344 = vmatmul.mubr.f32.gmra.mrb[108].mxu1 %v4132_v6  ;;  %10529 = vmatprep.mubr.f32.mxu0 %v15585_v18  ;;  %v8159_v63 = vadd.f32 -1.0, %v13520_v12  ;;  %v16941_v12 = vld [vmem:[#allocation57_spill] sm:$0xff] }
 0xcb6   :  { %10530 = vmatmul.mubr.f32.gmra.mrb[108].mxu0 %v15590_v49  ;;  %4349 = vmatprep.mubr.f32.mxu1 %v16873_v51  ;;  %v8158_v35 = vadd.f32 -1.0, %v13522_v61 }
 0xcb7   :  { %11943 = vmatpush3.bf16.msra.mxu0 %v13096_v47  ;;  %11911 = vmatpush1.bf16.msra.mxu1 %v13105_v28  ;;  %v4139_v4 = vsel %vm4059_vm14, %v15537_v17, %v8159_v63 }
 0xcb8   :  { %v13524_v44 = vpop.eup %13523  ;;  %v4138_v41 = vsel %vm4058_vm13, %v15540_v50, %v8158_v35  ;;  %11945 = vmatprep.subr.bf16.mxu0 %v13097_v45  ;;  %11913 = vmatprep.subr.bf16.mxu1 %v13106_v5  ;;  %v13111_v50 = vld [vmem:[#allocation6 + $0x150] ss:$12 sps:$4 sm:$0xff]  }
 0xcb9   :  { %v13526_v15 = vpop.eup %13525  ;;  %4350 = vmatmul.mubr.f32.gmra.mrb[110].mxu1 %v4133_v21  ;;  %10532 = vmatprep.mubr.f32.mxu0 %v4138_v41  ;;  %v8161_v26 = vadd.f32 -1.0, %v13524_v44 }
 0xcba   :  { %10533 = vmatmul.mubr.f32.gmra.mrb[110].mxu0 %v4139_v4  ;;  %4355 = vmatprep.mubr.f32.mxu1 %v16873_v51  ;;  %v8160_v1 = vadd.f32 -1.0, %v13526_v15 }
 0xcbb   :  { %11947 = vmatpush3.bf16.msra.mxu0 %v13097_v45  ;;  %11915 = vmatpush1.bf16.msra.mxu1 %v13108_v42  ;;  %v4141_v29 = vsel %vm4061_vm4, %v15548_v33, %v8161_v26 }
 0xcbc   :  { %v13528_v16 = vpop.eup %13527  ;;  %v4140_v20 = vsel %vm4060_vm7, %v15553_v40, %v8160_v1  ;;  %11949 = vmatprep.subr.bf16.mxu0 %v13101_v13  ;;  %11917 = vmatprep.subr.bf16.mxu1 %v13109_v34 }
 0xcbd   :  { %v13530_v17 = vpop.eup %13529  ;;  %4356 = vmatmul.mubr.f32.gmra.mrb[112].mxu1 %v15574_v32  ;;  %10535 = vmatprep.mubr.f32.mxu0 %v4140_v20  ;;  %v8163_v19 = vadd.f32 -1.0, %v13528_v16  ;;  %v16944_v16 = vld [vmem:[#allocation35_spill] sm:$0xff] }
 0xcbe   :  { %10536 = vmatmul.mubr.f32.gmra.mrb[112].mxu0 %v4141_v29  ;;  %4361 = vmatprep.mubr.f32.mxu1 %v16873_v51  ;;  %v8162_v6 = vadd.f32 -1.0, %v13530_v17 }
 0xcbf   :  { %11951 = vmatpush3.bf16.msra.mxu0 %v13101_v13  ;;  %11919 = vmatpush1.bf16.msra.mxu1 %v13111_v50  ;;  %v4143_v33 = vsel %vm4063_vm6, %v15561_v11, %v8163_v19  ;;  %v16935_v11 = vld [vmem:[#allocation48_spill] sm:$0xff]  ;;  %v4231_v50 = vrot.slane %v8164_v31, %v16941_v12 }
 0xcc0   :  { %v4142_v40 = vsel %vm4062_vm2, %v15566_v46, %v8162_v6  ;;  %11953 = vmatprep.subr.bf16.mxu0 %v13102_v59  ;;  %11921 = vmatprep.subr.bf16.mxu1 %v13112_v25  ;;  %v16938_v46 = vld [vmem:[#allocation68_spill] sm:$0xff]  ;;  %v16945_v25 = vld [vmem:[#allocation65_spill] sm:$0xff]  ;;  %v16947_v6 = vld [vmem:[#allocation67_spill] sm:$0xff] }
 0xcc1   :  { %4362 = vmatmul.mubr.f32.gmra.mrb[114].mxu1 %v15579_v53  ;;  %10538 = vmatprep.mubr.f32.mxu0 %v4142_v40  ;;  %v16940_v53 = vld [vmem:[#allocation58_spill] sm:$0xff]  ;;  %v4235_v17 = vrot.slane %v8164_v31, %v16945_v25 }
 0xcc2   :  { %10539 = vmatmul.mubr.f32.gmra.mrb[114].mxu0 %v4143_v33  ;;  %4367 = vmatprep.mubr.f32.mxu1 %v16873_v51  ;;  %v4239_v22 = vrot.slane %v8164_v31, %v16940_v53 }
 0xcc3   :  { %11955 = vmatpush3.bf16.msra.mxu0 %v13102_v59  ;;  %10573 = vmatprep.mubr.f32.mxu0 %v15049_v24 }
 0xcc4   :  { %11923 = vmatpush1.bf16.msra.mxu1 %v13114_v58  ;;  %11956 = vmatprep.subr.bf16.mxu0 %v16786_v37 }
 0xcc5   :  { %4368 = vmatmul.mubr.f32.gmra.mrb[116].mxu1 %v15585_v18  ;;  %12012 = vmatprep.subr.bf16.mxu1 %v16786_v37  ;;  %v15707_v18 = vrot.slane %v4239_v22, %v16941_v12 }
 0xcc6   :  { %10574 = vmatmul.mubr.f32.vlgmr.msra.gmra.mrb[116].mxu0 %v15058_v9  ;;  %4373 = vmatprep.mubr.f32.mxu1 %v16873_v51 }
 0xcc7   :  { %10576 = vmatprep.mubr.f32.mxu0 %v15067_v56 }
 0xcc9   :  { %4374 = vmatmul.mubr.f32.gmra.mrb[118].mxu1 %v15590_v49 }
 0xcca   :  { %10577 = vmatmul.mubr.f32.gmra.mrb[118].mxu0 %v15094_v2  ;;  %4379 = vmatprep.mubr.f32.mxu1 %v16873_v51 }
 0xccb   :  { %10579 = vmatprep.mubr.f32.mxu0 %v15110_v43 }
 0xccd   :  { %4380 = vmatmul.mubr.f32.gmra.mrb[120].mxu1 %v4138_v41 }
 0xcce   :  { %10580 = vmatmul.mubr.f32.gmra.mrb[120].mxu0 %v15127_v10  ;;  %4385 = vmatprep.mubr.f32.mxu1 %v16873_v51 }
 0xccf   :  { %10582 = vmatprep.mubr.f32.mxu0 %v15143_v62 }
 0xcd1   :  { %4386 = vmatmul.mubr.f32.gmra.mrb[122].mxu1 %v4139_v4 }
 0xcd2   :  { %10583 = vmatmul.mubr.f32.gmra.mrb[122].mxu0 %v15163_v36  ;;  %4391 = vmatprep.mubr.f32.mxu1 %v16873_v51 }
 0xcd3   :  { %10585 = vmatprep.mubr.f32.mxu0 %v15191_v55 }
 0xcd5   :  { %4392 = vmatmul.mubr.f32.gmra.mrb[124].mxu1 %v4140_v20  ;;  %v4645_v20 = vrot.slane %v8164_v31, %v16944_v16 }
 0xcd6   :  { %10586 = vmatmul.mubr.f32.gmra.mrb[124].mxu0 %v15196_v23  ;;  %4397 = vmatprep.mubr.f32.mxu1 %v16873_v51 }
 0xcd7   :  { %10588 = vmatprep.mubr.f32.mxu0 %v15201_v38  ;;  %v4660_v22 = vrot.slane %v4645_v20, %v16944_v16 }
 0xcd9   :  { %4398 = vmatmul.mubr.f32.gmra.mrb[126].mxu1 %v4141_v29  ;;  %v16946_v29 = vld [vmem:[#allocation66_spill] sm:$0xff] }
 0xcda   :  { %10589 = vmatmul.mubr.f32.gmra.mrb[126].mxu0 %v15206_v57  ;;  %4403 = vmatprep.mubr.f32.mxu1 %v16873_v51  ;;  %v4649_v19 = vrot.slane %v8164_v31, %v16946_v29 }
 0xcdb   :  { %10591 = vmatprep.mubr.f32.mxu0 %v16935_v11 }
 0xcdc   :  { %v4664_v53 = vrot.slane %v4649_v19, %v16944_v16 }
 0xcdd   :  { %4404 = vmatmul.mubr.f32.gmra.mrb[128].mxu1 %v4142_v40  ;;  %v4653_v40 = vrot.slane %v8164_v31, %v16947_v6 }
 0xcde   :  { %10592 = vmatmul.mubr.f32.gmra.mrb[128].mxu0 %v16936_v0  ;;  %4409 = vmatprep.mubr.f32.mxu1 %v16873_v51 }
 0xcdf   :  { %10594 = vmatprep.mubr.f32.mxu0 %v16937_v27 }
 0xce1   :  { %4410 = vmatmul.mubr.f32.gmra.mrb[130].mxu1 %v4143_v33  ;;  %v4246_v33 = vrot.slane %v4231_v50, %v16941_v12 }
 0xce2   :  { %10595 = vmatmul.mubr.f32.gmra.mrb[130].mxu0 %v16938_v46  ;;  %4733 = vmatprep.mubr.f32.mxu1 %v16873_v51 }
 0xce3   :  { %10629 = vmatprep.mubr.msk.f32.mxu0 %vm16939_vm8, %v16873_v51 }
 0xce5   :  { %4734 = vmatmul.mubr.f32.vlgmr.msra.gmra.mrb[100].mxu1 %v15049_v24 }
 0xce6   :  { %4739 = vmatprep.mubr.f32.mxu1 %v16873_v51 }
 0xce9   :  { %4740 = vmatmul.mubr.f32.gmra.mrb[102].mxu1 %v15058_v9 }
 0xcea   :  { %4745 = vmatprep.mubr.f32.mxu1 %v16873_v51 }
 0xced   :  { %4746 = vmatmul.mubr.f32.gmra.mrb[104].mxu1 %v15067_v56 }
 0xcee   :  { %4751 = vmatprep.mubr.f32.mxu1 %v16873_v51 }
 0xcf1   :  { %4752 = vmatmul.mubr.f32.gmra.mrb[106].mxu1 %v15094_v2 }
 0xcf2   :  { %4757 = vmatprep.mubr.f32.mxu1 %v16873_v51 }
 0xcf5   :  { %4758 = vmatmul.mubr.f32.gmra.mrb[108].mxu1 %v15110_v43 }
 0xcf6   :  { %4763 = vmatprep.mubr.f32.mxu1 %v16873_v51 }
 0xcf9   :  { %4764 = vmatmul.mubr.f32.gmra.mrb[110].mxu1 %v15127_v10 }
 0xcfa   :  { %4769 = vmatprep.mubr.f32.mxu1 %v16873_v51 }
 0xcfd   :  { %4770 = vmatmul.mubr.f32.gmra.mrb[112].mxu1 %v15143_v62 }
 0xcfe   :  { %4775 = vmatprep.mubr.f32.mxu1 %v16873_v51 }
 0xd01   :  { %4776 = vmatmul.mubr.f32.gmra.mrb[114].mxu1 %v15163_v36 }
 0xd02   :  { %4781 = vmatprep.mubr.f32.mxu1 %v16873_v51 }
 0xd05   :  { %4782 = vmatmul.mubr.f32.gmra.mrb[116].mxu1 %v15191_v55 }
 0xd06   :  { %4787 = vmatprep.mubr.f32.mxu1 %v16873_v51 }
 0xd09   :  { %4788 = vmatmul.mubr.f32.gmra.mrb[118].mxu1 %v15196_v23 }
 0xd0a   :  { %4793 = vmatprep.mubr.f32.mxu1 %v16873_v51 }
 0xd0d   :  { %4794 = vmatmul.mubr.f32.gmra.mrb[120].mxu1 %v15201_v38 }
 0xd0e   :  { %4799 = vmatprep.mubr.f32.mxu1 %v16873_v51 }
 0xd11   :  { %4800 = vmatmul.mubr.f32.gmra.mrb[122].mxu1 %v15206_v57 }
 0xd12   :  { %4805 = vmatprep.mubr.f32.mxu1 %v16873_v51 }
 0xd15   :  { %4806 = vmatmul.mubr.f32.gmra.mrb[124].mxu1 %v16935_v11 }
 0xd16   :  { %4811 = vmatprep.mubr.f32.mxu1 %v16873_v51 }
 0xd19   :  { %4812 = vmatmul.mubr.f32.gmra.mrb[126].mxu1 %v16936_v0 }
 0xd1a   :  { %4817 = vmatprep.mubr.f32.mxu1 %v16873_v51 }
 0xd1d   :  { %4818 = vmatmul.mubr.f32.gmra.mrb[128].mxu1 %v16937_v27 }
 0xd1e   :  { %4823 = vmatprep.mubr.f32.mxu1 %v16873_v51 }
 0xd21   :  { %4824 = vmatmul.mubr.f32.gmra.mrb[130].mxu1 %v16938_v46  ;;  %v15755_v46 = vadd.f32 %v4660_v22, %v4246_v33 }
 0xd22   :  { %10720 = vmatprep.mubr.msk.f32.mxu1 %vm16939_vm8, %v16873_v51  ;;  %v15753_v51 = vrot.slane %v4653_v40, %v16944_v16 }
 0xd79   :  { %v15674_v21 = vpop.f32.mrb[100].mxu0 }
 0xd7a   :  { %v15676_v7 = vpop.f32.mrb[101].mxu0 }
 0xd7d   :  { %v15678_v52 = vpop.f32.mrb[102].mxu0 }
 0xd7e   :  { %v15680_v8 = vpop.f32.mrb[103].mxu0 }
 0xd81   :  { %v15682_v60 = vpop.f32.mrb[104].mxu0 }
 0xd82   :  { %v15684_v47 = vpop.f32.mrb[105].mxu0 }
 0xd85   :  { %v15686_v14 = vpop.f32.mrb[106].mxu0 }
 0xd86   :  { %v15688_v3 = vpop.f32.mrb[107].mxu0 }
 0xd89   :  { %v15690_v54 = vpop.f32.mrb[108].mxu0 }
 0xd8a   :  { %v15692_v32 = vpop.f32.mrb[109].mxu0 }
 0xd8d   :  { %v15697_v39 = vpop.f32.mrb[110].mxu0 }
 0xd8e   :  { %v15699_v48 = vpop.f32.mrb[111].mxu0 }
 0xd91   :  { %v15702_v30 = vpop.f32.mrb[112].mxu0 }
 0xd92   :  { %v15704_v28 = vpop.f32.mrb[113].mxu0 }
 0xd95   :  { %v10540_v45 = vpop.f32.mrb[114].mxu0 }
 0xd96   :  { %v15710_v5 = vadd.f32 %v10540_v45, %v15707_v18  ;;  %v4552_v61 = vpop.f32.mrb[115].mxu0 }
 0xd97   :  { %v15713_v49 = vadd.f32 %v4552_v61, %v15707_v18  ;;  %v4250_v61 = vrot.slane %v4235_v17, %v16941_v12 }
 0xd98   :  { %16942 = vst [vmem:[#allocation59_spill] sm:$0xff] %v15710_v5 }
 0xd99   :  { %16943 = vst [vmem:[#allocation52_spill] sm:$0xff] %v15713_v49  ;;  %v15715_v63 = vpop.f32.mrb[116].mxu0  ;;  %v15760_v29 = vadd.f32 %v4664_v53, %v4250_v61 }
 0xd9a   :  { %v15717_v35 = vpop.f32.mrb[117].mxu0 }
 0xd9d   :  { %v15719_v42 = vpop.f32.mrb[118].mxu0 }
 0xd9e   :  { %v15721_v44 = vpop.f32.mrb[119].mxu0 }
 0xda1   :  { %v15723_v41 = vpop.f32.mrb[120].mxu0 }
 0xda2   :  { %v15725_v13 = vpop.f32.mrb[121].mxu0 }
 0xda5   :  { %v15727_v34 = vpop.f32.mrb[122].mxu0 }
 0xda6   :  { %v15729_v15 = vpop.f32.mrb[123].mxu0 }
 0xda9   :  { %v15731_v4 = vpop.f32.mrb[124].mxu0 }
 0xdaa   :  { %v15733_v26 = vpop.f32.mrb[125].mxu0 }
 0xdad   :  { %v15735_v1 = vpop.f32.mrb[126].mxu0 }
 0xdae   :  { %v15739_v59 = vpop.f32.mrb[127].mxu0 }
 0xdb1   :  { %v15744_v58 = vpop.f32.mrb[128].mxu0 }
 0xdb2   :  { %v15748_v45 = vpop.f32.mrb[129].mxu0 }
 0xdb5   :  { %v10596_v25 = vpop.f32.mrb[130].mxu0 }
 0xdb6   :  { %v15758_v31 = vadd.f32 %v10596_v25, %v15753_v51  ;;  %v4966_v6 = vpop.f32.mrb[131].mxu0 }
 0xdb7   :  { %v15763_v50 = vadd.f32 %v4966_v6, %v15753_v51 }
 0xdb8   :  { %16948 = vst [vmem:[#allocation51_spill] sm:$0xff] %v15758_v31  ;;  %v4735_v20 = vpop.f32.mrb[100].mxu1 }
 0xdb9   :  { %16949 = vst [vmem:[#allocation70_spill] sm:$0xff] %v15763_v50  ;;  %v12589_v17 = vadd.f32 %v15755_v46, %v4735_v20  ;;  %v4737_v12 = vpop.f32.mrb[101].mxu1 }
 0xdba   :  { %v12591_v19 = vadd.f32 %v15760_v29, %v4737_v12 }
 0xdbb   :  { %v8165_v40 = vmul.f32 -1.442695, %v12589_v17 }
 0xdbc   :  { %v8181_v16 = vmul.f32 -1.442695, %v12591_v19  ;;  %v4741_v27 = vpop.f32.mrb[102].mxu1 }
 0xdbd   :  { %13531 = vpow2.f32 %v8165_v40  ;;  %v12593_v33 = vadd.f32 %v15755_v46, %v4741_v27  ;;  %v4743_v25 = vpop.f32.mrb[103].mxu1 }
 0xdbe   :  { %13533 = vpow2.f32 %v8181_v16  ;;  %v12595_v53 = vadd.f32 %v15760_v29, %v4743_v25 }
 0xdbf   :  { %v8166_v22 = vmul.f32 -1.442695, %v12593_v33 }
 0xdc0   :  { %v8182_v61 = vmul.f32 -1.442695, %v12595_v53  ;;  %v4747_v6 = vpop.f32.mrb[104].mxu1 }
 0xdc1   :  { %13535 = vpow2.f32 %v8166_v22  ;;  %v12597_v0 = vadd.f32 %v15755_v46, %v4747_v6  ;;  %v4749_v20 = vpop.f32.mrb[105].mxu1 }
 0xdc2   :  { %13537 = vpow2.f32 %v8182_v61  ;;  %v12599_v12 = vadd.f32 %v15760_v29, %v4749_v20 }
 0xdc3   :  { %v8167_v17 = vmul.f32 -1.442695, %v12597_v0 }
 0xdc4   :  { %v8183_v19 = vmul.f32 -1.442695, %v12599_v12  ;;  %v4753_v5 = vpop.f32.mrb[106].mxu1 }
 0xdc5   :  { %13539 = vpow2.f32 %v8167_v17  ;;  %v12601_v27 = vadd.f32 %v15755_v46, %v4753_v5  ;;  %v4755_v40 = vpop.f32.mrb[107].mxu1 }
 0xdc6   :  { %v12603_v16 = vadd.f32 %v15760_v29, %v4755_v40  ;;  %13541 = vpow2.f32 %v8183_v19 }
 0xdc7   :  { %v13532_v25 = vpop.eup %13531  ;;  %v8168_v33 = vmul.f32 -1.442695, %v12601_v27 }
 0xdc8   :  { %v13534_v53 = vpop.eup %13533  ;;  %v5039_v22 = vadd.f32 1.0, %v13532_v25  ;;  %v8184_v31 = vmul.f32 -1.442695, %v12603_v16  ;;  %v4759_v6 = vpop.f32.mrb[108].mxu1 }
 0xdc9   :  { %13543 = vpow2.f32 %v8168_v33  ;;  %v12605_v61 = vadd.f32 %v15755_v46, %v4759_v6  ;;  %v4761_v20 = vpop.f32.mrb[109].mxu1  ;;  %v5151_v17 = vadd.f32 1.0, %v13534_v53 }
 0xdca   :  { %13545 = vrcp.f32 %v5039_v22  ;;  %v12607_v0 = vadd.f32 %v15760_v29, %v4761_v20 }
 0xdcb   :  { %v13536_v12 = vpop.eup %13535  ;;  %v8169_v5 = vmul.f32 -1.442695, %v12605_v61  ;;  %13547 = vpow2.f32 %v8184_v31 }
 0xdcc   :  { %v13538_v11 = vpop.eup %13537  ;;  %v5040_v49 = vadd.f32 1.0, %v13536_v12  ;;  %v8185_v40 = vmul.f32 -1.442695, %v12607_v0  ;;  %v4765_v19 = vpop.f32.mrb[110].mxu1 }
 0xdcd   :  { %13549 = vpow2.f32 %v8169_v5  ;;  %v12609_v27 = vadd.f32 %v15755_v46, %v4765_v19  ;;  %v4767_v16 = vpop.f32.mrb[111].mxu1  ;;  %v5152_v22 = vadd.f32 1.0, %v13538_v11 }
 0xdce   :  { %13551 = vrcp.f32 %v5040_v49  ;;  %v12611_v25 = vadd.f32 %v15760_v29, %v4767_v16  ;;  %v4897_v49 = vadd.f32 %v15717_v35, %v15753_v51  ;;  %v4902_v35 = vadd.f32 %v15715_v63, %v15753_v51 }
 0xdcf   :  { %v13540_v33 = vpop.eup %13539  ;;  %13553 = vrcp.f32 %v5151_v17  ;;  %v8170_v6 = vmul.f32 -1.442695, %v12609_v27  ;;  %v4498_v63 = vadd.f32 %v15678_v52, %v15707_v18 }
 0xdd0   :  { %v5041_v20 = vadd.f32 1.0, %v13540_v33  ;;  %13555 = vpow2.f32 %v8185_v40  ;;  %v8186_v53 = vmul.f32 -1.442695, %v12611_v25  ;;  %v4771_v61 = vpop.f32.mrb[112].mxu1  ;;  %v13542_v50 = vpop.eup %13541  ;;  %v4483_v25 = vadd.f32 %v15676_v7, %v15707_v18 }
 0xdd1   :  { %13557 = vpow2.f32 %v8170_v6  ;;  %v12613_v31 = vadd.f32 %v15755_v46, %v4771_v61  ;;  %v4773_v0 = vpop.f32.mrb[113].mxu1  ;;  %v5153_v19 = vadd.f32 1.0, %v13542_v50 }
 0xdd2   :  { %13559 = vrcp.f32 %v5041_v20  ;;  %v12615_v12 = vadd.f32 %v15760_v29, %v4773_v0 }
 0xdd3   :  { %v13544_v5 = vpop.eup %13543  ;;  %13561 = vrcp.f32 %v5152_v22  ;;  %v8171_v17 = vmul.f32 -1.442695, %v12613_v31 }
 0xdd4   :  { %v13546_v11 = vpop.eup %13545  ;;  %v5042_v27 = vadd.f32 1.0, %v13544_v5  ;;  %13563 = vpow2.f32 %v8186_v53  ;;  %v8187_v40 = vmul.f32 -1.442695, %v12615_v12  ;;  %v4777_v16 = vpop.f32.mrb[114].mxu1 }
 0xdd5   :  { %v5199_v33 = vmul.f32 %v13546_v11, %v4897_v49  ;;  %13565 = vpow2.f32 %v8171_v17  ;;  %v12617_v6 = vadd.f32 %v15755_v46, %v4777_v16  ;;  %v4779_v20 = vpop.f32.mrb[115].mxu1  ;;  %v13548_v61 = vpop.eup %13547  ;;  %v4488_v17 = vadd.f32 %v15674_v21, %v15707_v18 }
 0xdd6   :  { %13567 = vrcp.f32 %v5042_v27  ;;  %v5154_v50 = vadd.f32 1.0, %v13548_v61  ;;  %v12619_v7 = vadd.f32 %v15760_v29, %v4779_v20  ;;  %v15799_v21 = vadd.f32 %v15682_v60, %v15707_v18 }
 0xdd7   :  { %v13550_v0 = vpop.eup %13549  ;;  %v5215_v22 = vadd.f32 %v5199_v33, %v4483_v25  ;;  %13569 = vpow2.f32 %v8187_v40  ;;  %v8172_v12 = vmul.f32 -1.442695, %v12617_v6  ;;  %v4907_v25 = vadd.f32 %v15721_v44, %v15753_v51 }
 0xdd8   :  { %v13552_v53 = vpop.eup %13551  ;;  %13571 = vrcp.f32 %v5153_v19  ;;  %v5043_v31 = vadd.f32 1.0, %v13550_v0  ;;  %v4783_v5 = vpop.f32.mrb[116].mxu1  ;;  %v4493_v19 = vadd.f32 %v15680_v8, %v15707_v18  ;;  %v8188_v0 = vmul.f32 -1.442695, %v12619_v7 }
 0xdd9   :  { %v15787_v49 = vpop.eup %13553  ;;  %13573 = vtanh.f32 %v5215_v22  ;;  %v5200_v11 = vmul.f32 %v13552_v53, %v4902_v35  ;;  %v4785_v27 = vpop.f32.mrb[117].mxu1  ;;  %v4503_v8 = vadd.f32 %v15684_v47, %v15707_v18  ;;  %v15807_v44 = vadd.f32 %v15686_v14, %v15707_v18 }
 0xdda   :  { %v13556_v16 = vpop.eup %13555  ;;  %13575 = vrcp.f32 %v5154_v50  ;;  %v15811_v60 = vadd.f32 %v15688_v3, %v15707_v18  ;;  %v12623_v14 = vadd.f32 %v15760_v29, %v4785_v27 }
 0xddb   :  { %v13558_v40 = vpop.eup %13557  ;;  %v5216_v33 = vadd.f32 %v5200_v11, %v4488_v17  ;;  %13577 = vrcp.f32 %v5043_v31  ;;  %v5155_v6 = vadd.f32 1.0, %v13556_v16  ;;  %v4912_v31 = vadd.f32 %v15719_v42, %v15753_v51 }
 0xddc   :  { %v13560_v20 = vpop.eup %13559  ;;  %v5044_v61 = vadd.f32 1.0, %v13558_v40  ;;  %13579 = vpow2.f32 %v8172_v12  ;;  %v4789_v52 = vpop.f32.mrb[118].mxu1  ;;  %v12621_v12 = vadd.f32 %v15755_v46, %v4783_v5  ;;  %v4922_v16 = vadd.f32 %v15723_v41, %v15753_v51 }
 0xddd   :  { %v15801_v35 = vpop.eup %13561  ;;  %13581 = vtanh.f32 %v5216_v33  ;;  %v5201_v22 = vmul.f32 %v13560_v20, %v4907_v25  ;;  %v4791_v50 = vpop.f32.mrb[119].mxu1  ;;  %v12625_v3 = vadd.f32 %v15755_v46, %v4789_v52  ;;  %v4917_v42 = vadd.f32 %v15725_v13, %v15753_v51 }
 0xdde   :  { %v13564_v53 = vpop.eup %13563  ;;  %13583 = vrcp.f32 %v5155_v6  ;;  %v5247_v6 = vsub.f32 1.0, %v15787_v49  ;;  %v12627_v41 = vadd.f32 %v15760_v29, %v4791_v50  ;;  %v8189_v52 = vmul.f32 -1.442695, %v12623_v14 }
 0xddf   :  { %v13566_v7 = vpop.eup %13565  ;;  %v5217_v47 = vadd.f32 %v5201_v22, %v4493_v19  ;;  %13585 = vrcp.f32 %v5044_v61  ;;  %v5156_v17 = vadd.f32 1.0, %v13564_v53  ;;  %v8173_v61 = vmul.f32 -1.442695, %v12621_v12 }
 0xde0   :  { %v13568_v11 = vpop.eup %13567  ;;  %v5045_v40 = vadd.f32 1.0, %v13566_v7  ;;  %13587 = vpow2.f32 %v8188_v0  ;;  %v4795_v25 = vpop.f32.mrb[120].mxu1  ;;  %v5279_v53 = vmul.f32 %v15787_v49, %v15049_v24  ;;  %v15833_v12 = vadd.f32 %v15727_v34, %v15753_v51 }
 0xde1   :  { %v13570_v33 = vpop.eup %13569  ;;  %13589 = vtanh.f32 %v5217_v47  ;;  %v5202_v5 = vmul.f32 %v13568_v11, %v4912_v31  ;;  %v4797_v19 = vpop.f32.mrb[121].mxu1  ;;  %v8174_v31 = vmul.f32 -1.442695, %v12625_v3  ;;  %v12629_v7 = vadd.f32 %v15755_v46, %v4795_v25 }
 0xde2   :  { %v15823_v20 = vpop.eup %13571  ;;  %13591 = vrcp.f32 %v5156_v17  ;;  %v5157_v27 = vadd.f32 1.0, %v13570_v33  ;;  %v5248_v50 = vsub.f32 1.0, %v15801_v35  ;;  %v5280_v24 = vmul.f32 %v15801_v35, %v15058_v9 }
 0xde3   :  { %v13574_v0 = vpop.eup %13573  ;;  %v5218_v22 = vadd.f32 %v5202_v5, %v4498_v63  ;;  %13593 = vrcp.f32 %v5045_v40  ;;  %v8190_v40 = vmul.f32 -1.442695, %v12627_v41  ;;  %v12631_v5 = vadd.f32 %v15760_v29, %v4797_v19 }
 0xde4   :  { %v15828_v13 = vpop.eup %13575  ;;  %13595 = vrcp.f32 %v5157_v27  ;;  %v4801_v47 = vpop.f32.mrb[122].mxu1  ;;  %v5263_v11 = vmul.f32 %v13574_v0, %v5247_v6  ;;  %v8175_v0 = vmul.f32 -1.442695, %v12629_v7 }
 0xde5   :  { %v13578_v17 = vpop.eup %13577  ;;  %13597 = vtanh.f32 %v5218_v22  ;;  %v4803_v63 = vpop.f32.mrb[123].mxu1  ;;  %v12633_v34 = vadd.f32 %v15755_v46, %v4801_v47  ;;  %v8191_v7 = vmul.f32 -1.442695, %v12631_v5 }
 0xde6   :  { %v13580_v49 = vpop.eup %13579  ;;  %v5203_v14 = vmul.f32 %v13578_v17, %v4917_v42  ;;  %13599 = vpow2.f32 %v8173_v61  ;;  %v15838_v3 = vadd.f32 %v5279_v53, %v5263_v11  ;;  %v4927_v42 = vadd.f32 %v15729_v15, %v15753_v51 }
 0xde7   :  { %v13582_v25 = vpop.eup %13581  ;;  %v5046_v33 = vadd.f32 1.0, %v13580_v49  ;;  %13601 = vpow2.f32 %v8189_v52  ;;  %v12635_v61 = vadd.f32 %v15760_v29, %v4803_v63  ;;  %v5249_v52 = vsub.f32 1.0, %v15823_v20 }
 0xde8   :  { %v15842_v6 = vpop.eup %13583  ;;  %v5219_v27 = vadd.f32 %v5203_v14, %v4503_v8  ;;  %13603 = vpow2.f32 %v8174_v31  ;;  %v4807_v22 = vpop.f32.mrb[124].mxu1  ;;  %v5264_v9 = vmul.f32 %v13582_v25, %v5248_v50  ;;  %v5281_v8 = vmul.f32 %v15823_v20, %v15067_v56 }
 0xde9   :  { %v13586_v35 = vpop.eup %13585  ;;  %13605 = vrcp.f32 %v5046_v33  ;;  %v4809_v41 = vpop.f32.mrb[125].mxu1  ;;  %v8176_v11 = vmul.f32 -1.442695, %v12633_v34  ;;  %v12637_v15 = vadd.f32 %v15755_v46, %v4807_v22  ;;  %v5311_v49 = vmax.f32 %v15838_v3, 0.0 }
 0xdea   :  { %v13588_v19 = vpop.eup %13587  ;;  %13607 = vtanh.f32 %v5219_v27  ;;  %v5204_v53 = vmul.f32 %v13586_v35, %v4922_v16  ;;  %v15848_v47 = vadd.f32 %v5280_v24, %v5264_v9  ;;  %v8192_v14 = vmul.f32 -1.442695, %v12635_v61 }
 0xdeb   :  { %v13590_v31 = vpop.eup %13589  ;;  %13609 = vpow2.f32 %v8190_v40  ;;  %v5250_v56 = vsub.f32 1.0, %v15828_v13  ;;  %v5282_v40 = vmul.f32 %v15828_v13, %v15094_v2  ;;  %v5251_v9 = vsub.f32 1.0, %v15842_v6 }
 0xdec   :  { %v15853_v17 = vpop.eup %13591  ;;  %v5220_v63 = vadd.f32 %v5204_v53, %v15799_v21  ;;  %13611 = vpow2.f32 %v8175_v0  ;;  %v4813_v50 = vpop.f32.mrb[126].mxu1  ;;  %v5312_v16 = vmax.f32 %v15848_v47, 0.0  ;;  %v5265_v20 = vmul.f32 %v13590_v31, %v5249_v52 }
 0xded   :  { %v13594_v24 = vpop.eup %13593  ;;  %v4815_v25 = vpop.f32.mrb[127].mxu1  ;;  %v12639_v21 = vadd.f32 %v15760_v29, %v4809_v41  ;;  %v5158_v0 = vadd.f32 1.0, %v13588_v19  ;;  %v8177_v13 = vmul.f32 -1.442695, %v12637_v15  ;;  %v5283_v19 = vmul.f32 %v15842_v6, %v15110_v43 }
 0xdee   :  { %v15861_v33 = vpop.eup %13595  ;;  %13613 = vtanh.f32 %v5220_v63  ;;  %v5205_v5 = vmul.f32 %v13594_v24, %v4927_v42  ;;  %v11957_v34 = vpack.c.bf16 %v5312_v16, %v5311_v49  ;;  %v15868_v22 = vadd.f32 %v5281_v8, %v5265_v20 }
 0xdef   :  { %v13598_v27 = vpop.eup %13597  ;;  %13615 = vpow2.f32 %v8191_v7  ;;  %v8193_v7 = vmul.f32 -1.442695, %v12639_v21  ;;  %v5252_v6 = vsub.f32 1.0, %v15853_v17  ;;  %v16962_v3 = vmov 0.0  }
 0xdf0   :  { %v13600_v35 = vpop.eup %13599  ;;  %v5221_v2 = vadd.f32 %v5205_v5, %v15811_v60  ;;  %13617 = vpow2.f32 %v8176_v11  ;;  %v4819_v42 = vpop.f32.mrb[128].mxu1  ;;  %11958 = vmatpush3.bf16.msra.mxu0 %v11957_v34  ;;  %v5266_v61 = vmul.f32 %v13598_v27, %v5250_v56  ;;  %v5313_v27 = vmax.f32 %v15868_v22, 0.0 }
 0xdf1   :  { %v13602_v41 = vpop.eup %13601  ;;  %v5047_v52 = vadd.f32 1.0, %v13600_v35  ;;  %13619 = vpow2.f32 %v8192_v14  ;;  %v12645_v53 = vadd.f32 %v15755_v46, %v4819_v42  ;;  %v4821_v31 = vpop.f32.mrb[129].mxu1  ;;  %11959 = vmatprep.subr.bf16.mxu0 %v16786_v37  ;;  %v12641_v14 = vadd.f32 %v15755_v46, %v4813_v50 }
 0xdf2   :  { %v13604_v8 = vpop.eup %13603  ;;  %13621 = vtanh.f32 %v5221_v2  ;;  %v15877_v60 = vadd.f32 %v15760_v29, %v4821_v31  ;;  %v15879_v11 = vadd.f32 %v5282_v40, %v5266_v61  ;;  %v5159_v63 = vadd.f32 1.0, %v13602_v41 }
 0xdf3   :  { %v13606_v15 = vpop.eup %13605  ;;  %13623 = vrcp.f32 %v5047_v52  ;;  %v5048_v24 = vadd.f32 1.0, %v13604_v8  ;;  %v8178_v61 = vmul.f32 -1.442695, %v12641_v14  ;;  %v4937_v31 = vadd.f32 %v15733_v26, %v15753_v51 }
 0xdf4   :  { %v13608_v56 = vpop.eup %13607  ;;  %v5206_v20 = vmul.f32 %v13606_v15, %v15833_v12  ;;  %13625 = vrcp.f32 %v5158_v0  ;;  %v4825_v5 = vpop.f32.mrb[130].mxu1  ;;  %v5314_v43 = vmax.f32 %v15879_v11, 0.0  ;;  %v12643_v12 = vadd.f32 %v15760_v29, %v4815_v25 }
 0xdf5   :  { %v13610_v21 = vpop.eup %13609  ;;  %13627 = vrcp.f32 %v5048_v24  ;;  %v15886_v40 = vadd.f32 %v15755_v46, %v4825_v5  ;;  %v4827_v34 = vpop.f32.mrb[131].mxu1  ;;  %v5267_v35 = vmul.f32 %v13608_v56, %v5251_v9  ;;  %v8179_v56 = vmul.f32 -1.442695, %v12645_v53 }
 0xdf6   :  { %v13612_v2 = vpop.eup %13611  ;;  %v5222_v50 = vadd.f32 %v5206_v20, %v15807_v44  ;;  %13629 = vpow2.f32 %v8177_v13  ;;  %v15892_v0 = vadd.f32 %v15760_v29, %v4827_v34  ;;  %v11960_v46 = vpack.c.bf16 %v5314_v43, %v5313_v27 }
 0xdf7   :  { %13631 = vrcp.f32 %v5159_v63  ;;  %v5049_v42 = vadd.f32 1.0, %v13612_v2  ;;  %v5160_v9 = vadd.f32 1.0, %v13610_v21  ;;  %v15898_v52 = vadd.f32 %v5283_v19, %v5267_v35 }
 0xdf8   :  { %v13614_v41 = vpop.eup %13613  ;;  %13633 = vtanh.f32 %v5222_v50  ;;  %11961 = vmatpush3.bf16.msra.mxu0 %v11960_v46  ;;  %v5284_v29 = vmul.f32 %v15853_v17, %v15127_v10  ;;  %v8194_v15 = vmul.f32 -1.442695, %v12643_v12  ;;  %v5285_v26 = vmul.f32 %v15861_v33, %v15143_v62 }
 0xdf9   :  { %v13616_v44 = vpop.eup %13615  ;;  %13635 = vpow2.f32 %v8193_v7  ;;  %v5268_v25 = vmul.f32 %v13614_v41, %v5252_v6  ;;  %11962 = vmatprep.subr.bf16.mxu0 %v16786_v37  ;;  %v5253_v7 = vsub.f32 1.0, %v15861_v33  ;;  %v5315_v10 = vmax.f32 %v15898_v52, 0.0 }
 0xdfa   :  { %v13618_v13 = vpop.eup %13617  ;;  %13637 = vrcp.f32 %v5049_v42  ;;  %v5161_v8 = vadd.f32 1.0, %v13616_v44  ;;  %v4523_v34 = vadd.f32 %v15692_v32, %v15707_v18  ;;  %v4942_v35 = vadd.f32 %v15731_v4, %v15753_v51 }
 0xdfb   :  { %v13620_v63 = vpop.eup %13619  ;;  %v5050_v24 = vadd.f32 1.0, %v13618_v13  ;;  %13639 = vpow2.f32 %v8178_v61  ;;  %v15905_v19 = vadd.f32 %v5284_v29, %v5268_v25  ;;  %v4528_v12 = vadd.f32 %v15690_v54, %v15707_v18 }
 0xdfc   :  { %v13622_v14 = vpop.eup %13621  ;;  %13641 = vrcp.f32 %v5160_v9  ;;  %v5162_v20 = vadd.f32 1.0, %v13620_v63  ;;  %v8195_v46 = vmul.f32 -1.442695, %v15877_v60  ;;  %v8180_v25 = vmul.f32 -1.442695, %v15886_v40 }
 0xdfd   :  { %v13624_v17 = vpop.eup %13623  ;;  %13643 = vrcp.f32 %v5050_v24  ;;  %v5316_v5 = vmax.f32 %v15905_v19, 0.0  ;;  %v5269_v6 = vmul.f32 %v13622_v14, %v5253_v7  ;;  %v4947_v54 = vadd.f32 %v15739_v59, %v15753_v51 }
 0xdfe   :  { %v13626_v21 = vpop.eup %13625  ;;  %v5207_v2 = vmul.f32 %v13624_v17, %v4937_v31  ;;  %13645 = vrcp.f32 %v5161_v8  ;;  %v4952_v7 = vadd.f32 %v15735_v1, %v15753_v51 }
 0xdff   :  { %v13628_v53 = vpop.eup %13627  ;;  %13647 = vpow2.f32 %v8194_v15  ;;  %v11963_v62 = vpack.c.bf16 %v5316_v5, %v5315_v10  ;;  %v15920_v33 = vadd.f32 %v5285_v26, %v5269_v6  ;;  %v5254_v41 = vsub.f32 1.0, %v13626_v21 }
 0xe00   :  { %v13630_v50 = vpop.eup %13629  ;;  %v5223_v42 = vadd.f32 %v5207_v2, %v4523_v34  ;;  %v5208_v32 = vmul.f32 %v13628_v53, %v4942_v35  ;;  %13649 = vpow2.f32 %v8179_v56  ;;  %v5286_v31 = vmul.f32 %v13626_v21, %v15163_v36 }
 0xe01   :  { %v13632_v61 = vpop.eup %13631  ;;  %13651 = vrcp.f32 %v5162_v20  ;;  %v5051_v4 = vadd.f32 1.0, %v13630_v50  ;;  %11964 = vmatpush3.bf16.msra.mxu0 %v11963_v62  ;;  %v4533_v15 = vadd.f32 %v15699_v48, %v15707_v18  ;;  %v5317_v36 = vmax.f32 %v15920_v33, 0.0 }
 0xe02   :  { %v13634_v9 = vpop.eup %13633  ;;  %13653 = vtanh.f32 %v5223_v42  ;;  %v5224_v44 = vadd.f32 %v5208_v32, %v4528_v12  ;;  %11965 = vmatprep.subr.bf16.mxu0 %v16786_v37  ;;  %v4538_v48 = vadd.f32 %v15697_v39, %v15707_v18  ;;  %v8196_v34 = vmul.f32 -1.442695, %v15892_v0 }
 0xe03   :  { %v13636_v29 = vpop.eup %13635  ;;  %13655 = vrcp.f32 %v5051_v4  ;;  %v5270_v13 = vmul.f32 %v13634_v9, %v5254_v41  ;;  %v5255_v50 = vsub.f32 1.0, %v13632_v61  ;;  %v4957_v39 = vadd.f32 %v15748_v45, %v15753_v51 }
 0xe04   :  { %v13638_v8 = vpop.eup %13637  ;;  %13657 = vtanh.f32 %v5224_v44  ;;  %v5163_v26 = vadd.f32 1.0, %v13636_v29  ;;  %v5287_v0 = vmul.f32 %v13632_v61, %v15191_v55  ;;  %v4543_v9 = vadd.f32 %v15704_v28, %v15707_v18 }
 0xe05   :  { %v13640_v60 = vpop.eup %13639  ;;  %v5209_v63 = vmul.f32 %v13638_v8, %v4947_v54  ;;  %13659 = vpow2.f32 %v8195_v46  ;;  %v15932_v24 = vadd.f32 %v5286_v31, %v5270_v13  ;;  %v4962_v55 = vadd.f32 %v15744_v58, %v15753_v51 }
 0xe06   :  { %v13642_v40 = vpop.eup %13641  ;;  %v5052_v14 = vadd.f32 1.0, %v13640_v60  ;;  %13661 = vpow2.f32 %v8180_v25  ;;  %v4548_v28 = vadd.f32 %v15702_v30, %v15707_v18 }
 0xe07   :  { %v13644_v59 = vpop.eup %13643  ;;  %v5225_v56 = vadd.f32 %v5209_v63, %v4533_v15  ;;  %v5318_v17 = vmax.f32 %v15932_v24, 0.0  ;;  %v5256_v4 = vsub.f32 1.0, %v13642_v40  ;;  %v5288_v45 = vmul.f32 %v13642_v40, %v15196_v23 }
 0xe08   :  { %v13646_v20 = vpop.eup %13645  ;;  %v5210_v6 = vmul.f32 %v13644_v59, %v4952_v7  ;;  %13663 = vrcp.f32 %v5052_v14 }
 0xe09   :  { %v13648_v21 = vpop.eup %13647  ;;  %13665 = vtanh.f32 %v5225_v56  ;;  %v11966_v1 = vpack.c.bf16 %v5318_v17, %v5317_v36  ;;  %v5257_v15 = vsub.f32 1.0, %v13646_v20  ;;  %v5289_v51 = vmul.f32 %v13646_v20, %v15201_v38  ;;  %v16950_v38 = vld [vmem:[#allocation70_spill] sm:$0xff] }
 0xe0a   :  { %v13650_v35 = vpop.eup %13649  ;;  %v5226_v2 = vadd.f32 %v5210_v6, %v4538_v48  ;;  %13667 = vrcp.f32 %v5163_v26  ;;  %v5164_v32 = vadd.f32 1.0, %v13648_v21 }
 0xe0b   :  { %v13652_v53 = vpop.eup %13651  ;;  %v5053_v62 = vadd.f32 1.0, %v13650_v35  ;;  %11967 = vmatpush3.bf16.msra.mxu0 %v11966_v1 }
 0xe0c   :  { %v13654_v12 = vpop.eup %13653  ;;  %13669 = vtanh.f32 %v5226_v2  ;;  %11968 = vmatprep.subr.bf16.mxu0 %v16786_v37  ;;  %v5258_v18 = vsub.f32 1.0, %v13652_v53 }
 0xe0d   :  { %v13656_v42 = vpop.eup %13655  ;;  %13671 = vpow2.f32 %v8196_v34  ;;  %v5271_v46 = vmul.f32 %v13654_v12, %v5255_v50  ;;  %v5290_v34 = vmul.f32 %v13652_v53, %v15206_v57  ;;  %v16951_v50 = vld [vmem:[#allocation52_spill] sm:$0xff] }
 0xe0e   :  { %v13658_v41 = vpop.eup %13657  ;;  %v5211_v44 = vmul.f32 %v13656_v42, %v4957_v39  ;;  %13673 = vrcp.f32 %v5053_v62 }
 0xe0f   :  { %v13660_v25 = vpop.eup %13659  ;;  %v5272_v29 = vmul.f32 %v13658_v41, %v5256_v4  ;;  %v15952_v54 = vadd.f32 %v5287_v0, %v5271_v46  ;;  %13675 = vrcp.f32 %v5164_v32  ;;  %v16952_v46 = vld [vmem:[#allocation48_spill] sm:$0xff] }
 0xe10   :  { %v13662_v13 = vpop.eup %13661  ;;  %v5227_v31 = vadd.f32 %v5211_v44, %v4543_v9  ;;  %v5165_v56 = vadd.f32 1.0, %v13660_v25  ;;  %v16953_v9 = vld [vmem:[#allocation51_spill] sm:$0xff] }
 0xe11   :  { %v5054_v61 = vadd.f32 1.0, %v13662_v13  ;;  %v15956_v8 = vadd.f32 %v5288_v45, %v5272_v29  ;;  %v5319_v23 = vmax.f32 %v15952_v54, 0.0  ;;  %v16954_v29 = vld [vmem:[#allocation59_spill] sm:$0xff] }
 0xe12   :  { %v13664_v60 = vpop.eup %13663  ;;  %13677 = vtanh.f32 %v5227_v31 }
 0xe13   :  { %v13666_v63 = vpop.eup %13665  ;;  %v5212_v7 = vmul.f32 %v13664_v60, %v4962_v55  ;;  %13679 = vrcp.f32 %v5054_v61  ;;  %v5320_v40 = vmax.f32 %v15956_v8, 0.0  ;;  %v16955_v61 = vld [vmem:[#allocation47_spill] sm:$0xff] }
 0xe14   :  { %v5273_v14 = vmul.f32 %v13666_v63, %v5257_v15  ;;  %v13668_v58 = vpop.eup %13667 }
 0xe15   :  { %v5228_v59 = vadd.f32 %v5212_v7, %v4548_v28  ;;  %v11969_v30 = vpack.c.bf16 %v5320_v40, %v5319_v23  ;;  %v5259_v42 = vsub.f32 1.0, %v13668_v58  ;;  %v5291_v41 = vmul.f32 %v13668_v58, %v16952_v46  ;;  %v8743_v46 = vld [vmem:[#allocation2 + $0x150] sm:$0xff]  }
 0xe16   :  { %v13670_v26 = vpop.eup %13669  ;;  %v15967_v48 = vadd.f32 %v5289_v51, %v5273_v14 }
 0xe17   :  { %v13672_v6 = vpop.eup %13671  ;;  %13681 = vtanh.f32 %v5228_v59  ;;  %11970 = vmatpush3.bf16.msra.mxu0 %v11969_v30  ;;  %v5274_v21 = vmul.f32 %v13670_v26, %v5258_v18  ;;  %v16956_v30 = vld [vmem:[#allocation60_spill] sm:$0xff] }
 0xe18   :  { %v13674_v1 = vpop.eup %13673  ;;  %11971 = vmatprep.subr.bf16.mxu0 %v16786_v37  ;;  %13683 = vrcp.f32 %v5165_v56  ;;  %v5166_v2 = vadd.f32 1.0, %v13672_v6  ;;  %v5321_v39 = vmax.f32 %v15967_v48, 0.0 }
 0xe19   :  { %v5213_v20 = vmul.f32 %v13674_v1, %v16950_v38  ;;  %v15972_v35 = vadd.f32 %v5290_v34, %v5274_v21  ;;  %v13676_v62 = vpop.eup %13675  ;;  %v16957_v1 = vld [vmem:[#allocation68_spill] sm:$0xff] }
 0xe1a   :  { %v5260_v13 = vsub.f32 1.0, %v13676_v62  ;;  %v5292_v60 = vmul.f32 %v13676_v62, %v16955_v61 }
 0xe1b   :  { %v5229_v12 = vadd.f32 %v5213_v20, %v16951_v50  ;;  %v5322_v0 = vmax.f32 %v15972_v35, 0.0  ;;  %v8011_v50 = vld [vmem:[%s16546_s2] ss:$0 sm:$0xff] }
 0xe1c   :  { %v13678_v32 = vpop.eup %13677 }
 0xe1d   :  { %v13680_v4 = vpop.eup %13679  ;;  %13685 = vtanh.f32 %v5229_v12  ;;  %v11972_v57 = vpack.c.bf16 %v5322_v0, %v5321_v39  ;;  %v5275_v53 = vmul.f32 %v13678_v32, %v5259_v42  ;;  %v8388_v42 = vld [vmem:[#allocation2 + $0x140] sm:$0xff]   ;;  %v16958_v32 = vld [vmem:[#allocation34_spill] sm:$0xff] }
 0xe1e   :  { %v5214_v44 = vmul.f32 %v13680_v4, %v16953_v9  ;;  %13687 = vrcp.f32 %v5166_v2  ;;  %vm15996_vm9 = vcmp.eq.s32.totalorder %v16958_v32, %v8011_v50  ;;  %v8745_v9 = vld [vmem:[#allocation2 + $0x160] sm:$0xff]  }
 0xe1f   :  { %11973 = vmatpush3.bf16.msra.mxu0 %v11972_v57  ;;  %v15983_v25 = vadd.f32 %v5291_v41, %v5275_v53  ;;  %v8742_v57 = vld [vmem:[#allocation2 + $0x148] sm:$0xff]   ;;  %v16961_v53 = vmov 1.0   ;;  %v8744_v41 = vld [vmem:[#allocation2 + $0x158] sm:$0xff]  }
 0xe20   :  { %v5230_v45 = vadd.f32 %v5214_v44, %v16954_v29  ;;  %11974 = vmatprep.subr.bf16.mxu0 %v16786_v37  ;;  %v8746_v44 = vld [vmem:[#allocation2 + $0x168] sm:$0xff]   ;;  %v8748_v29 = vld [vmem:[#allocation2 + $0x178] sm:$0xff]  }
 0xe21   :  { %v13682_v31 = vpop.eup %13681  ;;  %v5323_v63 = vmax.f32 %v15983_v25, 0.0  ;;  %v8747_v25 = vld [vmem:[#allocation2 + $0x170] sm:$0xff]   ;;  %v16116_v50 = vld [vmem:[#allocation4 + $0x198] ss:$12 sps:$4 sm:$0xff]  }
 0xe22   :  { %13689 = vtanh.f32 %v5230_v45  ;;  %v5276_v55 = vmul.f32 %v13682_v31, %v5260_v13  ;;  %v13684_v28 = vpop.eup %13683 }
 0xe23   :  { %v5261_v14 = vsub.f32 1.0, %v13684_v28  ;;  %v5293_v18 = vmul.f32 %v13684_v28, %v16956_v30  ;;  %v16963_v30 = vld [vmem:[#allocation57_spill] sm:$0xff] }
 0xe24   :  { %v5308_v15 = vadd.f32 %v5292_v60, %v5276_v55  ;;  %v8198_v55 = vld [vmem:[%s16551_s7 + $0x5] sm:$0x1]  ;;  %v16089_v60 = vld [vmem:[%s16551_s7 + $0x6] sm:$0x1] }
 0xe26   :  { %v5324_v7 = vmax.f32 %v5308_v15, 0.0 }
 0xe27   :  { %v13686_v51 = vpop.eup %13685 }
 0xe28   :  { %v13688_v58 = vpop.eup %13687  ;;  %v11975_v59 = vpack.c.bf16 %v5324_v7, %v5323_v63  ;;  %v5277_v56 = vmul.f32 %v13686_v51, %v5261_v14 }
 0xe29   :  { %v5262_v6 = vsub.f32 1.0, %v13688_v58  ;;  %v5294_v38 = vmul.f32 %v13688_v58, %v16957_v1 }
 0xe2a   :  { %11976 = vmatpush3.bf16.msra.mxu0 %v11975_v59  ;;  %v5309_v26 = vadd.f32 %v5293_v18, %v5277_v56 }
 0xe2b   :  { %11977 = vmatprep.subr.bf16.mxu0 %v16786_v37 }
 0xe2c   :  { %v13690_v21 = vpop.eup %13689  ;;  %v5325_v2 = vmax.f32 %v5309_v26, 0.0 }
 0xe2d   :  { %v5278_v34 = vmul.f32 %v13690_v21, %v5262_v6 }
 0xe2f   :  { %v5310_v20 = vadd.f32 %v5294_v38, %v5278_v34 }
 0xe31   :  { %v5326_v62 = vmax.f32 %v5310_v20, 0.0  ;;  %v16108_v20 = vld [vmem:[#allocation4 + $0x184] ss:$12 sps:$4 sm:$0xff]  }
 0xe33   :  { %v11978_v12 = vpack.c.bf16 %v5326_v62, %v5325_v2 }
 0xe35   :  { %11979 = vmatpush3.bf16.msra.mxu0 %v11978_v12  ;;  %v16119_v12 = vld [vmem:[#allocation4 + $0x1b4] ss:$12 sps:$4 sm:$0xff]  }
 0xe36   :  { %11981 = vmatprep.subr.bf16.mxu0 %v8388_v42 }
 0xe38   :  { %10630 = vmatmul.mubr.msk.f32.vlgmr.msra.gmra.mrb[132].mxu0 %vm15996_vm9, %v16961_v53 }
 0xe39   :  { %11983 = vmatpush3.bf16.msra.mxu0 %v8388_v42  ;;  %10664 = vmatprep.mubr.f32.mxu0 %v5311_v49  ;;  %v16122_v42 = vld [vmem:[#allocation4 + $0x1b0] ss:$12 sps:$4 sm:$0xff]  }
 0xe3a   :  { %11985 = vmatprep.subr.bf16.mxu0 %v8742_v57 }
 0xe3d   :  { %11987 = vmatpush3.bf16.msra.mxu0 %v8742_v57 }
 0xe3e   :  { %11989 = vmatprep.subr.bf16.mxu0 %v8743_v46 }
 0xe41   :  { %11991 = vmatpush3.bf16.msra.mxu0 %v8743_v46 }
 0xe42   :  { %11993 = vmatprep.subr.bf16.mxu0 %v8744_v41 }
 0xe45   :  { %11995 = vmatpush3.bf16.msra.mxu0 %v8744_v41  ;;  %v16126_v41 = vld [vmem:[#allocation4 + $0x188] ss:$12 sps:$4 sm:$0xff]  }
 0xe46   :  { %11997 = vmatprep.subr.bf16.mxu0 %v8745_v9 }
 0xe49   :  { %11999 = vmatpush3.bf16.msra.mxu0 %v8745_v9 }
 0xe4a   :  { %12001 = vmatprep.subr.bf16.mxu0 %v8746_v44 }
 0xe4d   :  { %12003 = vmatpush3.bf16.msra.mxu0 %v8746_v44  ;;  %v16129_v44 = vld [vmem:[#allocation4 + $0x1a0] ss:$12 sps:$4 sm:$0xff]  }
 0xe4e   :  { %12005 = vmatprep.subr.bf16.mxu0 %v8747_v25 }
 0xe51   :  { %12007 = vmatpush3.bf16.msra.mxu0 %v8747_v25  ;;  %v16135_v25 = vld [vmem:[#allocation4 + $0x1b8] ss:$12 sps:$4 sm:$0xff]  }
 0xe52   :  { %12009 = vmatprep.subr.bf16.mxu0 %v8748_v29 }
 0xe55   :  { %12011 = vmatpush3.bf16.msra.mxu0 %v8748_v29  ;;  %v16140_v29 = vld [vmem:[#allocation4 + $0x1cc] ss:$12 sps:$4 sm:$0xff]  }
 0xe56   :  { %12036 = vmatprep.subr.bf16.mxu0 %v16786_v37 }
 0xe58   :  { %10665 = vmatmul.mubr.f32.vlgmr.msra.gmra.mrb[134].mxu0 %v5312_v16 }
 0xe59   :  { %10667 = vmatprep.mubr.f32.mxu0 %v5313_v27 }
 0xe5c   :  { %10668 = vmatmul.mubr.f32.gmra.mrb[136].mxu0 %v5314_v43 }
 0xe5d   :  { %10670 = vmatprep.mubr.f32.mxu0 %v5315_v10 }
 0xe60   :  { %10671 = vmatmul.mubr.f32.gmra.mrb[138].mxu0 %v5316_v5 }
 0xe61   :  { %10673 = vmatprep.mubr.f32.mxu0 %v5317_v36 }
 0xe64   :  { %10674 = vmatmul.mubr.f32.gmra.mrb[140].mxu0 %v5318_v17 }
 0xe65   :  { %10676 = vmatprep.mubr.f32.mxu0 %v5319_v23 }
 0xe68   :  { %10677 = vmatmul.mubr.f32.gmra.mrb[142].mxu0 %v5320_v40 }
 0xe69   :  { %10679 = vmatprep.mubr.f32.mxu0 %v5321_v39 }
 0xe6c   :  { %10680 = vmatmul.mubr.f32.gmra.mrb[144].mxu0 %v5322_v0 }
 0xe6d   :  { %10682 = vmatprep.mubr.f32.mxu0 %v5323_v63 }
 0xe70   :  { %10683 = vmatmul.mubr.f32.gmra.mrb[146].mxu0 %v5324_v7 }
 0xe71   :  { %10685 = vmatprep.mubr.f32.mxu0 %v5325_v2  ;;  %v16110_v2 = vld [vmem:[#allocation4 + $0x180] ss:$12 sps:$4 sm:$0xff]  }
 0xe74   :  { %10686 = vmatmul.mubr.f32.gmra.mrb[148].mxu0 %v5326_v62  ;;  %v16112_v62 = vld [vmem:[#allocation4 + $0x19c] ss:$12 sps:$4 sm:$0xff]  }
 0xe75   :  { %10765 = vmatprep.mubr.msk.f32.mxu0 %vm16939_vm8, %v16962_v3 }
 0xf0b   :  { %v5393_v47 = vpop.f32.mrb[132].mxu0 }
 0xf0c   :  { %v10631_v49 = vpop.f32.mrb[133].mxu0  ;;  %v16081_v61 = vmax.f32 %v5393_v47, 0.0  ;;  %v16142_v47 = vld [vmem:[#allocation4 + $0x1c8] ss:$12 sps:$4 sm:$0xff]  }
 0xf0d   :  { %v16144_v49 = vld [vmem:[#allocation4 + $0x1d0] ss:$12 sps:$4 sm:$0xff]  }
 0xf2b   :  { %v10666_v16 = vpop.f32.mrb[134].mxu0 }
 0xf2c   :  { %v5497_v22 = vpop.f32.mrb[135].mxu0 }
 0xf2d   :  { %v16030_v11 = vpack.c.bf16 %v10666_v16, %v5497_v22  ;;  %v16149_v16 = vld [vmem:[#allocation4 + $0x1e4] ss:$12 sps:$4 sm:$0xff]   ;;  %v16152_v22 = vld [vmem:[#allocation4 + $0x1e0] ss:$12 sps:$4 sm:$0xff]  }
 0xf2f   :  { %v10669_v43 = vpop.f32.mrb[136].mxu0  ;;  %12014 = vmatpush3.bf16.xpose.msra.mxu1 %v16030_v11  ;;  %12038 = vmatpush3.bf16.msra.mxu0 %v16030_v11 }
 0xf30   :  { %v5507_v27 = vpop.f32.mrb[137].mxu0  ;;  %12039 = vmatprep.subr.bf16.mxu0 %v16786_v37  ;;  %12015 = vmatprep.subr.bf16.mxu1 %v16786_v37 }
 0xf31   :  { %v16036_v52 = vpack.c.bf16 %v10669_v43, %v5507_v27  ;;  %v16154_v43 = vld [vmem:[#allocation4 + $0x1e8] ss:$12 sps:$4 sm:$0xff]  }
 0xf32   :  { %v16159_v27 = vld [vmem:[#allocation4 + $0x1fc] ss:$12 sps:$4 sm:$0xff]  }
 0xf33   :  { %v10672_v19 = vpop.f32.mrb[138].mxu0  ;;  %12041 = vmatpush3.bf16.msra.mxu0 %v16036_v52 }
 0xf34   :  { %v5517_v10 = vpop.f32.mrb[139].mxu0  ;;  %12042 = vmatprep.subr.bf16.mxu0 %v16786_v37 }
 0xf35   :  { %v16040_v5 = vpack.c.bf16 %v10672_v19, %v5517_v10  ;;  %v16161_v19 = vld [vmem:[#allocation4 + $0x1f8] ss:$12 sps:$4 sm:$0xff]   ;;  %v16164_v10 = vld [vmem:[#allocation4 + $0x200] ss:$12 sps:$4 sm:$0xff]  }
 0xf37   :  { %v10675_v33 = vpop.f32.mrb[140].mxu0  ;;  %12017 = vmatpush3.bf16.xpose.msra.mxu1 %v16036_v52  ;;  %12044 = vmatpush3.bf16.msra.mxu0 %v16040_v5 }
 0xf38   :  { %v5527_v24 = vpop.f32.mrb[141].mxu0  ;;  %12045 = vmatprep.subr.bf16.mxu0 %v16786_v37  ;;  %12018 = vmatprep.subr.bf16.mxu1 %v16786_v37 }
 0xf39   :  { %v16046_v36 = vpack.c.bf16 %v10675_v33, %v5527_v24  ;;  %v16166_v33 = vld [vmem:[#allocation4 + $0x214] ss:$12 sps:$4 sm:$0xff]   ;;  %v16171_v24 = vld [vmem:[#allocation4 + $0x210] ss:$12 sps:$4 sm:$0xff]  }
 0xf3b   :  { %v10678_v17 = vpop.f32.mrb[142].mxu0  ;;  %12047 = vmatpush3.bf16.msra.mxu0 %v16046_v36 }
 0xf3c   :  { %v5537_v54 = vpop.f32.mrb[143].mxu0  ;;  %12048 = vmatprep.subr.bf16.mxu0 %v16786_v37 }
 0xf3d   :  { %v16050_v8 = vpack.c.bf16 %v10678_v17, %v5537_v54  ;;  %v16173_v17 = vld [vmem:[#allocation4 + $0x218] ss:$12 sps:$4 sm:$0xff]  }
 0xf3e   :  { %v16177_v54 = vld [vmem:[#allocation4 + $0x22c] ss:$12 sps:$4 sm:$0xff]  }
 0xf3f   :  { %v10681_v23 = vpop.f32.mrb[144].mxu0  ;;  %12020 = vmatpush3.bf16.xpose.msra.mxu1 %v16040_v5  ;;  %12050 = vmatpush3.bf16.msra.mxu0 %v16050_v8 }
 0xf40   :  { %v5547_v40 = vpop.f32.mrb[145].mxu0  ;;  %12051 = vmatprep.subr.bf16.mxu0 %v16786_v37  ;;  %12021 = vmatprep.subr.bf16.mxu1 %v16786_v37 }
 0xf41   :  { %v16056_v48 = vpack.c.bf16 %v10681_v23, %v5547_v40  ;;  %v16181_v23 = vld [vmem:[#allocation4 + $0x228] ss:$12 sps:$4 sm:$0xff]   ;;  %v16183_v40 = vld [vmem:[#allocation4 + $0x230] ss:$12 sps:$4 sm:$0xff]  }
 0xf43   :  { %v10684_v35 = vpop.f32.mrb[146].mxu0  ;;  %12053 = vmatpush3.bf16.msra.mxu0 %v16056_v48 }
 0xf44   :  { %v5557_v39 = vpop.f32.mrb[147].mxu0  ;;  %12054 = vmatprep.subr.bf16.mxu0 %v16786_v37 }
 0xf45   :  { %v16060_v0 = vpack.c.bf16 %v10684_v35, %v5557_v39  ;;  %v16187_v35 = vld [vmem:[#allocation6 + $0x184] ss:$12 sps:$4 sm:$0xff]  }
 0xf46   :  { %v16196_v39 = vld [vmem:[%s16551_s7 + $0x7] ss:$0 sm:$0xff] }
 0xf47   :  { %v10687_v45 = vpop.f32.mrb[148].mxu0  ;;  %12023 = vmatpush3.bf16.xpose.msra.mxu1 %v16046_v36  ;;  %12056 = vmatpush3.bf16.msra.mxu0 %v16060_v0 }
 0xf48   :  { %v5567_v13 = vpop.f32.mrb[149].mxu0  ;;  %12057 = vmatprep.subr.bf16.mxu0 %v16786_v37  ;;  %12024 = vmatprep.subr.bf16.mxu1 %v16786_v37 }
 0xf49   :  { %v16066_v31 = vpack.c.bf16 %v10687_v45, %v5567_v13 }
 0xf4b   :  { %12059 = vmatpush3.bf16.msra.mxu0 %v16066_v31 }
 0xf4c   :  { %12092 = vmatprep.subr.bf16.mxu0 %v16786_v37 }
 0xf4f   :  { %12026 = vmatpush3.bf16.xpose.msra.mxu1 %v16050_v8 }
 0xf50   :  { %12027 = vmatprep.subr.bf16.mxu1 %v16786_v37 }
 0xf57   :  { %12029 = vmatpush3.bf16.xpose.msra.mxu1 %v16056_v48 }
 0xf58   :  { %12030 = vmatprep.subr.bf16.mxu1 %v16786_v37 }
 0xf5f   :  { %12032 = vmatpush3.bf16.xpose.msra.mxu1 %v16060_v0 }
 0xf60   :  { %12033 = vmatprep.subr.bf16.mxu1 %v16786_v37 }
 0xf67   :  { %12035 = vmatpush3.bf16.xpose.msra.mxu1 %v16066_v31 }
 0xf68   :  { %10723 = vmatprep.subr.mxu1 %v16962_v3 }
 0xf6e   :  { %10721 = vmatmul.mubr.f32.vlgmr.msra.gmra.mrb[132].mxu1 %v8198_v55 }
 0xf6f   :  { %10724 = vmatpush3.xpose.msra.mxu1 %v16081_v61  ;;  %10725 = vmatprep.mubr.msk.f32.mxu1 %vm16939_vm8, %v16962_v3 }
 0xf70   :  { %10728 = vmatprep.subr.mxu1 %v16962_v3 }
 0xf72   :  { %10726 = vmatmul.mubr.f32.vlgmr.msra.gmra.mrb[134].mxu1 %v16089_v60 }
 0xf73   :  { %10729 = vmatpush3.msk.msra.mxu1 %vm15996_vm9, %v16961_v53  ;;  %10730 = vmatprep.mubr.msk.f32.mxu1 %vm16939_vm8, %v16962_v3 }
 0xf74   :  { %12061 = vmatprep.subr.bf16.mxu1 %v16108_v20 }
0x1041   :  { %v16098_v28 = vpop.f32.mrb[132].mxu1 }
0x1042   :  { %v10722_v15 = vpop.f32.mrb[133].mxu1 }
0x1045   :  { %v5716_v63 = vpop.f32.mrb[134].mxu1 }
0x1046   :  { %v10727_v7 = vpop.f32.mrb[135].mxu1  ;;  %10731 = vmatmul.mubr.msk.f32.vlgmr.msra.gmra.mrb[136].mxu1 %vm5720_vm11, %v5716_v63 }
0x1047   :  { %6073 = vmatprep.mubr.f32.mxu1 %v16962_v3  ;;  %12063 = vmatpush1.bf16.msra.mxu1 %v16110_v2 }
0x1048   :  { %12065 = vmatprep.subr.bf16.mxu1 %v16112_v62 }
0x104b   :  { %12067 = vmatpush1.bf16.msra.mxu1 %v16116_v50 }
0x104c   :  { %12069 = vmatprep.subr.bf16.mxu1 %v16119_v12 }
0x104f   :  { %12071 = vmatpush1.bf16.msra.mxu1 %v16122_v42 }
0x1050   :  { %12073 = vmatprep.subr.bf16.mxu1 %v16140_v29 }
0x1053   :  { %12075 = vmatpush1.bf16.msra.mxu1 %v16142_v47 }
0x1054   :  { %12077 = vmatprep.subr.bf16.mxu1 %v16149_v16 }
0x1057   :  { %12079 = vmatpush1.bf16.msra.mxu1 %v16152_v22 }
0x1058   :  { %12081 = vmatprep.subr.bf16.mxu1 %v16159_v27 }
0x105b   :  { %12083 = vmatpush1.bf16.msra.mxu1 %v16161_v19 }
0x105c   :  { %12085 = vmatprep.subr.bf16.mxu1 %v16166_v33 }
0x105f   :  { %12087 = vmatpush1.bf16.msra.mxu1 %v16171_v24 }
0x1060   :  { %12089 = vmatprep.subr.bf16.mxu1 %v16177_v54 }
0x1063   :  { %12091 = vmatpush1.bf16.msra.mxu1 %v16181_v23 }
0x1064   :  { %12117 = vmatprep.subr.bf16.mxu1 %v16187_v35 }
0x1119   :  { %v5790_v14 = vpop.f32.mrb[136].mxu1 }
0x111a   :  { %v5794_v51 = vadd.f32 %v5790_v14, %v16098_v28  ;;  %v10732_v58 = vpop.f32.mrb[137].mxu1  ;;  %v16199_v14 = vld [vmem:[#allocation6 + $0x180] ss:$12 sps:$4 sm:$0xff]  }
0x111b   :  { %v16201_v58 = vld [vmem:[#allocation6 + $0x188] ss:$12 sps:$4 sm:$0xff]  }
0x111c   :  { %vm5795_vm12 = vcmp.gt.f32.partialorder %v5794_v51, 0.0  ;;  %v5796_v59 = vmul.f32 0.01, %v5794_v51 }
0x111e   :  { %v5797_v56 = vsel %vm5795_vm12, %v5794_v51, %v5796_v59  ;;  %v16203_v59 = vld [vmem:[#allocation6 + $0x19c] ss:$12 sps:$4 sm:$0xff]  }
0x111f   :  { %v5803_v18 = vrot.slane %v5797_v56, %v16963_v30 }
0x1121   :  { %v5804_v26 = vsel %vm15996_vm9, %v5803_v18, -1e+30  ;;  %v16207_v18 = vld [vmem:[#allocation6 + $0x198] ss:$12 sps:$4 sm:$0xff]  }
0x1122   :  { %5805 = vmax.xlane.f32.xlu1 %v5804_v26 }
0x11af   :  { %v5806_v6 = vpop.xlane.xlu1 %5805 }
0x11b0   :  { %v5807_v21 = vsub.f32 %v5804_v26, %v5806_v6  ;;  %v16209_v26 = vld [vmem:[#allocation6 + $0x1a0] ss:$12 sps:$4 sm:$0xff]  }
0x11b1   :  { %v16213_v6 = vld [vmem:[#allocation6 + $0x1b4] ss:$12 sps:$4 sm:$0xff]  }
0x11b2   :  { %v5808_v34 = vmul.f32 1.442695, %v5807_v21  ;;  %v16220_v21 = vld [vmem:[#allocation6 + $0x1b0] ss:$12 sps:$4 sm:$0xff]  }
0x11b4   :  { %13691 = vpow2.f32 %v5808_v34  ;;  %v16222_v34 = vld [vmem:[#allocation6 + $0x1b8] ss:$12 sps:$4 sm:$0xff]  }
0x11be   :  { %v13692_v1 = vpop.eup %13691 }
0x11bf   :  { %v5810_v38 = vsel %vm15996_vm9, %v13692_v1, 0.0  ;;  %v16226_v1 = vld [vmem:[#allocation6 + $0x1cc] ss:$12 sps:$4 sm:$0xff]  }
0x11c0   :  { %5811 = vadd.xlane.f32.xlu0 %v5810_v38 }
0x124d   :  { %v5812_v32 = vpop.xlane.xlu0 %5811 }
0x124e   :  { %v5813_v57 = vadd.f32 1e-16, %v5812_v32  ;;  %v16232_v32 = vld [vmem:[#allocation6 + $0x1d0] ss:$12 sps:$4 sm:$0xff]  }
0x1250   :  { %13693 = vrcp.f32 %v5813_v57  ;;  %v16236_v57 = vld [vmem:[#allocation6 + $0x1e4] ss:$12 sps:$4 sm:$0xff]  }
0x125a   :  { %v13694_v46 = vpop.eup %13693 }
0x125b   :  { %v5815_v9 = vmul.f32 %v13694_v46, %v5810_v38  ;;  %v16230_v38 = vld [vmem:[#allocation6 + $0x1c8] ss:$12 sps:$4 sm:$0xff]   ;;  %v16240_v46 = vld [vmem:[#allocation6 + $0x1e0] ss:$12 sps:$4 sm:$0xff]  }
0x125d   :  { %10766 = vmatmul.mubr.f32.vlgmr.msra.gmra.mrb[150].mxu0 %v5815_v9  ;;  %v16242_v9 = vld [vmem:[#allocation6 + $0x1e8] ss:$12 sps:$4 sm:$0xff]  }
0x125e   :  { %12094 = vmatpush3.bf16.msra.mxu0 %v16126_v41  ;;  %10800 = vmatprep.mubr.msk.f32.mxu0 %vm16939_vm8, %v16962_v3 }
0x125f   :  { %12095 = vmatprep.subr.bf16.mxu0 %v16786_v37 }
0x1262   :  { %12097 = vmatpush3.bf16.msra.mxu0 %v16129_v44 }
0x1263   :  { %12098 = vmatprep.subr.bf16.mxu0 %v16786_v37 }
0x1266   :  { %12100 = vmatpush3.bf16.msra.mxu0 %v16135_v25 }
0x1267   :  { %12101 = vmatprep.subr.bf16.mxu0 %v16786_v37 }
0x126a   :  { %12103 = vmatpush3.bf16.msra.mxu0 %v16144_v49 }
0x126b   :  { %12104 = vmatprep.subr.bf16.mxu0 %v16786_v37 }
0x126e   :  { %12106 = vmatpush3.bf16.msra.mxu0 %v16154_v43 }
0x126f   :  { %12107 = vmatprep.subr.bf16.mxu0 %v16786_v37 }
0x1272   :  { %12109 = vmatpush3.bf16.msra.mxu0 %v16164_v10 }
0x1273   :  { %12110 = vmatprep.subr.bf16.mxu0 %v16786_v37 }
0x1276   :  { %12112 = vmatpush3.bf16.msra.mxu0 %v16173_v17 }
0x1277   :  { %12113 = vmatprep.subr.bf16.mxu0 %v16786_v37 }
0x127a   :  { %12115 = vmatpush3.bf16.msra.mxu0 %v16183_v40 }
0x127b   :  { %12148 = vmatprep.subr.bf16.mxu0 %v16786_v37 }
0x1330   :  { %v5888_v45 = vpop.f32.mrb[150].mxu0 }
0x1331   :  { %v5889_v13 = vadd.f32 %v16196_v39, %v5888_v45  ;;  %v10767_v55 = vpop.f32.mrb[151].mxu0  ;;  %v16246_v45 = vld [vmem:[#allocation6 + $0x1fc] ss:$12 sps:$4 sm:$0xff]  }
0x1332   :  { %16964 = vst [vmem:[#allocation12_spill] sm:$0xff] %v16246_v45  ;;  %v16252_v55 = vld [vmem:[#allocation6 + $0x200] ss:$12 sps:$4 sm:$0xff]  }
0x1333   :  { %v5893_v15 = vmin.f32 %v5889_v13, 0.0  ;;  %vm5892_vm15 = vcmp.gt.f32.partialorder %v5889_v13, 0.0 }
0x1335   :  { %v5894_v63 = vmul.f32 1.442695, %v5893_v15  ;;  %v16256_v15 = vld [vmem:[#allocation6 + $0x214] ss:$12 sps:$4 sm:$0xff]  }
0x1337   :  { %13695 = vpow2.f32 %v5894_v63  ;;  %v16260_v63 = vld [vmem:[#allocation6 + $0x210] ss:$12 sps:$4 sm:$0xff]  }
0x1338   :  { %16965 = vst [vmem:[#allocation56_spill] sm:$0xff] %v16260_v63 }
0x1341   :  { %v13696_v7 = vpop.eup %13695 }
0x1342   :  { %v8204_v51 = vadd.f32 -1.0, %v13696_v7  ;;  %v16262_v7 = vld [vmem:[#allocation6 + $0x218] ss:$12 sps:$4 sm:$0xff]  }
0x1343   :  { %16966 = vst [vmem:[#allocation55_spill] sm:$0xff] %v16262_v7 }
0x1344   :  { %v5897_v56 = vsel %vm5892_vm15, %v5889_v13, %v8204_v51  ;;  %v16250_v13 = vld [vmem:[#allocation6 + $0x1f8] ss:$12 sps:$4 sm:$0xff]  }
0x1345   :  { %6074 = vmatmul.mubr.f32.vlgmr.msra.gmra.mrb[138].mxu1 %v5897_v56  ;;  %10801 = vmatmul.mubr.f32.vlgmr.msra.gmra.mrb[152].mxu0 %v5897_v56  ;;  %v16266_v51 = vld [vmem:[#allocation6 + $0x22c] ss:$12 sps:$4 sm:$0xff]   ;;  %v16270_v56 = vld [vmem:[#allocation6 + $0x228] ss:$12 sps:$4 sm:$0xff]  }
0x1346   :  { %12119 = vmatpush1.bf16.msra.mxu1 %v16199_v14  ;;  %12150 = vmatpush3.bf16.msra.mxu0 %v16201_v58  ;;  %16967 = vst [vmem:[#allocation62_spill] sm:$0xff] %v16266_v51  ;;  %16968 = vst [vmem:[#allocation11_spill] sm:$0xff] %v16270_v56 }
0x1347   :  { %12121 = vmatprep.subr.bf16.mxu1 %v16203_v59  ;;  %12151 = vmatprep.subr.bf16.mxu0 %v16786_v37 }
0x1348   :  { %6322 = vmatprep.mubr.f32.mxu1 %v16962_v3  ;;  %10835 = vmatprep.mubr.msk.f32.mxu0 %vm16939_vm8, %v16962_v3 }
0x134a   :  { %12123 = vmatpush1.bf16.msra.mxu1 %v16207_v18  ;;  %12153 = vmatpush3.bf16.msra.mxu0 %v16209_v26 }
0x134b   :  { %12125 = vmatprep.subr.bf16.mxu1 %v16213_v6  ;;  %12154 = vmatprep.subr.bf16.mxu0 %v16786_v37 }
0x134e   :  { %12127 = vmatpush1.bf16.msra.mxu1 %v16220_v21  ;;  %12156 = vmatpush3.bf16.msra.mxu0 %v16222_v34 }
0x134f   :  { %12129 = vmatprep.subr.bf16.mxu1 %v16226_v1  ;;  %12157 = vmatprep.subr.bf16.mxu0 %v16786_v37 }
0x1352   :  { %12131 = vmatpush1.bf16.msra.mxu1 %v16230_v38  ;;  %12159 = vmatpush3.bf16.msra.mxu0 %v16232_v32 }
0x1353   :  { %12133 = vmatprep.subr.bf16.mxu1 %v16236_v57  ;;  %12160 = vmatprep.subr.bf16.mxu0 %v16786_v37 }
0x1356   :  { %12135 = vmatpush1.bf16.msra.mxu1 %v16240_v46  ;;  %12162 = vmatpush3.bf16.msra.mxu0 %v16242_v9 }
0x1357   :  { %12137 = vmatprep.subr.bf16.mxu1 %v16246_v45  ;;  %12163 = vmatprep.subr.bf16.mxu0 %v16786_v37  ;;  %v16272_v45 = vld [vmem:[#allocation6 + $0x230] ss:$12 sps:$4 sm:$0xff]  }
0x1358   :  { %16969 = vst [vmem:[#allocation69_spill] sm:$0xff] %v16272_v45 }
0x135a   :  { %12139 = vmatpush1.bf16.msra.mxu1 %v16250_v13  ;;  %12165 = vmatpush3.bf16.msra.mxu0 %v16252_v55 }
0x135b   :  { %12141 = vmatprep.subr.bf16.mxu1 %v16256_v15  ;;  %12166 = vmatprep.subr.bf16.mxu0 %v16786_v37 }
0x135e   :  { %12143 = vmatpush1.bf16.msra.mxu1 %v16260_v63  ;;  %12168 = vmatpush3.bf16.msra.mxu0 %v16262_v7 }
0x135f   :  { %12145 = vmatprep.subr.bf16.mxu1 %v16266_v51  ;;  %12169 = vmatprep.subr.bf16.mxu0 %v16786_v37 }
0x1362   :  { %12147 = vmatpush1.bf16.msra.mxu1 %v16270_v56  ;;  %12171 = vmatpush3.bf16.msra.mxu0 %v16272_v45 }
0x1363   :  { %10838 = vmatprep.subr.mxu1 %v16962_v3  ;;  %12197 = vmatprep.subr.bf16.mxu0 %v16108_v20 }
0x1365   :  { %6323 = vmatmul.mubr.f32.vlgmr.msra.gmra.mrb[138].mxu1 %v16081_v61  ;;  %10836 = vmatmul.mubr.f32.vlgmr.msra.gmra.mrb[154].mxu0 %v16081_v61 }
0x1366   :  { %10840 = vmatprep.mubr.msk.f32.mxu1 %vm16939_vm8, %v16962_v3  ;;  %12199 = vmatpush1.bf16.msra.mxu0 %v16110_v2 }
0x1367   :  { %12201 = vmatprep.subr.bf16.mxu0 %v16112_v62  ;;  %6724 = vmatprep.mubr.f32.mxu0 %v16962_v3  ;;  %v8205_v62 = vld [vmem:[%s16555_s11 + $0xc] sm:$0x3f] }
0x136a   :  { %12203 = vmatpush1.bf16.msra.mxu0 %v16116_v50  ;;  %v5985_v50 = vrot.slane %v8205_v62, %v16963_v30 }
0x136b   :  { %12205 = vmatprep.subr.bf16.mxu0 %v16119_v12  ;;  %v16970_v12 = vld [vmem:[#allocation35_spill] sm:$0xff] }
0x136e   :  { %12207 = vmatpush1.bf16.msra.mxu0 %v16122_v42  ;;  %v6234_v42 = vrot.slane %v8205_v62, %v16970_v12 }
0x136f   :  { %12209 = vmatprep.subr.bf16.mxu0 %v16140_v29  ;;  %v16971_v29 = vld [vmem:[#allocation65_spill] sm:$0xff] }
0x1372   :  { %12211 = vmatpush1.bf16.msra.mxu0 %v16142_v47  ;;  %v5989_v47 = vrot.slane %v8205_v62, %v16971_v29 }
0x1373   :  { %12213 = vmatprep.subr.bf16.mxu0 %v16149_v16  ;;  %v16972_v16 = vld [vmem:[#allocation66_spill] sm:$0xff] }
0x1376   :  { %12215 = vmatpush1.bf16.msra.mxu0 %v16152_v22  ;;  %v6238_v22 = vrot.slane %v8205_v62, %v16972_v16 }
0x1377   :  { %12217 = vmatprep.subr.bf16.mxu0 %v16159_v27  ;;  %v6000_v27 = vrot.slane %v5985_v50, %v16963_v30 }
0x137a   :  { %12219 = vmatpush1.bf16.msra.mxu0 %v16161_v19  ;;  %v6249_v19 = vrot.slane %v6234_v42, %v16970_v12 }
0x137b   :  { %12221 = vmatprep.subr.bf16.mxu0 %v16166_v33  ;;  %v6004_v33 = vrot.slane %v5989_v47, %v16963_v30 }
0x137e   :  { %12223 = vmatpush1.bf16.msra.mxu0 %v16171_v24  ;;  %v6253_v24 = vrot.slane %v6238_v22, %v16970_v12  ;;  %v16973_v22 = vld [vmem:[#allocation67_spill] sm:$0xff] }
0x137f   :  { %12225 = vmatprep.subr.bf16.mxu0 %v16177_v54  ;;  %v16312_v54 = vadd.f32 %v6249_v19, %v6000_v27  ;;  %v6242_v27 = vrot.slane %v8205_v62, %v16973_v22  ;;  %v16974_v19 = vld [vmem:[#allocation58_spill] sm:$0xff] }
0x1380   :  { %v5993_v7 = vrot.slane %v8205_v62, %v16974_v19 }
0x1382   :  { %12227 = vmatpush1.bf16.msra.mxu0 %v16181_v23 }
0x1383   :  { %12253 = vmatprep.subr.bf16.mxu0 %v16187_v35 }
0x1418   :  { %v6146_v20 = vpop.f32.mrb[152].mxu0 }
0x1419   :  { %v10802_v2 = vpop.f32.mrb[153].mxu0 }
0x141a   :  { %v16314_v2 = vadd.f32 %v6253_v24, %v6004_v33  ;;  %v16321_v33 = vrot.slane %v6242_v27, %v16970_v12  ;;  %v16324_v24 = vrot.slane %v5993_v7, %v16963_v30 }
0x1438   :  { %v6324_v23 = vpop.f32.mrb[138].mxu1  ;;  %v6395_v35 = vpop.f32.mrb[154].mxu0 }
0x1439   :  { %v12653_v45 = vadd.f32 %v16312_v54, %v6324_v23  ;;  %v6326_v56 = vpop.f32.mrb[139].mxu1  ;;  %v10837_v29 = vpop.f32.mrb[155].mxu0  ;;  %v6147_v23 = vadd.f32 %v6146_v20, %v16324_v24 }
0x143a   :  { %v12655_v16 = vadd.f32 %v16314_v2, %v6326_v56  ;;  %v6396_v56 = vadd.f32 %v6395_v35, %v16321_v33 }
0x143b   :  { %v8206_v51 = vmul.f32 -1.442695, %v12653_v45 }
0x143c   :  { %v8207_v50 = vmul.f32 -1.442695, %v12655_v16 }
0x143d   :  { %13697 = vpow2.f32 %v8206_v51 }
0x143e   :  { %13699 = vpow2.f32 %v8207_v50 }
0x1447   :  { %v13698_v42 = vpop.eup %13697 }
0x1448   :  { %v6403_v47 = vadd.f32 1.0, %v13698_v42  ;;  %v13700_v63 = vpop.eup %13699 }
0x1449   :  { %v6410_v45 = vadd.f32 1.0, %v13700_v63 }
0x144a   :  { %13701 = vrcp.f32 %v6403_v47 }
0x144b   :  { %13703 = vrcp.f32 %v6410_v45 }
0x1454   :  { %v13702_v51 = vpop.eup %13701 }
0x1455   :  { %v6413_v29 = vmul.f32 %v13702_v51, %v6396_v56  ;;  %v13704_v50 = vpop.eup %13703  ;;  %v8764_v56 = vld [vmem:[#allocation2 + $0x210] sm:$0xff]   ;;  %v8758_v51 = vld [vmem:[#allocation2 + $0x1d8] sm:$0xff]  }
0x1456   :  { %v6416_v42 = vsub.f32 1.0, %v13704_v50  ;;  %v6418_v12 = vmul.f32 %v13704_v50, %v16081_v61  ;;  %v8760_v50 = vld [vmem:[#allocation2 + $0x1e8] sm:$0xff]  }
0x1457   :  { %v6414_v16 = vadd.f32 %v6413_v29, %v6147_v23  ;;  %v8765_v23 = vld [vmem:[#allocation2 + $0x218] sm:$0xff]   ;;  %v8759_v29 = vld [vmem:[#allocation2 + $0x1e0] sm:$0xff]  }
0x1459   :  { %13705 = vtanh.f32 %v6414_v16  ;;  %v8766_v16 = vld [vmem:[#allocation2 + $0x220] sm:$0xff]  }
0x1463   :  { %v13706_v62 = vpop.eup %13705 }
0x1464   :  { %v6417_v47 = vmul.f32 %v13706_v62, %v6416_v42  ;;  %v8767_v42 = vld [vmem:[#allocation2 + $0x228] sm:$0xff]   ;;  %v8761_v62 = vld [vmem:[#allocation2 + $0x1f0] sm:$0xff]  }
0x1466   :  { %v6419_v22 = vadd.f32 %v6418_v12, %v6417_v47  ;;  %v8768_v47 = vld [vmem:[#allocation2 + $0x230] sm:$0xff]   ;;  %v8762_v12 = vld [vmem:[#allocation2 + $0x1f8] sm:$0xff]  }
0x1468   :  { %v16329_v27 = vmax.f32 %v6419_v22, 0.0  ;;  %v8769_v22 = vld [vmem:[#allocation2 + $0x238] sm:$0xff]  }
0x146a   :  { %10839 = vmatpush3.xpose.msra.mxu1 %v16329_v27 }
0x146b   :  { %10843 = vmatprep.subr.mxu1 %v16962_v3 }
0x146d   :  { %10841 = vmatmul.mubr.f32.vlgmr.msra.gmra.mrb[140].mxu1 %v16089_v60 }
0x146e   :  { %10844 = vmatpush3.msk.msra.mxu1 %vm15996_vm9, %v16961_v53  ;;  %10845 = vmatprep.mubr.msk.f32.mxu1 %vm16939_vm8, %v16962_v3 }
0x146f   :  { %12172 = vmatprep.subr.bf16.mxu1 %v16786_v37 }
0x1540   :  { %v6487_v63 = vpop.f32.mrb[140].mxu1 }
0x1541   :  { %v10842_v61 = vpop.f32.mrb[141].mxu1  ;;  %10846 = vmatmul.mubr.msk.f32.vlgmr.msra.gmra.mrb[142].mxu1 %vm5720_vm11, %v6487_v63 }
0x1542   :  { %12174 = vmatpush3.bf16.msra.mxu1 %v16030_v11  ;;  %10880 = vmatprep.mubr.msk.f32.mxu1 %vm16939_vm8, %v16962_v3 }
0x1543   :  { %12175 = vmatprep.subr.bf16.mxu1 %v16786_v37 }
0x1546   :  { %12177 = vmatpush3.bf16.msra.mxu1 %v16036_v52 }
0x1547   :  { %12178 = vmatprep.subr.bf16.mxu1 %v16786_v37 }
0x154a   :  { %12180 = vmatpush3.bf16.msra.mxu1 %v16040_v5 }
0x154b   :  { %12181 = vmatprep.subr.bf16.mxu1 %v16786_v37 }
0x154e   :  { %12183 = vmatpush3.bf16.msra.mxu1 %v16046_v36 }
0x154f   :  { %12184 = vmatprep.subr.bf16.mxu1 %v16786_v37 }
0x1552   :  { %12186 = vmatpush3.bf16.msra.mxu1 %v16050_v8 }
0x1553   :  { %12187 = vmatprep.subr.bf16.mxu1 %v16786_v37 }
0x1556   :  { %12189 = vmatpush3.bf16.msra.mxu1 %v16056_v48 }
0x1557   :  { %12190 = vmatprep.subr.bf16.mxu1 %v16786_v37 }
0x155a   :  { %12192 = vmatpush3.bf16.msra.mxu1 %v16060_v0 }
0x155b   :  { %12193 = vmatprep.subr.bf16.mxu1 %v16786_v37 }
0x155e   :  { %12195 = vmatpush3.bf16.msra.mxu1 %v16066_v31 }
0x155f   :  { %12228 = vmatprep.subr.bf16.mxu1 %v16786_v37 }
0x1614   :  { %v6560_v53 = vpop.f32.mrb[142].mxu1 }
0x1615   :  { %v6564_v11 = vadd.f32 %v6560_v53, %v16098_v28  ;;  %v10847_v52 = vpop.f32.mrb[143].mxu1 }
0x1617   :  { %vm6565_vm1 = vcmp.gt.f32.partialorder %v6564_v11, 0.0  ;;  %v6566_v5 = vmul.f32 0.01, %v6564_v11 }
0x1619   :  { %v6567_v36 = vsel %vm6565_vm1, %v6564_v11, %v6566_v5 }
0x161a   :  { %v6571_v8 = vrot.slane %v6567_v36, %v16963_v30 }
0x161c   :  { %v6572_v48 = vsel %vm15996_vm9, %v6571_v8, -1e+30 }
0x161d   :  { %6573 = vmax.xlane.f32.xlu1 %v6572_v48 }
0x16aa   :  { %v6574_v0 = vpop.xlane.xlu1 %6573 }
0x16ab   :  { %v6575_v60 = vsub.f32 %v6572_v48, %v6574_v0 }
0x16ad   :  { %v6576_v7 = vmul.f32 1.442695, %v6575_v60 }
0x16af   :  { %13707 = vpow2.f32 %v6576_v7 }
0x16b9   :  { %v13708_v31 = vpop.eup %13707 }
0x16ba   :  { %v6578_v20 = vsel %vm15996_vm9, %v13708_v31, 0.0 }
0x16bb   :  { %6579 = vadd.xlane.f32.xlu0 %v6578_v20 }
0x1748   :  { %v6580_v28 = vpop.xlane.xlu0 %6579 }
0x1749   :  { %v6581_v35 = vadd.f32 1e-16, %v6580_v28 }
0x174b   :  { %13709 = vrcp.f32 %v6581_v35 }
0x1755   :  { %v13710_v19 = vpop.eup %13709 }
0x1756   :  { %v6583_v45 = vmul.f32 %v13710_v19, %v6578_v20 }
0x1758   :  { %10881 = vmatmul.mubr.f32.vlgmr.msra.gmra.mrb[144].mxu1 %v6583_v45 }
0x1759   :  { %12230 = vmatpush3.bf16.msra.mxu1 %v16126_v41  ;;  %10915 = vmatprep.mubr.msk.f32.mxu1 %vm16939_vm8, %v16962_v3 }
0x175a   :  { %12231 = vmatprep.subr.bf16.mxu1 %v16786_v37 }
0x175d   :  { %12233 = vmatpush3.bf16.msra.mxu1 %v16129_v44 }
0x175e   :  { %12234 = vmatprep.subr.bf16.mxu1 %v16786_v37 }
0x1761   :  { %12236 = vmatpush3.bf16.msra.mxu1 %v16135_v25 }
0x1762   :  { %12237 = vmatprep.subr.bf16.mxu1 %v16786_v37 }
0x1765   :  { %12239 = vmatpush3.bf16.msra.mxu1 %v16144_v49 }
0x1766   :  { %12240 = vmatprep.subr.bf16.mxu1 %v16786_v37 }
0x1769   :  { %12242 = vmatpush3.bf16.msra.mxu1 %v16154_v43 }
0x176a   :  { %12243 = vmatprep.subr.bf16.mxu1 %v16786_v37 }
0x176d   :  { %12245 = vmatpush3.bf16.msra.mxu1 %v16164_v10 }
0x176e   :  { %12246 = vmatprep.subr.bf16.mxu1 %v16786_v37 }
0x1771   :  { %12248 = vmatpush3.bf16.msra.mxu1 %v16173_v17  ;;  %v16975_v17 = vld [vmem:[#allocation12_spill] sm:$0xff] }
0x1772   :  { %12249 = vmatprep.subr.bf16.mxu1 %v16786_v37 }
0x1775   :  { %12251 = vmatpush3.bf16.msra.mxu1 %v16183_v40  ;;  %v16976_v40 = vld [vmem:[#allocation56_spill] sm:$0xff] }
0x1776   :  { %12284 = vmatprep.subr.bf16.mxu1 %v16786_v37 }
0x182b   :  { %v6650_v4 = vpop.f32.mrb[144].mxu1 }
0x182c   :  { %v6651_v30 = vadd.f32 %v16196_v39, %v6650_v4  ;;  %v10882_v41 = vpop.f32.mrb[145].mxu1  ;;  %v16977_v39 = vld [vmem:[#allocation55_spill] sm:$0xff] }
0x182e   :  { %v6655_v44 = vmin.f32 %v6651_v30, 0.0  ;;  %vm6654_vm10 = vcmp.gt.f32.partialorder %v6651_v30, 0.0 }
0x1830   :  { %v6656_v25 = vmul.f32 1.442695, %v6655_v44 }
0x1832   :  { %13711 = vpow2.f32 %v6656_v25  ;;  %v8548_v25 = vld [vmem:[#allocation2 + $0x280] sm:$0xff]  }
0x183c   :  { %v13712_v49 = vpop.eup %13711 }
0x183d   :  { %v8210_v43 = vadd.f32 -1.0, %v13712_v49  ;;  %v8516_v49 = vld [vmem:[#allocation2 + $0x240] sm:$0xff]  }
0x183f   :  { %v6659_v10 = vsel %vm6654_vm10, %v6651_v30, %v8210_v43  ;;  %v8770_v43 = vld [vmem:[#allocation2 + $0x248] sm:$0xff]  }
0x1840   :  { %6725 = vmatmul.mubr.f32.vlgmr.msra.gmra.mrb[156].mxu0 %v6659_v10  ;;  %10916 = vmatmul.mubr.f32.vlgmr.msra.gmra.mrb[146].mxu1 %v6659_v10 }
0x1841   :  { %12255 = vmatpush1.bf16.msra.mxu0 %v16199_v14  ;;  %12286 = vmatpush3.bf16.msra.mxu1 %v16201_v58  ;;  %v16978_v14 = vld [vmem:[#allocation62_spill] sm:$0xff]  ;;  %v16979_v58 = vld [vmem:[#allocation11_spill] sm:$0xff] }
0x1842   :  { %12257 = vmatprep.subr.bf16.mxu0 %v16203_v59  ;;  %12287 = vmatprep.subr.bf16.mxu1 %v16786_v37  ;;  %v16980_v59 = vld [vmem:[#allocation69_spill] sm:$0xff] }
0x1843   :  { %6865 = vmatprep.mubr.f32.mxu0 %v16962_v3  ;;  %10950 = vmatprep.mubr.msk.f32.mxu1 %vm16939_vm8, %v16962_v3 }
0x1845   :  { %12259 = vmatpush1.bf16.msra.mxu0 %v16207_v18  ;;  %12289 = vmatpush3.bf16.msra.mxu1 %v16209_v26  ;;  %v8420_v18 = vld [vmem:[#allocation2 + $0x180] sm:$0xff]   ;;  %v8749_v26 = vld [vmem:[#allocation2 + $0x188] sm:$0xff]  }
0x1846   :  { %12261 = vmatprep.subr.bf16.mxu0 %v16213_v6  ;;  %12290 = vmatprep.subr.bf16.mxu1 %v16786_v37  ;;  %v8750_v6 = vld [vmem:[#allocation2 + $0x190] sm:$0xff]  }
0x1849   :  { %12263 = vmatpush1.bf16.msra.mxu0 %v16220_v21  ;;  %12292 = vmatpush3.bf16.msra.mxu1 %v16222_v34  ;;  %v8751_v21 = vld [vmem:[#allocation2 + $0x198] sm:$0xff]   ;;  %v8752_v34 = vld [vmem:[#allocation2 + $0x1a0] sm:$0xff]  }
0x184a   :  { %12265 = vmatprep.subr.bf16.mxu0 %v16226_v1  ;;  %12293 = vmatprep.subr.bf16.mxu1 %v16786_v37  ;;  %v8753_v1 = vld [vmem:[#allocation2 + $0x1a8] sm:$0xff]  }
0x184d   :  { %12267 = vmatpush1.bf16.msra.mxu0 %v16230_v38  ;;  %12295 = vmatpush3.bf16.msra.mxu1 %v16232_v32  ;;  %v8754_v38 = vld [vmem:[#allocation2 + $0x1b0] sm:$0xff]   ;;  %v8755_v32 = vld [vmem:[#allocation2 + $0x1b8] sm:$0xff]  }
0x184e   :  { %12269 = vmatprep.subr.bf16.mxu0 %v16236_v57  ;;  %12296 = vmatprep.subr.bf16.mxu1 %v16786_v37  ;;  %v6964_v57 = vld [vmem:[%s16549_s5] sm:$0xff] }
0x1851   :  { %12271 = vmatpush1.bf16.msra.mxu0 %v16240_v46  ;;  %12298 = vmatpush3.bf16.msra.mxu1 %v16242_v9  ;;  %v8452_v46 = vld [vmem:[#allocation2 + $0x1c0] sm:$0xff]  }
0x1852   :  { %12273 = vmatprep.subr.bf16.mxu0 %v16975_v17  ;;  %12299 = vmatprep.subr.bf16.mxu1 %v16786_v37  ;;  %v8484_v9 = vld [vmem:[#allocation2 + $0x200] sm:$0xff]  }
0x1855   :  { %12275 = vmatpush1.bf16.msra.mxu0 %v16250_v13  ;;  %12301 = vmatpush3.bf16.msra.mxu1 %v16252_v55  ;;  %v8756_v13 = vld [vmem:[#allocation2 + $0x1c8] sm:$0xff]  }
0x1856   :  { %12277 = vmatprep.subr.bf16.mxu0 %v16256_v15  ;;  %12302 = vmatprep.subr.bf16.mxu1 %v16786_v37  ;;  %v8763_v55 = vld [vmem:[#allocation2 + $0x208] sm:$0xff]   ;;  %v8757_v15 = vld [vmem:[#allocation2 + $0x1d0] sm:$0xff]  }
0x1859   :  { %12279 = vmatpush1.bf16.msra.mxu0 %v16976_v40  ;;  %12304 = vmatpush3.bf16.msra.mxu1 %v16977_v39  ;;  %v8778_v40 = vld [vmem:[#allocation2 + $0x290] sm:$0xff]  }
0x185a   :  { %12281 = vmatprep.subr.bf16.mxu0 %v16978_v14  ;;  %12305 = vmatprep.subr.bf16.mxu1 %v16786_v37  ;;  %v8771_v39 = vld [vmem:[#allocation2 + $0x250] sm:$0xff]  }
0x185d   :  { %12283 = vmatpush1.bf16.msra.mxu0 %v16979_v58  ;;  %12307 = vmatpush3.bf16.msra.mxu1 %v16980_v59 }
0x185e   :  { %12308 = vmatprep.subr.bf16.mxu0 %v16786_v37  ;;  %12332 = vmatprep.subr.bf16.mxu1 %v16786_v37 }
0x1860   :  { %6866 = vmatmul.mubr.f32.vlgmr.msra.gmra.mrb[156].mxu0 %v16329_v27  ;;  %10951 = vmatmul.mubr.f32.vlgmr.msra.gmra.mrb[148].mxu1 %v16329_v27 }
0x1861   :  { %12310 = vmatpush3.bf16.msra.mxu0 %v8420_v18  ;;  %10985 = vmatprep.mubr.msk.f32.mxu0 %vm16939_vm8, %v16962_v3  ;;  %v8779_v18 = vld [vmem:[#allocation2 + $0x298] sm:$0xff]  }
0x1862   :  { %12311 = vmatprep.subr.bf16.mxu0 %v16786_v37  ;;  %11020 = vmatprep.mubr.msk.f32.mxu1 %vm16939_vm8, %v16962_v3 }
0x1863   :  { %12334 = vmatpush3.bf16.msra.mxu1 %v8452_v46  ;;  %v8216_v46 = vld [vmem:[%s16551_s7 + $0x9] ss:$0 sm:$0xff] }
0x1864   :  { %12335 = vmatprep.subr.bf16.mxu1 %v16786_v37 }
0x1865   :  { %12313 = vmatpush3.bf16.msra.mxu0 %v8749_v26  ;;  %v8772_v26 = vld [vmem:[#allocation2 + $0x258] sm:$0xff]  }
0x1866   :  { %12314 = vmatprep.subr.bf16.mxu0 %v16786_v37 }
0x1867   :  { %12337 = vmatpush3.bf16.msra.mxu1 %v8756_v13 }
0x1868   :  { %12338 = vmatprep.subr.bf16.mxu1 %v16786_v37 }
0x1869   :  { %12316 = vmatpush3.bf16.msra.mxu0 %v8750_v6  ;;  %v8780_v6 = vld [vmem:[#allocation2 + $0x2a0] sm:$0xff]  }
0x186a   :  { %12317 = vmatprep.subr.bf16.mxu0 %v16786_v37 }
0x186b   :  { %12340 = vmatpush3.bf16.msra.mxu1 %v8757_v15 }
0x186c   :  { %12341 = vmatprep.subr.bf16.mxu1 %v16786_v37 }
0x186d   :  { %12319 = vmatpush3.bf16.msra.mxu0 %v8751_v21  ;;  %v8773_v21 = vld [vmem:[#allocation2 + $0x260] sm:$0xff]  }
0x186e   :  { %12320 = vmatprep.subr.bf16.mxu0 %v16786_v37 }
0x186f   :  { %12343 = vmatpush3.bf16.msra.mxu1 %v8758_v51 }
0x1870   :  { %12344 = vmatprep.subr.bf16.mxu1 %v16786_v37 }
0x1871   :  { %12322 = vmatpush3.bf16.msra.mxu0 %v8752_v34  ;;  %v8774_v34 = vld [vmem:[#allocation2 + $0x268] sm:$0xff]  }
0x1872   :  { %12323 = vmatprep.subr.bf16.mxu0 %v16786_v37 }
0x1873   :  { %12346 = vmatpush3.bf16.msra.mxu1 %v8759_v29 }
0x1874   :  { %12347 = vmatprep.subr.bf16.mxu1 %v16786_v37 }
0x1875   :  { %12325 = vmatpush3.bf16.msra.mxu0 %v8753_v1  ;;  %v8782_v1 = vld [vmem:[#allocation2 + $0x2b0] sm:$0xff]  }
0x1876   :  { %12326 = vmatprep.subr.bf16.mxu0 %v16786_v37 }
0x1877   :  { %12349 = vmatpush3.bf16.msra.mxu1 %v8760_v50  ;;  %v8612_v50 = vld [vmem:[#allocation2 + $0x300] sm:$0xff]  }
0x1878   :  { %12350 = vmatprep.subr.bf16.mxu1 %v16786_v37 }
0x1879   :  { %12328 = vmatpush3.bf16.msra.mxu0 %v8754_v38  ;;  %v8775_v38 = vld [vmem:[#allocation2 + $0x270] sm:$0xff]  }
0x187a   :  { %12329 = vmatprep.subr.bf16.mxu0 %v16786_v37 }
0x187b   :  { %12352 = vmatpush3.bf16.msra.mxu1 %v8761_v62  ;;  %v8791_v62 = vld [vmem:[#allocation2 + $0x308] sm:$0xff]  }
0x187c   :  { %12353 = vmatprep.subr.bf16.mxu1 %v16786_v37 }
0x187d   :  { %12331 = vmatpush3.bf16.msra.mxu0 %v8755_v32  ;;  %v8783_v32 = vld [vmem:[#allocation2 + $0x2b8] sm:$0xff]  }
0x187e   :  { %12356 = vmatprep.subr.bf16.mxu0 %v16786_v37 }
0x187f   :  { %12355 = vmatpush3.bf16.msra.mxu1 %v8762_v12  ;;  %v8792_v12 = vld [vmem:[#allocation2 + $0x310] sm:$0xff]  }
0x1880   :  { %10986 = vmatmul.mubr.f32.vlgmr.msra.gmra.mrb[158].mxu0 %v6964_v57  ;;  %12380 = vmatprep.subr.bf16.mxu1 %v16786_v37  ;;  %v8776_v57 = vld [vmem:[#allocation2 + $0x278] sm:$0xff]  }
0x1881   :  { %11055 = vmatprep.mubr.msk.f32.mxu0 %vm16939_vm8, %v16962_v3  ;;  %12358 = vmatpush3.bf16.msra.mxu0 %v8484_v9  ;;  %v8218_v9 = vld [vmem:[%s16551_s7 + $0xa] ss:$0 sm:$0xff] }
0x1882   :  { %12359 = vmatprep.subr.bf16.mxu0 %v16786_v37 }
0x1885   :  { %12361 = vmatpush3.bf16.msra.mxu0 %v8763_v55 }
0x1886   :  { %12362 = vmatprep.subr.bf16.mxu0 %v16786_v37 }
0x1889   :  { %12364 = vmatpush3.bf16.msra.mxu0 %v8764_v56 }
0x188a   :  { %12365 = vmatprep.subr.bf16.mxu0 %v16786_v37 }
0x188d   :  { %12367 = vmatpush3.bf16.msra.mxu0 %v8765_v23 }
0x188e   :  { %12368 = vmatprep.subr.bf16.mxu0 %v16786_v37 }
0x1891   :  { %12370 = vmatpush3.bf16.msra.mxu0 %v8766_v16 }
0x1892   :  { %12371 = vmatprep.subr.bf16.mxu0 %v16786_v37 }
0x1895   :  { %12373 = vmatpush3.bf16.msra.mxu0 %v8767_v42  ;;  %v8580_v42 = vld [vmem:[#allocation2 + $0x2c0] sm:$0xff]  }
0x1896   :  { %12374 = vmatprep.subr.bf16.mxu0 %v16786_v37 }
0x1899   :  { %12376 = vmatpush3.bf16.msra.mxu0 %v8768_v47  ;;  %v8784_v47 = vld [vmem:[#allocation2 + $0x2c8] sm:$0xff]  }
0x189a   :  { %12377 = vmatprep.subr.bf16.mxu0 %v16786_v37 }
0x189d   :  { %12379 = vmatpush3.bf16.msra.mxu0 %v8769_v22  ;;  %v8785_v22 = vld [vmem:[#allocation2 + $0x2d0] sm:$0xff]  }
0x189e   :  { %12404 = vmatprep.subr.bf16.mxu0 %v16786_v37 }
0x1913   :  { %v6797_v63 = vpop.f32.mrb[146].mxu1 }
0x1914   :  { %v10917_v61 = vpop.f32.mrb[147].mxu1  ;;  %v6798_v19 = vadd.f32 %v6797_v63, %v16324_v24  ;;  %v8777_v24 = vld [vmem:[#allocation2 + $0x288] sm:$0xff]   ;;  %v8793_v63 = vld [vmem:[#allocation2 + $0x318] sm:$0xff]  }
0x1915   :  { %v8786_v61 = vld [vmem:[#allocation2 + $0x2d8] sm:$0xff]  }
0x1933   :  { %v6867_v53 = vpop.f32.mrb[156].mxu0  ;;  %v6938_v11 = vpop.f32.mrb[148].mxu1 }
0x1934   :  { %v12657_v52 = vadd.f32 %v16312_v54, %v6867_v53  ;;  %v6869_v5 = vpop.f32.mrb[157].mxu0  ;;  %v10952_v36 = vpop.f32.mrb[149].mxu1  ;;  %v6939_v28 = vadd.f32 %v6938_v11, %v16321_v33  ;;  %v8214_v54 = vld [vmem:[%s16551_s7 + $0x8] ss:$0 sm:$0xff]  ;;  %v8794_v53 = vld [vmem:[#allocation2 + $0x320] sm:$0xff]  }
0x1935   :  { %v12659_v48 = vadd.f32 %v16314_v2, %v6869_v5  ;;  %v8787_v11 = vld [vmem:[#allocation2 + $0x2e0] sm:$0xff]   ;;  %v8788_v5 = vld [vmem:[#allocation2 + $0x2e8] sm:$0xff]   ;;  %v8796_v36 = vld [vmem:[#allocation2 + $0x330] sm:$0xff]  }
0x1936   :  { %v8211_v8 = vmul.f32 -1.442695, %v12657_v52  ;;  %v8795_v52 = vld [vmem:[#allocation2 + $0x328] sm:$0xff]  }
0x1937   :  { %v8212_v0 = vmul.f32 -1.442695, %v12659_v48 }
0x1938   :  { %13713 = vpow2.f32 %v8211_v8  ;;  %v8797_v8 = vld [vmem:[#allocation2 + $0x338] sm:$0xff]  }
0x1939   :  { %13715 = vpow2.f32 %v8212_v0  ;;  %v8789_v0 = vld [vmem:[#allocation2 + $0x2f0] sm:$0xff]  }
0x1942   :  { %v13714_v60 = vpop.eup %13713 }
0x1943   :  { %v6946_v7 = vadd.f32 1.0, %v13714_v60  ;;  %v13716_v31 = vpop.eup %13715  ;;  %v8790_v60 = vld [vmem:[#allocation2 + $0x2f8] sm:$0xff]  }
0x1944   :  { %v6953_v20 = vadd.f32 1.0, %v13716_v31  ;;  %v8798_v31 = vld [vmem:[#allocation2 + $0x348] sm:$0xff]  }
0x1945   :  { %13717 = vrcp.f32 %v6946_v7  ;;  %v8644_v7 = vld [vmem:[#allocation2 + $0x340] sm:$0xff]  }
0x1946   :  { %13719 = vrcp.f32 %v6953_v20  ;;  %v8799_v20 = vld [vmem:[#allocation2 + $0x350] sm:$0xff]  }
0x194f   :  { %v13718_v35 = vpop.eup %13717 }
0x1950   :  { %v6956_v45 = vmul.f32 %v13718_v35, %v6939_v28  ;;  %v13720_v33 = vpop.eup %13719  ;;  %v8800_v28 = vld [vmem:[#allocation2 + $0x358] sm:$0xff]   ;;  %v8801_v35 = vld [vmem:[#allocation2 + $0x360] sm:$0xff]  }
0x1951   :  { %v6959_v10 = vsub.f32 1.0, %v13720_v33  ;;  %v6961_v58 = vmul.f32 %v13720_v33, %v16329_v27  ;;  %v8781_v27 = vld [vmem:[#allocation2 + $0x2a8] sm:$0xff]  }
0x1952   :  { %v6957_v2 = vadd.f32 %v6956_v45, %v6798_v19  ;;  %v8802_v19 = vld [vmem:[#allocation2 + $0x368] sm:$0xff]  }
0x1953   :  { %v7072_v4 = vpop.f32.mrb[158].mxu0 }
0x1954   :  { %13721 = vtanh.f32 %v6957_v2  ;;  %v7073_v30 = vadd.f32 %v8214_v54, %v7072_v4  ;;  %v10987_v41 = vpop.f32.mrb[159].mxu0  ;;  %v8220_v2 = vld [vmem:[%s16551_s7 + $0xb] ss:$0 sm:$0xff] }
0x1956   :  { %v7076_v44 = vmax.f32 %v7073_v30, 0.0 }
0x1958   :  { %11021 = vmatmul.mubr.f32.vlgmr.msra.gmra.mrb[150].mxu1 %v7076_v44  ;;  %11056 = vmatmul.mubr.f32.vlgmr.msra.gmra.mrb[160].mxu0 %v7076_v44 }
0x1959   :  { %12382 = vmatpush3.bf16.msra.mxu1 %v8548_v25  ;;  %12406 = vmatpush3.bf16.msra.mxu0 %v8516_v49 }
0x195a   :  { %12383 = vmatprep.subr.bf16.mxu1 %v16786_v37  ;;  %12407 = vmatprep.subr.bf16.mxu0 %v16786_v37 }
0x195b   :  { %11090 = vmatprep.mubr.msk.f32.mxu1 %vm16939_vm8, %v16962_v3  ;;  %11125 = vmatprep.mubr.msk.f32.mxu0 %vm16939_vm8, %v16962_v3 }
0x195d   :  { %12385 = vmatpush3.bf16.msra.mxu1 %v8777_v24  ;;  %12409 = vmatpush3.bf16.msra.mxu0 %v8770_v43  ;;  %v8803_v24 = vld [vmem:[#allocation2 + $0x370] sm:$0xff]   ;;  %v8804_v43 = vld [vmem:[#allocation2 + $0x378] sm:$0xff]  }
0x195e   :  { %v13722_v17 = vpop.eup %13721  ;;  %12386 = vmatprep.subr.bf16.mxu1 %v16786_v37  ;;  %12410 = vmatprep.subr.bf16.mxu0 %v16786_v37 }
0x195f   :  { %v6960_v14 = vmul.f32 %v13722_v17, %v6959_v10  ;;  %v8676_v10 = vld [vmem:[#allocation2 + $0x380] sm:$0xff]   ;;  %v8805_v17 = vld [vmem:[#allocation2 + $0x388] sm:$0xff]  }
0x1961   :  { %12388 = vmatpush3.bf16.msra.mxu1 %v8778_v40  ;;  %12412 = vmatpush3.bf16.msra.mxu0 %v8771_v39  ;;  %v16470_v59 = vadd.f32 %v6961_v58, %v6960_v14  ;;  %v8806_v40 = vld [vmem:[#allocation2 + $0x390] sm:$0xff]   ;;  %v8808_v39 = vld [vmem:[#allocation2 + $0x3a0] sm:$0xff]   ;;  %v8809_v14 = vld [vmem:[#allocation2 + $0x3a8] sm:$0xff]  }
0x1962   :  { %12389 = vmatprep.subr.bf16.mxu1 %v16786_v37  ;;  %12413 = vmatprep.subr.bf16.mxu0 %v16786_v37  ;;  %v8810_v58 = vld [vmem:[#allocation2 + $0x3b0] sm:$0xff]  }
0x1963   :  { %v6963_v48 = vmax.f32 %v16470_v59, 0.0 }
0x1965   :  { %12391 = vmatpush3.bf16.msra.mxu1 %v8779_v18  ;;  %12415 = vmatpush3.bf16.msra.mxu0 %v8772_v26  ;;  %v8222_v18 = vld [vmem:[%s16551_s7 + $0xc] ss:$0 sm:$0xff] }
0x1966   :  { %12392 = vmatprep.subr.bf16.mxu1 %v16786_v37  ;;  %12416 = vmatprep.subr.bf16.mxu0 %v16786_v37 }
0x1969   :  { %12394 = vmatpush3.bf16.msra.mxu1 %v8780_v6  ;;  %12418 = vmatpush3.bf16.msra.mxu0 %v8773_v21 }
0x196a   :  { %12395 = vmatprep.subr.bf16.mxu1 %v16786_v37  ;;  %12419 = vmatprep.subr.bf16.mxu0 %v16786_v37 }
0x196d   :  { %12397 = vmatpush3.bf16.msra.mxu1 %v8781_v27  ;;  %12421 = vmatpush3.bf16.msra.mxu0 %v8774_v34  ;;  %v8811_v34 = vld [vmem:[#allocation2 + $0x3b8] sm:$0xff]  }
0x196e   :  { %12398 = vmatprep.subr.bf16.mxu1 %v16786_v37  ;;  %12422 = vmatprep.subr.bf16.mxu0 %v16786_v37 }
0x1971   :  { %12400 = vmatpush3.bf16.msra.mxu1 %v8782_v1  ;;  %12424 = vmatpush3.bf16.msra.mxu0 %v8775_v38  ;;  %v8224_v1 = vld [vmem:[%s16551_s7 + $0xd] ss:$0 sm:$0xff] }
0x1972   :  { %12401 = vmatprep.subr.bf16.mxu1 %v16786_v37  ;;  %12425 = vmatprep.subr.bf16.mxu0 %v16786_v37 }
0x1975   :  { %12403 = vmatpush3.bf16.msra.mxu1 %v8783_v32  ;;  %12427 = vmatpush3.bf16.msra.mxu0 %v8776_v57 }
0x1976   :  { %12428 = vmatprep.subr.bf16.mxu1 %v16786_v37  ;;  %12452 = vmatprep.subr.bf16.mxu0 %v16786_v37 }
0x1a2b   :  { %v7184_v13 = vpop.f32.mrb[150].mxu1  ;;  %v7296_v55 = vpop.f32.mrb[160].mxu0 }
0x1a2c   :  { %v7185_v15 = vadd.f32 %v8216_v46, %v7184_v13  ;;  %v7297_v56 = vadd.f32 %v8218_v9, %v7296_v55  ;;  %v11022_v51 = vpop.f32.mrb[151].mxu1  ;;  %v11057_v23 = vpop.f32.mrb[161].mxu0  ;;  %v8226_v46 = vld [vmem:[%s16551_s7 + $0xe] ss:$0 sm:$0xff] }
0x1a2e   :  { %v7188_v29 = vmax.f32 %v7185_v15, 0.0  ;;  %v7300_v16 = vmax.f32 %v7297_v56, 0.0 }
0x1a30   :  { %11091 = vmatmul.mubr.f32.vlgmr.msra.gmra.mrb[152].mxu1 %v7300_v16  ;;  %11126 = vmatmul.mubr.f32.vlgmr.msra.gmra.mrb[162].mxu0 %v7188_v29 }
0x1a31   :  { %12430 = vmatpush3.bf16.msra.mxu1 %v8612_v50  ;;  %11160 = vmatprep.mubr.msk.f32.mxu1 %vm16939_vm8, %v16962_v3 }
0x1a32   :  { %12431 = vmatprep.subr.bf16.mxu1 %v16786_v37  ;;  %12454 = vmatpush3.bf16.msra.mxu0 %v8580_v42 }
0x1a33   :  { %12455 = vmatprep.subr.bf16.mxu0 %v16786_v37  ;;  %11195 = vmatprep.mubr.msk.f32.mxu0 %vm16939_vm8, %v16962_v3 }
0x1a35   :  { %12433 = vmatpush3.bf16.msra.mxu1 %v8791_v62 }
0x1a36   :  { %12434 = vmatprep.subr.bf16.mxu1 %v16786_v37  ;;  %12457 = vmatpush3.bf16.msra.mxu0 %v8784_v47 }
0x1a37   :  { %12458 = vmatprep.subr.bf16.mxu0 %v16786_v37 }
0x1a39   :  { %12436 = vmatpush3.bf16.msra.mxu1 %v8792_v12 }
0x1a3a   :  { %12437 = vmatprep.subr.bf16.mxu1 %v16786_v37  ;;  %12460 = vmatpush3.bf16.msra.mxu0 %v8785_v22 }
0x1a3b   :  { %12461 = vmatprep.subr.bf16.mxu0 %v16786_v37 }
0x1a3d   :  { %12439 = vmatpush3.bf16.msra.mxu1 %v8793_v63 }
0x1a3e   :  { %12440 = vmatprep.subr.bf16.mxu1 %v16786_v37  ;;  %12463 = vmatpush3.bf16.msra.mxu0 %v8786_v61 }
0x1a3f   :  { %12464 = vmatprep.subr.bf16.mxu0 %v16786_v37 }
0x1a41   :  { %12442 = vmatpush3.bf16.msra.mxu1 %v8794_v53 }
0x1a42   :  { %12443 = vmatprep.subr.bf16.mxu1 %v16786_v37  ;;  %12466 = vmatpush3.bf16.msra.mxu0 %v8787_v11 }
0x1a43   :  { %12467 = vmatprep.subr.bf16.mxu0 %v16786_v37 }
0x1a45   :  { %12445 = vmatpush3.bf16.msra.mxu1 %v8795_v52 }
0x1a46   :  { %12446 = vmatprep.subr.bf16.mxu1 %v16786_v37  ;;  %12469 = vmatpush3.bf16.msra.mxu0 %v8788_v5 }
0x1a47   :  { %12470 = vmatprep.subr.bf16.mxu0 %v16786_v37 }
0x1a49   :  { %12448 = vmatpush3.bf16.msra.mxu1 %v8796_v36 }
0x1a4a   :  { %12449 = vmatprep.subr.bf16.mxu1 %v16786_v37  ;;  %12472 = vmatpush3.bf16.msra.mxu0 %v8789_v0 }
0x1a4b   :  { %12473 = vmatprep.subr.bf16.mxu0 %v16786_v37 }
0x1a4d   :  { %12451 = vmatpush3.bf16.msra.mxu1 %v8797_v8 }
0x1a4e   :  { %12476 = vmatprep.subr.bf16.mxu1 %v16786_v37  ;;  %12475 = vmatpush3.bf16.msra.mxu0 %v8790_v60 }
0x1a4f   :  { %12500 = vmatprep.subr.bf16.mxu0 %v16786_v37 }
0x1a50   :  { %11161 = vmatmul.mubr.f32.vlgmr.msra.gmra.mrb[154].mxu1 %v6963_v48 }
0x1a51   :  { %11230 = vmatprep.mubr.msk.f32.mxu1 %vm16939_vm8, %v16962_v3  ;;  %12478 = vmatpush3.bf16.msra.mxu1 %v8644_v7 }
0x1a52   :  { %12479 = vmatprep.subr.bf16.mxu1 %v16786_v37 }
0x1a55   :  { %12481 = vmatpush3.bf16.msra.mxu1 %v8798_v31 }
0x1a56   :  { %12482 = vmatprep.subr.bf16.mxu1 %v16786_v37 }
0x1a59   :  { %12484 = vmatpush3.bf16.msra.mxu1 %v8799_v20 }
0x1a5a   :  { %12485 = vmatprep.subr.bf16.mxu1 %v16786_v37 }
0x1a5d   :  { %12487 = vmatpush3.bf16.msra.mxu1 %v8800_v28 }
0x1a5e   :  { %12488 = vmatprep.subr.bf16.mxu1 %v16786_v37 }
0x1a61   :  { %12490 = vmatpush3.bf16.msra.mxu1 %v8801_v35 }
0x1a62   :  { %12491 = vmatprep.subr.bf16.mxu1 %v16786_v37 }
0x1a65   :  { %12493 = vmatpush3.bf16.msra.mxu1 %v8802_v19 }
0x1a66   :  { %12494 = vmatprep.subr.bf16.mxu1 %v16786_v37 }
0x1a69   :  { %12496 = vmatpush3.bf16.msra.mxu1 %v8803_v24 }
0x1a6a   :  { %12497 = vmatprep.subr.bf16.mxu1 %v16786_v37 }
0x1a6d   :  { %12499 = vmatpush3.bf16.msra.mxu1 %v8804_v43 }
0x1b03   :  { %v7433_v45 = vpop.f32.mrb[152].mxu1  ;;  %v7503_v54 = vpop.f32.mrb[162].mxu0 }
0x1b04   :  { %v7504_v4 = vadd.f32 %v7503_v54, %v7433_v45  ;;  %v11092_v30 = vpop.f32.mrb[153].mxu1  ;;  %v11127_v41 = vpop.f32.mrb[163].mxu0 }
0x1b06   :  { %v7515_v44 = vadd.f32 %v8220_v2, %v7504_v4 }
0x1b08   :  { %v7516_v25 = vmax.f32 %v7515_v44, 0.0 }
0x1b0a   :  { %11196 = vmatmul.mubr.f32.vlgmr.msra.gmra.mrb[164].mxu0 %v7516_v25 }
0x1b0b   :  { %11265 = vmatprep.mubr.msk.f32.mxu0 %vm16939_vm8, %v16962_v3  ;;  %12502 = vmatpush3.bf16.msra.mxu0 %v8676_v10  ;;  %v8807_v3 = vld [vmem:[#allocation2 + $0x398] sm:$0xff]  }
0x1b0c   :  { %12503 = vmatprep.subr.bf16.mxu0 %v16786_v37 }
0x1b0f   :  { %12505 = vmatpush3.bf16.msra.mxu0 %v8805_v17 }
0x1b10   :  { %12506 = vmatprep.subr.bf16.mxu0 %v16786_v37 }
0x1b13   :  { %12508 = vmatpush3.bf16.msra.mxu0 %v8806_v40 }
0x1b14   :  { %12509 = vmatprep.subr.bf16.mxu0 %v16786_v37 }
0x1b17   :  { %12511 = vmatpush3.bf16.msra.mxu0 %v8807_v3 }
0x1b18   :  { %12512 = vmatprep.subr.bf16.mxu0 %v16786_v37 }
0x1b1b   :  { %12514 = vmatpush3.bf16.msra.mxu0 %v8808_v39 }
0x1b1c   :  { %12515 = vmatprep.subr.bf16.mxu0 %v16786_v37 }
0x1b1f   :  { %12517 = vmatpush3.bf16.msra.mxu0 %v8809_v14 }
0x1b20   :  { %12518 = vmatprep.subr.bf16.mxu0 %v16786_v37 }
0x1b23   :  { %v7649_v49 = vpop.f32.mrb[154].mxu1  ;;  %12520 = vmatpush3.bf16.msra.mxu0 %v8810_v58 }
0x1b24   :  { %v11162_v33 = vpop.f32.mrb[155].mxu1  ;;  %12521 = vmatprep.subr.bf16.mxu0 %v16786_v37 }
0x1b27   :  { %12523 = vmatpush3.bf16.msra.mxu0 %v8811_v34 }
0x1bdd   :  { %v7719_v59 = vpop.f32.mrb[164].mxu0 }
0x1bde   :  { %v7720_v26 = vadd.f32 %v7719_v59, %v7649_v49  ;;  %v11197_v6 = vpop.f32.mrb[165].mxu0 }
0x1be0   :  { %v7731_v21 = vadd.f32 %v8222_v18, %v7720_v26 }
0x1be2   :  { %v7732_v27 = vmax.f32 %v7731_v21, 0.0 }
0x1be4   :  { %11231 = vmatmul.mubr.f32.vlgmr.msra.gmra.mrb[156].mxu1 %v7732_v27 }
0x1cb7   :  { %v7840_v38 = vpop.f32.mrb[156].mxu1 }
0x1cb8   :  { %v7841_v32 = vadd.f32 %v8224_v1, %v7840_v38  ;;  %v11232_v57 = vpop.f32.mrb[157].mxu1 }
0x1cba   :  { %v7844_v37 = vmax.f32 %v7841_v32, 0.0 }
0x1cbc   :  { %11266 = vmatmul.mubr.f32.vlgmr.msra.gmra.mrb[166].mxu0 %v7844_v37 }
0x1d8f   :  { %v7952_v9 = vpop.f32.mrb[166].mxu0 }
0x1d90   :  { %v7953_v13 = vadd.f32 %v8226_v46, %v7952_v9  ;;  %v11267_v55 = vpop.f32.mrb[167].mxu0 }
0x1d92   :  { %7956 = vst [vmem:[%s16556_s12] sm:$0xff] %v7953_v13 }
0x1d93   :  { %7961 = vsyncpa [#allocation3], 1 }
0x1d94   :  { %7962 = vsyncpa [#allocation5], 1 }

</bundles_post_ra>
